<compile_context>
chip_gen: v7x
topology: tpu7x:2x2x1
jax: 0.10.0
libtpu: 0.0.40
codegen_flags: <defaults>
</compile_context>

<pallas_src>
import functools
import math

import jax
import jax.numpy as jnp
from jax.experimental import pallas as pl
from jax.experimental.pallas import tpu as pltpu


# ---------------------------------------------------------------------------
# Config (bert-small: hidden=512, 4 layers, 8 heads, intermediate=2048).
# Vocab / max-position are shrunk since weights are synthetic.
# ---------------------------------------------------------------------------
CFG = dict(
    vocab=128,
    max_pos=64,
    hidden=512,
    heads=8,
    layers=4,
    intermediate=2048,
    num_labels=3,      # num_labels=[3], num_tasks=1  ->  single classifier Linear(512, 3)
    ln_eps=1e-12,
)


# ---------------------------------------------------------------------------
# Helpers used inside kernels
# ---------------------------------------------------------------------------
def _layernorm(x, g, b, eps):
    mean = jnp.mean(x, axis=-1, keepdims=True)
    var = jnp.mean(jnp.square(x - mean), axis=-1, keepdims=True)
    return (x - mean) * jax.lax.rsqrt(var + eps) * g + b


def _gelu_exact(x):
    # exact (erf) GELU, matching HF BERT's "gelu"
    return 0.5 * x * (1.0 + jax.lax.erf(x * (1.0 / math.sqrt(2.0))))


# ---------------------------------------------------------------------------
# Fused encoder kernel: grid=(L,), hidden state carried in the revisited output block
# ---------------------------------------------------------------------------
def _encoder_kernel(emb_ref, mask_ref, eg_ref, eb_ref,
                    qkvw_ref, qkvb_ref, aow_ref, aob_ref, aog_ref, aobb_ref,
                    iw_ref, ib_ref, ow_ref, ob_ref, og_ref, obb_ref,
                    h_ref, qkv_scr, ctx_scr,
                    *, B, S, nH, Dh, eps):
    H = nH * Dh
    layer = pl.program_id(0)

    # First grid step: embedding LayerNorm initializes the resident hidden state.
    @pl.when(layer == 0)
    def _():
        h_ref[...] = _layernorm(emb_ref[...], eg_ref[...], eb_ref[...], eps
                                ).astype(h_ref.dtype)

    h = h_ref[...]                                   # [B*S, H] f32
    hb = h.astype(jnp.bfloat16)

    # --- fused Q/K/V projection (one MXU call instead of three) ---------------
    qkv_scr[...] = (jnp.dot(hb, qkvw_ref[0], preferred_element_type=jnp.float32)
                    + qkvb_ref[0])                   # [B*S, 3H] f32

    # --- per-(batch, head) attention, fully unrolled (B*nH tiny tiles) --------
    scale = 1.0 / math.sqrt(Dh)
    mask = mask_ref[...]                             # [B, S] additive (-1e9 on pads)
    for b in range(B):
        mb = mask[b:b + 1, :]                        # [1, S] -> broadcast over queries
        rows = pl.ds(b * S, S)
        for hd in range(nH):
            qh = qkv_scr[rows, pl.ds(hd * Dh, Dh)]            # [S, Dh]
            kh = qkv_scr[rows, pl.ds(H + hd * Dh, Dh)]        # [S, Dh]
            vh = qkv_scr[rows, pl.ds(2 * H + hd * Dh, Dh)]    # [S, Dh]
            s = jax.lax.dot_general(qh, kh, (((1,), (1,)), ((), ())),
                                    preferred_element_type=jnp.float32) * scale
            s = s + mb                                        # mask along key axis
            s = s - jnp.max(s, axis=-1, keepdims=True)
            p = jnp.exp(s)
            p = p * pl.reciprocal(jnp.sum(p, axis=-1, keepdims=True), approx=True)
            ctx_scr[rows, pl.ds(hd * Dh, Dh)] = jnp.dot(
                p, vh, preferred_element_type=jnp.float32)

    # --- attention output projection + residual + LN --------------------------
    attn_out = (jnp.dot(ctx_scr[...].astype(jnp.bfloat16), aow_ref[0],
                        preferred_element_type=jnp.float32) + aob_ref[0])
    h = _layernorm(attn_out + h, aog_ref[0], aobb_ref[0], eps)

    # --- FFN: GELU(h @ Wi + bi) @ Wo + bo, residual + LN -----------------------
    inter = (jnp.dot(h.astype(jnp.bfloat16), iw_ref[0],
                     preferred_element_type=jnp.float32) + ib_ref[0])
    inter = _gelu_exact(inter)
    ffn = (jnp.dot(inter.astype(jnp.bfloat16), ow_ref[0],
                   preferred_element_type=jnp.float32) + ob_ref[0])
    h = _layernorm(ffn + h, og_ref[0], obb_ref[0], eps)

    h_ref[...] = h.astype(h_ref.dtype)


# ---------------------------------------------------------------------------
# Fused pooler + classifier head (single-block kernel)
# ---------------------------------------------------------------------------
def _head_kernel(cls_ref, pw_ref, pb_ref, cw_ref, cb_ref, o_ref):
    pooled = jnp.tanh(jnp.dot(cls_ref[...].astype(jnp.bfloat16), pw_ref[...],
                              preferred_element_type=jnp.float32) + pb_ref[...])
    logits = jnp.dot(pooled.astype(jnp.bfloat16), cw_ref[...],
                     preferred_element_type=jnp.float32) + cb_ref[...]
    o_ref[...] = logits.astype(o_ref.dtype)


# ---------------------------------------------------------------------------
# Parameter initialization (deterministic, synthetic — no checkpoint load)
# ---------------------------------------------------------------------------
def init_params(key, cfg):
    H, I, V, P, L = (cfg["hidden"], cfg["intermediate"], cfg["vocab"],
                     cfg["max_pos"], cfg["layers"])

    def nrm(k, shape):
        return (0.02 * jax.random.normal(k, shape)).astype(jnp.float32)

    keys = iter(jax.random.split(key, 5 + 4 * L))
    params = dict(
        word_emb=nrm(next(keys), (V, H)),
        pos_emb=nrm(next(keys), (P, H)),
        type_emb=nrm(next(keys), (2, H)),
        emb_ln_g=jnp.ones((1, H), jnp.float32),
        emb_ln_b=jnp.zeros((1, H), jnp.float32),
        pool_w=nrm(next(keys), (H, H)).astype(jnp.bfloat16),
        pool_b=jnp.zeros((1, H), jnp.float32),
        cls_w=nrm(next(keys), (H, cfg["num_labels"])).astype(jnp.bfloat16),
        cls_b=jnp.zeros((1, cfg["num_labels"]), jnp.float32),
    )
    qkv_w, ao_w, i_w, o_w = [], [], [], []
    for _ in range(L):
        qkv_w.append(nrm(next(keys), (H, 3 * H)))   # concat of Wq|Wk|Wv, pre-transposed
        ao_w.append(nrm(next(keys), (H, H)))
        i_w.append(nrm(next(keys), (H, I)))
        o_w.append(nrm(next(keys), (I, H)))
    params.update(
        qkv_w=jnp.stack(qkv_w).astype(jnp.bfloat16),        # [L, H, 3H]
        qkv_b=jnp.zeros((L, 1, 3 * H), jnp.float32),
        ao_w=jnp.stack(ao_w).astype(jnp.bfloat16),          # [L, H, H]
        ao_b=jnp.zeros((L, 1, H), jnp.float32),
        ao_ln_g=jnp.ones((L, 1, H), jnp.float32),
        ao_ln_b=jnp.zeros((L, 1, H), jnp.float32),
        i_w=jnp.stack(i_w).astype(jnp.bfloat16),            # [L, H, I]
        i_b=jnp.zeros((L, 1, I), jnp.float32),
        o_w=jnp.stack(o_w).astype(jnp.bfloat16),            # [L, I, H]
        o_b=jnp.zeros((L, 1, H), jnp.float32),
        o_ln_g=jnp.ones((L, 1, H), jnp.float32),
        o_ln_b=jnp.zeros((L, 1, H), jnp.float32),
    )
    return params


# ---------------------------------------------------------------------------
# Forward pass
# ---------------------------------------------------------------------------
def bert_finetune_forward(params, input_ids, attention_mask, cfg=CFG):
    B, S = input_ids.shape
    H, nH, L, I = cfg["hidden"], cfg["heads"], cfg["layers"], cfg["intermediate"]
    Dh = H // nH
    M = B * S

    # Embedding gather (JAX glue), token_type_ids default to all-zero as in HF.
    emb = (params["word_emb"][input_ids]
           + params["pos_emb"][jnp.arange(S)][None, :, :]
           + params["type_emb"][0][None, None, :]).reshape(M, H).astype(jnp.float32)

    # Additive attention mask, kept compact as [B, S] (no per-head broadcast in HBM).
    add_mask = (1.0 - attention_mask.astype(jnp.float32)) * -1e9

    kernel = functools.partial(_encoder_kernel, B=B, S=S, nH=nH, Dh=Dh,
                               eps=cfg["ln_eps"])

    enc = pl.pallas_call(
        kernel,
        out_shape=jax.ShapeDtypeStruct((M, H), jnp.float32),
        grid_spec=pltpu.PrefetchScalarGridSpec(
            num_scalar_prefetch=0,
            grid=(L,),
            in_specs=[
                pl.BlockSpec((M, H), lambda l: (0, 0)),            # emb (loaded once)
                pl.BlockSpec((B, S), lambda l: (0, 0)),            # additive mask
                pl.BlockSpec((1, H), lambda l: (0, 0)),            # emb LN gamma
                pl.BlockSpec((1, H), lambda l: (0, 0)),            # emb LN beta
                pl.BlockSpec((1, H, 3 * H), lambda l: (l, 0, 0)),  # qkv_w  (bf16)
                pl.BlockSpec((1, 1, 3 * H), lambda l: (l, 0, 0)),  # qkv_b
                pl.BlockSpec((1, H, H), lambda l: (l, 0, 0)),      # ao_w   (bf16)
                pl.BlockSpec((1, 1, H), lambda l: (l, 0, 0)),      # ao_b
                pl.BlockSpec((1, 1, H), lambda l: (l, 0, 0)),      # ao_ln_g
                pl.BlockSpec((1, 1, H), lambda l: (l, 0, 0)),      # ao_ln_b
                pl.BlockSpec((1, H, I), lambda l: (l, 0, 0)),      # i_w    (bf16)
                pl.BlockSpec((1, 1, I), lambda l: (l, 0, 0)),      # i_b
                pl.BlockSpec((1, I, H), lambda l: (l, 0, 0)),      # o_w    (bf16)
                pl.BlockSpec((1, 1, H), lambda l: (l, 0, 0)),      # o_b
                pl.BlockSpec((1, 1, H), lambda l: (l, 0, 0)),      # o_ln_g
                pl.BlockSpec((1, 1, H), lambda l: (l, 0, 0)),      # o_ln_b
            ],
            out_specs=pl.BlockSpec((M, H), lambda l: (0, 0)),      # resident hidden state
            scratch_shapes=[
                pltpu.VMEM((M, 3 * H), jnp.float32),               # fused QKV
                pltpu.VMEM((M, H), jnp.float32),                   # attention context
            ],
        ),
        compiler_params=pltpu.CompilerParams(
            # layer axis carries the hidden state -> sequential
            dimension_semantics=("arbitrary",),
            # room for bf16 layer-weight double-buffering (~12 MiB) on all generations,
            # still well under v7x's 64 MiB physical VMEM
            vmem_limit_bytes=48 * 1024 * 1024,
        ),
    )(emb, add_mask, params["emb_ln_g"], params["emb_ln_b"],
      params["qkv_w"], params["qkv_b"], params["ao_w"], params["ao_b"],
      params["ao_ln_g"], params["ao_ln_b"], params["i_w"], params["i_b"],
      params["o_w"], params["o_b"], params["o_ln_g"], params["o_ln_b"])

    # [CLS] token per batch element, then fused pooler (tanh) + classifier.
    cls_tok = enc.reshape(B, S, H)[:, 0, :]                         # [B, H]
    logits = pl.pallas_call(
        _head_kernel,
        out_shape=jax.ShapeDtypeStruct((B, cfg["num_labels"]), jnp.float32),
        in_specs=[pl.BlockSpec(memory_space=pltpu.MemorySpace.VMEM)] * 5,
        out_specs=pl.BlockSpec(memory_space=pltpu.MemorySpace.VMEM),
    )(cls_tok, params["pool_w"], params["pool_b"], params["cls_w"], params["cls_b"])
    return logits


# ---------------------------------------------------------------------------
if __name__ == "__main__":
    key = jax.random.PRNGKey(0)
    pkey, ikey = jax.random.split(key)

    params = init_params(pkey, CFG)

    B, S = 2, 8
    input_ids = jax.random.randint(ikey, (B, S), 0, CFG["vocab"], dtype=jnp.int32)
    lengths = jnp.array([8, 5], dtype=jnp.int32)
    attention_mask = (jnp.arange(S)[None, :] < lengths[:, None]).astype(jnp.int32)

    fwd = jax.jit(lambda p, ids, m: bert_finetune_forward(p, ids, m))
    logits = fwd(params, input_ids, attention_mask)
    jax.block_until_ready(logits)

    assert logits.shape == (B, CFG["num_labels"])
    assert logits.dtype == jnp.float32
    assert bool(jnp.all(jnp.isfinite(logits)))
    print("KERNEL_OK")
</pallas_src>

<mosaic_0001>
module attributes {stable_mosaic.version = 11 : i64} {
  func.func @_head_kernel(%arg0: memref<2x512xf32, #tpu.memory_space<vmem>>, %arg1: memref<512x512xbf16, #tpu.memory_space<vmem>>, %arg2: memref<1x512xf32, #tpu.memory_space<vmem>>, %arg3: memref<512x3xbf16, #tpu.memory_space<vmem>>, %arg4: memref<1x3xf32, #tpu.memory_space<vmem>>, %arg5: memref<2x3xf32, #tpu.memory_space<vmem>>) attributes {dimension_semantics = [], scalar_prefetch = 0 : i64, scratch_operands = 0 : i64, tpu.core_type = #tpu.core_type<tc>} {
    %c0 = arith.constant 0 : index
    %c0_0 = arith.constant 0 : index
    %0 = vector.load %arg0[%c0, %c0_0] : memref<2x512xf32, #tpu.memory_space<vmem>>, vector<2x512xf32>
    %1 = arith.truncf %0 : vector<2x512xf32> to vector<2x512xbf16>
    %c0_1 = arith.constant 0 : index
    %c0_2 = arith.constant 0 : index
    %2 = vector.load %arg1[%c0_1, %c0_2] : memref<512x512xbf16, #tpu.memory_space<vmem>>, vector<512x512xbf16>
    %cst = arith.constant dense<0.000000e+00> : vector<2x512xf32>
    %3 = tpu.matmul %1, %2, %cst {dimension_numbers = #tpu.dot_dimension_numbers<[1], [0], [0], [1], [0, 0, 1, 1], [], []>} : vector<2x512xbf16>, vector<512x512xbf16>, vector<2x512xf32> -> vector<2x512xf32>
    %c0_3 = arith.constant 0 : index
    %c0_4 = arith.constant 0 : index
    %4 = vector.load %arg2[%c0_3, %c0_4] : memref<1x512xf32, #tpu.memory_space<vmem>>, vector<1x512xf32>
    %5 = vector.broadcast %4 : vector<1x512xf32> to vector<2x512xf32>
    %6 = arith.addf %3, %5 : vector<2x512xf32>
    %7 = math.tanh %6 : vector<2x512xf32>
    %8 = arith.truncf %7 : vector<2x512xf32> to vector<2x512xbf16>
    %c0_5 = arith.constant 0 : index
    %c0_6 = arith.constant 0 : index
    %9 = vector.load %arg3[%c0_5, %c0_6] : memref<512x3xbf16, #tpu.memory_space<vmem>>, vector<512x3xbf16>
    %cst_7 = arith.constant dense<0.000000e+00> : vector<2x3xf32>
    %10 = tpu.matmul %8, %9, %cst_7 {dimension_numbers = #tpu.dot_dimension_numbers<[1], [0], [0], [1], [0, 0, 1, 1], [], []>} : vector<2x512xbf16>, vector<512x3xbf16>, vector<2x3xf32> -> vector<2x3xf32>
    %c0_8 = arith.constant 0 : index
    %c0_9 = arith.constant 0 : index
    %11 = vector.load %arg4[%c0_8, %c0_9] : memref<1x3xf32, #tpu.memory_space<vmem>>, vector<1x3xf32>
    %12 = vector.broadcast %11 : vector<1x3xf32> to vector<2x3xf32>
    %13 = arith.addf %10, %12 : vector<2x3xf32>
    %c0_10 = arith.constant 0 : index
    %c0_11 = arith.constant 0 : index
    %14 = vector.load %arg5[%c0_10, %c0_11] : memref<2x3xf32, #tpu.memory_space<vmem>>, vector<2x3xf32>
    tpu.vector_store %arg5[%c0_10, %c0_11], %13 {strides = array<i32>} : memref<2x3xf32, #tpu.memory_space<vmem>>, vector<2x3xf32>,
    return
  }
}

module attributes {stable_mosaic.version = 11 : i64} {
  func.func @_encoder_kernel(%arg0: i32, %arg1: memref<16x512xf32, #tpu.memory_space<vmem>>, %arg2: memref<2x8xf32, #tpu.memory_space<vmem>>, %arg3: memref<1x512xf32, #tpu.memory_space<vmem>>, %arg4: memref<1x512xf32, #tpu.memory_space<vmem>>, %arg5: memref<1x512x1536xbf16, #tpu.memory_space<vmem>>, %arg6: memref<1x1x1536xf32, #tpu.memory_space<vmem>>, %arg7: memref<1x512x512xbf16, #tpu.memory_space<vmem>>, %arg8: memref<1x1x512xf32, #tpu.memory_space<vmem>>, %arg9: memref<1x1x512xf32, #tpu.memory_space<vmem>>, %arg10: memref<1x1x512xf32, #tpu.memory_space<vmem>>, %arg11: memref<1x512x2048xbf16, #tpu.memory_space<vmem>>, %arg12: memref<1x1x2048xf32, #tpu.memory_space<vmem>>, %arg13: memref<1x2048x512xbf16, #tpu.memory_space<vmem>>, %arg14: memref<1x1x512xf32, #tpu.memory_space<vmem>>, %arg15: memref<1x1x512xf32, #tpu.memory_space<vmem>>, %arg16: memref<1x1x512xf32, #tpu.memory_space<vmem>>, %arg17: memref<16x512xf32, #tpu.memory_space<vmem>>, %arg18: memref<16x1536xf32, #tpu.memory_space<vmem>>, %arg19: memref<16x512xf32, #tpu.memory_space<vmem>>) attributes {dimension_semantics = [#tpu.dimension_semantics<arbitrary>], iteration_bounds = array<i64: 4>, scalar_prefetch = 0 : i64, scratch_operands = 2 : i64, tpu.core_type = #tpu.core_type<tc>, window_params = [{pipeline_mode = #tpu.pipeline_mode<synchronous>, transform_indices = @transform_0, window_bounds = array<i64: 16, 512>}, {pipeline_mode = #tpu.pipeline_mode<synchronous>, transform_indices = @transform_1, window_bounds = array<i64: 2, 8>}, {pipeline_mode = #tpu.pipeline_mode<synchronous>, transform_indices = @transform_2, window_bounds = array<i64: 1, 512>}, {pipeline_mode = #tpu.pipeline_mode<synchronous>, transform_indices = @transform_3, window_bounds = array<i64: 1, 512>}, {transform_indices = @transform_4, window_bounds = array<i64: 1, 512, 1536>}, {transform_indices = @transform_5, window_bounds = array<i64: 1, 1, 1536>}, {transform_indices = @transform_6, window_bounds = array<i64: 1, 512, 512>}, {transform_indices = @transform_7, window_bounds = array<i64: 1, 1, 512>}, {transform_indices = @transform_8, window_bounds = array<i64: 1, 1, 512>}, {transform_indices = @transform_9, window_bounds = array<i64: 1, 1, 512>}, {transform_indices = @transform_10, window_bounds = array<i64: 1, 512, 2048>}, {transform_indices = @transform_11, window_bounds = array<i64: 1, 1, 2048>}, {transform_indices = @transform_12, window_bounds = array<i64: 1, 2048, 512>}, {transform_indices = @transform_13, window_bounds = array<i64: 1, 1, 512>}, {transform_indices = @transform_14, window_bounds = array<i64: 1, 1, 512>}, {transform_indices = @transform_15, window_bounds = array<i64: 1, 1, 512>}, {pipeline_mode = #tpu.pipeline_mode<synchronous>, transform_indices = @transform_16, window_bounds = array<i64: 16, 512>}]} {
    %c0_i32 = arith.constant 0 : i32
    %0 = arith.cmpi eq, %arg0, %c0_i32 : i32
    %1 = arith.extui %0 : i1 to i32
    %c0_i32_0 = arith.constant 0 : i32
    %2 = arith.cmpi ne, %1, %c0_i32_0 : i32
    scf.if %2 {
      %c0_246 = arith.constant 0 : index
      %c0_247 = arith.constant 0 : index
      %424 = vector.load %arg1[%c0_246, %c0_247] : memref<16x512xf32, #tpu.memory_space<vmem>>, vector<16x512xf32>
      %c0_248 = arith.constant 0 : index
      %c0_249 = arith.constant 0 : index
      %425 = vector.load %arg3[%c0_248, %c0_249] : memref<1x512xf32, #tpu.memory_space<vmem>>, vector<1x512xf32>
      %c0_250 = arith.constant 0 : index
      %c0_251 = arith.constant 0 : index
      %426 = vector.load %arg4[%c0_250, %c0_251] : memref<1x512xf32, #tpu.memory_space<vmem>>, vector<1x512xf32>
      %cst_252 = arith.constant dense<0.000000e+00> : vector<16xf32>
      %427 = vector.multi_reduction <add>, %424, %cst_252 [1] : vector<16x512xf32> to vector<16xf32>
      %428 = vector.shape_cast %427 : vector<16xf32> to vector<16x1xf32>
      %cst_253 = arith.constant 5.120000e+02 : f32
      %429 = vector.broadcast %cst_253 : f32 to vector<16x1xf32>
      %430 = arith.divf %428, %429 : vector<16x1xf32>
      %431 = vector.broadcast %430 : vector<16x1xf32> to vector<16x512xf32>
      %432 = arith.subf %424, %431 : vector<16x512xf32>
      %433 = arith.mulf %432, %432 : vector<16x512xf32>
      %cst_254 = arith.constant dense<0.000000e+00> : vector<16xf32>
      %434 = vector.multi_reduction <add>, %433, %cst_254 [1] : vector<16x512xf32> to vector<16xf32>
      %435 = vector.shape_cast %434 : vector<16xf32> to vector<16x1xf32>
      %cst_255 = arith.constant 5.120000e+02 : f32
      %436 = vector.broadcast %cst_255 : f32 to vector<16x1xf32>
      %437 = arith.divf %435, %436 : vector<16x1xf32>
      %438 = vector.broadcast %430 : vector<16x1xf32> to vector<16x512xf32>
      %439 = arith.subf %424, %438 : vector<16x512xf32>
      %cst_256 = arith.constant 9.99999996E-13 : f32
      %440 = vector.broadcast %cst_256 : f32 to vector<16x1xf32>
      %441 = arith.addf %437, %440 : vector<16x1xf32>
      %442 = math.rsqrt %441 : vector<16x1xf32>
      %443 = vector.broadcast %442 : vector<16x1xf32> to vector<16x512xf32>
      %444 = arith.mulf %439, %443 : vector<16x512xf32>
      %445 = vector.broadcast %425 : vector<1x512xf32> to vector<16x512xf32>
      %446 = arith.mulf %444, %445 : vector<16x512xf32>
      %447 = vector.broadcast %426 : vector<1x512xf32> to vector<16x512xf32>
      %448 = arith.addf %446, %447 : vector<16x512xf32>
      %c0_257 = arith.constant 0 : index
      %c0_258 = arith.constant 0 : index
      %449 = vector.load %arg17[%c0_257, %c0_258] : memref<16x512xf32, #tpu.memory_space<vmem>>, vector<16x512xf32>
      tpu.vector_store %arg17[%c0_257, %c0_258], %448 {strides = array<i32>} : memref<16x512xf32, #tpu.memory_space<vmem>>, vector<16x512xf32>,
    } else {
    }
    %c0 = arith.constant 0 : index
    %c0_1 = arith.constant 0 : index
    %3 = vector.load %arg17[%c0, %c0_1] : memref<16x512xf32, #tpu.memory_space<vmem>>, vector<16x512xf32>
    %4 = arith.truncf %3 : vector<16x512xf32> to vector<16x512xbf16>
    %c0_2 = arith.constant 0 : index
    %c0_3 = arith.constant 0 : index
    %c0_4 = arith.constant 0 : index
    %5 = vector.load %arg5[%c0_2, %c0_3, %c0_4] : memref<1x512x1536xbf16, #tpu.memory_space<vmem>>, vector<1x512x1536xbf16>
    %6 = vector.shape_cast %5 : vector<1x512x1536xbf16> to vector<512x1536xbf16>
    %cst = arith.constant dense<0.000000e+00> : vector<16x1536xf32>
    %7 = tpu.matmul %4, %6, %cst {dimension_numbers = #tpu.dot_dimension_numbers<[1], [0], [0], [1], [0, 0, 1, 1], [], []>} : vector<16x512xbf16>, vector<512x1536xbf16>, vector<16x1536xf32> -> vector<16x1536xf32>
    %c0_5 = arith.constant 0 : index
    %c0_6 = arith.constant 0 : index
    %c0_7 = arith.constant 0 : index
    %8 = vector.load %arg6[%c0_5, %c0_6, %c0_7] : memref<1x1x1536xf32, #tpu.memory_space<vmem>>, vector<1x1x1536xf32>
    %9 = vector.shape_cast %8 : vector<1x1x1536xf32> to vector<1x1536xf32>
    %10 = vector.broadcast %9 : vector<1x1536xf32> to vector<16x1536xf32>
    %11 = arith.addf %7, %10 : vector<16x1536xf32>
    %c0_8 = arith.constant 0 : index
    %c0_9 = arith.constant 0 : index
    %12 = vector.load %arg18[%c0_8, %c0_9] : memref<16x1536xf32, #tpu.memory_space<vmem>>, vector<16x1536xf32>
    tpu.vector_store %arg18[%c0_8, %c0_9], %11 {strides = array<i32>} : memref<16x1536xf32, #tpu.memory_space<vmem>>, vector<16x1536xf32>,
    %c0_10 = arith.constant 0 : index
    %c0_11 = arith.constant 0 : index
    %13 = vector.load %arg2[%c0_10, %c0_11] : memref<2x8xf32, #tpu.memory_space<vmem>>, vector<2x8xf32>
    %14 = vector.extract_strided_slice %13 {offsets = [0, 0], sizes = [1, 8], strides = [1, 1]} : vector<2x8xf32> to vector<1x8xf32>
    %c0_12 = arith.constant 0 : index
    %c0_13 = arith.constant 0 : index
    %15 = vector.load %arg18[%c0_12, %c0_13] : memref<16x1536xf32, #tpu.memory_space<vmem>>, vector<8x64xf32>
    %c0_14 = arith.constant 0 : index
    %c512 = arith.constant 512 : index
    %16 = vector.load %arg18[%c0_14, %c512] : memref<16x1536xf32, #tpu.memory_space<vmem>>, vector<8x64xf32>
    %c0_15 = arith.constant 0 : index
    %c1024 = arith.constant 1024 : index
    %17 = vector.load %arg18[%c0_15, %c1024] : memref<16x1536xf32, #tpu.memory_space<vmem>>, vector<8x64xf32>
    %cst_16 = arith.constant dense<0.000000e+00> : vector<8x8xf32>
    %18 = tpu.matmul %15, %16, %cst_16 {dimension_numbers = #tpu.dot_dimension_numbers<[1], [1], [0], [0], [0, 0, 1, 0], [], []>} : vector<8x64xf32>, vector<8x64xf32>, vector<8x8xf32> -> vector<8x8xf32>
    %cst_17 = arith.constant 1.250000e-01 : f32
    %19 = vector.broadcast %cst_17 : f32 to vector<8x8xf32>
    %20 = arith.mulf %18, %19 : vector<8x8xf32>
    %21 = vector.broadcast %14 : vector<1x8xf32> to vector<8x8xf32>
    %22 = arith.addf %20, %21 : vector<8x8xf32>
    %cst_18 = arith.constant dense<0xFF800000> : vector<8xf32>
    %23 = vector.multi_reduction <maximumf>, %22, %cst_18 [1] : vector<8x8xf32> to vector<8xf32>
    %24 = vector.shape_cast %23 : vector<8xf32> to vector<8x1xf32>
    %25 = vector.broadcast %24 : vector<8x1xf32> to vector<8x8xf32>
    %26 = arith.subf %22, %25 : vector<8x8xf32>
    %27 = math.exp %26 : vector<8x8xf32>
    %cst_19 = arith.constant dense<0.000000e+00> : vector<8xf32>
    %28 = vector.multi_reduction <add>, %27, %cst_19 [1] : vector<8x8xf32> to vector<8xf32>
    %29 = vector.shape_cast %28 : vector<8xf32> to vector<8x1xf32>
    %30 = tpu.reciprocal %29 {approx = true} : vector<8x1xf32> -> vector<8x1xf32>
    %31 = vector.broadcast %30 : vector<8x1xf32> to vector<8x8xf32>
    %32 = arith.mulf %27, %31 : vector<8x8xf32>
    %cst_20 = arith.constant dense<0.000000e+00> : vector<8x64xf32>
    %33 = tpu.matmul %32, %17, %cst_20 {dimension_numbers = #tpu.dot_dimension_numbers<[1], [0], [0], [1], [0, 0, 1, 1], [], []>} : vector<8x8xf32>, vector<8x64xf32>, vector<8x64xf32> -> vector<8x64xf32>
    %c0_21 = arith.constant 0 : index
    %c0_22 = arith.constant 0 : index
    %34 = vector.load %arg19[%c0_21, %c0_22] : memref<16x512xf32, #tpu.memory_space<vmem>>, vector<8x64xf32>
    tpu.vector_store %arg19[%c0_21, %c0_22], %33 {strides = array<i32>} : memref<16x512xf32, #tpu.memory_space<vmem>>, vector<8x64xf32>,
    %c0_23 = arith.constant 0 : index
    %c64 = arith.constant 64 : index
    %35 = vector.load %arg18[%c0_23, %c64] : memref<16x1536xf32, #tpu.memory_space<vmem>>, vector<8x64xf32>
    %c0_24 = arith.constant 0 : index
    %c576 = arith.constant 576 : index
    %36 = vector.load %arg18[%c0_24, %c576] : memref<16x1536xf32, #tpu.memory_space<vmem>>, vector<8x64xf32>
    %c0_25 = arith.constant 0 : index
    %c1088 = arith.constant 1088 : index
    %37 = vector.load %arg18[%c0_25, %c1088] : memref<16x1536xf32, #tpu.memory_space<vmem>>, vector<8x64xf32>
    %cst_26 = arith.constant dense<0.000000e+00> : vector<8x8xf32>
    %38 = tpu.matmul %35, %36, %cst_26 {dimension_numbers = #tpu.dot_dimension_numbers<[1], [1], [0], [0], [0, 0, 1, 0], [], []>} : vector<8x64xf32>, vector<8x64xf32>, vector<8x8xf32> -> vector<8x8xf32>
    %cst_27 = arith.constant 1.250000e-01 : f32
    %39 = vector.broadcast %cst_27 : f32 to vector<8x8xf32>
    %40 = arith.mulf %38, %39 : vector<8x8xf32>
    %41 = vector.broadcast %14 : vector<1x8xf32> to vector<8x8xf32>
    %42 = arith.addf %40, %41 : vector<8x8xf32>
    %cst_28 = arith.constant dense<0xFF800000> : vector<8xf32>
    %43 = vector.multi_reduction <maximumf>, %42, %cst_28 [1] : vector<8x8xf32> to vector<8xf32>
    %44 = vector.shape_cast %43 : vector<8xf32> to vector<8x1xf32>
    %45 = vector.broadcast %44 : vector<8x1xf32> to vector<8x8xf32>
    %46 = arith.subf %42, %45 : vector<8x8xf32>
    %47 = math.exp %46 : vector<8x8xf32>
    %cst_29 = arith.constant dense<0.000000e+00> : vector<8xf32>
    %48 = vector.multi_reduction <add>, %47, %cst_29 [1] : vector<8x8xf32> to vector<8xf32>
    %49 = vector.shape_cast %48 : vector<8xf32> to vector<8x1xf32>
    %50 = tpu.reciprocal %49 {approx = true} : vector<8x1xf32> -> vector<8x1xf32>
    %51 = vector.broadcast %50 : vector<8x1xf32> to vector<8x8xf32>
    %52 = arith.mulf %47, %51 : vector<8x8xf32>
    %cst_30 = arith.constant dense<0.000000e+00> : vector<8x64xf32>
    %53 = tpu.matmul %52, %37, %cst_30 {dimension_numbers = #tpu.dot_dimension_numbers<[1], [0], [0], [1], [0, 0, 1, 1], [], []>} : vector<8x8xf32>, vector<8x64xf32>, vector<8x64xf32> -> vector<8x64xf32>
    %c0_31 = arith.constant 0 : index
    %c64_32 = arith.constant 64 : index
    %54 = vector.load %arg19[%c0_31, %c64_32] : memref<16x512xf32, #tpu.memory_space<vmem>>, vector<8x64xf32>
    tpu.vector_store %arg19[%c0_31, %c64_32], %53 {strides = array<i32>} : memref<16x512xf32, #tpu.memory_space<vmem>>, vector<8x64xf32>,
    %c0_33 = arith.constant 0 : index
    %c128 = arith.constant 128 : index
    %55 = vector.load %arg18[%c0_33, %c128] : memref<16x1536xf32, #tpu.memory_space<vmem>>, vector<8x64xf32>
    %c0_34 = arith.constant 0 : index
    %c640 = arith.constant 640 : index
    %56 = vector.load %arg18[%c0_34, %c640] : memref<16x1536xf32, #tpu.memory_space<vmem>>, vector<8x64xf32>
    %c0_35 = arith.constant 0 : index
    %c1152 = arith.constant 1152 : index
    %57 = vector.load %arg18[%c0_35, %c1152] : memref<16x1536xf32, #tpu.memory_space<vmem>>, vector<8x64xf32>
    %cst_36 = arith.constant dense<0.000000e+00> : vector<8x8xf32>
    %58 = tpu.matmul %55, %56, %cst_36 {dimension_numbers = #tpu.dot_dimension_numbers<[1], [1], [0], [0], [0, 0, 1, 0], [], []>} : vector<8x64xf32>, vector<8x64xf32>, vector<8x8xf32> -> vector<8x8xf32>
    %cst_37 = arith.constant 1.250000e-01 : f32
    %59 = vector.broadcast %cst_37 : f32 to vector<8x8xf32>
    %60 = arith.mulf %58, %59 : vector<8x8xf32>
    %61 = vector.broadcast %14 : vector<1x8xf32> to vector<8x8xf32>
    %62 = arith.addf %60, %61 : vector<8x8xf32>
    %cst_38 = arith.constant dense<0xFF800000> : vector<8xf32>
    %63 = vector.multi_reduction <maximumf>, %62, %cst_38 [1] : vector<8x8xf32> to vector<8xf32>
    %64 = vector.shape_cast %63 : vector<8xf32> to vector<8x1xf32>
    %65 = vector.broadcast %64 : vector<8x1xf32> to vector<8x8xf32>
    %66 = arith.subf %62, %65 : vector<8x8xf32>
    %67 = math.exp %66 : vector<8x8xf32>
    %cst_39 = arith.constant dense<0.000000e+00> : vector<8xf32>
    %68 = vector.multi_reduction <add>, %67, %cst_39 [1] : vector<8x8xf32> to vector<8xf32>
    %69 = vector.shape_cast %68 : vector<8xf32> to vector<8x1xf32>
    %70 = tpu.reciprocal %69 {approx = true} : vector<8x1xf32> -> vector<8x1xf32>
    %71 = vector.broadcast %70 : vector<8x1xf32> to vector<8x8xf32>
    %72 = arith.mulf %67, %71 : vector<8x8xf32>
    %cst_40 = arith.constant dense<0.000000e+00> : vector<8x64xf32>
    %73 = tpu.matmul %72, %57, %cst_40 {dimension_numbers = #tpu.dot_dimension_numbers<[1], [0], [0], [1], [0, 0, 1, 1], [], []>} : vector<8x8xf32>, vector<8x64xf32>, vector<8x64xf32> -> vector<8x64xf32>
    %c0_41 = arith.constant 0 : index
    %c128_42 = arith.constant 128 : index
    %74 = vector.load %arg19[%c0_41, %c128_42] : memref<16x512xf32, #tpu.memory_space<vmem>>, vector<8x64xf32>
    tpu.vector_store %arg19[%c0_41, %c128_42], %73 {strides = array<i32>} : memref<16x512xf32, #tpu.memory_space<vmem>>, vector<8x64xf32>,
    %c0_43 = arith.constant 0 : index
    %c192 = arith.constant 192 : index
    %75 = vector.load %arg18[%c0_43, %c192] : memref<16x1536xf32, #tpu.memory_space<vmem>>, vector<8x64xf32>
    %c0_44 = arith.constant 0 : index
    %c704 = arith.constant 704 : index
    %76 = vector.load %arg18[%c0_44, %c704] : memref<16x1536xf32, #tpu.memory_space<vmem>>, vector<8x64xf32>
    %c0_45 = arith.constant 0 : index
    %c1216 = arith.constant 1216 : index
    %77 = vector.load %arg18[%c0_45, %c1216] : memref<16x1536xf32, #tpu.memory_space<vmem>>, vector<8x64xf32>
    %cst_46 = arith.constant dense<0.000000e+00> : vector<8x8xf32>
    %78 = tpu.matmul %75, %76, %cst_46 {dimension_numbers = #tpu.dot_dimension_numbers<[1], [1], [0], [0], [0, 0, 1, 0], [], []>} : vector<8x64xf32>, vector<8x64xf32>, vector<8x8xf32> -> vector<8x8xf32>
    %cst_47 = arith.constant 1.250000e-01 : f32
    %79 = vector.broadcast %cst_47 : f32 to vector<8x8xf32>
    %80 = arith.mulf %78, %79 : vector<8x8xf32>
    %81 = vector.broadcast %14 : vector<1x8xf32> to vector<8x8xf32>
    %82 = arith.addf %80, %81 : vector<8x8xf32>
    %cst_48 = arith.constant dense<0xFF800000> : vector<8xf32>
    %83 = vector.multi_reduction <maximumf>, %82, %cst_48 [1] : vector<8x8xf32> to vector<8xf32>
    %84 = vector.shape_cast %83 : vector<8xf32> to vector<8x1xf32>
    %85 = vector.broadcast %84 : vector<8x1xf32> to vector<8x8xf32>
    %86 = arith.subf %82, %85 : vector<8x8xf32>
    %87 = math.exp %86 : vector<8x8xf32>
    %cst_49 = arith.constant dense<0.000000e+00> : vector<8xf32>
    %88 = vector.multi_reduction <add>, %87, %cst_49 [1] : vector<8x8xf32> to vector<8xf32>
    %89 = vector.shape_cast %88 : vector<8xf32> to vector<8x1xf32>
    %90 = tpu.reciprocal %89 {approx = true} : vector<8x1xf32> -> vector<8x1xf32>
    %91 = vector.broadcast %90 : vector<8x1xf32> to vector<8x8xf32>
    %92 = arith.mulf %87, %91 : vector<8x8xf32>
    %cst_50 = arith.constant dense<0.000000e+00> : vector<8x64xf32>
    %93 = tpu.matmul %92, %77, %cst_50 {dimension_numbers = #tpu.dot_dimension_numbers<[1], [0], [0], [1], [0, 0, 1, 1], [], []>} : vector<8x8xf32>, vector<8x64xf32>, vector<8x64xf32> -> vector<8x64xf32>
    %c0_51 = arith.constant 0 : index
    %c192_52 = arith.constant 192 : index
    %94 = vector.load %arg19[%c0_51, %c192_52] : memref<16x512xf32, #tpu.memory_space<vmem>>, vector<8x64xf32>
    tpu.vector_store %arg19[%c0_51, %c192_52], %93 {strides = array<i32>} : memref<16x512xf32, #tpu.memory_space<vmem>>, vector<8x64xf32>,
    %c0_53 = arith.constant 0 : index
    %c256 = arith.constant 256 : index
    %95 = vector.load %arg18[%c0_53, %c256] : memref<16x1536xf32, #tpu.memory_space<vmem>>, vector<8x64xf32>
    %c0_54 = arith.constant 0 : index
    %c768 = arith.constant 768 : index
    %96 = vector.load %arg18[%c0_54, %c768] : memref<16x1536xf32, #tpu.memory_space<vmem>>, vector<8x64xf32>
    %c0_55 = arith.constant 0 : index
    %c1280 = arith.constant 1280 : index
    %97 = vector.load %arg18[%c0_55, %c1280] : memref<16x1536xf32, #tpu.memory_space<vmem>>, vector<8x64xf32>
    %cst_56 = arith.constant dense<0.000000e+00> : vector<8x8xf32>
    %98 = tpu.matmul %95, %96, %cst_56 {dimension_numbers = #tpu.dot_dimension_numbers<[1], [1], [0], [0], [0, 0, 1, 0], [], []>} : vector<8x64xf32>, vector<8x64xf32>, vector<8x8xf32> -> vector<8x8xf32>
    %cst_57 = arith.constant 1.250000e-01 : f32
    %99 = vector.broadcast %cst_57 : f32 to vector<8x8xf32>
    %100 = arith.mulf %98, %99 : vector<8x8xf32>
    %101 = vector.broadcast %14 : vector<1x8xf32> to vector<8x8xf32>
    %102 = arith.addf %100, %101 : vector<8x8xf32>
    %cst_58 = arith.constant dense<0xFF800000> : vector<8xf32>
    %103 = vector.multi_reduction <maximumf>, %102, %cst_58 [1] : vector<8x8xf32> to vector<8xf32>
    %104 = vector.shape_cast %103 : vector<8xf32> to vector<8x1xf32>
    %105 = vector.broadcast %104 : vector<8x1xf32> to vector<8x8xf32>
    %106 = arith.subf %102, %105 : vector<8x8xf32>
    %107 = math.exp %106 : vector<8x8xf32>
    %cst_59 = arith.constant dense<0.000000e+00> : vector<8xf32>
    %108 = vector.multi_reduction <add>, %107, %cst_59 [1] : vector<8x8xf32> to vector<8xf32>
    %109 = vector.shape_cast %108 : vector<8xf32> to vector<8x1xf32>
    %110 = tpu.reciprocal %109 {approx = true} : vector<8x1xf32> -> vector<8x1xf32>
    %111 = vector.broadcast %110 : vector<8x1xf32> to vector<8x8xf32>
    %112 = arith.mulf %107, %111 : vector<8x8xf32>
    %cst_60 = arith.constant dense<0.000000e+00> : vector<8x64xf32>
    %113 = tpu.matmul %112, %97, %cst_60 {dimension_numbers = #tpu.dot_dimension_numbers<[1], [0], [0], [1], [0, 0, 1, 1], [], []>} : vector<8x8xf32>, vector<8x64xf32>, vector<8x64xf32> -> vector<8x64xf32>
    %c0_61 = arith.constant 0 : index
    %c256_62 = arith.constant 256 : index
    %114 = vector.load %arg19[%c0_61, %c256_62] : memref<16x512xf32, #tpu.memory_space<vmem>>, vector<8x64xf32>
    tpu.vector_store %arg19[%c0_61, %c256_62], %113 {strides = array<i32>} : memref<16x512xf32, #tpu.memory_space<vmem>>, vector<8x64xf32>,
    %c0_63 = arith.constant 0 : index
    %c320 = arith.constant 320 : index
    %115 = vector.load %arg18[%c0_63, %c320] : memref<16x1536xf32, #tpu.memory_space<vmem>>, vector<8x64xf32>
    %c0_64 = arith.constant 0 : index
    %c832 = arith.constant 832 : index
    %116 = vector.load %arg18[%c0_64, %c832] : memref<16x1536xf32, #tpu.memory_space<vmem>>, vector<8x64xf32>
    %c0_65 = arith.constant 0 : index
    %c1344 = arith.constant 1344 : index
    %117 = vector.load %arg18[%c0_65, %c1344] : memref<16x1536xf32, #tpu.memory_space<vmem>>, vector<8x64xf32>
    %cst_66 = arith.constant dense<0.000000e+00> : vector<8x8xf32>
    %118 = tpu.matmul %115, %116, %cst_66 {dimension_numbers = #tpu.dot_dimension_numbers<[1], [1], [0], [0], [0, 0, 1, 0], [], []>} : vector<8x64xf32>, vector<8x64xf32>, vector<8x8xf32> -> vector<8x8xf32>
    %cst_67 = arith.constant 1.250000e-01 : f32
    %119 = vector.broadcast %cst_67 : f32 to vector<8x8xf32>
    %120 = arith.mulf %118, %119 : vector<8x8xf32>
    %121 = vector.broadcast %14 : vector<1x8xf32> to vector<8x8xf32>
    %122 = arith.addf %120, %121 : vector<8x8xf32>
    %cst_68 = arith.constant dense<0xFF800000> : vector<8xf32>
    %123 = vector.multi_reduction <maximumf>, %122, %cst_68 [1] : vector<8x8xf32> to vector<8xf32>
    %124 = vector.shape_cast %123 : vector<8xf32> to vector<8x1xf32>
    %125 = vector.broadcast %124 : vector<8x1xf32> to vector<8x8xf32>
    %126 = arith.subf %122, %125 : vector<8x8xf32>
    %127 = math.exp %126 : vector<8x8xf32>
    %cst_69 = arith.constant dense<0.000000e+00> : vector<8xf32>
    %128 = vector.multi_reduction <add>, %127, %cst_69 [1] : vector<8x8xf32> to vector<8xf32>
    %129 = vector.shape_cast %128 : vector<8xf32> to vector<8x1xf32>
    %130 = tpu.reciprocal %129 {approx = true} : vector<8x1xf32> -> vector<8x1xf32>
    %131 = vector.broadcast %130 : vector<8x1xf32> to vector<8x8xf32>
    %132 = arith.mulf %127, %131 : vector<8x8xf32>
    %cst_70 = arith.constant dense<0.000000e+00> : vector<8x64xf32>
    %133 = tpu.matmul %132, %117, %cst_70 {dimension_numbers = #tpu.dot_dimension_numbers<[1], [0], [0], [1], [0, 0, 1, 1], [], []>} : vector<8x8xf32>, vector<8x64xf32>, vector<8x64xf32> -> vector<8x64xf32>
    %c0_71 = arith.constant 0 : index
    %c320_72 = arith.constant 320 : index
    %134 = vector.load %arg19[%c0_71, %c320_72] : memref<16x512xf32, #tpu.memory_space<vmem>>, vector<8x64xf32>
    tpu.vector_store %arg19[%c0_71, %c320_72], %133 {strides = array<i32>} : memref<16x512xf32, #tpu.memory_space<vmem>>, vector<8x64xf32>,
    %c0_73 = arith.constant 0 : index
    %c384 = arith.constant 384 : index
    %135 = vector.load %arg18[%c0_73, %c384] : memref<16x1536xf32, #tpu.memory_space<vmem>>, vector<8x64xf32>
    %c0_74 = arith.constant 0 : index
    %c896 = arith.constant 896 : index
    %136 = vector.load %arg18[%c0_74, %c896] : memref<16x1536xf32, #tpu.memory_space<vmem>>, vector<8x64xf32>
    %c0_75 = arith.constant 0 : index
    %c1408 = arith.constant 1408 : index
    %137 = vector.load %arg18[%c0_75, %c1408] : memref<16x1536xf32, #tpu.memory_space<vmem>>, vector<8x64xf32>
    %cst_76 = arith.constant dense<0.000000e+00> : vector<8x8xf32>
    %138 = tpu.matmul %135, %136, %cst_76 {dimension_numbers = #tpu.dot_dimension_numbers<[1], [1], [0], [0], [0, 0, 1, 0], [], []>} : vector<8x64xf32>, vector<8x64xf32>, vector<8x8xf32> -> vector<8x8xf32>
    %cst_77 = arith.constant 1.250000e-01 : f32
    %139 = vector.broadcast %cst_77 : f32 to vector<8x8xf32>
    %140 = arith.mulf %138, %139 : vector<8x8xf32>
    %141 = vector.broadcast %14 : vector<1x8xf32> to vector<8x8xf32>
    %142 = arith.addf %140, %141 : vector<8x8xf32>
    %cst_78 = arith.constant dense<0xFF800000> : vector<8xf32>
    %143 = vector.multi_reduction <maximumf>, %142, %cst_78 [1] : vector<8x8xf32> to vector<8xf32>
    %144 = vector.shape_cast %143 : vector<8xf32> to vector<8x1xf32>
    %145 = vector.broadcast %144 : vector<8x1xf32> to vector<8x8xf32>
    %146 = arith.subf %142, %145 : vector<8x8xf32>
    %147 = math.exp %146 : vector<8x8xf32>
    %cst_79 = arith.constant dense<0.000000e+00> : vector<8xf32>
    %148 = vector.multi_reduction <add>, %147, %cst_79 [1] : vector<8x8xf32> to vector<8xf32>
    %149 = vector.shape_cast %148 : vector<8xf32> to vector<8x1xf32>
    %150 = tpu.reciprocal %149 {approx = true} : vector<8x1xf32> -> vector<8x1xf32>
    %151 = vector.broadcast %150 : vector<8x1xf32> to vector<8x8xf32>
    %152 = arith.mulf %147, %151 : vector<8x8xf32>
    %cst_80 = arith.constant dense<0.000000e+00> : vector<8x64xf32>
    %153 = tpu.matmul %152, %137, %cst_80 {dimension_numbers = #tpu.dot_dimension_numbers<[1], [0], [0], [1], [0, 0, 1, 1], [], []>} : vector<8x8xf32>, vector<8x64xf32>, vector<8x64xf32> -> vector<8x64xf32>
    %c0_81 = arith.constant 0 : index
    %c384_82 = arith.constant 384 : index
    %154 = vector.load %arg19[%c0_81, %c384_82] : memref<16x512xf32, #tpu.memory_space<vmem>>, vector<8x64xf32>
    tpu.vector_store %arg19[%c0_81, %c384_82], %153 {strides = array<i32>} : memref<16x512xf32, #tpu.memory_space<vmem>>, vector<8x64xf32>,
    %c0_83 = arith.constant 0 : index
    %c448 = arith.constant 448 : index
    %155 = vector.load %arg18[%c0_83, %c448] : memref<16x1536xf32, #tpu.memory_space<vmem>>, vector<8x64xf32>
    %c0_84 = arith.constant 0 : index
    %c960 = arith.constant 960 : index
    %156 = vector.load %arg18[%c0_84, %c960] : memref<16x1536xf32, #tpu.memory_space<vmem>>, vector<8x64xf32>
    %c0_85 = arith.constant 0 : index
    %c1472 = arith.constant 1472 : index
    %157 = vector.load %arg18[%c0_85, %c1472] : memref<16x1536xf32, #tpu.memory_space<vmem>>, vector<8x64xf32>
    %cst_86 = arith.constant dense<0.000000e+00> : vector<8x8xf32>
    %158 = tpu.matmul %155, %156, %cst_86 {dimension_numbers = #tpu.dot_dimension_numbers<[1], [1], [0], [0], [0, 0, 1, 0], [], []>} : vector<8x64xf32>, vector<8x64xf32>, vector<8x8xf32> -> vector<8x8xf32>
    %cst_87 = arith.constant 1.250000e-01 : f32
    %159 = vector.broadcast %cst_87 : f32 to vector<8x8xf32>
    %160 = arith.mulf %158, %159 : vector<8x8xf32>
    %161 = vector.broadcast %14 : vector<1x8xf32> to vector<8x8xf32>
    %162 = arith.addf %160, %161 : vector<8x8xf32>
    %cst_88 = arith.constant dense<0xFF800000> : vector<8xf32>
    %163 = vector.multi_reduction <maximumf>, %162, %cst_88 [1] : vector<8x8xf32> to vector<8xf32>
    %164 = vector.shape_cast %163 : vector<8xf32> to vector<8x1xf32>
    %165 = vector.broadcast %164 : vector<8x1xf32> to vector<8x8xf32>
    %166 = arith.subf %162, %165 : vector<8x8xf32>
    %167 = math.exp %166 : vector<8x8xf32>
    %cst_89 = arith.constant dense<0.000000e+00> : vector<8xf32>
    %168 = vector.multi_reduction <add>, %167, %cst_89 [1] : vector<8x8xf32> to vector<8xf32>
    %169 = vector.shape_cast %168 : vector<8xf32> to vector<8x1xf32>
    %170 = tpu.reciprocal %169 {approx = true} : vector<8x1xf32> -> vector<8x1xf32>
    %171 = vector.broadcast %170 : vector<8x1xf32> to vector<8x8xf32>
    %172 = arith.mulf %167, %171 : vector<8x8xf32>
    %cst_90 = arith.constant dense<0.000000e+00> : vector<8x64xf32>
    %173 = tpu.matmul %172, %157, %cst_90 {dimension_numbers = #tpu.dot_dimension_numbers<[1], [0], [0], [1], [0, 0, 1, 1], [], []>} : vector<8x8xf32>, vector<8x64xf32>, vector<8x64xf32> -> vector<8x64xf32>
    %c0_91 = arith.constant 0 : index
    %c448_92 = arith.constant 448 : index
    %174 = vector.load %arg19[%c0_91, %c448_92] : memref<16x512xf32, #tpu.memory_space<vmem>>, vector<8x64xf32>
    tpu.vector_store %arg19[%c0_91, %c448_92], %173 {strides = array<i32>} : memref<16x512xf32, #tpu.memory_space<vmem>>, vector<8x64xf32>,
    %175 = vector.extract_strided_slice %13 {offsets = [1, 0], sizes = [1, 8], strides = [1, 1]} : vector<2x8xf32> to vector<1x8xf32>
    %c8 = arith.constant 8 : index
    %c0_93 = arith.constant 0 : index
    %176 = vector.load %arg18[%c8, %c0_93] : memref<16x1536xf32, #tpu.memory_space<vmem>>, vector<8x64xf32>
    %c8_94 = arith.constant 8 : index
    %c512_95 = arith.constant 512 : index
    %177 = vector.load %arg18[%c8_94, %c512_95] : memref<16x1536xf32, #tpu.memory_space<vmem>>, vector<8x64xf32>
    %c8_96 = arith.constant 8 : index
    %c1024_97 = arith.constant 1024 : index
    %178 = vector.load %arg18[%c8_96, %c1024_97] : memref<16x1536xf32, #tpu.memory_space<vmem>>, vector<8x64xf32>
    %cst_98 = arith.constant dense<0.000000e+00> : vector<8x8xf32>
    %179 = tpu.matmul %176, %177, %cst_98 {dimension_numbers = #tpu.dot_dimension_numbers<[1], [1], [0], [0], [0, 0, 1, 0], [], []>} : vector<8x64xf32>, vector<8x64xf32>, vector<8x8xf32> -> vector<8x8xf32>
    %cst_99 = arith.constant 1.250000e-01 : f32
    %180 = vector.broadcast %cst_99 : f32 to vector<8x8xf32>
    %181 = arith.mulf %179, %180 : vector<8x8xf32>
    %182 = vector.broadcast %175 : vector<1x8xf32> to vector<8x8xf32>
    %183 = arith.addf %181, %182 : vector<8x8xf32>
    %cst_100 = arith.constant dense<0xFF800000> : vector<8xf32>
    %184 = vector.multi_reduction <maximumf>, %183, %cst_100 [1] : vector<8x8xf32> to vector<8xf32>
    %185 = vector.shape_cast %184 : vector<8xf32> to vector<8x1xf32>
    %186 = vector.broadcast %185 : vector<8x1xf32> to vector<8x8xf32>
    %187 = arith.subf %183, %186 : vector<8x8xf32>
    %188 = math.exp %187 : vector<8x8xf32>
    %cst_101 = arith.constant dense<0.000000e+00> : vector<8xf32>
    %189 = vector.multi_reduction <add>, %188, %cst_101 [1] : vector<8x8xf32> to vector<8xf32>
    %190 = vector.shape_cast %189 : vector<8xf32> to vector<8x1xf32>
    %191 = tpu.reciprocal %190 {approx = true} : vector<8x1xf32> -> vector<8x1xf32>
    %192 = vector.broadcast %191 : vector<8x1xf32> to vector<8x8xf32>
    %193 = arith.mulf %188, %192 : vector<8x8xf32>
    %cst_102 = arith.constant dense<0.000000e+00> : vector<8x64xf32>
    %194 = tpu.matmul %193, %178, %cst_102 {dimension_numbers = #tpu.dot_dimension_numbers<[1], [0], [0], [1], [0, 0, 1, 1], [], []>} : vector<8x8xf32>, vector<8x64xf32>, vector<8x64xf32> -> vector<8x64xf32>
    %c8_103 = arith.constant 8 : index
    %c0_104 = arith.constant 0 : index
    %195 = vector.load %arg19[%c8_103, %c0_104] : memref<16x512xf32, #tpu.memory_space<vmem>>, vector<8x64xf32>
    tpu.vector_store %arg19[%c8_103, %c0_104], %194 {strides = array<i32>} : memref<16x512xf32, #tpu.memory_space<vmem>>, vector<8x64xf32>,
    %c8_105 = arith.constant 8 : index
    %c64_106 = arith.constant 64 : index
    %196 = vector.load %arg18[%c8_105, %c64_106] : memref<16x1536xf32, #tpu.memory_space<vmem>>, vector<8x64xf32>
    %c8_107 = arith.constant 8 : index
    %c576_108 = arith.constant 576 : index
    %197 = vector.load %arg18[%c8_107, %c576_108] : memref<16x1536xf32, #tpu.memory_space<vmem>>, vector<8x64xf32>
    %c8_109 = arith.constant 8 : index
    %c1088_110 = arith.constant 1088 : index
    %198 = vector.load %arg18[%c8_109, %c1088_110] : memref<16x1536xf32, #tpu.memory_space<vmem>>, vector<8x64xf32>
    %cst_111 = arith.constant dense<0.000000e+00> : vector<8x8xf32>
    %199 = tpu.matmul %196, %197, %cst_111 {dimension_numbers = #tpu.dot_dimension_numbers<[1], [1], [0], [0], [0, 0, 1, 0], [], []>} : vector<8x64xf32>, vector<8x64xf32>, vector<8x8xf32> -> vector<8x8xf32>
    %cst_112 = arith.constant 1.250000e-01 : f32
    %200 = vector.broadcast %cst_112 : f32 to vector<8x8xf32>
    %201 = arith.mulf %199, %200 : vector<8x8xf32>
    %202 = vector.broadcast %175 : vector<1x8xf32> to vector<8x8xf32>
    %203 = arith.addf %201, %202 : vector<8x8xf32>
    %cst_113 = arith.constant dense<0xFF800000> : vector<8xf32>
    %204 = vector.multi_reduction <maximumf>, %203, %cst_113 [1] : vector<8x8xf32> to vector<8xf32>
    %205 = vector.shape_cast %204 : vector<8xf32> to vector<8x1xf32>
    %206 = vector.broadcast %205 : vector<8x1xf32> to vector<8x8xf32>
    %207 = arith.subf %203, %206 : vector<8x8xf32>
    %208 = math.exp %207 : vector<8x8xf32>
    %cst_114 = arith.constant dense<0.000000e+00> : vector<8xf32>
    %209 = vector.multi_reduction <add>, %208, %cst_114 [1] : vector<8x8xf32> to vector<8xf32>
    %210 = vector.shape_cast %209 : vector<8xf32> to vector<8x1xf32>
    %211 = tpu.reciprocal %210 {approx = true} : vector<8x1xf32> -> vector<8x1xf32>
    %212 = vector.broadcast %211 : vector<8x1xf32> to vector<8x8xf32>
    %213 = arith.mulf %208, %212 : vector<8x8xf32>
    %cst_115 = arith.constant dense<0.000000e+00> : vector<8x64xf32>
    %214 = tpu.matmul %213, %198, %cst_115 {dimension_numbers = #tpu.dot_dimension_numbers<[1], [0], [0], [1], [0, 0, 1, 1], [], []>} : vector<8x8xf32>, vector<8x64xf32>, vector<8x64xf32> -> vector<8x64xf32>
    %c8_116 = arith.constant 8 : index
    %c64_117 = arith.constant 64 : index
    %215 = vector.load %arg19[%c8_116, %c64_117] : memref<16x512xf32, #tpu.memory_space<vmem>>, vector<8x64xf32>
    tpu.vector_store %arg19[%c8_116, %c64_117], %214 {strides = array<i32>} : memref<16x512xf32, #tpu.memory_space<vmem>>, vector<8x64xf32>,
    %c8_118 = arith.constant 8 : index
    %c128_119 = arith.constant 128 : index
    %216 = vector.load %arg18[%c8_118, %c128_119] : memref<16x1536xf32, #tpu.memory_space<vmem>>, vector<8x64xf32>
    %c8_120 = arith.constant 8 : index
    %c640_121 = arith.constant 640 : index
    %217 = vector.load %arg18[%c8_120, %c640_121] : memref<16x1536xf32, #tpu.memory_space<vmem>>, vector<8x64xf32>
    %c8_122 = arith.constant 8 : index
    %c1152_123 = arith.constant 1152 : index
    %218 = vector.load %arg18[%c8_122, %c1152_123] : memref<16x1536xf32, #tpu.memory_space<vmem>>, vector<8x64xf32>
    %cst_124 = arith.constant dense<0.000000e+00> : vector<8x8xf32>
    %219 = tpu.matmul %216, %217, %cst_124 {dimension_numbers = #tpu.dot_dimension_numbers<[1], [1], [0], [0], [0, 0, 1, 0], [], []>} : vector<8x64xf32>, vector<8x64xf32>, vector<8x8xf32> -> vector<8x8xf32>
    %cst_125 = arith.constant 1.250000e-01 : f32
    %220 = vector.broadcast %cst_125 : f32 to vector<8x8xf32>
    %221 = arith.mulf %219, %220 : vector<8x8xf32>
    %222 = vector.broadcast %175 : vector<1x8xf32> to vector<8x8xf32>
    %223 = arith.addf %221, %222 : vector<8x8xf32>
    %cst_126 = arith.constant dense<0xFF800000> : vector<8xf32>
    %224 = vector.multi_reduction <maximumf>, %223, %cst_126 [1] : vector<8x8xf32> to vector<8xf32>
    %225 = vector.shape_cast %224 : vector<8xf32> to vector<8x1xf32>
    %226 = vector.broadcast %225 : vector<8x1xf32> to vector<8x8xf32>
    %227 = arith.subf %223, %226 : vector<8x8xf32>
    %228 = math.exp %227 : vector<8x8xf32>
    %cst_127 = arith.constant dense<0.000000e+00> : vector<8xf32>
    %229 = vector.multi_reduction <add>, %228, %cst_127 [1] : vector<8x8xf32> to vector<8xf32>
    %230 = vector.shape_cast %229 : vector<8xf32> to vector<8x1xf32>
    %231 = tpu.reciprocal %230 {approx = true} : vector<8x1xf32> -> vector<8x1xf32>
    %232 = vector.broadcast %231 : vector<8x1xf32> to vector<8x8xf32>
    %233 = arith.mulf %228, %232 : vector<8x8xf32>
    %cst_128 = arith.constant dense<0.000000e+00> : vector<8x64xf32>
    %234 = tpu.matmul %233, %218, %cst_128 {dimension_numbers = #tpu.dot_dimension_numbers<[1], [0], [0], [1], [0, 0, 1, 1], [], []>} : vector<8x8xf32>, vector<8x64xf32>, vector<8x64xf32> -> vector<8x64xf32>
    %c8_129 = arith.constant 8 : index
    %c128_130 = arith.constant 128 : index
    %235 = vector.load %arg19[%c8_129, %c128_130] : memref<16x512xf32, #tpu.memory_space<vmem>>, vector<8x64xf32>
    tpu.vector_store %arg19[%c8_129, %c128_130], %234 {strides = array<i32>} : memref<16x512xf32, #tpu.memory_space<vmem>>, vector<8x64xf32>,
    %c8_131 = arith.constant 8 : index
    %c192_132 = arith.constant 192 : index
    %236 = vector.load %arg18[%c8_131, %c192_132] : memref<16x1536xf32, #tpu.memory_space<vmem>>, vector<8x64xf32>
    %c8_133 = arith.constant 8 : index
    %c704_134 = arith.constant 704 : index
    %237 = vector.load %arg18[%c8_133, %c704_134] : memref<16x1536xf32, #tpu.memory_space<vmem>>, vector<8x64xf32>
    %c8_135 = arith.constant 8 : index
    %c1216_136 = arith.constant 1216 : index
    %238 = vector.load %arg18[%c8_135, %c1216_136] : memref<16x1536xf32, #tpu.memory_space<vmem>>, vector<8x64xf32>
    %cst_137 = arith.constant dense<0.000000e+00> : vector<8x8xf32>
    %239 = tpu.matmul %236, %237, %cst_137 {dimension_numbers = #tpu.dot_dimension_numbers<[1], [1], [0], [0], [0, 0, 1, 0], [], []>} : vector<8x64xf32>, vector<8x64xf32>, vector<8x8xf32> -> vector<8x8xf32>
    %cst_138 = arith.constant 1.250000e-01 : f32
    %240 = vector.broadcast %cst_138 : f32 to vector<8x8xf32>
    %241 = arith.mulf %239, %240 : vector<8x8xf32>
    %242 = vector.broadcast %175 : vector<1x8xf32> to vector<8x8xf32>
    %243 = arith.addf %241, %242 : vector<8x8xf32>
    %cst_139 = arith.constant dense<0xFF800000> : vector<8xf32>
    %244 = vector.multi_reduction <maximumf>, %243, %cst_139 [1] : vector<8x8xf32> to vector<8xf32>
    %245 = vector.shape_cast %244 : vector<8xf32> to vector<8x1xf32>
    %246 = vector.broadcast %245 : vector<8x1xf32> to vector<8x8xf32>
    %247 = arith.subf %243, %246 : vector<8x8xf32>
    %248 = math.exp %247 : vector<8x8xf32>
    %cst_140 = arith.constant dense<0.000000e+00> : vector<8xf32>
    %249 = vector.multi_reduction <add>, %248, %cst_140 [1] : vector<8x8xf32> to vector<8xf32>
    %250 = vector.shape_cast %249 : vector<8xf32> to vector<8x1xf32>
    %251 = tpu.reciprocal %250 {approx = true} : vector<8x1xf32> -> vector<8x1xf32>
    %252 = vector.broadcast %251 : vector<8x1xf32> to vector<8x8xf32>
    %253 = arith.mulf %248, %252 : vector<8x8xf32>
    %cst_141 = arith.constant dense<0.000000e+00> : vector<8x64xf32>
    %254 = tpu.matmul %253, %238, %cst_141 {dimension_numbers = #tpu.dot_dimension_numbers<[1], [0], [0], [1], [0, 0, 1, 1], [], []>} : vector<8x8xf32>, vector<8x64xf32>, vector<8x64xf32> -> vector<8x64xf32>
    %c8_142 = arith.constant 8 : index
    %c192_143 = arith.constant 192 : index
    %255 = vector.load %arg19[%c8_142, %c192_143] : memref<16x512xf32, #tpu.memory_space<vmem>>, vector<8x64xf32>
    tpu.vector_store %arg19[%c8_142, %c192_143], %254 {strides = array<i32>} : memref<16x512xf32, #tpu.memory_space<vmem>>, vector<8x64xf32>,
    %c8_144 = arith.constant 8 : index
    %c256_145 = arith.constant 256 : index
    %256 = vector.load %arg18[%c8_144, %c256_145] : memref<16x1536xf32, #tpu.memory_space<vmem>>, vector<8x64xf32>
    %c8_146 = arith.constant 8 : index
    %c768_147 = arith.constant 768 : index
    %257 = vector.load %arg18[%c8_146, %c768_147] : memref<16x1536xf32, #tpu.memory_space<vmem>>, vector<8x64xf32>
    %c8_148 = arith.constant 8 : index
    %c1280_149 = arith.constant 1280 : index
    %258 = vector.load %arg18[%c8_148, %c1280_149] : memref<16x1536xf32, #tpu.memory_space<vmem>>, vector<8x64xf32>
    %cst_150 = arith.constant dense<0.000000e+00> : vector<8x8xf32>
    %259 = tpu.matmul %256, %257, %cst_150 {dimension_numbers = #tpu.dot_dimension_numbers<[1], [1], [0], [0], [0, 0, 1, 0], [], []>} : vector<8x64xf32>, vector<8x64xf32>, vector<8x8xf32> -> vector<8x8xf32>
    %cst_151 = arith.constant 1.250000e-01 : f32
    %260 = vector.broadcast %cst_151 : f32 to vector<8x8xf32>
    %261 = arith.mulf %259, %260 : vector<8x8xf32>
    %262 = vector.broadcast %175 : vector<1x8xf32> to vector<8x8xf32>
    %263 = arith.addf %261, %262 : vector<8x8xf32>
    %cst_152 = arith.constant dense<0xFF800000> : vector<8xf32>
    %264 = vector.multi_reduction <maximumf>, %263, %cst_152 [1] : vector<8x8xf32> to vector<8xf32>
    %265 = vector.shape_cast %264 : vector<8xf32> to vector<8x1xf32>
    %266 = vector.broadcast %265 : vector<8x1xf32> to vector<8x8xf32>
    %267 = arith.subf %263, %266 : vector<8x8xf32>
    %268 = math.exp %267 : vector<8x8xf32>
    %cst_153 = arith.constant dense<0.000000e+00> : vector<8xf32>
    %269 = vector.multi_reduction <add>, %268, %cst_153 [1] : vector<8x8xf32> to vector<8xf32>
    %270 = vector.shape_cast %269 : vector<8xf32> to vector<8x1xf32>
    %271 = tpu.reciprocal %270 {approx = true} : vector<8x1xf32> -> vector<8x1xf32>
    %272 = vector.broadcast %271 : vector<8x1xf32> to vector<8x8xf32>
    %273 = arith.mulf %268, %272 : vector<8x8xf32>
    %cst_154 = arith.constant dense<0.000000e+00> : vector<8x64xf32>
    %274 = tpu.matmul %273, %258, %cst_154 {dimension_numbers = #tpu.dot_dimension_numbers<[1], [0], [0], [1], [0, 0, 1, 1], [], []>} : vector<8x8xf32>, vector<8x64xf32>, vector<8x64xf32> -> vector<8x64xf32>
    %c8_155 = arith.constant 8 : index
    %c256_156 = arith.constant 256 : index
    %275 = vector.load %arg19[%c8_155, %c256_156] : memref<16x512xf32, #tpu.memory_space<vmem>>, vector<8x64xf32>
    tpu.vector_store %arg19[%c8_155, %c256_156], %274 {strides = array<i32>} : memref<16x512xf32, #tpu.memory_space<vmem>>, vector<8x64xf32>,
    %c8_157 = arith.constant 8 : index
    %c320_158 = arith.constant 320 : index
    %276 = vector.load %arg18[%c8_157, %c320_158] : memref<16x1536xf32, #tpu.memory_space<vmem>>, vector<8x64xf32>
    %c8_159 = arith.constant 8 : index
    %c832_160 = arith.constant 832 : index
    %277 = vector.load %arg18[%c8_159, %c832_160] : memref<16x1536xf32, #tpu.memory_space<vmem>>, vector<8x64xf32>
    %c8_161 = arith.constant 8 : index
    %c1344_162 = arith.constant 1344 : index
    %278 = vector.load %arg18[%c8_161, %c1344_162] : memref<16x1536xf32, #tpu.memory_space<vmem>>, vector<8x64xf32>
    %cst_163 = arith.constant dense<0.000000e+00> : vector<8x8xf32>
    %279 = tpu.matmul %276, %277, %cst_163 {dimension_numbers = #tpu.dot_dimension_numbers<[1], [1], [0], [0], [0, 0, 1, 0], [], []>} : vector<8x64xf32>, vector<8x64xf32>, vector<8x8xf32> -> vector<8x8xf32>
    %cst_164 = arith.constant 1.250000e-01 : f32
    %280 = vector.broadcast %cst_164 : f32 to vector<8x8xf32>
    %281 = arith.mulf %279, %280 : vector<8x8xf32>
    %282 = vector.broadcast %175 : vector<1x8xf32> to vector<8x8xf32>
    %283 = arith.addf %281, %282 : vector<8x8xf32>
    %cst_165 = arith.constant dense<0xFF800000> : vector<8xf32>
    %284 = vector.multi_reduction <maximumf>, %283, %cst_165 [1] : vector<8x8xf32> to vector<8xf32>
    %285 = vector.shape_cast %284 : vector<8xf32> to vector<8x1xf32>
    %286 = vector.broadcast %285 : vector<8x1xf32> to vector<8x8xf32>
    %287 = arith.subf %283, %286 : vector<8x8xf32>
    %288 = math.exp %287 : vector<8x8xf32>
    %cst_166 = arith.constant dense<0.000000e+00> : vector<8xf32>
    %289 = vector.multi_reduction <add>, %288, %cst_166 [1] : vector<8x8xf32> to vector<8xf32>
    %290 = vector.shape_cast %289 : vector<8xf32> to vector<8x1xf32>
    %291 = tpu.reciprocal %290 {approx = true} : vector<8x1xf32> -> vector<8x1xf32>
    %292 = vector.broadcast %291 : vector<8x1xf32> to vector<8x8xf32>
    %293 = arith.mulf %288, %292 : vector<8x8xf32>
    %cst_167 = arith.constant dense<0.000000e+00> : vector<8x64xf32>
    %294 = tpu.matmul %293, %278, %cst_167 {dimension_numbers = #tpu.dot_dimension_numbers<[1], [0], [0], [1], [0, 0, 1, 1], [], []>} : vector<8x8xf32>, vector<8x64xf32>, vector<8x64xf32> -> vector<8x64xf32>
    %c8_168 = arith.constant 8 : index
    %c320_169 = arith.constant 320 : index
    %295 = vector.load %arg19[%c8_168, %c320_169] : memref<16x512xf32, #tpu.memory_space<vmem>>, vector<8x64xf32>
    tpu.vector_store %arg19[%c8_168, %c320_169], %294 {strides = array<i32>} : memref<16x512xf32, #tpu.memory_space<vmem>>, vector<8x64xf32>,
    %c8_170 = arith.constant 8 : index
    %c384_171 = arith.constant 384 : index
    %296 = vector.load %arg18[%c8_170, %c384_171] : memref<16x1536xf32, #tpu.memory_space<vmem>>, vector<8x64xf32>
    %c8_172 = arith.constant 8 : index
    %c896_173 = arith.constant 896 : index
    %297 = vector.load %arg18[%c8_172, %c896_173] : memref<16x1536xf32, #tpu.memory_space<vmem>>, vector<8x64xf32>
    %c8_174 = arith.constant 8 : index
    %c1408_175 = arith.constant 1408 : index
    %298 = vector.load %arg18[%c8_174, %c1408_175] : memref<16x1536xf32, #tpu.memory_space<vmem>>, vector<8x64xf32>
    %cst_176 = arith.constant dense<0.000000e+00> : vector<8x8xf32>
    %299 = tpu.matmul %296, %297, %cst_176 {dimension_numbers = #tpu.dot_dimension_numbers<[1], [1], [0], [0], [0, 0, 1, 0], [], []>} : vector<8x64xf32>, vector<8x64xf32>, vector<8x8xf32> -> vector<8x8xf32>
    %cst_177 = arith.constant 1.250000e-01 : f32
    %300 = vector.broadcast %cst_177 : f32 to vector<8x8xf32>
    %301 = arith.mulf %299, %300 : vector<8x8xf32>
    %302 = vector.broadcast %175 : vector<1x8xf32> to vector<8x8xf32>
    %303 = arith.addf %301, %302 : vector<8x8xf32>
    %cst_178 = arith.constant dense<0xFF800000> : vector<8xf32>
    %304 = vector.multi_reduction <maximumf>, %303, %cst_178 [1] : vector<8x8xf32> to vector<8xf32>
    %305 = vector.shape_cast %304 : vector<8xf32> to vector<8x1xf32>
    %306 = vector.broadcast %305 : vector<8x1xf32> to vector<8x8xf32>
    %307 = arith.subf %303, %306 : vector<8x8xf32>
    %308 = math.exp %307 : vector<8x8xf32>
    %cst_179 = arith.constant dense<0.000000e+00> : vector<8xf32>
    %309 = vector.multi_reduction <add>, %308, %cst_179 [1] : vector<8x8xf32> to vector<8xf32>
    %310 = vector.shape_cast %309 : vector<8xf32> to vector<8x1xf32>
    %311 = tpu.reciprocal %310 {approx = true} : vector<8x1xf32> -> vector<8x1xf32>
    %312 = vector.broadcast %311 : vector<8x1xf32> to vector<8x8xf32>
    %313 = arith.mulf %308, %312 : vector<8x8xf32>
    %cst_180 = arith.constant dense<0.000000e+00> : vector<8x64xf32>
    %314 = tpu.matmul %313, %298, %cst_180 {dimension_numbers = #tpu.dot_dimension_numbers<[1], [0], [0], [1], [0, 0, 1, 1], [], []>} : vector<8x8xf32>, vector<8x64xf32>, vector<8x64xf32> -> vector<8x64xf32>
    %c8_181 = arith.constant 8 : index
    %c384_182 = arith.constant 384 : index
    %315 = vector.load %arg19[%c8_181, %c384_182] : memref<16x512xf32, #tpu.memory_space<vmem>>, vector<8x64xf32>
    tpu.vector_store %arg19[%c8_181, %c384_182], %314 {strides = array<i32>} : memref<16x512xf32, #tpu.memory_space<vmem>>, vector<8x64xf32>,
    %c8_183 = arith.constant 8 : index
    %c448_184 = arith.constant 448 : index
    %316 = vector.load %arg18[%c8_183, %c448_184] : memref<16x1536xf32, #tpu.memory_space<vmem>>, vector<8x64xf32>
    %c8_185 = arith.constant 8 : index
    %c960_186 = arith.constant 960 : index
    %317 = vector.load %arg18[%c8_185, %c960_186] : memref<16x1536xf32, #tpu.memory_space<vmem>>, vector<8x64xf32>
    %c8_187 = arith.constant 8 : index
    %c1472_188 = arith.constant 1472 : index
    %318 = vector.load %arg18[%c8_187, %c1472_188] : memref<16x1536xf32, #tpu.memory_space<vmem>>, vector<8x64xf32>
    %cst_189 = arith.constant dense<0.000000e+00> : vector<8x8xf32>
    %319 = tpu.matmul %316, %317, %cst_189 {dimension_numbers = #tpu.dot_dimension_numbers<[1], [1], [0], [0], [0, 0, 1, 0], [], []>} : vector<8x64xf32>, vector<8x64xf32>, vector<8x8xf32> -> vector<8x8xf32>
    %cst_190 = arith.constant 1.250000e-01 : f32
    %320 = vector.broadcast %cst_190 : f32 to vector<8x8xf32>
    %321 = arith.mulf %319, %320 : vector<8x8xf32>
    %322 = vector.broadcast %175 : vector<1x8xf32> to vector<8x8xf32>
    %323 = arith.addf %321, %322 : vector<8x8xf32>
    %cst_191 = arith.constant dense<0xFF800000> : vector<8xf32>
    %324 = vector.multi_reduction <maximumf>, %323, %cst_191 [1] : vector<8x8xf32> to vector<8xf32>
    %325 = vector.shape_cast %324 : vector<8xf32> to vector<8x1xf32>
    %326 = vector.broadcast %325 : vector<8x1xf32> to vector<8x8xf32>
    %327 = arith.subf %323, %326 : vector<8x8xf32>
    %328 = math.exp %327 : vector<8x8xf32>
    %cst_192 = arith.constant dense<0.000000e+00> : vector<8xf32>
    %329 = vector.multi_reduction <add>, %328, %cst_192 [1] : vector<8x8xf32> to vector<8xf32>
    %330 = vector.shape_cast %329 : vector<8xf32> to vector<8x1xf32>
    %331 = tpu.reciprocal %330 {approx = true} : vector<8x1xf32> -> vector<8x1xf32>
    %332 = vector.broadcast %331 : vector<8x1xf32> to vector<8x8xf32>
    %333 = arith.mulf %328, %332 : vector<8x8xf32>
    %cst_193 = arith.constant dense<0.000000e+00> : vector<8x64xf32>
    %334 = tpu.matmul %333, %318, %cst_193 {dimension_numbers = #tpu.dot_dimension_numbers<[1], [0], [0], [1], [0, 0, 1, 1], [], []>} : vector<8x8xf32>, vector<8x64xf32>, vector<8x64xf32> -> vector<8x64xf32>
    %c8_194 = arith.constant 8 : index
    %c448_195 = arith.constant 448 : index
    %335 = vector.load %arg19[%c8_194, %c448_195] : memref<16x512xf32, #tpu.memory_space<vmem>>, vector<8x64xf32>
    tpu.vector_store %arg19[%c8_194, %c448_195], %334 {strides = array<i32>} : memref<16x512xf32, #tpu.memory_space<vmem>>, vector<8x64xf32>,
    %c0_196 = arith.constant 0 : index
    %c0_197 = arith.constant 0 : index
    %336 = vector.load %arg19[%c0_196, %c0_197] : memref<16x512xf32, #tpu.memory_space<vmem>>, vector<16x512xf32>
    %337 = arith.truncf %336 : vector<16x512xf32> to vector<16x512xbf16>
    %c0_198 = arith.constant 0 : index
    %c0_199 = arith.constant 0 : index
    %c0_200 = arith.constant 0 : index
    %338 = vector.load %arg7[%c0_198, %c0_199, %c0_200] : memref<1x512x512xbf16, #tpu.memory_space<vmem>>, vector<1x512x512xbf16>
    %339 = vector.shape_cast %338 : vector<1x512x512xbf16> to vector<512x512xbf16>
    %cst_201 = arith.constant dense<0.000000e+00> : vector<16x512xf32>
    %340 = tpu.matmul %337, %339, %cst_201 {dimension_numbers = #tpu.dot_dimension_numbers<[1], [0], [0], [1], [0, 0, 1, 1], [], []>} : vector<16x512xbf16>, vector<512x512xbf16>, vector<16x512xf32> -> vector<16x512xf32>
    %c0_202 = arith.constant 0 : index
    %c0_203 = arith.constant 0 : index
    %c0_204 = arith.constant 0 : index
    %341 = vector.load %arg8[%c0_202, %c0_203, %c0_204] : memref<1x1x512xf32, #tpu.memory_space<vmem>>, vector<1x1x512xf32>
    %342 = vector.shape_cast %341 : vector<1x1x512xf32> to vector<1x512xf32>
    %343 = vector.broadcast %342 : vector<1x512xf32> to vector<16x512xf32>
    %344 = arith.addf %340, %343 : vector<16x512xf32>
    %345 = arith.addf %344, %3 : vector<16x512xf32>
    %c0_205 = arith.constant 0 : index
    %c0_206 = arith.constant 0 : index
    %c0_207 = arith.constant 0 : index
    %346 = vector.load %arg9[%c0_205, %c0_206, %c0_207] : memref<1x1x512xf32, #tpu.memory_space<vmem>>, vector<1x1x512xf32>
    %347 = vector.shape_cast %346 : vector<1x1x512xf32> to vector<1x512xf32>
    %c0_208 = arith.constant 0 : index
    %c0_209 = arith.constant 0 : index
    %c0_210 = arith.constant 0 : index
    %348 = vector.load %arg10[%c0_208, %c0_209, %c0_210] : memref<1x1x512xf32, #tpu.memory_space<vmem>>, vector<1x1x512xf32>
    %349 = vector.shape_cast %348 : vector<1x1x512xf32> to vector<1x512xf32>
    %cst_211 = arith.constant dense<0.000000e+00> : vector<16xf32>
    %350 = vector.multi_reduction <add>, %345, %cst_211 [1] : vector<16x512xf32> to vector<16xf32>
    %351 = vector.shape_cast %350 : vector<16xf32> to vector<16x1xf32>
    %cst_212 = arith.constant 5.120000e+02 : f32
    %352 = vector.broadcast %cst_212 : f32 to vector<16x1xf32>
    %353 = arith.divf %351, %352 : vector<16x1xf32>
    %354 = vector.broadcast %353 : vector<16x1xf32> to vector<16x512xf32>
    %355 = arith.subf %345, %354 : vector<16x512xf32>
    %356 = arith.mulf %355, %355 : vector<16x512xf32>
    %cst_213 = arith.constant dense<0.000000e+00> : vector<16xf32>
    %357 = vector.multi_reduction <add>, %356, %cst_213 [1] : vector<16x512xf32> to vector<16xf32>
    %358 = vector.shape_cast %357 : vector<16xf32> to vector<16x1xf32>
    %cst_214 = arith.constant 5.120000e+02 : f32
    %359 = vector.broadcast %cst_214 : f32 to vector<16x1xf32>
    %360 = arith.divf %358, %359 : vector<16x1xf32>
    %361 = vector.broadcast %353 : vector<16x1xf32> to vector<16x512xf32>
    %362 = arith.subf %345, %361 : vector<16x512xf32>
    %cst_215 = arith.constant 9.99999996E-13 : f32
    %363 = vector.broadcast %cst_215 : f32 to vector<16x1xf32>
    %364 = arith.addf %360, %363 : vector<16x1xf32>
    %365 = math.rsqrt %364 : vector<16x1xf32>
    %366 = vector.broadcast %365 : vector<16x1xf32> to vector<16x512xf32>
    %367 = arith.mulf %362, %366 : vector<16x512xf32>
    %368 = vector.broadcast %347 : vector<1x512xf32> to vector<16x512xf32>
    %369 = arith.mulf %367, %368 : vector<16x512xf32>
    %370 = vector.broadcast %349 : vector<1x512xf32> to vector<16x512xf32>
    %371 = arith.addf %369, %370 : vector<16x512xf32>
    %372 = arith.truncf %371 : vector<16x512xf32> to vector<16x512xbf16>
    %c0_216 = arith.constant 0 : index
    %c0_217 = arith.constant 0 : index
    %c0_218 = arith.constant 0 : index
    %373 = vector.load %arg11[%c0_216, %c0_217, %c0_218] : memref<1x512x2048xbf16, #tpu.memory_space<vmem>>, vector<1x512x2048xbf16>
    %374 = vector.shape_cast %373 : vector<1x512x2048xbf16> to vector<512x2048xbf16>
    %cst_219 = arith.constant dense<0.000000e+00> : vector<16x2048xf32>
    %375 = tpu.matmul %372, %374, %cst_219 {dimension_numbers = #tpu.dot_dimension_numbers<[1], [0], [0], [1], [0, 0, 1, 1], [], []>} : vector<16x512xbf16>, vector<512x2048xbf16>, vector<16x2048xf32> -> vector<16x2048xf32>
    %c0_220 = arith.constant 0 : index
    %c0_221 = arith.constant 0 : index
    %c0_222 = arith.constant 0 : index
    %376 = vector.load %arg12[%c0_220, %c0_221, %c0_222] : memref<1x1x2048xf32, #tpu.memory_space<vmem>>, vector<1x1x2048xf32>
    %377 = vector.shape_cast %376 : vector<1x1x2048xf32> to vector<1x2048xf32>
    %378 = vector.broadcast %377 : vector<1x2048xf32> to vector<16x2048xf32>
    %379 = arith.addf %375, %378 : vector<16x2048xf32>
    %cst_223 = arith.constant 5.000000e-01 : f32
    %380 = vector.broadcast %cst_223 : f32 to vector<16x2048xf32>
    %381 = arith.mulf %380, %379 : vector<16x2048xf32>
    %cst_224 = arith.constant 0.707106769 : f32
    %382 = vector.broadcast %cst_224 : f32 to vector<16x2048xf32>
    %383 = arith.mulf %379, %382 : vector<16x2048xf32>
    %384 = math.erf %383 : vector<16x2048xf32>
    %cst_225 = arith.constant 1.000000e+00 : f32
    %385 = vector.broadcast %cst_225 : f32 to vector<16x2048xf32>
    %386 = arith.addf %385, %384 : vector<16x2048xf32>
    %387 = arith.mulf %381, %386 : vector<16x2048xf32>
    %388 = arith.truncf %387 : vector<16x2048xf32> to vector<16x2048xbf16>
    %c0_226 = arith.constant 0 : index
    %c0_227 = arith.constant 0 : index
    %c0_228 = arith.constant 0 : index
    %389 = vector.load %arg13[%c0_226, %c0_227, %c0_228] : memref<1x2048x512xbf16, #tpu.memory_space<vmem>>, vector<1x2048x512xbf16>
    %390 = vector.shape_cast %389 : vector<1x2048x512xbf16> to vector<2048x512xbf16>
    %cst_229 = arith.constant dense<0.000000e+00> : vector<16x512xf32>
    %391 = tpu.matmul %388, %390, %cst_229 {dimension_numbers = #tpu.dot_dimension_numbers<[1], [0], [0], [1], [0, 0, 1, 1], [], []>} : vector<16x2048xbf16>, vector<2048x512xbf16>, vector<16x512xf32> -> vector<16x512xf32>
    %c0_230 = arith.constant 0 : index
    %c0_231 = arith.constant 0 : index
    %c0_232 = arith.constant 0 : index
    %392 = vector.load %arg14[%c0_230, %c0_231, %c0_232] : memref<1x1x512xf32, #tpu.memory_space<vmem>>, vector<1x1x512xf32>
    %393 = vector.shape_cast %392 : vector<1x1x512xf32> to vector<1x512xf32>
    %394 = vector.broadcast %393 : vector<1x512xf32> to vector<16x512xf32>
    %395 = arith.addf %391, %394 : vector<16x512xf32>
    %396 = arith.addf %395, %371 : vector<16x512xf32>
    %c0_233 = arith.constant 0 : index
    %c0_234 = arith.constant 0 : index
    %c0_235 = arith.constant 0 : index
    %397 = vector.load %arg15[%c0_233, %c0_234, %c0_235] : memref<1x1x512xf32, #tpu.memory_space<vmem>>, vector<1x1x512xf32>
    %398 = vector.shape_cast %397 : vector<1x1x512xf32> to vector<1x512xf32>
    %c0_236 = arith.constant 0 : index
    %c0_237 = arith.constant 0 : index
    %c0_238 = arith.constant 0 : index
    %399 = vector.load %arg16[%c0_236, %c0_237, %c0_238] : memref<1x1x512xf32, #tpu.memory_space<vmem>>, vector<1x1x512xf32>
    %400 = vector.shape_cast %399 : vector<1x1x512xf32> to vector<1x512xf32>
    %cst_239 = arith.constant dense<0.000000e+00> : vector<16xf32>
    %401 = vector.multi_reduction <add>, %396, %cst_239 [1] : vector<16x512xf32> to vector<16xf32>
    %402 = vector.shape_cast %401 : vector<16xf32> to vector<16x1xf32>
    %cst_240 = arith.constant 5.120000e+02 : f32
    %403 = vector.broadcast %cst_240 : f32 to vector<16x1xf32>
    %404 = arith.divf %402, %403 : vector<16x1xf32>
    %405 = vector.broadcast %404 : vector<16x1xf32> to vector<16x512xf32>
    %406 = arith.subf %396, %405 : vector<16x512xf32>
    %407 = arith.mulf %406, %406 : vector<16x512xf32>
    %cst_241 = arith.constant dense<0.000000e+00> : vector<16xf32>
    %408 = vector.multi_reduction <add>, %407, %cst_241 [1] : vector<16x512xf32> to vector<16xf32>
    %409 = vector.shape_cast %408 : vector<16xf32> to vector<16x1xf32>
    %cst_242 = arith.constant 5.120000e+02 : f32
    %410 = vector.broadcast %cst_242 : f32 to vector<16x1xf32>
    %411 = arith.divf %409, %410 : vector<16x1xf32>
    %412 = vector.broadcast %404 : vector<16x1xf32> to vector<16x512xf32>
    %413 = arith.subf %396, %412 : vector<16x512xf32>
    %cst_243 = arith.constant 9.99999996E-13 : f32
    %414 = vector.broadcast %cst_243 : f32 to vector<16x1xf32>
    %415 = arith.addf %411, %414 : vector<16x1xf32>
    %416 = math.rsqrt %415 : vector<16x1xf32>
    %417 = vector.broadcast %416 : vector<16x1xf32> to vector<16x512xf32>
    %418 = arith.mulf %413, %417 : vector<16x512xf32>
    %419 = vector.broadcast %398 : vector<1x512xf32> to vector<16x512xf32>
    %420 = arith.mulf %418, %419 : vector<16x512xf32>
    %421 = vector.broadcast %400 : vector<1x512xf32> to vector<16x512xf32>
    %422 = arith.addf %420, %421 : vector<16x512xf32>
    %c0_244 = arith.constant 0 : index
    %c0_245 = arith.constant 0 : index
    %423 = vector.load %arg17[%c0_244, %c0_245] : memref<16x512xf32, #tpu.memory_space<vmem>>, vector<16x512xf32>
    tpu.vector_store %arg17[%c0_244, %c0_245], %422 {strides = array<i32>} : memref<16x512xf32, #tpu.memory_space<vmem>>, vector<16x512xf32>,
    return
  }
  func.func @transform_0(%arg0: i32) -> (i32, i32) {
    %c0_i32 = arith.constant 0 : i32
    %c0_i32_0 = arith.constant 0 : i32
    %c0_i32_1 = arith.constant 0 : i32
    return %c0_i32, %c0_i32_0 : i32, i32
  }
  func.func @transform_1(%arg0: i32) -> (i32, i32) {
    %c0_i32 = arith.constant 0 : i32
    %c0_i32_0 = arith.constant 0 : i32
    %c0_i32_1 = arith.constant 0 : i32
    return %c0_i32, %c0_i32_0 : i32, i32
  }
  func.func @transform_2(%arg0: i32) -> (i32, i32) {
    %c0_i32 = arith.constant 0 : i32
    %c0_i32_0 = arith.constant 0 : i32
    %c0_i32_1 = arith.constant 0 : i32
    return %c0_i32, %c0_i32_0 : i32, i32
  }
  func.func @transform_3(%arg0: i32) -> (i32, i32) {
    %c0_i32 = arith.constant 0 : i32
    %c0_i32_0 = arith.constant 0 : i32
    %c0_i32_1 = arith.constant 0 : i32
    return %c0_i32, %c0_i32_0 : i32, i32
  }
  func.func @transform_4(%arg0: i32) -> (i32, i32, i32) {
    %c0_i32 = arith.constant 0 : i32
    %c0_i32_0 = arith.constant 0 : i32
    %c0_i32_1 = arith.constant 0 : i32
    return %arg0, %c0_i32, %c0_i32_0 : i32, i32, i32
  }
  func.func @transform_5(%arg0: i32) -> (i32, i32, i32) {
    %c0_i32 = arith.constant 0 : i32
    %c0_i32_0 = arith.constant 0 : i32
    %c0_i32_1 = arith.constant 0 : i32
    return %arg0, %c0_i32, %c0_i32_0 : i32, i32, i32
  }
  func.func @transform_6(%arg0: i32) -> (i32, i32, i32) {
    %c0_i32 = arith.constant 0 : i32
    %c0_i32_0 = arith.constant 0 : i32
    %c0_i32_1 = arith.constant 0 : i32
    return %arg0, %c0_i32, %c0_i32_0 : i32, i32, i32
  }
  func.func @transform_7(%arg0: i32) -> (i32, i32, i32) {
    %c0_i32 = arith.constant 0 : i32
    %c0_i32_0 = arith.constant 0 : i32
    %c0_i32_1 = arith.constant 0 : i32
    return %arg0, %c0_i32, %c0_i32_0 : i32, i32, i32
  }
  func.func @transform_8(%arg0: i32) -> (i32, i32, i32) {
    %c0_i32 = arith.constant 0 : i32
    %c0_i32_0 = arith.constant 0 : i32
    %c0_i32_1 = arith.constant 0 : i32
    return %arg0, %c0_i32, %c0_i32_0 : i32, i32, i32
  }
  func.func @transform_9(%arg0: i32) -> (i32, i32, i32) {
    %c0_i32 = arith.constant 0 : i32
    %c0_i32_0 = arith.constant 0 : i32
    %c0_i32_1 = arith.constant 0 : i32
    return %arg0, %c0_i32, %c0_i32_0 : i32, i32, i32
  }
  func.func @transform_10(%arg0: i32) -> (i32, i32, i32) {
    %c0_i32 = arith.constant 0 : i32
    %c0_i32_0 = arith.constant 0 : i32
    %c0_i32_1 = arith.constant 0 : i32
    return %arg0, %c0_i32, %c0_i32_0 : i32, i32, i32
  }
  func.func @transform_11(%arg0: i32) -> (i32, i32, i32) {
    %c0_i32 = arith.constant 0 : i32
    %c0_i32_0 = arith.constant 0 : i32
    %c0_i32_1 = arith.constant 0 : i32
    return %arg0, %c0_i32, %c0_i32_0 : i32, i32, i32
  }
  func.func @transform_12(%arg0: i32) -> (i32, i32, i32) {
    %c0_i32 = arith.constant 0 : i32
    %c0_i32_0 = arith.constant 0 : i32
    %c0_i32_1 = arith.constant 0 : i32
    return %arg0, %c0_i32, %c0_i32_0 : i32, i32, i32
  }
  func.func @transform_13(%arg0: i32) -> (i32, i32, i32) {
    %c0_i32 = arith.constant 0 : i32
    %c0_i32_0 = arith.constant 0 : i32
    %c0_i32_1 = arith.constant 0 : i32
    return %arg0, %c0_i32, %c0_i32_0 : i32, i32, i32
  }
  func.func @transform_14(%arg0: i32) -> (i32, i32, i32) {
    %c0_i32 = arith.constant 0 : i32
    %c0_i32_0 = arith.constant 0 : i32
    %c0_i32_1 = arith.constant 0 : i32
    return %arg0, %c0_i32, %c0_i32_0 : i32, i32, i32
  }
  func.func @transform_15(%arg0: i32) -> (i32, i32, i32) {
    %c0_i32 = arith.constant 0 : i32
    %c0_i32_0 = arith.constant 0 : i32
    %c0_i32_1 = arith.constant 0 : i32
    return %arg0, %c0_i32, %c0_i32_0 : i32, i32, i32
  }
  func.func @transform_16(%arg0: i32) -> (i32, i32) {
    %c0_i32 = arith.constant 0 : i32
    %c0_i32_0 = arith.constant 0 : i32
    %c0_i32_1 = arith.constant 0 : i32
    return %c0_i32, %c0_i32_0 : i32, i32
  }
}

</mosaic_0001>

<bundles_post_ra>
// kernel: _lambda_.3
= control target key start
LH: loop header
LB: loop body
LE: loop exit
PB: predicated region body
PF: predicated region fallthrough
CT: control target
= control target key end

     0   :  { %v1846_v36 = vmov 1983009808   ;;  %v28_v38 = vlaneseq  ;;  %s2392_s0 = inlined_call_operand.vmem [shape: f32[2,512], index: 0, kind: input, shape index: {}]   ;;  %s2393_s1 = inlined_call_operand.vmem [shape: bf16[512,512], index: 1, kind: input, shape index: {}]   ;;  %s2394_s2 = inlined_call_operand.vmem [shape: f32[1,512], index: 2, kind: input, shape index: {}]   ;;  %s2395_s3 = inlined_call_operand.vmem [shape: bf16[512,3], index: 3, kind: input, shape index: {}]   ;;  %s2396_s4 = inlined_call_operand.vmem [shape: f32[1,3], index: 4, kind: input, shape index: {}]   ;;  %s2397_s5 = inlined_call_operand.hbm [shape: f32[2,3], index: 5, kind: output, shape index: {}]  }
   0x1   :  { %v1589_v0 = vld [vmem:[%s2393_s1 + $0x4] ss:$16 sps:$4 sm:$0xff]   ;;  %v1591_v1 = vld [vmem:[%s2393_s1 + $0xc] ss:$16 sps:$4 sm:$0xff]   ;;  %v1593_v2 = vld [vmem:[%s2393_s1] ss:$16 sps:$4 sm:$0xff]   ;;  %v26_v37 = vunpack.c.l.s4 %v1846_v36 }
   0x2   :  { %839 = vmatprep.subr.bf16.mxu0 %v1589_v0  ;;  %v1594_v3 = vld [vmem:[%s2393_s1 + $0x8] ss:$16 sps:$4 sm:$0xff]   ;;  %921 = vmatprep.subr.bf16.mxu1 %v1591_v1  ;;  %v1595_v4 = vld [vmem:[%s2393_s1 + $0x24] ss:$16 sps:$4 sm:$0xff]   ;;  %v1597_v5 = vld [vmem:[%s2393_s1 + $0x2c] ss:$16 sps:$4 sm:$0xff]  }
   0x3   :  { %840 = vmatpush1.bf16.msra.mxu0 %v1593_v2  ;;  %922 = vmatpush1.bf16.msra.mxu1 %v1594_v3  ;;  %v1599_v6 = vld [vmem:[%s2393_s1 + $0x20] ss:$16 sps:$4 sm:$0xff]   ;;  %v1600_v7 = vld [vmem:[%s2393_s1 + $0x28] ss:$16 sps:$4 sm:$0xff]   ;;  %v1601_v8 = vld [vmem:[%s2393_s1 + $0x44] ss:$16 sps:$4 sm:$0xff]   ;;  %v27_v42 = vunpack.c.0.s8 %v26_v37 }
   0x4   :  { %841 = vmatprep.subr.bf16.mxu0 %v1595_v4  ;;  %923 = vmatprep.subr.bf16.mxu1 %v1597_v5  ;;  %v1603_v9 = vld [vmem:[%s2393_s1 + $0x4c] ss:$16 sps:$4 sm:$0xff]   ;;  %v1605_v10 = vld [vmem:[%s2393_s1 + $0x40] ss:$16 sps:$4 sm:$0xff]   ;;  %v1606_v11 = vld [vmem:[%s2393_s1 + $0x48] ss:$16 sps:$4 sm:$0xff]  }
   0x5   :  { %v1607_v12 = vld [vmem:[%s2393_s1 + $0x64] ss:$16 sps:$4 sm:$0xff]   ;;  %v1609_v13 = vld [vmem:[%s2393_s1 + $0x6c] ss:$16 sps:$4 sm:$0xff]   ;;  %v1611_v14 = vld [vmem:[%s2393_s1 + $0x60] ss:$16 sps:$4 sm:$0xff]  }
   0x6   :  { %v1612_v15 = vld [vmem:[%s2393_s1 + $0x68] ss:$16 sps:$4 sm:$0xff]   ;;  %v1613_v16 = vld [vmem:[%s2393_s1 + $0x84] ss:$16 sps:$4 sm:$0xff]   ;;  %v1615_v17 = vld [vmem:[%s2393_s1 + $0x8c] ss:$16 sps:$4 sm:$0xff]  }
   0x7   :  { %842 = vmatpush1.bf16.msra.mxu0 %v1599_v6  ;;  %924 = vmatpush1.bf16.msra.mxu1 %v1600_v7  ;;  %v1617_v18 = vld [vmem:[%s2393_s1 + $0x80] ss:$16 sps:$4 sm:$0xff]   ;;  %v1618_v19 = vld [vmem:[%s2393_s1 + $0x88] ss:$16 sps:$4 sm:$0xff]   ;;  %v1619_v20 = vld [vmem:[%s2393_s1 + $0xa4] ss:$16 sps:$4 sm:$0xff]  }
   0x8   :  { %843 = vmatprep.subr.bf16.mxu0 %v1601_v8  ;;  %925 = vmatprep.subr.bf16.mxu1 %v1603_v9  ;;  %v1621_v21 = vld [vmem:[%s2393_s1 + $0xac] ss:$16 sps:$4 sm:$0xff]   ;;  %v1623_v22 = vld [vmem:[%s2393_s1 + $0xa0] ss:$16 sps:$4 sm:$0xff]   ;;  %v1624_v23 = vld [vmem:[%s2393_s1 + $0xa8] ss:$16 sps:$4 sm:$0xff]  }
   0x9   :  { %v1625_v24 = vld [vmem:[%s2393_s1 + $0xc4] ss:$16 sps:$4 sm:$0xff]   ;;  %v1627_v25 = vld [vmem:[%s2393_s1 + $0xcc] ss:$16 sps:$4 sm:$0xff]   ;;  %v1629_v26 = vld [vmem:[%s2393_s1 + $0xc0] ss:$16 sps:$4 sm:$0xff]  }
   0xa   :  { %v1630_v27 = vld [vmem:[%s2393_s1 + $0xc8] ss:$16 sps:$4 sm:$0xff]   ;;  %v1631_v28 = vld [vmem:[%s2393_s1 + $0xe4] ss:$16 sps:$4 sm:$0xff]   ;;  %v1633_v29 = vld [vmem:[%s2393_s1 + $0xec] ss:$16 sps:$4 sm:$0xff]  }
   0xb   :  { %844 = vmatpush1.bf16.msra.mxu0 %v1605_v10  ;;  %926 = vmatpush1.bf16.msra.mxu1 %v1606_v11  ;;  %v1635_v30 = vld [vmem:[%s2393_s1 + $0xe0] ss:$16 sps:$4 sm:$0xff]   ;;  %v1636_v31 = vld [vmem:[%s2393_s1 + $0xe8] ss:$16 sps:$4 sm:$0xff]   ;;  %v1637_v32 = vld [vmem:[%s2393_s1 + $0x104] ss:$16 sps:$4 sm:$0xff]  }
   0xc   :  { %845 = vmatprep.subr.bf16.mxu0 %v1607_v12  ;;  %927 = vmatprep.subr.bf16.mxu1 %v1609_v13  ;;  %v1639_v33 = vld [vmem:[%s2393_s1 + $0x10c] ss:$16 sps:$4 sm:$0xff]   ;;  %v1641_v34 = vld [vmem:[%s2393_s1 + $0x100] ss:$16 sps:$4 sm:$0xff]   ;;  %v1642_v35 = vld [vmem:[%s2393_s1 + $0x108] ss:$16 sps:$4 sm:$0xff]  }
   0xd   :  { %v1643_v39 = vld [vmem:[%s2393_s1 + $0x124] ss:$16 sps:$4 sm:$0xff]   ;;  %v1645_v40 = vld [vmem:[%s2393_s1 + $0x12c] ss:$16 sps:$4 sm:$0xff]   ;;  %v1647_v41 = vld [vmem:[%s2393_s1 + $0x120] ss:$16 sps:$4 sm:$0xff]  }
   0xe   :  { %v1995_v43 = vshrl.u32 %v28_v38, 7  ;;  %v1648_v44 = vld [vmem:[%s2393_s1 + $0x128] ss:$16 sps:$4 sm:$0xff]   ;;  %v1649_v45 = vld [vmem:[%s2393_s1 + $0x144] ss:$16 sps:$4 sm:$0xff]  }
   0xf   :  { %846 = vmatpush1.bf16.msra.mxu0 %v1611_v14  ;;  %928 = vmatpush1.bf16.msra.mxu1 %v1612_v15  ;;  %v1651_v46 = vld [vmem:[%s2393_s1 + $0x14c] ss:$16 sps:$4 sm:$0xff]   ;;  %v1653_v47 = vld [vmem:[%s2393_s1 + $0x140] ss:$16 sps:$4 sm:$0xff]   ;;  %v1654_v48 = vld [vmem:[%s2393_s1 + $0x148] ss:$16 sps:$4 sm:$0xff]  }
  0x10   :  { %847 = vmatprep.subr.bf16.mxu0 %v1613_v16  ;;  %929 = vmatprep.subr.bf16.mxu1 %v1615_v17  ;;  %v30_v49 = vsub.s32 %v27_v42, %v1995_v43  ;;  %v1655_v50 = vld [vmem:[%s2393_s1 + $0x164] ss:$16 sps:$4 sm:$0xff]   ;;  %v1657_v51 = vld [vmem:[%s2393_s1 + $0x16c] ss:$16 sps:$4 sm:$0xff]   ;;  %v1659_v53 = vld [vmem:[%s2393_s1 + $0x160] ss:$16 sps:$4 sm:$0xff]  }
  0x11   :  { %v22_v52 = vld [vmem:[%s2392_s0] sm:$0xff]  ;;  %v1660_v55 = vld [vmem:[%s2393_s1 + $0x168] ss:$16 sps:$4 sm:$0xff]   ;;  %v1663_v57 = vld [vmem:[%s2393_s1 + $0x18c] ss:$16 sps:$4 sm:$0xff]  }
  0x12   :  { %v31_v54 = vrot.slane %v22_v52, %v30_v49  ;;  %v1661_v56 = vld [vmem:[%s2393_s1 + $0x184] ss:$16 sps:$4 sm:$0xff]   ;;  %v1665_v59 = vld [vmem:[%s2393_s1 + $0x180] ss:$16 sps:$4 sm:$0xff]   ;;  %v1666_v61 = vld [vmem:[%s2393_s1 + $0x188] ss:$16 sps:$4 sm:$0xff]   ;;  %v24_v4 = vcombine.high %v22_v52, %v22_v52 }
  0x13   :  { %848 = vmatpush1.bf16.msra.mxu0 %v1617_v18  ;;  %930 = vmatpush1.bf16.msra.mxu1 %v1618_v19  ;;  %v1667_v62 = vld [vmem:[%s2393_s1 + $0x1a4] ss:$16 sps:$4 sm:$0xff]   ;;  %v1669_v63 = vld [vmem:[%s2393_s1 + $0x1ac] ss:$16 sps:$4 sm:$0xff]   ;;  %v1671_v0 = vld [vmem:[%s2393_s1 + $0x1a0] ss:$16 sps:$4 sm:$0xff]  }
  0x14   :  { %849 = vmatprep.subr.bf16.mxu0 %v1619_v20  ;;  %931 = vmatprep.subr.bf16.mxu1 %v1621_v21  ;;  %v39_v58 = vcombine.high %v31_v54, %v31_v54  ;;  %v1672_v1 = vld [vmem:[%s2393_s1 + $0x1a8] ss:$16 sps:$4 sm:$0xff]   ;;  %v1673_v2 = vld [vmem:[%s2393_s1 + $0x1c4] ss:$16 sps:$4 sm:$0xff]   ;;  %v1675_v3 = vld [vmem:[%s2393_s1 + $0x1cc] ss:$16 sps:$4 sm:$0xff]   ;;  %v2070_v9 = vrot.slane %v24_v4, %v30_v49  ;;  %v45_v16 = vpack.c.bf16 %v31_v54, %v31_v54 }
  0x15   :  { %v1677_v5 = vld [vmem:[%s2393_s1 + $0x1c0] ss:$16 sps:$4 sm:$0xff]   ;;  %v1678_v6 = vld [vmem:[%s2393_s1 + $0x1c8] ss:$16 sps:$4 sm:$0xff]   ;;  %v1679_v7 = vld [vmem:[%s2393_s1 + $0x1e4] ss:$16 sps:$4 sm:$0xff]  }
  0x16   :  { %v46_v60 = vpack.c.bf16 %v39_v58, %v39_v58  ;;  %v1681_v8 = vld [vmem:[%s2393_s1 + $0x1ec] ss:$16 sps:$4 sm:$0xff]   ;;  %v1683_v10 = vld [vmem:[%s2393_s1 + $0x1e0] ss:$16 sps:$4 sm:$0xff]   ;;  %v1684_v11 = vld [vmem:[%s2393_s1 + $0x1e8] ss:$16 sps:$4 sm:$0xff]   ;;  %v40_v14 = vcombine.high %v2070_v9, %v2070_v9 }
  0x17   :  { %850 = vmatpush1.bf16.msra.mxu0 %v1623_v22  ;;  %932 = vmatpush1.bf16.msra.mxu1 %v1624_v23  ;;  %v1688_v12 = vld [vmem:[%s2393_s1 + $0x204] ss:$16 sps:$4 sm:$0xff]   ;;  %v1691_v13 = vld [vmem:[%s2393_s1 + $0x20c] ss:$16 sps:$4 sm:$0xff]   ;;  %v1686_v15 = vld [vmem:[%s2393_s1 + $0x200] ss:$16 sps:$4 sm:$0xff]  }
  0x18   :  { %851 = vmatprep.subr.bf16.mxu0 %v1625_v24  ;;  %933 = vmatprep.subr.bf16.mxu1 %v1627_v25  ;;  %v1689_v17 = vld [vmem:[%s2393_s1 + $0x208] ss:$16 sps:$4 sm:$0xff]   ;;  %v1694_v18 = vld [vmem:[%s2393_s1 + $0x224] ss:$16 sps:$4 sm:$0xff]   ;;  %v1697_v19 = vld [vmem:[%s2393_s1 + $0x22c] ss:$16 sps:$4 sm:$0xff]   ;;  %v48_v20 = vpack.c.bf16 %v40_v14, %v40_v14 }
  0x19   :  { %871 = vmatprep.mubr.bf16.mxu0 %v46_v60  ;;  %953 = vmatprep.mubr.bf16.mxu1 %v46_v60  ;;  %v1692_v21 = vld [vmem:[%s2393_s1 + $0x220] ss:$16 sps:$4 sm:$0xff]   ;;  %v1695_v22 = vld [vmem:[%s2393_s1 + $0x228] ss:$16 sps:$4 sm:$0xff]   ;;  %v1700_v23 = vld [vmem:[%s2393_s1 + $0x244] ss:$16 sps:$4 sm:$0xff]  }
  0x1a   :  { %v1703_v24 = vld [vmem:[%s2393_s1 + $0x24c] ss:$16 sps:$4 sm:$0xff]   ;;  %v1698_v25 = vld [vmem:[%s2393_s1 + $0x240] ss:$16 sps:$4 sm:$0xff]   ;;  %v1719_v38 = vld [vmem:[%s2393_s1 + $0x2a8] ss:$16 sps:$4 sm:$0xff]  }
  0x1b   :  { %852 = vmatpush1.bf16.msra.mxu0 %v1629_v26  ;;  %934 = vmatpush1.bf16.msra.mxu1 %v1630_v27  ;;  %v1701_v26 = vld [vmem:[%s2393_s1 + $0x248] ss:$16 sps:$4 sm:$0xff]   ;;  %v1706_v27 = vld [vmem:[%s2393_s1 + $0x264] ss:$16 sps:$4 sm:$0xff]   ;;  %v1721_v36 = vld [vmem:[%s2393_s1 + $0x2ac] ss:$16 sps:$4 sm:$0xff]  }
  0x1c   :  { %853 = vmatprep.subr.bf16.mxu0 %v1631_v28  ;;  %935 = vmatprep.subr.bf16.mxu1 %v1633_v29  ;;  %v1709_v28 = vld [vmem:[%s2393_s1 + $0x26c] ss:$16 sps:$4 sm:$0xff]   ;;  %v1704_v29 = vld [vmem:[%s2393_s1 + $0x260] ss:$16 sps:$4 sm:$0xff]   ;;  %v1725_v42 = vld [vmem:[%s2393_s1 + $0x2c8] ss:$16 sps:$4 sm:$0xff]  }
  0x1d   :  { %v1716_v37 = vld [vmem:[%s2393_s1 + $0x2a0] ss:$16 sps:$4 sm:$0xff]   ;;  %v1739_v49 = vld [vmem:[%s2393_s1 + $0x30c] ss:$16 sps:$4 sm:$0xff]   ;;  %v1742_v52 = vld [vmem:[%s2393_s1 + $0x324] ss:$16 sps:$4 sm:$0xff]  }
  0x1e   :  { %v1740_v54 = vld [vmem:[%s2393_s1 + $0x320] ss:$16 sps:$4 sm:$0xff]   ;;  %v1754_v60 = vld [vmem:[%s2393_s1 + $0x364] ss:$16 sps:$4 sm:$0xff]  }
  0x1f   :  { %854 = vmatpush1.bf16.msra.mxu0 %v1635_v30  ;;  %936 = vmatpush1.bf16.msra.mxu1 %v1636_v31  ;;  %v1707_v30 = vld [vmem:[%s2393_s1 + $0x268] ss:$16 sps:$4 sm:$0xff]   ;;  %v1712_v31 = vld [vmem:[%s2393_s1 + $0x284] ss:$16 sps:$4 sm:$0xff]   ;;  %v1746_v58 = vld [vmem:[%s2393_s1 + $0x340] ss:$16 sps:$4 sm:$0xff]  }
  0x20   :  { %855 = vmatprep.subr.bf16.mxu0 %v1637_v32  ;;  %937 = vmatprep.subr.bf16.mxu1 %v1639_v33  ;;  %v1715_v32 = vld [vmem:[%s2393_s1 + $0x28c] ss:$16 sps:$4 sm:$0xff]   ;;  %v1710_v33 = vld [vmem:[%s2393_s1 + $0x280] ss:$16 sps:$4 sm:$0xff]  }
  0x23   :  { %856 = vmatpush1.bf16.msra.mxu0 %v1641_v34  ;;  %938 = vmatpush1.bf16.msra.mxu1 %v1642_v35  ;;  %v1713_v34 = vld [vmem:[%s2393_s1 + $0x288] ss:$16 sps:$4 sm:$0xff]   ;;  %v1718_v35 = vld [vmem:[%s2393_s1 + $0x2a4] ss:$16 sps:$4 sm:$0xff]  }
  0x24   :  { %857 = vmatprep.subr.bf16.mxu0 %v1643_v39  ;;  %939 = vmatprep.subr.bf16.mxu1 %v1645_v40  ;;  %v1724_v39 = vld [vmem:[%s2393_s1 + $0x2c4] ss:$16 sps:$4 sm:$0xff]   ;;  %v1727_v40 = vld [vmem:[%s2393_s1 + $0x2cc] ss:$16 sps:$4 sm:$0xff]  }
  0x27   :  { %858 = vmatpush1.bf16.msra.mxu0 %v1647_v41  ;;  %940 = vmatpush1.bf16.msra.mxu1 %v1648_v44  ;;  %v1722_v41 = vld [vmem:[%s2393_s1 + $0x2c0] ss:$16 sps:$4 sm:$0xff]   ;;  %v1730_v44 = vld [vmem:[%s2393_s1 + $0x2e4] ss:$16 sps:$4 sm:$0xff]  }
  0x28   :  { %859 = vmatprep.subr.bf16.mxu0 %v1649_v45  ;;  %941 = vmatprep.subr.bf16.mxu1 %v1651_v46  ;;  %v1733_v45 = vld [vmem:[%s2393_s1 + $0x2ec] ss:$16 sps:$4 sm:$0xff]   ;;  %v1728_v46 = vld [vmem:[%s2393_s1 + $0x2e0] ss:$16 sps:$4 sm:$0xff]  }
  0x2b   :  { %860 = vmatpush1.bf16.msra.mxu0 %v1653_v47  ;;  %942 = vmatpush1.bf16.msra.mxu1 %v1654_v48  ;;  %v1731_v47 = vld [vmem:[%s2393_s1 + $0x2e8] ss:$16 sps:$4 sm:$0xff]   ;;  %v1736_v48 = vld [vmem:[%s2393_s1 + $0x304] ss:$16 sps:$4 sm:$0xff]  }
  0x2c   :  { %861 = vmatprep.subr.bf16.mxu0 %v1655_v50  ;;  %943 = vmatprep.subr.bf16.mxu1 %v1657_v51  ;;  %v1734_v50 = vld [vmem:[%s2393_s1 + $0x300] ss:$16 sps:$4 sm:$0xff]   ;;  %v1737_v51 = vld [vmem:[%s2393_s1 + $0x308] ss:$16 sps:$4 sm:$0xff]  }
  0x2f   :  { %862 = vmatpush1.bf16.msra.mxu0 %v1659_v53  ;;  %944 = vmatpush1.bf16.msra.mxu1 %v1660_v55  ;;  %v1745_v53 = vld [vmem:[%s2393_s1 + $0x32c] ss:$16 sps:$4 sm:$0xff]   ;;  %v1743_v55 = vld [vmem:[%s2393_s1 + $0x328] ss:$16 sps:$4 sm:$0xff]  }
  0x30   :  { %863 = vmatprep.subr.bf16.mxu0 %v1661_v56  ;;  %945 = vmatprep.subr.bf16.mxu1 %v1663_v57  ;;  %v1748_v56 = vld [vmem:[%s2393_s1 + $0x344] ss:$16 sps:$4 sm:$0xff]   ;;  %v1751_v57 = vld [vmem:[%s2393_s1 + $0x34c] ss:$16 sps:$4 sm:$0xff]  }
  0x33   :  { %864 = vmatpush1.bf16.msra.mxu0 %v1665_v59  ;;  %946 = vmatpush1.bf16.msra.mxu1 %v1666_v61  ;;  %v1749_v59 = vld [vmem:[%s2393_s1 + $0x348] ss:$16 sps:$4 sm:$0xff]   ;;  %v1757_v61 = vld [vmem:[%s2393_s1 + $0x36c] ss:$16 sps:$4 sm:$0xff]  }
  0x34   :  { %865 = vmatprep.subr.bf16.mxu0 %v1667_v62  ;;  %947 = vmatprep.subr.bf16.mxu1 %v1669_v63  ;;  %v1752_v62 = vld [vmem:[%s2393_s1 + $0x360] ss:$16 sps:$4 sm:$0xff]   ;;  %v1755_v63 = vld [vmem:[%s2393_s1 + $0x368] ss:$16 sps:$4 sm:$0xff]  }
  0x37   :  { %866 = vmatpush1.bf16.msra.mxu0 %v1671_v0  ;;  %948 = vmatpush1.bf16.msra.mxu1 %v1672_v1  ;;  %v1760_v0 = vld [vmem:[%s2393_s1 + $0x384] ss:$16 sps:$4 sm:$0xff]   ;;  %v1763_v1 = vld [vmem:[%s2393_s1 + $0x38c] ss:$16 sps:$4 sm:$0xff]  }
  0x38   :  { %867 = vmatprep.subr.bf16.mxu0 %v1673_v2  ;;  %949 = vmatprep.subr.bf16.mxu1 %v1675_v3  ;;  %v1758_v2 = vld [vmem:[%s2393_s1 + $0x380] ss:$16 sps:$4 sm:$0xff]   ;;  %v1761_v3 = vld [vmem:[%s2393_s1 + $0x388] ss:$16 sps:$4 sm:$0xff]  }
  0x3b   :  { %868 = vmatpush1.bf16.msra.mxu0 %v1677_v5  ;;  %950 = vmatpush1.bf16.msra.mxu1 %v1678_v6 }
  0x3c   :  { %869 = vmatprep.subr.bf16.mxu0 %v1679_v7  ;;  %951 = vmatprep.subr.bf16.mxu1 %v1681_v8 }
  0x3f   :  { %870 = vmatpush1.bf16.msra.mxu0 %v1683_v10  ;;  %952 = vmatpush1.bf16.msra.mxu1 %v1684_v11 }
  0x40   :  { %880 = vmatprep.subr.bf16.mxu0 %v1688_v12  ;;  %962 = vmatprep.subr.bf16.mxu1 %v1691_v13 }
  0x42   :  { %872 = vmatmul.mubr.bf16.vlgmr.msra.gmra.mrb[0].mxu0 %v45_v16  ;;  %954 = vmatmul.mubr.bf16.vlgmr.msra.gmra.mrb[0].mxu1 %v45_v16 }
  0x43   :  { %881 = vmatpush1.bf16.msra.mxu0 %v1686_v15  ;;  %963 = vmatpush1.bf16.msra.mxu1 %v1689_v17 }
  0x44   :  { %882 = vmatprep.subr.bf16.mxu0 %v1694_v18  ;;  %964 = vmatprep.subr.bf16.mxu1 %v1697_v19 }
  0x45   :  { %912 = vmatprep.mubr.bf16.mxu0 %v48_v20  ;;  %994 = vmatprep.mubr.bf16.mxu1 %v48_v20 }
  0x47   :  { %883 = vmatpush1.bf16.msra.mxu0 %v1692_v21  ;;  %965 = vmatpush1.bf16.msra.mxu1 %v1695_v22 }
  0x48   :  { %884 = vmatprep.subr.bf16.mxu0 %v1700_v23  ;;  %966 = vmatprep.subr.bf16.mxu1 %v1703_v24 }
  0x4b   :  { %885 = vmatpush1.bf16.msra.mxu0 %v1698_v25  ;;  %967 = vmatpush1.bf16.msra.mxu1 %v1701_v26 }
  0x4c   :  { %886 = vmatprep.subr.bf16.mxu0 %v1706_v27  ;;  %968 = vmatprep.subr.bf16.mxu1 %v1709_v28 }
  0x4f   :  { %887 = vmatpush1.bf16.msra.mxu0 %v1704_v29  ;;  %969 = vmatpush1.bf16.msra.mxu1 %v1707_v30 }
  0x50   :  { %888 = vmatprep.subr.bf16.mxu0 %v1712_v31  ;;  %970 = vmatprep.subr.bf16.mxu1 %v1715_v32 }
  0x53   :  { %889 = vmatpush1.bf16.msra.mxu0 %v1710_v33  ;;  %971 = vmatpush1.bf16.msra.mxu1 %v1713_v34 }
  0x54   :  { %890 = vmatprep.subr.bf16.mxu0 %v1718_v35  ;;  %972 = vmatprep.subr.bf16.mxu1 %v1721_v36 }
  0x57   :  { %891 = vmatpush1.bf16.msra.mxu0 %v1716_v37  ;;  %973 = vmatpush1.bf16.msra.mxu1 %v1719_v38 }
  0x58   :  { %892 = vmatprep.subr.bf16.mxu0 %v1724_v39  ;;  %974 = vmatprep.subr.bf16.mxu1 %v1727_v40 }
  0x5b   :  { %893 = vmatpush1.bf16.msra.mxu0 %v1722_v41  ;;  %975 = vmatpush1.bf16.msra.mxu1 %v1725_v42 }
  0x5c   :  { %894 = vmatprep.subr.bf16.mxu0 %v1730_v44  ;;  %976 = vmatprep.subr.bf16.mxu1 %v1733_v45 }
  0x5f   :  { %895 = vmatpush1.bf16.msra.mxu0 %v1728_v46  ;;  %977 = vmatpush1.bf16.msra.mxu1 %v1731_v47 }
  0x60   :  { %896 = vmatprep.subr.bf16.mxu0 %v1736_v48  ;;  %978 = vmatprep.subr.bf16.mxu1 %v1739_v49 }
  0x63   :  { %897 = vmatpush1.bf16.msra.mxu0 %v1734_v50  ;;  %979 = vmatpush1.bf16.msra.mxu1 %v1737_v51 }
  0x64   :  { %898 = vmatprep.subr.bf16.mxu0 %v1742_v52  ;;  %980 = vmatprep.subr.bf16.mxu1 %v1745_v53 }
  0x67   :  { %899 = vmatpush1.bf16.msra.mxu0 %v1740_v54  ;;  %981 = vmatpush1.bf16.msra.mxu1 %v1743_v55 }
  0x68   :  { %900 = vmatprep.subr.bf16.mxu0 %v1748_v56  ;;  %982 = vmatprep.subr.bf16.mxu1 %v1751_v57 }
  0x6b   :  { %901 = vmatpush1.bf16.msra.mxu0 %v1746_v58  ;;  %983 = vmatpush1.bf16.msra.mxu1 %v1749_v59 }
  0x6c   :  { %902 = vmatprep.subr.bf16.mxu0 %v1754_v60  ;;  %984 = vmatprep.subr.bf16.mxu1 %v1757_v61 }
  0x6f   :  { %903 = vmatpush1.bf16.msra.mxu0 %v1752_v62  ;;  %985 = vmatpush1.bf16.msra.mxu1 %v1755_v63 }
  0x70   :  { %10 = vsyncpa [#allocation3], 0  ;;  %904 = vmatprep.subr.bf16.mxu0 %v1760_v0  ;;  %986 = vmatprep.subr.bf16.mxu1 %v1763_v1  ;;  %v1766_v4 = vld [vmem:[%s2393_s1 + $0x3a4] ss:$16 sps:$4 sm:$0xff]   ;;  %v1769_v5 = vld [vmem:[%s2393_s1 + $0x3ac] ss:$16 sps:$4 sm:$0xff]   ;;  %v47_v19 = vpack.c.bf16 %v2070_v9, %v2070_v9 }
  0x71   :  { %v1764_v6 = vld [vmem:[%s2393_s1 + $0x3a0] ss:$16 sps:$4 sm:$0xff]   ;;  %v1767_v7 = vld [vmem:[%s2393_s1 + $0x3a8] ss:$16 sps:$4 sm:$0xff]   ;;  %v1772_v8 = vld [vmem:[%s2393_s1 + $0x3c4] ss:$16 sps:$4 sm:$0xff]  }
  0x72   :  { %v1775_v10 = vld [vmem:[%s2393_s1 + $0x3cc] ss:$16 sps:$4 sm:$0xff]   ;;  %v1770_v11 = vld [vmem:[%s2393_s1 + $0x3c0] ss:$16 sps:$4 sm:$0xff]   ;;  %v1773_v12 = vld [vmem:[%s2393_s1 + $0x3c8] ss:$16 sps:$4 sm:$0xff]  }
  0x73   :  { %905 = vmatpush1.bf16.msra.mxu0 %v1758_v2  ;;  %987 = vmatpush1.bf16.msra.mxu1 %v1761_v3  ;;  %v1778_v13 = vld [vmem:[%s2393_s1 + $0x3e4] ss:$16 sps:$4 sm:$0xff]   ;;  %v1781_v14 = vld [vmem:[%s2393_s1 + $0x3ec] ss:$16 sps:$4 sm:$0xff]   ;;  %v1776_v15 = vld [vmem:[%s2393_s1 + $0x3e0] ss:$16 sps:$4 sm:$0xff]  }
  0x74   :  { %906 = vmatprep.subr.bf16.mxu0 %v1766_v4  ;;  %988 = vmatprep.subr.bf16.mxu1 %v1769_v5  ;;  %v1779_v16 = vld [vmem:[%s2393_s1 + $0x3e8] ss:$16 sps:$4 sm:$0xff]   ;;  %v1782_v17 = vld [vmem:[%s2395_s3 + $0x40] sm:$0xff]   ;;  %v1790_v25 = vld [vmem:[%s2395_s3 + $0x50] sm:$0xff]   ;;  %v181_v50 = vsub.s32 0, %v1995_v43  ;;  %v189_v51 = vsub.s32 2, %v1995_v43 }
  0x75   :  { %v1783_v18 = vld [vmem:[%s2395_s3 + $0xc0] sm:$0xff]   ;;  %v1786_v22 = vld [vmem:[%s2395_s3 + $0x48] sm:$0xff]   ;;  %v1791_v26 = vld [vmem:[%s2395_s3 + $0xd0] sm:$0xff]   ;;  %v185_v53 = vsub.s32 1, %v1995_v43  ;;  %v193_v54 = vsub.s32 3, %v1995_v43  ;;  %s1847_s30 = smov [#allocation2]  }
  0x76   :  { %v1784_v20 = vld [vmem:[%s2395_s3] sm:$0xff]   ;;  %v1787_v9 = vld [vmem:[%s2395_s3 + $0xc8] sm:$0xff]   ;;  %v1792_v27 = vld [vmem:[%s2395_s3 + $0x10] sm:$0xff]   ;;  %s1362_s6 = sshll.u32 %s1847_s30, 4  ;;  %vm1354_vm0 = vcmask 17408   ;;  %s1363_s6 = int_to_ptr.vmem [resolvable:$true] %s1362_s6 }
  0x77   :  { %907 = vmatpush1.bf16.msra.mxu0 %v1764_v6  ;;  %989 = vmatpush1.bf16.msra.mxu1 %v1767_v7  ;;  %v1785_v21 = vld [vmem:[%s2395_s3 + $0x80] sm:$0xff]   ;;  %v1788_v23 = vld [vmem:[%s2395_s3 + $0x8] sm:$0xff]   ;;  %v1793_v28 = vld [vmem:[%s2395_s3 + $0x90] sm:$0xff]   ;;  %s1822_s7 = scalar_lea.vmem %s1363_s6, 32  ;;  %p1827_p1 = scmp.lt.s32.totalorder %s1363_s6, %s1363_s6 }
  0x78   :  { %908 = vmatprep.subr.bf16.mxu0 %v1772_v8  ;;  %990 = vmatprep.subr.bf16.mxu1 %v1775_v10  ;;  %v1789_v24 = vld [vmem:[%s2395_s3 + $0x88] sm:$0xff]   ;;  %v1794_v29 = vld [vmem:[%s2395_s3 + $0x58] sm:$0xff]   ;;  %v1798_v33 = vld [vmem:[%s2395_s3 + $0x60] sm:$0xff]   ;;  %p1823_p0 = scmp.ne.s32.totalorder %s1363_s6, %s1822_s7  ;;  %p1828_p2 = scmp.lt.s32.totalorder %s1822_s7, %s1822_s7 }
  0x79   :  { %v1795_v30 = vld [vmem:[%s2395_s3 + $0xd8] sm:$0xff]   ;;  %v1799_v34 = vld [vmem:[%s2395_s3 + $0xe0] sm:$0xff]   ;;  %v1802_v37 = vld [vmem:[%s2395_s3 + $0x68] sm:$0xff]  }
  0x7a   :  { %v1796_v31 = vld [vmem:[%s2395_s3 + $0x18] sm:$0xff]   ;;  %v1800_v35 = vld [vmem:[%s2395_s3 + $0x20] sm:$0xff]   ;;  %v1803_v38 = vld [vmem:[%s2395_s3 + $0xe8] sm:$0xff]   ;;  %p1829_p3 = por %p1828_p2, %p1827_p1 }
  0x7b   :  { %909 = vmatpush1.bf16.msra.mxu0 %v1770_v11  ;;  %991 = vmatpush1.bf16.msra.mxu1 %v1773_v12  ;;  %v1797_v32 = vld [vmem:[%s2395_s3 + $0x98] sm:$0xff]   ;;  %v1801_v36 = vld [vmem:[%s2395_s3 + $0xa0] sm:$0xff]   ;;  %v1804_v39 = vld [vmem:[%s2395_s3 + $0x28] sm:$0xff]  }
  0x7c   :  { %910 = vmatprep.subr.bf16.mxu0 %v1778_v13  ;;  %992 = vmatprep.subr.bf16.mxu1 %v1781_v14  ;;  %v1805_v40 = vld [vmem:[%s2395_s3 + $0xa8] sm:$0xff]   ;;  %v1806_v41 = vld [vmem:[%s2395_s3 + $0x70] sm:$0xff]   ;;  %v1810_v46 = vld [vmem:[%s2395_s3 + $0x78] sm:$0xff]   ;;  %p1830_p4 = pnand %p1829_p3, %p1823_p0 }
  0x7d   :  { %v1807_v42 = vld [vmem:[%s2395_s3 + $0xf0] sm:$0xff]   ;;  %v1811_v47 = vld [vmem:[%s2395_s3 + $0xf8] sm:$0xff]   ;;  %v177_v52 = vld [vmem:[%s2394_s2] sm:$0xf] }
  0x7e   :  { %v1808_v44 = vld [vmem:[%s2395_s3 + $0x30] sm:$0xff]   ;;  %v1812_v48 = vld [vmem:[%s2395_s3 + $0x38] sm:$0xff]   ;;  %v182_v55 = vrot.slane %v177_v52, %v181_v50  ;;  %v190_v56 = vrot.slane %v177_v52, %v189_v51  ;;  %v186_v57 = vrot.slane %v177_v52, %v185_v53  ;;  %v194_v58 = vrot.slane %v177_v52, %v193_v54 }
  0x7f   :  { %911 = vmatpush1.bf16.msra.mxu0 %v1776_v15  ;;  %993 = vmatpush1.bf16.msra.mxu1 %v1779_v16  ;;  %v1809_v45 = vld [vmem:[%s2395_s3 + $0xb0] sm:$0xff]   ;;  %v1813_v49 = vld [vmem:[%s2395_s3 + $0xb8] sm:$0xff]  }
  0x80   :  { %1531 = vmatprep.subr.bf16.mxu0 %v1782_v17  ;;  %1553 = vmatprep.subr.bf16.mxu1 %v1783_v18  ;;  %v1498_v17 = vld [vmem:[%s2396_s4] ss:$0 sm:$0xff] }
  0x82   :  { %913 = vmatmul.mubr.bf16.vlgmr.msra.gmra.mrb[0].mxu0 %v47_v19  ;;  %995 = vmatmul.mubr.bf16.vlgmr.msra.gmra.mrb[0].mxu1 %v47_v19 }
  0x83   :  { %1532 = vmatpush3.bf16.msra.mxu0 %v1784_v20  ;;  %1554 = vmatpush3.bf16.msra.mxu1 %v1785_v21 }
  0x84   :  { %1533 = vmatprep.subr.bf16.mxu0 %v1786_v22  ;;  %1555 = vmatprep.subr.bf16.mxu1 %v1787_v9 }
  0x87   :  { %1534 = vmatpush3.bf16.msra.mxu0 %v1788_v23  ;;  %1556 = vmatpush3.bf16.msra.mxu1 %v1789_v24 }
  0x88   :  { %1535 = vmatprep.subr.bf16.mxu0 %v1790_v25  ;;  %1557 = vmatprep.subr.bf16.mxu1 %v1791_v26 }
  0x8b   :  { %1536 = vmatpush3.bf16.msra.mxu0 %v1792_v27  ;;  %1558 = vmatpush3.bf16.msra.mxu1 %v1793_v28 }
  0x8c   :  { %1537 = vmatprep.subr.bf16.mxu0 %v1794_v29  ;;  %1559 = vmatprep.subr.bf16.mxu1 %v1795_v30 }
  0x8f   :  { %1538 = vmatpush3.bf16.msra.mxu0 %v1796_v31  ;;  %1560 = vmatpush3.bf16.msra.mxu1 %v1797_v32 }
  0x90   :  { %1539 = vmatprep.subr.bf16.mxu0 %v1798_v33  ;;  %1561 = vmatprep.subr.bf16.mxu1 %v1799_v34 }
  0x93   :  { %1540 = vmatpush3.bf16.msra.mxu0 %v1800_v35  ;;  %1562 = vmatpush3.bf16.msra.mxu1 %v1801_v36 }
  0x94   :  { %1541 = vmatprep.subr.bf16.mxu0 %v1802_v37  ;;  %1563 = vmatprep.subr.bf16.mxu1 %v1803_v38 }
  0x97   :  { %1542 = vmatpush3.bf16.msra.mxu0 %v1804_v39  ;;  %1564 = vmatpush3.bf16.msra.mxu1 %v1805_v40 }
  0x98   :  { %1543 = vmatprep.subr.bf16.mxu0 %v1806_v41  ;;  %1565 = vmatprep.subr.bf16.mxu1 %v1807_v42 }
  0x9b   :  { %1544 = vmatpush3.bf16.msra.mxu0 %v1808_v44  ;;  %1566 = vmatpush3.bf16.msra.mxu1 %v1809_v45 }
  0x9c   :  { %1545 = vmatprep.subr.bf16.mxu0 %v1810_v46  ;;  %1567 = vmatprep.subr.bf16.mxu1 %v1811_v47 }
  0x9f   :  { %1546 = vmatpush3.bf16.msra.mxu0 %v1812_v48  ;;  %1568 = vmatpush3.bf16.msra.mxu1 %v1813_v49 }
 0x155   :  { %v914_v59 = vpop.f32.mrb[0].mxu0  ;;  %v996_v60 = vpop.f32.mrb[0].mxu1 }
 0x156   :  { %v1575_v61 = vadd.f32 %v914_v59, %v182_v55  ;;  %v1577_v62 = vadd.f32 %v996_v60, %v190_v56  ;;  %v916_v63 = vpop.f32.mrb[1].mxu0  ;;  %v998_v0 = vpop.f32.mrb[1].mxu1 }
 0x157   :  { %v1576_v1 = vadd.f32 %v916_v63, %v186_v57  ;;  %v1578_v2 = vadd.f32 %v998_v0, %v194_v58  ;;  %v918_v3 = vpop.f32.mrb[2].mxu0  ;;  %v1000_v4 = vpop.f32.mrb[2].mxu1 }
 0x158   :  { %1814 = vtanh.f32 %v1575_v61  ;;  %v919_v5 = vpop.f32.mrb[3].mxu0  ;;  %v1001_v6 = vpop.f32.mrb[3].mxu1 }
 0x159   :  { %1816 = vtanh.f32 %v1577_v62 }
 0x15a   :  { %1818 = vtanh.f32 %v1576_v1 }
 0x15b   :  { %1820 = vtanh.f32 %v1578_v2 }
 0x162   :  { %v1815_v43 = vpop.eup %1814 }
 0x163   :  { %v1817_v7 = vpop.eup %1816  ;;  %v1007_v12 = vpack.c.bf16 %v1815_v43, %v1815_v43 }
 0x164   :  { %v1819_v8 = vpop.eup %1818  ;;  %v1009_v14 = vpack.c.bf16 %v1817_v7, %v1817_v7 }
 0x165   :  { %v1821_v10 = vpop.eup %1820  ;;  %v1008_v11 = vpack.c.bf16 %v1819_v8, %v1819_v8 }
 0x166   :  { %v1010_v13 = vpack.c.bf16 %v1821_v10, %v1821_v10 }
 0x167   :  { %1306 = vmatprep.mubr.bf16.mxu0 %v1008_v11 }
 0x168   :  { %1346 = vmatprep.mubr.bf16.mxu1 %v1010_v13  ;;  %1307 = vmatmul.mubr.bf16.vlgmr.msra.gmra.mrb[4].mxu0 %v1007_v12 }
 0x169   :  { %1347 = vmatmul.mubr.bf16.vlgmr.msra.gmra.mrb[4].mxu1 %v1009_v14 }
 0x23b   :  { %v1547_v15 = vpop.f32.mrb[4].mxu0 }
 0x23c   :  { %v1569_v16 = vpop.f32.mrb[4].mxu1  ;;  %v1548_v18 = vpop.f32.mrb[5].mxu0 }
 0x23d   :  { %v1549_v19 = vadd.f32 %v1548_v18, %v1547_v15  ;;  %v1570_v20 = vpop.f32.mrb[5].mxu1  ;;  %v1550_v21 = vpop.f32.mrb[6].mxu0 }
 0x23e   :  { %v1571_v22 = vadd.f32 %v1570_v20, %v1569_v16  ;;  %v1572_v9 = vpop.f32.mrb[6].mxu1  ;;  %v1551_v23 = vpop.f32.mrb[7].mxu0 }
 0x23f   :  { %v1309_v24 = vadd.f32 %v1549_v19, %v1498_v17  ;;  %v1573_v25 = vpop.f32.mrb[7].mxu1 }
 0x241   :  { %v1349_v26 = vadd.f32 %v1571_v22, %v1309_v24 }
 0x243   :  { %1355 = vst.msk [vmem:[#allocation2] sm:$0x3] %vm1354_vm0, %v1349_v26 }
 0x244   :  { %1833 = shalt.err (!%p1830_p4)
}
 0x245   :  { %s1834_s9 = scalar_lea.hbm %s2397_s5, 32 }
 0x246   :  { %p1835_p5 = scmp.ne.s32.totalorder %s2397_s5, %s1834_s9  ;;  %p1838_p6 = scmp.lt.u32.totalorder %s1834_s9, %s2397_s5 }
 0x248   :  { %p1840_p7 = pnand %p1838_p6, %p1835_p5 }
 0x24a   :  { %1843 = shalt.err (!%p1840_p7)
}
 0x24b   :  { %1365 = dma.vmem_to_hbm [thread:$0]  %s1363_s6, 32, %s2397_s5, [#allocation3]  }
 0x24c   :  { %1844 = dma.done.wait [#allocation3], 32  }
 0x24d   :  { %1845 = vsyncadd [#allocation3], 4294967264 }
 0x24e   :  { %1369 = vsyncpa [#allocation3], 1 }

// kernel: _lambda_.2
= control target key start
LH: loop header
LB: loop body
LE: loop exit
PB: predicated region body
PF: predicated region fallthrough
CT: control target
= control target key end

     0   :  { %s23732_s0 = inlined_call_operand.vmem [shape: f32[16,512], index: 0, kind: input, shape index: {}]   ;;  %s23733_s1 = inlined_call_operand.vmem [shape: f32[2,8], index: 1, kind: input, shape index: {}]   ;;  %s23734_s2 = inlined_call_operand.hbm [shape: f32[1,512], index: 2, kind: input, shape index: {}]   ;;  %s23735_s3 = inlined_call_operand.hbm [shape: f32[1,512], index: 3, kind: input, shape index: {}]   ;;  %s23736_s4 = inlined_call_operand.hbm [shape: bf16[4,512,1536], index: 4, kind: input, shape index: {}]   ;;  %s23737_s5 = inlined_call_operand.hbm [shape: f32[4,1,1536], index: 5, kind: input, shape index: {}]   ;;  %s23738_s6 = inlined_call_operand.hbm [shape: bf16[4,512,512], index: 6, kind: input, shape index: {}]   ;;  %s23739_s7 = inlined_call_operand.hbm [shape: f32[4,1,512], index: 7, kind: input, shape index: {}]   ;;  %s23740_s8 = inlined_call_operand.hbm [shape: f32[4,1,512], index: 8, kind: input, shape index: {}]   ;;  %s23741_s9 = inlined_call_operand.hbm [shape: f32[4,1,512], index: 9, kind: input, shape index: {}]   ;;  %s23742_s10 = inlined_call_operand.hbm [shape: bf16[4,512,2048], index: 10, kind: input, shape index: {}]   ;;  %s23743_s11 = inlined_call_operand.hbm [shape: f32[4,1,2048], index: 11, kind: input, shape index: {}]   ;;  %s23744_s12 = inlined_call_operand.hbm [shape: bf16[4,2048,512], index: 12, kind: input, shape index: {}]   ;;  %s23745_s13 = inlined_call_operand.hbm [shape: f32[4,1,512], index: 13, kind: input, shape index: {}]   ;;  %s23746_s14 = inlined_call_operand.hbm [shape: f32[4,1,512], index: 14, kind: input, shape index: {}]   ;;  %s23747_s15 = inlined_call_operand.hbm [shape: f32[4,1,512], index: 15, kind: input, shape index: {}]   ;;  %s23748_s16 = inlined_call_operand.vmem [shape: f32[16,512], index: 16, kind: output, shape index: {}]  }
   0x1   :  { %23780 = sst [smem:[#allocation30_spill]] %s23732_s0 }
   0x2   :  { %23781 = sst [smem:[#allocation31_spill]] %s23733_s1 }
   0x3   :  { %23782 = sst [smem:[#allocation32_spill]] %s23734_s2 }
   0x4   :  { %23783 = sst [smem:[#allocation33_spill]] %s23735_s3 }
   0x5   :  { %23784 = sst [smem:[#allocation34_spill]] %s23736_s4 }
   0x6   :  { %23785 = sst [smem:[#allocation35_spill]] %s23737_s5 }
   0x7   :  { %23786 = sst [smem:[#allocation36_spill]] %s23738_s6 }
   0x8   :  { %23787 = sst [smem:[#allocation37_spill]] %s23747_s15 }
   0x9   :  { %23788 = sst [smem:[#allocation38_spill]] %s23748_s16 }
   0xa   :  { %21 = vsyncpa [#allocation5], 0 }
   0xb   :  { %22 = vsyncpa [#allocation7], 0  ;;  %s20510_s21 = smov 0   ;;  %s20512_s22 = smov 0  }
   0xc   :  { %s20514_s23 = smov 0   ;;  %s20516_s24 = smov 0  }
   0xd LB: > { %23789 = sst [smem:[#allocation23_spill]] %s20392_s22  ;;  %s20529_s25 = sadd.s32 4294967295, %s20400_s24   ;;  %s20400_s24 = sphi %s20516_s24, %s23842_s24   ;;  %s20396_s23 = sphi %s20514_s23, %s23845_s23   ;;  %s20392_s22 = sphi %s20512_s22, %s23844_s22   ;;  %s20388_s21 = sphi %s20510_s21, %s23843_s21  }
   0xe   : > { %23790 = sst [smem:[#allocation24_spill]] %s20396_s23  ;;  %s20532_s26 = sadd.s32 1, %s20400_s24  }
   0xf   : > { %23791 = sst [smem:[#allocation25_spill]] %s20529_s25  ;;  %s116_s27 = ssub.s32 %s20400_s24, %s20532_s26 }
  0x10   : > { %23792 = sst [smem:[#allocation26_spill]] %s20532_s26  ;;  %s119_s28 = sadd.s32 1, %s20396_s23 }
  0x11   : > { %p117_p0 = scmp.eq.s32.totalorder %s116_s27, 0  ;;  %p126_p1 = scmp.ne.s32.totalorder %s20396_s23, %s20392_s22 }
  0x12   : > { %p127_p2 = scmp.eq.s32.totalorder %s20400_s24, 0  ;;  %p132_p3 = scmp.ne.s32.totalorder %s20392_s22, %s20388_s21 }
  0x13   : > { %s20542_s29 = scalar_select %p117_p0, %s20396_s23, %s119_s28  }
  0x14   : > { %p20544_p4 = por %p127_p2, %p126_p1  ;;  %p23758_p5 = scmp.eq.s32.totalorder %s20529_s25, 0 }
  0x15   : > { %23793 = sst [smem:[#allocation27_spill]] %s20542_s29  ;;  %p16066_p6 = scmp.ge.s32.totalorder %s20400_s24, 1 }
  0x16   : > { %p450_p7 = scmp.lt.s32.totalorder %s20400_s24, 5  ;;  %p20553_p8 = por %p23758_p5, %p132_p3 }
  0x17   : > { %s20402_s18 = smov [#allocation4]   ;;  %p18212_p12 = scmp.lt.s32.totalorder %s20400_s24, 4 }
  0x18   : > { %s23795_s0 = scalar_select %p20553_p8, 1, 0 }
  0x19   : > { %p20558_p10 = pnand %p16066_p6, %p450_p7  ;;  %s469_s19 = sshll.u32 %s20402_s18, 4  ;;  %s470_s19 = int_to_ptr.vmem [resolvable:$true] %s469_s19 }
  0x1a   : > { %23796 = sst [smem:[#allocation28_spill]] %s23795_s0  ;;  %s20566_s20 = sand.u32 1, %s20396_s23  }
  0x1b   : > { %s23797_s17 = scalar_select %p20558_p10, 1, 0 }
  0x1c   : > { %p18166_p11 = pneg %p20558_p10  ;;  %s491_s27 = sand.u32 1, %s20400_s24  }
  0x1d   : > { %23798 = sst [smem:[#allocation29_spill]] %s23797_s17  ;;  %p20577_p0 = pnand %p18212_p12, %p20544_p4 }
  0x1e   : > { %p20570_p13 = pnand %p18166_p11, %p23758_p5  ;;  %s18128_s18 = smul.u32 3072, %s20566_s20 }
  0x1f   : > { %s23800_s28 = scalar_select %p20577_p0, 1, 0 }
  0x20   : > { %s23799_s21 = scalar_select %p20570_p13, 1, 0 }
  0x21   : > { %s23801_s2 = sld [smem:[#allocation32_spill]]  ;;  %p23764_p2 = pneg %p20570_p13 }
  0x27   : > { %s19942_s23 = scalar_lea.hbm %s23801_s2, 64 }
  0x28   : > { %p19943_p1 = scmp.ne.s32.totalorder %s23801_s2, %s19942_s23  ;;  %p19949_p4 = scmp.lt.u32.totalorder %s19942_s23, %s23801_s2 }
  0x2a   : > { %p19945_p3 = pnand %p23764_p2, %p19943_p1 }
  0x2c   : > { %p19946_p6 = pneg %p19945_p3 }
  0x2e   : > { %p19951_p7 = pnand %p19949_p4, %p19946_p6 }
  0x30   : > { %19954 = shalt.err (!%p19951_p7)
}
  0x31   : > { %s19955_s22 = scalar_lea.vmem %s470_s19, 64  ;;  %p19963_p5 = scmp.lt.s32.totalorder %s470_s19, %s470_s19 }
  0x32   : > { %p19956_p11 = scmp.ne.s32.totalorder %s470_s19, %s19955_s22  ;;  %p19964_p8 = scmp.lt.s32.totalorder %s19955_s22, %s19955_s22 }
  0x34   : > { %p19958_p12 = pnand %p19956_p11, %p23764_p2  ;;  %p19965_p10 = por %p19964_p8, %p19963_p5 }
  0x36   : > { %p19959_p9 = pneg %p19958_p12 }
  0x38   : > { %p19966_p0 = pnand %p19965_p10, %p19959_p9 }
  0x3a   : > { %19969 = shalt.err (!%p19966_p0)
}
  0x3b   : > { %18169 = dma.hbm_to_vmem [thread:$0]  (!%p20570_p13), %s23801_s2, 64, %s470_s19, [#allocation5]  }
  0x3c   : > { %s18129_s23 = smul.u32 49152, %s20400_s24  ;;  %s495_s26 = scalar_lea.vmem [#allocation8], %s18128_s18 }
  0x3d   : > { %s502_s29 = sshll.u32 %s495_s26, 4  ;;  %s23802_s4 = sld [smem:[#allocation34_spill]]  ;;  %s20605_s29 = int_to_ptr.vmem [resolvable:$true] %s502_s29 }
  0x3e   : > { %s20612_s25 = scalar_lea.sflag [#allocation5], %s491_s27  ;;  %p23803_p8 = scmp.ne.s32.totalorder %s23800_s28, 0 }
  0x40   : > { %p20618_p9 = pneg %p23803_p8 }
  0x42   : > { %s23804_s19 = scalar_select %p20618_p9, 1, 0 }
  0x43   : > { %s20610_s22 = scalar_lea.hbm %s23802_s4, %s18129_s23  ;;  %s19975_s23 = scalar_lea.hbm %s23802_s4, 196608 }
  0x44   : > { %s19970_s1 = scalar_lea.hbm %s20610_s22, 49152  ;;  %p19976_p1 = scmp.lt.u32.totalorder %s20610_s22, %s23802_s4 }
  0x45   : > { %p19971_p5 = scmp.ne.s32.totalorder %s20610_s22, %s19970_s1  ;;  %p19977_p3 = scmp.lt.u32.totalorder %s19975_s23, %s19970_s1 }
  0x46   : > { %p19979_p4 = scmp.lt.u32.totalorder %s19970_s1, %s20610_s22 }
  0x47   : > { %p19973_p10 = pnand %p20618_p9, %p19971_p5  ;;  %p19978_p6 = por %p19977_p3, %p19976_p1 }
  0x49   : > { %p19974_p0 = pneg %p19973_p10  ;;  %p19980_p7 = por %p19979_p4, %p19978_p6 }
  0x4b   : > { %p19981_p11 = pnand %p19980_p7, %p19974_p0 }
  0x4d   : > { %19984 = shalt.err (!%p19981_p11)
}
  0x4e   : > { %s19985_s27 = scalar_lea.vmem %s20605_s29, 49152  ;;  %s20403_s30 = smov [#allocation8]  }
  0x4f   : > { %p19986_p12 = scmp.ne.s32.totalorder %s20605_s29, %s19985_s27  ;;  %s19990_s18 = sshll.u32 %s20403_s30, 4  ;;  %s19991_s18 = int_to_ptr.vmem [resolvable:$false] %s19990_s18 }
  0x50   : > { %s19992_s16 = scalar_lea.vmem %s19991_s18, 98304  ;;  %p19993_p2 = scmp.lt.s32.totalorder %s20605_s29, %s19991_s18 }
  0x51   : > { %p19988_p5 = pnand %p19986_p12, %p20618_p9  ;;  %p19994_p13 = scmp.lt.s32.totalorder %s19992_s16, %s19985_s27 }
  0x53   : > { %p19989_p10 = pneg %p19988_p5  ;;  %p19995_p1 = por %p19994_p13, %p19993_p2 }
  0x55   : > { %p19996_p3 = pnand %p19995_p1, %p19989_p10 }
  0x57   : > { %19999 = shalt.err (!%p19996_p3)
}
  0x58   : > { %s20404_s1 = smov 768   ;;  %s20405_s23 = smov 48  }
  0x59   : > { %18176 = dma.hbm_to_vmem [thread:$0]  (!%p23803_p8), %s20610_s22, 49152, %s20605_s29, %s20612_s25, %s20404_s1, %s20404_s1, %s20405_s23  }
  0x5a   : > { %s18130_s26 = smul.u32 12, %s20566_s20  ;;  %s16072_s0 = sshll.u32 %s20566_s20, 10 }
  0x5b   : > { %s18131_s30 = smul.u32 192, %s20400_s24  ;;  %s17702_s27 = sshll.u32 %s20400_s24, 14 }
  0x5c   : > { %s23805_s5 = sld [smem:[#allocation35_spill]]  ;;  %s516_s4 = scalar_lea.vmem [#allocation9], %s18130_s26 }
  0x5d   : > { %s524_s17 = sshll.u32 %s516_s4, 4  ;;  %s23806_s6 = sld [smem:[#allocation36_spill]]  ;;  %s525_s17 = int_to_ptr.vmem [resolvable:$true] %s524_s17 }
  0x62   : > { %s20649_s2 = scalar_lea.hbm %s23805_s5, %s18131_s30  ;;  %s20005_s30 = scalar_lea.hbm %s23805_s5, 768 }
  0x63   : > { %s20654_s29 = scalar_lea.hbm %s23806_s6, %s17702_s27  ;;  %s20000_s22 = scalar_lea.hbm %s20649_s2, 192 }
  0x64   : > { %p20001_p13 = scmp.ne.s32.totalorder %s20649_s2, %s20000_s22  ;;  %p20006_p6 = scmp.lt.u32.totalorder %s20649_s2, %s23805_s5 }
  0x65   : > { %p20007_p4 = scmp.lt.u32.totalorder %s20005_s30, %s20000_s22  ;;  %p20009_p11 = scmp.lt.u32.totalorder %s20000_s22, %s20649_s2 }
  0x66   : > { %p20003_p2 = pnand %p20001_p13, %p20618_p9 }
  0x67   : > { %p20008_p7 = por %p20007_p4, %p20006_p6 }
  0x68   : > { %p20004_p0 = pneg %p20003_p2 }
  0x69   : > { %p20010_p12 = por %p20009_p11, %p20008_p7 }
  0x6b   : > { %p20011_p5 = pnand %p20010_p12, %p20004_p0 }
  0x6d   : > { %20014 = shalt.err (!%p20011_p5)
}
  0x6e   : > { %s20015_s3 = scalar_lea.vmem %s525_s17, 192  ;;  %s20406_s4 = smov [#allocation9]  }
  0x6f   : > { %p20016_p10 = scmp.ne.s32.totalorder %s525_s17, %s20015_s3  ;;  %s20020_s15 = sshll.u32 %s20406_s4, 4  ;;  %s20021_s15 = int_to_ptr.vmem [resolvable:$false] %s20020_s15 }
  0x70   : > { %s20022_s26 = scalar_lea.vmem %s20021_s15, 384  ;;  %p20023_p13 = scmp.lt.s32.totalorder %s525_s17, %s20021_s15 }
  0x71   : > { %p20018_p1 = pnand %p20016_p10, %p20618_p9  ;;  %p20024_p2 = scmp.lt.s32.totalorder %s20022_s26, %s20015_s3 }
  0x73   : > { %p20019_p3 = pneg %p20018_p1  ;;  %p20025_p8 = por %p20024_p2, %p20023_p13 }
  0x75   : > { %p20026_p4 = pnand %p20025_p8, %p20019_p3 }
  0x77   : > { %20029 = shalt.err (!%p20026_p4)
}
  0x78   : > { %p23807_p6 = scmp.ne.s32.totalorder %s23800_s28, 0  ;;  %s535_s27 = scalar_lea.vmem [#allocation10], %s16072_s0 }
  0x79   : > { %s542_s22 = sshll.u32 %s535_s27, 4  ;;  %s20030_s1 = scalar_lea.hbm %s20654_s29, 16384  ;;  %s20676_s22 = int_to_ptr.vmem [resolvable:$true] %s542_s22 }
  0x7a   : > { %18179 = dma.hbm_to_vmem [thread:$0]  (!%p23807_p6), %s20649_s2, 192, %s525_s17, %s20612_s25  }
  0x7b   : > { %p20031_p0 = scmp.ne.s32.totalorder %s20654_s29, %s20030_s1  ;;  %s20035_s18 = scalar_lea.hbm %s23806_s6, 65536 }
  0x7c   : > { %p20036_p11 = scmp.lt.u32.totalorder %s20654_s29, %s23806_s6  ;;  %p20037_p12 = scmp.lt.u32.totalorder %s20035_s18, %s20030_s1 }
  0x7d   : > { %p20033_p8 = pnand %p20031_p0, %p20618_p9  ;;  %p20039_p10 = scmp.lt.u32.totalorder %s20030_s1, %s20654_s29 }
  0x7e   : > { %p20038_p5 = por %p20037_p12, %p20036_p11 }
  0x7f   : > { %p20034_p7 = pneg %p20033_p8 }
  0x80   : > { %p20040_p1 = por %p20039_p10, %p20038_p5 }
  0x82   : > { %p20041_p3 = pnand %p20040_p1, %p20034_p7 }
  0x84   : > { %20044 = shalt.err (!%p20041_p3)
}
  0x85   : > { %s20045_s2 = scalar_lea.vmem %s20676_s22, 16384  ;;  %s20407_s17 = smov [#allocation10]  }
  0x86   : > { %p20046_p13 = scmp.ne.s32.totalorder %s20676_s22, %s20045_s2  ;;  %s20050_s0 = sshll.u32 %s20407_s17, 4  ;;  %s20051_s0 = int_to_ptr.vmem [resolvable:$false] %s20050_s0 }
  0x87   : > { %s20052_s4 = scalar_lea.vmem %s20051_s0, 32768  ;;  %p20053_p0 = scmp.lt.s32.totalorder %s20676_s22, %s20051_s0 }
  0x88   : > { %p20048_p2 = pnand %p20046_p13, %p20618_p9  ;;  %p20054_p8 = scmp.lt.s32.totalorder %s20052_s4, %s20045_s2 }
  0x8a   : > { %p20049_p4 = pneg %p20048_p2  ;;  %p20055_p11 = por %p20054_p8, %p20053_p0 }
  0x8c   : > { %p20056_p12 = pnand %p20055_p11, %p20049_p4 }
  0x8e   : > { %20059 = shalt.err (!%p20056_p12)
}
  0x8f   : > { %s23771_s15 = smov 256   ;;  %s23773_s26 = smov 16  }
  0x90   : > { %18182 = dma.hbm_to_vmem [thread:$0]  (!%p23807_p6), %s20654_s29, 16384, %s20676_s22, %s20612_s25, %s23771_s15, %s23771_s15, %s23773_s26  }
  0x91   : > { %s20704_s27 = sshll.u32 %s20566_s20, 2  ;;  %s20707_s1 = sshll.u32 %s20400_s24, 6 }
  0x92   : > { %s20713_s18 = scalar_lea.hbm %s23739_s7, %s20707_s1  ;;  %s556_s16 = scalar_lea.vmem [#allocation11], %s20704_s27 }
  0x93   : > { %s564_s3 = sshll.u32 %s556_s16, 4  ;;  %s20720_s2 = scalar_lea.hbm %s23740_s8, %s20707_s1  ;;  %s565_s3 = int_to_ptr.vmem [resolvable:$true] %s564_s3 }
  0x94   : > { %s20060_s17 = scalar_lea.hbm %s20713_s18, 64  ;;  %s20065_s23 = scalar_lea.hbm %s23739_s7, 256 }
  0x95   : > { %p20061_p7 = scmp.ne.s32.totalorder %s20713_s18, %s20060_s17  ;;  %p20066_p1 = scmp.lt.u32.totalorder %s20713_s18, %s23739_s7 }
  0x96   : > { %p20067_p3 = scmp.lt.u32.totalorder %s20065_s23, %s20060_s17  ;;  %p20069_p2 = scmp.lt.u32.totalorder %s20060_s17, %s20713_s18 }
  0x97   : > { %p20063_p5 = pnand %p20061_p7, %p20618_p9 }
  0x98   : > { %p20068_p13 = por %p20067_p3, %p20066_p1 }
  0x99   : > { %p20064_p10 = pneg %p20063_p5 }
  0x9a   : > { %p20070_p4 = por %p20069_p2, %p20068_p13 }
  0x9c   : > { %p20071_p0 = pnand %p20070_p4, %p20064_p10 }
  0x9e   : > { %20074 = shalt.err (!%p20071_p0)
}
  0x9f   : > { %s20075_s16 = scalar_lea.vmem %s565_s3, 64  ;;  %s20410_s29 = smov [#allocation11]  }
  0xa0   : > { %p20076_p8 = scmp.ne.s32.totalorder %s565_s3, %s20075_s16  ;;  %s20080_s22 = sshll.u32 %s20410_s29, 4  ;;  %s20081_s22 = int_to_ptr.vmem [resolvable:$false] %s20080_s22 }
  0xa1   : > { %s20082_s0 = scalar_lea.vmem %s20081_s22, 128  ;;  %p20083_p7 = scmp.lt.s32.totalorder %s565_s3, %s20081_s22 }
  0xa2   : > { %p20078_p11 = pnand %p20076_p8, %p20618_p9  ;;  %p20084_p5 = scmp.lt.s32.totalorder %s20082_s0, %s20075_s16 }
  0xa4   : > { %p20079_p12 = pneg %p20078_p11  ;;  %p20085_p6 = por %p20084_p5, %p20083_p7 }
  0xa6   : > { %p20086_p1 = pnand %p20085_p6, %p20079_p12 }
  0xa8   : > { %20089 = shalt.err (!%p20086_p1)
}
  0xa9   : > { %p23808_p3 = scmp.ne.s32.totalorder %s23800_s28, 0  ;;  %s575_s15 = scalar_lea.vmem [#allocation12], %s20704_s27 }
  0xaa   : > { %s583_s17 = sshll.u32 %s575_s15, 4  ;;  %s20745_s30 = scalar_lea.hbm %s23741_s9, %s20707_s1  ;;  %s584_s17 = int_to_ptr.vmem [resolvable:$true] %s583_s17 }
  0xab   : > { %18185 = dma.hbm_to_vmem [thread:$0]  (!%p23808_p3), %s20713_s18, 64, %s565_s3, %s20612_s25  }
  0xac   : > { %s20090_s16 = scalar_lea.hbm %s20720_s2, 64  ;;  %s20095_s0 = scalar_lea.hbm %s23740_s8, 256 }
  0xad   : > { %p20091_p6 = scmp.ne.s32.totalorder %s20720_s2, %s20090_s16  ;;  %p20096_p2 = scmp.lt.u32.totalorder %s20720_s2, %s23740_s8 }
  0xae   : > { %p20097_p4 = scmp.lt.u32.totalorder %s20095_s0, %s20090_s16  ;;  %p20099_p8 = scmp.lt.u32.totalorder %s20090_s16, %s20720_s2 }
  0xaf   : > { %p20093_p10 = pnand %p20091_p6, %p20618_p9 }
  0xb0   : > { %p20098_p0 = por %p20097_p4, %p20096_p2 }
  0xb1   : > { %p20094_p13 = pneg %p20093_p10 }
  0xb2   : > { %p20100_p11 = por %p20099_p8, %p20098_p0 }
  0xb4   : > { %p20101_p12 = pnand %p20100_p11, %p20094_p13 }
  0xb6   : > { %20104 = shalt.err (!%p20101_p12)
}
  0xb7   : > { %s20105_s18 = scalar_lea.vmem %s584_s17, 64  ;;  %s20411_s3 = smov [#allocation12]  }
  0xb8   : > { %p20106_p7 = scmp.ne.s32.totalorder %s584_s17, %s20105_s18  ;;  %s20110_s15 = sshll.u32 %s20411_s3, 4  ;;  %s20111_s15 = int_to_ptr.vmem [resolvable:$false] %s20110_s15 }
  0xb9   : > { %s20112_s4 = scalar_lea.vmem %s20111_s15, 128  ;;  %p20113_p6 = scmp.lt.s32.totalorder %s584_s17, %s20111_s15 }
  0xba   : > { %p20108_p5 = pnand %p20106_p7, %p20618_p9  ;;  %p20114_p10 = scmp.lt.s32.totalorder %s20112_s4, %s20105_s18 }
  0xbc   : > { %p20109_p1 = pneg %p20108_p5  ;;  %p20115_p3 = por %p20114_p10, %p20113_p6 }
  0xbe   : > { %p20116_p2 = pnand %p20115_p3, %p20109_p1 }
  0xc0   : > { %20119 = shalt.err (!%p20116_p2)
}
  0xc1   : > { %p23809_p4 = scmp.ne.s32.totalorder %s23800_s28, 0  ;;  %s594_s5 = scalar_lea.vmem [#allocation13], %s20704_s27 }
  0xc2   : > { %s602_s26 = sshll.u32 %s594_s5, 4  ;;  %s23774_s23 = sshll.u32 %s20566_s20, 12  ;;  %s603_s26 = int_to_ptr.vmem [resolvable:$true] %s602_s26 }
  0xc3   : > { %18188 = dma.hbm_to_vmem [thread:$0]  (!%p23809_p4), %s20720_s2, 64, %s584_s17, %s20612_s25  }
  0xc4   : > { %s20120_s16 = scalar_lea.hbm %s20745_s30, 64  ;;  %s20125_s0 = scalar_lea.hbm %s23741_s9, 256 }
  0xc5   : > { %p20121_p13 = scmp.ne.s32.totalorder %s20745_s30, %s20120_s16  ;;  %p20126_p8 = scmp.lt.u32.totalorder %s20745_s30, %s23741_s9 }
  0xc6   : > { %p20127_p11 = scmp.lt.u32.totalorder %s20125_s0, %s20120_s16  ;;  %p20129_p7 = scmp.lt.u32.totalorder %s20120_s16, %s20745_s30 }
  0xc7   : > { %p20123_p3 = pnand %p20121_p13, %p20618_p9 }
  0xc8   : > { %p20128_p12 = por %p20127_p11, %p20126_p8 }
  0xc9   : > { %p20124_p0 = pneg %p20123_p3 }
  0xca   : > { %p20130_p5 = por %p20129_p7, %p20128_p12 }
  0xcc   : > { %p20131_p1 = pnand %p20130_p5, %p20124_p0 }
  0xce   : > { %20134 = shalt.err (!%p20131_p1)
}
  0xcf   : > { %s20135_s2 = scalar_lea.vmem %s603_s26, 64  ;;  %s20412_s17 = smov [#allocation13]  }
  0xd0   : > { %p20136_p6 = scmp.ne.s32.totalorder %s603_s26, %s20135_s2  ;;  %s20140_s15 = sshll.u32 %s20412_s17, 4  ;;  %s20141_s15 = int_to_ptr.vmem [resolvable:$false] %s20140_s15 }
  0xd1   : > { %s20142_s4 = scalar_lea.vmem %s20141_s15, 128  ;;  %p20143_p13 = scmp.lt.s32.totalorder %s603_s26, %s20141_s15 }
  0xd2   : > { %p20138_p10 = pnand %p20136_p6, %p20618_p9  ;;  %p20144_p3 = scmp.lt.s32.totalorder %s20142_s4, %s20135_s2 }
  0xd4   : > { %p20139_p2 = pneg %p20138_p10  ;;  %p20145_p4 = por %p20144_p3, %p20143_p13 }
  0xd6   : > { %p20146_p8 = pnand %p20145_p4, %p20139_p2 }
  0xd8   : > { %20149 = shalt.err (!%p20146_p8)
}
  0xd9   : > { %p23810_p11 = scmp.ne.s32.totalorder %s23800_s28, 0  ;;  %s17706_s5 = sshll.u32 %s20400_s24, 16 }
  0xda   : > { %s613_s16 = scalar_lea.vmem [#allocation14], %s23774_s23  ;;  %s20793_s18 = scalar_lea.hbm %s23742_s10, %s17706_s5 }
  0xdb   : > { %18191 = dma.hbm_to_vmem [thread:$0]  (!%p23810_p11), %s20745_s30, 64, %s603_s26, %s20612_s25  }
  0xdc   : > { %s620_s29 = sshll.u32 %s613_s16, 4  ;;  %s20150_s3 = scalar_lea.hbm %s20793_s18, 65536  ;;  %s20795_s29 = int_to_ptr.vmem [resolvable:$true] %s620_s29 }
  0xdd   : > { %p20151_p4 = scmp.ne.s32.totalorder %s20793_s18, %s20150_s3  ;;  %s20155_s2 = scalar_lea.hbm %s23742_s10, 262144 }
  0xde   : > { %p20156_p7 = scmp.lt.u32.totalorder %s20793_s18, %s23742_s10  ;;  %p20157_p5 = scmp.lt.u32.totalorder %s20155_s2, %s20150_s3 }
  0xdf   : > { %p20153_p0 = pnand %p20151_p4, %p20618_p9  ;;  %p20159_p6 = scmp.lt.u32.totalorder %s20150_s3, %s20793_s18 }
  0xe0   : > { %p20158_p1 = por %p20157_p5, %p20156_p7 }
  0xe1   : > { %p20154_p12 = pneg %p20153_p0 }
  0xe2   : > { %p20160_p10 = por %p20159_p6, %p20158_p1 }
  0xe4   : > { %p20161_p2 = pnand %p20160_p10, %p20154_p12 }
  0xe6   : > { %20164 = shalt.err (!%p20161_p2)
}
  0xe7   : > { %s20165_s4 = scalar_lea.vmem %s20795_s29, 65536  ;;  %s20413_s16 = smov [#allocation14]  }
  0xe8   : > { %p20166_p13 = scmp.ne.s32.totalorder %s20795_s29, %s20165_s4  ;;  %s20170_s22 = sshll.u32 %s20413_s16, 4  ;;  %s20171_s22 = int_to_ptr.vmem [resolvable:$false] %s20170_s22 }
  0xe9   : > { %s20172_s0 = scalar_lea.vmem %s20171_s22, 131072  ;;  %p20173_p4 = scmp.lt.s32.totalorder %s20795_s29, %s20171_s22 }
  0xea   : > { %p20168_p3 = pnand %p20166_p13, %p20618_p9  ;;  %p20174_p0 = scmp.lt.s32.totalorder %s20172_s0, %s20165_s4 }
  0xec   : > { %p20169_p8 = pneg %p20168_p3  ;;  %p20175_p7 = por %p20174_p0, %p20173_p4 }
  0xee   : > { %p20176_p5 = pnand %p20175_p7, %p20169_p8 }
  0xf0   : > { %20179 = shalt.err (!%p20176_p5)
}
  0xf1   : > { %s20414_s3 = smov 1024   ;;  %s20415_s30 = smov 64  }
  0xf2   : > { %18194 = dma.hbm_to_vmem [thread:$0]  (!%p23810_p11), %s20793_s18, 65536, %s20795_s29, %s20612_s25, %s20414_s3, %s20414_s3, %s20415_s30  }
  0xf3   : > { %s16087_s26 = sshll.u32 %s20566_s20, 4  ;;  %s17707_s2 = sshll.u32 %s20400_s24, 8 }
  0xf4   : > { %s20824_s4 = scalar_lea.hbm %s23743_s11, %s17707_s2  ;;  %s634_s16 = scalar_lea.vmem [#allocation15], %s16087_s26 }
  0xf5   : > { %s642_s22 = sshll.u32 %s634_s16, 4  ;;  %s20831_s6 = scalar_lea.hbm %s23744_s12, %s17706_s5  ;;  %s643_s22 = int_to_ptr.vmem [resolvable:$true] %s642_s22 }
  0xf6   : > { %s20180_s29 = scalar_lea.hbm %s20824_s4, 256  ;;  %s20185_s30 = scalar_lea.hbm %s23743_s11, 1024 }
  0xf7   : > { %p20181_p12 = scmp.ne.s32.totalorder %s20824_s4, %s20180_s29  ;;  %p20186_p10 = scmp.lt.u32.totalorder %s20824_s4, %s23743_s11 }
  0xf8   : > { %p20187_p2 = scmp.lt.u32.totalorder %s20185_s30, %s20180_s29  ;;  %p20189_p3 = scmp.lt.u32.totalorder %s20180_s29, %s20824_s4 }
  0xf9   : > { %p20183_p1 = pnand %p20181_p12, %p20618_p9 }
  0xfa   : > { %p20188_p13 = por %p20187_p2, %p20186_p10 }
  0xfb   : > { %p20184_p6 = pneg %p20183_p1 }
  0xfc   : > { %p20190_p8 = por %p20189_p3, %p20188_p13 }
  0xfe   : > { %p20191_p4 = pnand %p20190_p8, %p20184_p6 }
 0x100   : > { %20194 = shalt.err (!%p20191_p4)
}
 0x101   : > { %s20195_s24 = scalar_lea.vmem %s643_s22, 256  ;;  %s20416_s23 = smov [#allocation15]  }
 0x102   : > { %p20196_p0 = scmp.ne.s32.totalorder %s643_s22, %s20195_s24  ;;  %s20200_s5 = sshll.u32 %s20416_s23, 4  ;;  %s20201_s5 = int_to_ptr.vmem [resolvable:$false] %s20200_s5 }
 0x103   : > { %s20202_s26 = scalar_lea.vmem %s20201_s5, 512  ;;  %p20203_p12 = scmp.lt.s32.totalorder %s643_s22, %s20201_s5 }
 0x104   : > { %p20198_p7 = pnand %p20196_p0, %p20618_p9  ;;  %p20204_p1 = scmp.lt.s32.totalorder %s20202_s26, %s20195_s24 }
 0x106   : > { %p20199_p5 = pneg %p20198_p7  ;;  %p20205_p11 = por %p20204_p1, %p20203_p12 }
 0x108   : > { %p20206_p2 = pnand %p20205_p11, %p20199_p5 }
 0x10a   : > { %20209 = shalt.err (!%p20206_p2)
}
 0x10b   : > { %p23811_p10 = scmp.ne.s32.totalorder %s23800_s28, 0  ;;  %s23812_s15 = sshll.u32 %s20566_s20, 12 }
 0x10c   : > { %s653_s16 = scalar_lea.vmem [#allocation16], %s23812_s15  ;;  %s20859_s3 = scalar_lea.hbm %s23745_s13, %s20707_s1 }
 0x10d   : > { %18197 = dma.hbm_to_vmem [thread:$0]  (!%p23811_p10), %s20824_s4, 256, %s643_s22, %s20612_s25  }
 0x10e   : > { %s660_s0 = sshll.u32 %s653_s16, 4  ;;  %s20210_s30 = scalar_lea.hbm %s20831_s6, 65536  ;;  %s20853_s0 = int_to_ptr.vmem [resolvable:$true] %s660_s0 }
 0x10f   : > { %p20211_p11 = scmp.ne.s32.totalorder %s20831_s6, %s20210_s30  ;;  %s20215_s24 = scalar_lea.hbm %s23744_s12, 262144 }
 0x110   : > { %p20216_p3 = scmp.lt.u32.totalorder %s20831_s6, %s23744_s12  ;;  %p20217_p8 = scmp.lt.u32.totalorder %s20215_s24, %s20210_s30 }
 0x111   : > { %p20213_p6 = pnand %p20211_p11, %p20618_p9  ;;  %p20219_p0 = scmp.lt.u32.totalorder %s20210_s30, %s20831_s6 }
 0x112   : > { %p20218_p4 = por %p20217_p8, %p20216_p3 }
 0x113   : > { %p20214_p13 = pneg %p20213_p6 }
 0x114   : > { %p20220_p7 = por %p20219_p0, %p20218_p4 }
 0x116   : > { %p20221_p5 = pnand %p20220_p7, %p20214_p13 }
 0x118   : > { %20224 = shalt.err (!%p20221_p5)
}
 0x119   : > { %s20225_s22 = scalar_lea.vmem %s20853_s0, 65536  ;;  %s20417_s23 = smov [#allocation16]  }
 0x11a   : > { %p20226_p12 = scmp.ne.s32.totalorder %s20853_s0, %s20225_s22  ;;  %s20230_s5 = sshll.u32 %s20417_s23, 4  ;;  %s20231_s5 = int_to_ptr.vmem [resolvable:$false] %s20230_s5 }
 0x11b   : > { %s20232_s26 = scalar_lea.vmem %s20231_s5, 131072  ;;  %p20233_p11 = scmp.lt.s32.totalorder %s20853_s0, %s20231_s5 }
 0x11c   : > { %p20228_p1 = pnand %p20226_p12, %p20618_p9  ;;  %p20234_p6 = scmp.lt.s32.totalorder %s20232_s26, %s20225_s22 }
 0x11e   : > { %p20229_p2 = pneg %p20228_p1  ;;  %p20235_p3 = por %p20234_p6, %p20233_p11 }
 0x120   : > { %p20236_p8 = pnand %p20235_p3, %p20229_p2 }
 0x122   : > { %20239 = shalt.err (!%p20236_p8)
}
 0x123   : > { %s23813_s15 = smov 16   ;;  %s23814_s16 = smov 256  }
 0x124   : > { %18200 = dma.hbm_to_vmem [thread:$0]  (!%p23811_p10), %s20831_s6, 65536, %s20853_s0, %s20612_s25, %s23814_s16, %s23814_s16, %s23813_s15  }
 0x125   : > { %s674_s29 = scalar_lea.vmem [#allocation17], %s20704_s27  ;;  %s20891_s17 = scalar_lea.hbm %s23746_s14, %s20707_s1 }
 0x126   : > { %s682_s18 = sshll.u32 %s674_s29, 4  ;;  %s20240_s24 = scalar_lea.hbm %s20859_s3, 64  ;;  %s683_s18 = int_to_ptr.vmem [resolvable:$true] %s682_s18 }
 0x127   : > { %p20241_p13 = scmp.ne.s32.totalorder %s20859_s3, %s20240_s24  ;;  %s20245_s22 = scalar_lea.hbm %s23745_s13, 256 }
 0x128   : > { %p20246_p7 = scmp.lt.u32.totalorder %s20859_s3, %s23745_s13  ;;  %p20247_p5 = scmp.lt.u32.totalorder %s20245_s22, %s20240_s24 }
 0x129   : > { %p20243_p4 = pnand %p20241_p13, %p20618_p9  ;;  %p20249_p1 = scmp.lt.u32.totalorder %s20240_s24, %s20859_s3 }
 0x12a   : > { %p20248_p12 = por %p20247_p5, %p20246_p7 }
 0x12b   : > { %p20244_p0 = pneg %p20243_p4 }
 0x12c   : > { %p20250_p2 = por %p20249_p1, %p20248_p12 }
 0x12e   : > { %p20251_p11 = pnand %p20250_p2, %p20244_p0 }
 0x130   : > { %20254 = shalt.err (!%p20251_p11)
}
 0x131   : > { %s20255_s6 = scalar_lea.vmem %s683_s18, 64  ;;  %s20418_s0 = smov [#allocation17]  }
 0x132   : > { %p20256_p6 = scmp.ne.s32.totalorder %s683_s18, %s20255_s6  ;;  %s20260_s26 = sshll.u32 %s20418_s0, 4  ;;  %s20261_s26 = int_to_ptr.vmem [resolvable:$false] %s20260_s26 }
 0x133   : > { %s20262_s15 = scalar_lea.vmem %s20261_s26, 128  ;;  %p20263_p13 = scmp.lt.s32.totalorder %s683_s18, %s20261_s26 }
 0x134   : > { %p20258_p3 = pnand %p20256_p6, %p20618_p9  ;;  %p20264_p4 = scmp.lt.s32.totalorder %s20262_s15, %s20255_s6 }
 0x136   : > { %p20259_p8 = pneg %p20258_p3  ;;  %p20265_p10 = por %p20264_p4, %p20263_p13 }
 0x138   : > { %p20266_p5 = pnand %p20265_p10, %p20259_p8 }
 0x13a   : > { %20269 = shalt.err (!%p20266_p5)
}
 0x13b   : > { %p23815_p7 = scmp.ne.s32.totalorder %s23800_s28, 0  ;;  %s693_s16 = scalar_lea.vmem [#allocation18], %s20704_s27 }
 0x13c   : > { %s701_s29 = sshll.u32 %s693_s16, 4  ;;  %s20419_s30 = smov [#allocation6]   ;;  %s20912_s29 = int_to_ptr.vmem [resolvable:$true] %s701_s29 }
 0x13d   : > { %18203 = dma.hbm_to_vmem [thread:$0]  (!%p23815_p7), %s20859_s3, 64, %s683_s18, %s20612_s25  }
 0x13e   : > { %s480_s2 = sshll.u32 %s20419_s30, 4  ;;  %s20270_s24 = scalar_lea.hbm %s20891_s17, 64  ;;  %s481_s2 = int_to_ptr.vmem [resolvable:$true] %s480_s2 }
 0x13f   : > { %p20271_p10 = scmp.ne.s32.totalorder %s20891_s17, %s20270_s24  ;;  %s20275_s22 = scalar_lea.hbm %s23746_s14, 256 }
 0x140   : > { %p20276_p1 = scmp.lt.u32.totalorder %s20891_s17, %s23746_s14  ;;  %p20277_p2 = scmp.lt.u32.totalorder %s20275_s22, %s20270_s24 }
 0x141   : > { %p20273_p0 = pnand %p20271_p10, %p20618_p9  ;;  %p20279_p6 = scmp.lt.u32.totalorder %s20270_s24, %s20891_s17 }
 0x142   : > { %p20278_p11 = por %p20277_p2, %p20276_p1 }
 0x143   : > { %p20274_p12 = pneg %p20273_p0 }
 0x144   : > { %p20280_p3 = por %p20279_p6, %p20278_p11 }
 0x146   : > { %p20281_p8 = pnand %p20280_p3, %p20274_p12 }
 0x148   : > { %20284 = shalt.err (!%p20281_p8)
}
 0x149   : > { %s20285_s3 = scalar_lea.vmem %s20912_s29, 64  ;;  %s20420_s18 = smov [#allocation18]  }
 0x14a   : > { %p20286_p13 = scmp.ne.s32.totalorder %s20912_s29, %s20285_s3  ;;  %s20290_s6 = sshll.u32 %s20420_s18, 4  ;;  %s20291_s6 = int_to_ptr.vmem [resolvable:$false] %s20290_s6 }
 0x14b   : > { %s20292_s0 = scalar_lea.vmem %s20291_s6, 128  ;;  %p20293_p10 = scmp.lt.s32.totalorder %s20912_s29, %s20291_s6 }
 0x14c   : > { %p20288_p4 = pnand %p20286_p13, %p20618_p9  ;;  %p20294_p0 = scmp.lt.s32.totalorder %s20292_s0, %s20285_s3 }
 0x14e   : > { %p20289_p5 = pneg %p20288_p4  ;;  %p20295_p1 = por %p20294_p0, %p20293_p10 }
 0x150   : > { %p20296_p2 = pnand %p20295_p1, %p20289_p5 }
 0x152   : > { %20299 = shalt.err (!%p20296_p2)
}
 0x153   : > { %18206 = dma.hbm_to_vmem [thread:$0]  (!%p23815_p7), %s20891_s17, 64, %s20912_s29, %s20612_s25  }
 0x154   : > { %s23816_s16 = sld [smem:[#allocation33_spill]]  ;;  %p23817_p11 = scmp.ne.s32.totalorder %s23799_s21, 0 }
 0x156   : > { %p23818_p6 = pneg %p23817_p11 }
 0x15a   : > { %s20300_s30 = scalar_lea.hbm %s23816_s16, 64 }
 0x15b   : > { %p20301_p12 = scmp.ne.s32.totalorder %s23816_s16, %s20300_s30  ;;  %p20307_p13 = scmp.lt.u32.totalorder %s20300_s30, %s23816_s16 }
 0x15d   : > { %p20303_p3 = pnand %p20301_p12, %p23818_p6 }
 0x15f   : > { %p20304_p8 = pneg %p20303_p3 }
 0x161   : > { %p20309_p4 = pnand %p20307_p13, %p20304_p8 }
 0x163   : > { %20312 = shalt.err (!%p20309_p4)
}
 0x164   : > { %s20313_s17 = scalar_lea.vmem %s481_s2, 64  ;;  %p23819_p10 = pmov %p23818_p6 }
 0x165   : > { %p20314_p5 = scmp.ne.s32.totalorder %s481_s2, %s20313_s17  ;;  %p20321_p2 = scmp.lt.s32.totalorder %s481_s2, %s481_s2 }
 0x166   : > { %p20322_p7 = scmp.lt.s32.totalorder %s20313_s17, %s20313_s17 }
 0x167   : > { %p20316_p0 = pnand %p20314_p5, %p23819_p10 }
 0x168   : > { %p20323_p9 = por %p20322_p7, %p20321_p2 }
 0x169   : > { %p20317_p1 = pneg %p20316_p0 }
 0x16b   : > { %p20324_p6 = pnand %p20323_p9, %p20317_p1 }
 0x16d   : > { %20327 = shalt.err (!%p20324_p6)
}
 0x16e   : > { %18172 = dma.hbm_to_vmem [thread:$0]  (!%p23817_p11), %s23816_s16, 64, %s481_s2, [#allocation7]  }
 0x16f   : > { %s23820_s18 = sld [smem:[#allocation37_spill]]  ;;  %s712_s0 = scalar_lea.vmem [#allocation19], %s20704_s27 }
 0x170   : > { %s720_s26 = sshll.u32 %s712_s0, 4  ;;  %p23821_p7 = scmp.ne.s32.totalorder %s23804_s19, 0  ;;  %s721_s26 = int_to_ptr.vmem [resolvable:$true] %s720_s26 }
 0x175   : > { %s20960_s6 = scalar_lea.hbm %s23820_s18, %s20707_s1  ;;  %s20333_s2 = scalar_lea.hbm %s23820_s18, 256 }
 0x176   : > { %s20328_s21 = scalar_lea.hbm %s20960_s6, 64  ;;  %p20334_p11 = scmp.lt.u32.totalorder %s20960_s6, %s23820_s18 }
 0x177   : > { %p20329_p9 = scmp.ne.s32.totalorder %s20960_s6, %s20328_s21  ;;  %p20335_p8 = scmp.lt.u32.totalorder %s20333_s2, %s20328_s21 }
 0x178   : > { %p20337_p4 = scmp.lt.u32.totalorder %s20328_s21, %s20960_s6 }
 0x179   : > { %p20331_p12 = pnand %p20329_p9, %p23821_p7  ;;  %p20336_p13 = por %p20335_p8, %p20334_p11 }
 0x17b   : > { %p20332_p3 = pneg %p20331_p12  ;;  %p20338_p5 = por %p20337_p4, %p20336_p13 }
 0x17d   : > { %p20339_p10 = pnand %p20338_p5, %p20332_p3 }
 0x17f   : > { %20342 = shalt.err (!%p20339_p10)
}
 0x180   : > { %s20343_s27 = scalar_lea.vmem %s721_s26, 64  ;;  %s20421_s1 = smov [#allocation19]  }
 0x181   : > { %p20344_p0 = scmp.ne.s32.totalorder %s721_s26, %s20343_s27  ;;  %s20348_s20 = sshll.u32 %s20421_s1, 4  ;;  %s20349_s20 = int_to_ptr.vmem [resolvable:$false] %s20348_s20 }
 0x182   : > { %s20350_s22 = scalar_lea.vmem %s20349_s20, 128  ;;  %p20351_p6 = scmp.lt.s32.totalorder %s721_s26, %s20349_s20 }
 0x183   : > { %p20346_p1 = pnand %p20344_p0, %p23821_p7  ;;  %p20352_p9 = scmp.lt.s32.totalorder %s20350_s22, %s20343_s27 }
 0x185   : > { %p20347_p2 = pneg %p20346_p1  ;;  %p20353_p12 = por %p20352_p9, %p20351_p6 }
 0x187   : > { %p20354_p8 = pnand %p20353_p12, %p20347_p2 }
 0x189   : > { %20357 = shalt.err (!%p20354_p8)
}
 0x18a   : > { %p23822_p11 = scmp.ne.s32.totalorder %s23800_s28, 0  ;;  %s23823_s17 = sld [smem:[#allocation29_spill]] }
 0x18c   : > { %18209 = dma.hbm_to_vmem [thread:$0]  (!%p23822_p11), %s20960_s6, 64, %s721_s26, %s20612_s25  }
 0x190   : > { %p23824_p3 = scmp.ne.s32.totalorder %s23823_s17, 0 }
 0x191   : > { %s23825_s19 = sld [smem:[#allocation25_spill]] (!%p23824_p3) }
 0x192   : > { %729 = sbr.rel (%p23824_p3) target bundleno = 4431 (0x114f), region = 84 }
 0x197   : > { %p23826_p7 = scmp.eq.s32.totalorder (!%p23824_p3), %s23825_s19, 0 }
 0x199   : > { %20375 = dma.done.wait (%p23826_p7), [#allocation5], 64   ;;  %p23827_p13 = pmov %p23826_p7 }
 0x19a   : > { %p23828_p4 = pmov %p23826_p7 }
 0x19b   : > { %20377 = vsyncadd (%p23827_p13), [#allocation5], 4294967232 }
 0x19c   : > { %20379 = dma.done.wait (%p23828_p4), [#allocation7], 64   ;;  %p23829_p5 = pmov %p23828_p4 }
 0x19d   : > { %s23830_s28 = sld [smem:[#allocation23_spill]]  ;;  %s23831_s29 = sld [smem:[#allocation28_spill]] }
 0x19e   : > { %20381 = vsyncadd (%p23829_p5), [#allocation7], 4294967232  ;;  %s739_s23 = sand.u32 1, %s23825_s19  }
 0x19f   : > { %s740_s3 = scalar_lea.sflag [#allocation5], %s739_s23 }
 0x1a3   : > { %s741_s25 = sand.u32 1, %s23830_s28   ;;  %p23832_p10 = scmp.ne.s32.totalorder %s23831_s29, 0 }
 0x1a4   : > { %s18132_s5 = smul.u32 3072, %s741_s25 }
 0x1a6   : > { %s20993_s6 = scalar_lea.vmem [#allocation8], %s18132_s5 }
 0x1a7   : > { %20383 = dma.done.wait (%p23832_p10), %s740_s3, 197440  }
 0x1a8   : > { %20385 = vsyncadd (%p23832_p10), %s740_s3, 4294769856  ;;  %s18133_s0 = smul.u32 12, %s741_s25  ;;  %s16105_s26 = sshll.u32 %s741_s25, 10 }
 0x1a9   : > { %s20999_s21 = sshll.u32 %s741_s25, 2  ;;  %s16109_s15 = sshll.u32 %s741_s25, 12 }
 0x1aa   : > { %s16110_s30 = sshll.u32 %s741_s25, 4  ;;  %s21001_s2 = scalar_lea.vmem [#allocation9], %s18133_s0 }
 0x1ab   : > { %s21003_s24 = scalar_lea.vmem [#allocation10], %s16105_s26  ;;  %s770_s4 = scalar_lea.vmem [#allocation11], %s20999_s21 }
 0x1ac   : > { %s21008_s20 = scalar_lea.vmem [#allocation14], %s16109_s15  ;;  %s21010_s22 = scalar_lea.vmem [#allocation15], %s16110_s30 }
 0x1ad   : > { %s21012_s17 = scalar_lea.vmem [#allocation16], %s16109_s15  ;;  %s824_s28 = scalar_lea.vmem [#allocation17], %s20999_s21 }
 0x1ae   : > { %p23833_p0 = scmp.ne.s32.totalorder %s23825_s19, 0 }
 0x1af   : > { %s23834_s3 = sld [smem:[#allocation30_spill]] (!%p23833_p0)  ;;  %v1009_v42 = vlaneseq (!%p23833_p0)  ;;  %v953_v52 = vld [vmem:[#allocation4] sm:$0xf] (!%p23833_p0)  ;;  %v954_v53 = vld [vmem:[#allocation6] sm:$0xf] (!%p23833_p0) }
 0x1b0   : > { %944 = sbr.rel (%p23833_p0) target bundleno = 768 (0x300), region = 144  ;;  %s23835_s26 = sld [smem:[#allocation38_spill]] (!%p23833_p0) }
 0x1b1   : > { %v1010_v46 = vshrl.u32 (!%p23833_p0), %v1009_v42, 7 }
 0x1b3   : > { %v1011_v48 = vsub.s32 (!%p23833_p0), 0, %v1010_v46  ;;  %v1015_v49 = vsub.s32 (!%p23833_p0), 1, %v1010_v46  ;;  %v1019_v50 = vsub.s32 (!%p23833_p0), 2, %v1010_v46  ;;  %v1023_v51 = vsub.s32 (!%p23833_p0), 3, %v1010_v46 }
 0x1b5   : > { %v945_v0 = vld [vmem:[%s23834_s3] sm:$0xff] (!%p23833_p0)  ;;  %v946_v1 = vld [vmem:[%s23834_s3 + $0x8] sm:$0xff] (!%p23833_p0)  ;;  %v947_v2 = vld [vmem:[%s23834_s3 + $0x10] sm:$0xff] (!%p23833_p0)  ;;  %v1012_v54 = vrot.slane (!%p23833_p0), %v953_v52, %v1011_v48  ;;  %v1016_v55 = vrot.slane (!%p23833_p0), %v953_v52, %v1015_v49  ;;  %v1020_v56 = vrot.slane (!%p23833_p0), %v953_v52, %v1019_v50  ;;  %v1024_v57 = vrot.slane (!%p23833_p0), %v953_v52, %v1023_v51 }
 0x1b6   : > { %v955_v3 = vadd.f32 (!%p23833_p0), %v946_v1, %v945_v0  ;;  %v949_v4 = vld [vmem:[%s23834_s3 + $0x20] sm:$0xff] (!%p23833_p0)  ;;  %v950_v5 = vld [vmem:[%s23834_s3 + $0x28] sm:$0xff] (!%p23833_p0)  ;;  %v948_v6 = vld [vmem:[%s23834_s3 + $0x18] sm:$0xff] (!%p23833_p0)  ;;  %v1041_v59 = vrot.slane (!%p23833_p0), %v954_v53, %v1011_v48  ;;  %v1045_v60 = vrot.slane (!%p23833_p0), %v954_v53, %v1015_v49  ;;  %v1049_v61 = vrot.slane (!%p23833_p0), %v954_v53, %v1019_v50 }
 0x1b7   : > { %v951_v7 = vld [vmem:[%s23834_s3 + $0x30] sm:$0xff]  ;;  %v960_v8 = vadd.f32 %v950_v5, %v949_v4  ;;  %v952_v10 = vld [vmem:[%s23834_s3 + $0x38] sm:$0xff]  ;;  %v1053_v62 = vrot.slane %v954_v53, %v1023_v51 }
 0x1b8   : > { %v956_v9 = vadd.f32 %v955_v3, %v947_v2 }
 0x1b9   : > { %v961_v11 = vadd.f32 %v960_v8, %v951_v7 }
 0x1ba   : > { %v957_v12 = vadd.f32 %v956_v9, %v948_v6 }
 0x1bb   : > { %v962_v13 = vadd.f32 %v961_v11, %v952_v10 }
 0x1bc   : > { %958 = vadd.xlane.f32.xlu0 %v957_v12 }
 0x1c0   : > { %963 = vadd.xlane.f32.xlu0 %v962_v13 }
 0x249   : > { %v959_v14 = vpop.xlane.xlu0 %958 }
 0x24a   : > { %v966_v15 = vmul.f32 0.001953125, %v959_v14 }
 0x24c   : > { %v968_v16 = vsub.f32 %v945_v0, %v966_v15  ;;  %v969_v17 = vsub.f32 %v946_v1, %v966_v15  ;;  %v970_v18 = vsub.f32 %v947_v2, %v966_v15  ;;  %v971_v20 = vsub.f32 %v948_v6, %v966_v15 }
 0x24d   : > { %v964_v19 = vpop.xlane.xlu0 %963 }
 0x24e   : > { %v967_v21 = vmul.f32 0.001953125, %v964_v19  ;;  %v976_v22 = vmul.f32 %v968_v16, %v968_v16  ;;  %v977_v23 = vmul.f32 %v969_v17, %v969_v17  ;;  %v978_v24 = vmul.f32 %v970_v18, %v970_v18 }
 0x24f   : > { %v979_v29 = vmul.f32 %v971_v20, %v971_v20 }
 0x250   : > { %v972_v25 = vsub.f32 %v949_v4, %v967_v21  ;;  %v973_v26 = vsub.f32 %v950_v5, %v967_v21  ;;  %v984_v27 = vadd.f32 %v977_v23, %v976_v22  ;;  %v974_v28 = vsub.f32 %v951_v7, %v967_v21 }
 0x251   : > { %v975_v31 = vsub.f32 %v952_v10, %v967_v21 }
 0x252   : > { %v985_v30 = vadd.f32 %v984_v27, %v978_v24  ;;  %v980_v32 = vmul.f32 %v972_v25, %v972_v25  ;;  %v981_v33 = vmul.f32 %v973_v26, %v973_v26  ;;  %v982_v35 = vmul.f32 %v974_v28, %v974_v28 }
 0x253   : > { %v983_v37 = vmul.f32 %v975_v31, %v975_v31 }
 0x254   : > { %v986_v34 = vadd.f32 %v985_v30, %v979_v29  ;;  %v989_v36 = vadd.f32 %v981_v33, %v980_v32 }
 0x256   : > { %987 = vadd.xlane.f32.xlu1 %v986_v34  ;;  %v990_v38 = vadd.f32 %v989_v36, %v982_v35 }
 0x258   : > { %v991_v39 = vadd.f32 %v990_v38, %v983_v37 }
 0x25a   : > { %992 = vadd.xlane.f32.xlu1 %v991_v39 }
 0x2e3   : > { %v988_v40 = vpop.xlane.xlu1 %987 }
 0x2e4   : > { %v994_v41 = vmul.f32 0.001953125, %v988_v40 }
 0x2e6   : > { %v996_v43 = vadd.f32 1e-12, %v994_v41 }
 0x2e7   : > { %v993_v44 = vpop.xlane.xlu1 %992 }
 0x2e8   : > { %18258 = vrsqrt.f32 %v996_v43  ;;  %v995_v45 = vmul.f32 0.001953125, %v993_v44 }
 0x2ea   : > { %v997_v47 = vadd.f32 1e-12, %v995_v45 }
 0x2ec   : > { %18260 = vrsqrt.f32 %v997_v47 }
 0x2f2   : > { %v18259_v58 = vpop.eup %18258 }
 0x2f3   : > { %v1000_v63 = vmul.f32 %v18259_v58, %v968_v16  ;;  %v1001_v0 = vmul.f32 %v18259_v58, %v969_v17  ;;  %v1002_v1 = vmul.f32 %v18259_v58, %v970_v18  ;;  %v1003_v2 = vmul.f32 %v18259_v58, %v971_v20 }
 0x2f5   : > { %v1029_v3 = vmul.f32 %v1012_v54, %v1000_v63  ;;  %v1030_v4 = vmul.f32 %v1016_v55, %v1001_v0  ;;  %v1031_v5 = vmul.f32 %v1020_v56, %v1002_v1  ;;  %v1032_v6 = vmul.f32 %v1024_v57, %v1003_v2 }
 0x2f6   : > { %v18261_v7 = vpop.eup %18260 }
 0x2f7   : > { %v1058_v8 = vadd.f32 %v1041_v59, %v1029_v3  ;;  %v1059_v9 = vadd.f32 %v1045_v60, %v1030_v4  ;;  %v1060_v10 = vadd.f32 %v1049_v61, %v1031_v5  ;;  %v1061_v11 = vadd.f32 %v1053_v62, %v1032_v6 }
 0x2f8   : > { %v1004_v12 = vmul.f32 %v18261_v7, %v972_v25  ;;  %v1005_v13 = vmul.f32 %v18261_v7, %v973_v26  ;;  %v1006_v14 = vmul.f32 %v18261_v7, %v974_v28  ;;  %v1007_v15 = vmul.f32 %v18261_v7, %v975_v31 }
 0x2f9   : > { %1066 = vst [vmem:[%s23835_s26] sm:$0xff] %v1058_v8  ;;  %1067 = vst [vmem:[%s23835_s26 + $0x8] sm:$0xff] %v1059_v9 }
 0x2fa   : > { %1068 = vst [vmem:[%s23835_s26 + $0x10] sm:$0xff] %v1060_v10  ;;  %1069 = vst [vmem:[%s23835_s26 + $0x18] sm:$0xff] %v1061_v11  ;;  %v1033_v16 = vmul.f32 %v1012_v54, %v1004_v12  ;;  %v1034_v17 = vmul.f32 %v1016_v55, %v1005_v13  ;;  %v1035_v18 = vmul.f32 %v1020_v56, %v1006_v14 }
 0x2fb   : > { %v1036_v19 = vmul.f32 %v1024_v57, %v1007_v15 }
 0x2fc   : > { %v1062_v20 = vadd.f32 %v1041_v59, %v1033_v16  ;;  %v1063_v21 = vadd.f32 %v1045_v60, %v1034_v17  ;;  %v1064_v22 = vadd.f32 %v1049_v61, %v1035_v18 }
 0x2fd   : > { %v1065_v23 = vadd.f32 %v1053_v62, %v1036_v19 }
 0x2fe   : > { %1070 = vst [vmem:[%s23835_s26 + $0x20] sm:$0xff] %v1062_v20  ;;  %1071 = vst [vmem:[%s23835_s26 + $0x28] sm:$0xff] %v1063_v21 }
 0x2ff   : > { %1072 = vst [vmem:[%s23835_s26 + $0x30] sm:$0xff] %v1064_v22  ;;  %1073 = vst [vmem:[%s23835_s26 + $0x38] sm:$0xff] %v1065_v23 }
 0x300 PF: > { %v18262_v24 = vld [vmem:[%s20993_s6 + $0x4] ss:$48 sps:$4 sm:$0xff]   ;;  %v18264_v25 = vld [vmem:[%s20993_s6 + $0xc] ss:$48 sps:$4 sm:$0xff]   ;;  %v18266_v26 = vld [vmem:[%s20993_s6] ss:$48 sps:$4 sm:$0xff]  }
 0x301   : > { %3454 = vmatprep.subr.bf16.mxu0 %v18262_v24  ;;  %v18267_v27 = vld [vmem:[%s20993_s6 + $0x8] ss:$48 sps:$4 sm:$0xff]   ;;  %3540 = vmatprep.subr.bf16.mxu1 %v18264_v25  ;;  %v18268_v28 = vld [vmem:[%s20993_s6 + $0x64] ss:$48 sps:$4 sm:$0xff]   ;;  %v18270_v29 = vld [vmem:[%s20993_s6 + $0x6c] ss:$48 sps:$4 sm:$0xff]  }
 0x302   : > { %3455 = vmatpush1.bf16.msra.mxu0 %v18266_v26  ;;  %3541 = vmatpush1.bf16.msra.mxu1 %v18267_v27  ;;  %v18272_v30 = vld [vmem:[%s20993_s6 + $0x60] ss:$48 sps:$4 sm:$0xff]   ;;  %v18273_v31 = vld [vmem:[%s20993_s6 + $0x68] ss:$48 sps:$4 sm:$0xff]   ;;  %v18274_v32 = vld [vmem:[%s20993_s6 + $0xc4] ss:$48 sps:$4 sm:$0xff]  }
 0x303   : > { %3456 = vmatprep.subr.bf16.mxu0 %v18268_v28  ;;  %3542 = vmatprep.subr.bf16.mxu1 %v18270_v29  ;;  %v18276_v33 = vld [vmem:[%s20993_s6 + $0xcc] ss:$48 sps:$4 sm:$0xff]   ;;  %v18278_v34 = vld [vmem:[%s20993_s6 + $0xc0] ss:$48 sps:$4 sm:$0xff]   ;;  %v18279_v35 = vld [vmem:[%s20993_s6 + $0xc8] ss:$48 sps:$4 sm:$0xff]  }
 0x304   : > { %v18280_v36 = vld [vmem:[%s20993_s6 + $0x124] ss:$48 sps:$4 sm:$0xff]   ;;  %v18282_v37 = vld [vmem:[%s20993_s6 + $0x12c] ss:$48 sps:$4 sm:$0xff]   ;;  %v18284_v38 = vld [vmem:[%s20993_s6 + $0x120] ss:$48 sps:$4 sm:$0xff]  }
 0x305   : > { %v18285_v39 = vld [vmem:[%s20993_s6 + $0x128] ss:$48 sps:$4 sm:$0xff]   ;;  %v18286_v40 = vld [vmem:[%s20993_s6 + $0x184] ss:$48 sps:$4 sm:$0xff]   ;;  %v18288_v41 = vld [vmem:[%s20993_s6 + $0x18c] ss:$48 sps:$4 sm:$0xff]  }
 0x306   : > { %3457 = vmatpush1.bf16.msra.mxu0 %v18272_v30  ;;  %3543 = vmatpush1.bf16.msra.mxu1 %v18273_v31  ;;  %v18290_v42 = vld [vmem:[%s20993_s6 + $0x180] ss:$48 sps:$4 sm:$0xff]   ;;  %v18291_v43 = vld [vmem:[%s20993_s6 + $0x188] ss:$48 sps:$4 sm:$0xff]   ;;  %v18292_v44 = vld [vmem:[%s20993_s6 + $0x1e4] ss:$48 sps:$4 sm:$0xff]  }
 0x307   : > { %3458 = vmatprep.subr.bf16.mxu0 %v18274_v32  ;;  %3544 = vmatprep.subr.bf16.mxu1 %v18276_v33  ;;  %v18294_v45 = vld [vmem:[%s20993_s6 + $0x1ec] ss:$48 sps:$4 sm:$0xff]   ;;  %v18296_v46 = vld [vmem:[%s20993_s6 + $0x1e0] ss:$48 sps:$4 sm:$0xff]   ;;  %v18297_v47 = vld [vmem:[%s20993_s6 + $0x1e8] ss:$48 sps:$4 sm:$0xff]  }
 0x308   : > { %v18298_v48 = vld [vmem:[%s20993_s6 + $0x244] ss:$48 sps:$4 sm:$0xff]   ;;  %v18300_v49 = vld [vmem:[%s20993_s6 + $0x24c] ss:$48 sps:$4 sm:$0xff]   ;;  %v18302_v50 = vld [vmem:[%s20993_s6 + $0x240] ss:$48 sps:$4 sm:$0xff]  }
 0x309   : > { %v18303_v51 = vld [vmem:[%s20993_s6 + $0x248] ss:$48 sps:$4 sm:$0xff]   ;;  %v18304_v52 = vld [vmem:[%s20993_s6 + $0x2a4] ss:$48 sps:$4 sm:$0xff]   ;;  %v18306_v53 = vld [vmem:[%s20993_s6 + $0x2ac] ss:$48 sps:$4 sm:$0xff]  }
 0x30a   : > { %3459 = vmatpush1.bf16.msra.mxu0 %v18278_v34  ;;  %3545 = vmatpush1.bf16.msra.mxu1 %v18279_v35  ;;  %v18308_v54 = vld [vmem:[%s20993_s6 + $0x2a0] ss:$48 sps:$4 sm:$0xff]   ;;  %v18309_v55 = vld [vmem:[%s20993_s6 + $0x2a8] ss:$48 sps:$4 sm:$0xff]   ;;  %v18310_v56 = vld [vmem:[%s20993_s6 + $0x304] ss:$48 sps:$4 sm:$0xff]  }
 0x30b   : > { %3460 = vmatprep.subr.bf16.mxu0 %v18280_v36  ;;  %3546 = vmatprep.subr.bf16.mxu1 %v18282_v37  ;;  %v18312_v57 = vld [vmem:[%s20993_s6 + $0x30c] ss:$48 sps:$4 sm:$0xff]   ;;  %v18314_v58 = vld [vmem:[%s20993_s6 + $0x300] ss:$48 sps:$4 sm:$0xff]   ;;  %v18315_v59 = vld [vmem:[%s20993_s6 + $0x308] ss:$48 sps:$4 sm:$0xff]  }
 0x30c   : > { %v18316_v60 = vld [vmem:[%s20993_s6 + $0x364] ss:$48 sps:$4 sm:$0xff]   ;;  %v18318_v61 = vld [vmem:[%s20993_s6 + $0x36c] ss:$48 sps:$4 sm:$0xff]   ;;  %v18320_v62 = vld [vmem:[%s20993_s6 + $0x360] ss:$48 sps:$4 sm:$0xff]  }
 0x30d   : > { %v18321_v63 = vld [vmem:[%s20993_s6 + $0x368] ss:$48 sps:$4 sm:$0xff]   ;;  %v18322_v0 = vld [vmem:[%s20993_s6 + $0x3c4] ss:$48 sps:$4 sm:$0xff]   ;;  %v18324_v1 = vld [vmem:[%s20993_s6 + $0x3cc] ss:$48 sps:$4 sm:$0xff]  }
 0x30e   : > { %3461 = vmatpush1.bf16.msra.mxu0 %v18284_v38  ;;  %3547 = vmatpush1.bf16.msra.mxu1 %v18285_v39  ;;  %v18326_v2 = vld [vmem:[%s20993_s6 + $0x3c0] ss:$48 sps:$4 sm:$0xff]   ;;  %v18327_v3 = vld [vmem:[%s20993_s6 + $0x3c8] ss:$48 sps:$4 sm:$0xff]   ;;  %v18328_v4 = vld [vmem:[%s20993_s6 + $0x424] ss:$48 sps:$4 sm:$0xff]  }
 0x30f   : > { %3462 = vmatprep.subr.bf16.mxu0 %v18286_v40  ;;  %3548 = vmatprep.subr.bf16.mxu1 %v18288_v41  ;;  %v18330_v5 = vld [vmem:[%s20993_s6 + $0x42c] ss:$48 sps:$4 sm:$0xff]   ;;  %s23836_s0 = sld [smem:[#allocation38_spill]]  ;;  %v18332_v8 = vld [vmem:[%s20993_s6 + $0x420] ss:$48 sps:$4 sm:$0xff]   ;;  %vm20423_vm0 = vmmov 0  }
 0x310   : > { %v18333_v9 = vld [vmem:[%s20993_s6 + $0x428] ss:$48 sps:$4 sm:$0xff]   ;;  %v18334_v11 = vld [vmem:[%s20993_s6 + $0x484] ss:$48 sps:$4 sm:$0xff]   ;;  %v18336_v12 = vld [vmem:[%s20993_s6 + $0x48c] ss:$48 sps:$4 sm:$0xff]  }
 0x311   : > { %v18338_v13 = vld [vmem:[%s20993_s6 + $0x480] ss:$48 sps:$4 sm:$0xff]   ;;  %v18339_v14 = vld [vmem:[%s20993_s6 + $0x488] ss:$48 sps:$4 sm:$0xff]   ;;  %v18340_v15 = vld [vmem:[%s20993_s6 + $0x4e4] ss:$48 sps:$4 sm:$0xff]  }
 0x312   : > { %3463 = vmatpush1.bf16.msra.mxu0 %v18290_v42  ;;  %3549 = vmatpush1.bf16.msra.mxu1 %v18291_v43  ;;  %v18342_v16 = vld [vmem:[%s20993_s6 + $0x4ec] ss:$48 sps:$4 sm:$0xff]   ;;  %v18344_v17 = vld [vmem:[%s20993_s6 + $0x4e0] ss:$48 sps:$4 sm:$0xff]   ;;  %v18345_v18 = vld [vmem:[%s20993_s6 + $0x4e8] ss:$48 sps:$4 sm:$0xff]  }
 0x313   : > { %3464 = vmatprep.subr.bf16.mxu0 %v18292_v44  ;;  %3550 = vmatprep.subr.bf16.mxu1 %v18294_v45  ;;  %v18346_v19 = vld [vmem:[%s20993_s6 + $0x544] ss:$48 sps:$4 sm:$0xff]   ;;  %v18348_v20 = vld [vmem:[%s20993_s6 + $0x54c] ss:$48 sps:$4 sm:$0xff]   ;;  %v18350_v21 = vld [vmem:[%s20993_s6 + $0x540] ss:$48 sps:$4 sm:$0xff]  }
 0x314   : > { %v18351_v22 = vld [vmem:[%s20993_s6 + $0x548] ss:$48 sps:$4 sm:$0xff]   ;;  %v18352_v23 = vld [vmem:[%s20993_s6 + $0x5a4] ss:$48 sps:$4 sm:$0xff]   ;;  %v18354_v24 = vld [vmem:[%s20993_s6 + $0x5ac] ss:$48 sps:$4 sm:$0xff]  }
 0x315   : > { %v1075_v6 = vld [vmem:[%s23836_s0 + $0x8] sm:$0xff]  ;;  %v18357_v26 = vld [vmem:[%s20993_s6 + $0x5a8] ss:$48 sps:$4 sm:$0xff]   ;;  %v18363_v30 = vld [vmem:[%s20993_s6 + $0x60c] ss:$48 sps:$4 sm:$0xff]   ;;  %vm3998_vm1 = vcmask 523264  }
 0x316   : > { %3465 = vmatpush1.bf16.msra.mxu0 %v18296_v46  ;;  %3551 = vmatpush1.bf16.msra.mxu1 %v18297_v47  ;;  %v1079_v7 = vld [vmem:[%s23836_s0 + $0x28] sm:$0xff]  ;;  %v1074_v28 = vld [vmem:[%s23836_s0] sm:$0xff]  ;;  %s20424_s15 = smov 64   ;;  %s23837_s30 = sld [smem:[#allocation31_spill]]  ;;  %vm4081_vm2 = vcmask 64512   ;;  %vm4344_vm3 = vcmask 1048064  }
 0x317   : > { %3466 = vmatprep.subr.bf16.mxu0 %v18298_v48  ;;  %3552 = vmatprep.subr.bf16.mxu1 %v18300_v49  ;;  %v21121_v10 = vpack.c.bf16 %v1079_v7, %v1075_v6  ;;  %v18356_v25 = vld [vmem:[%s20993_s6 + $0x5a0] ss:$48 sps:$4 sm:$0xff]   ;;  %v18360_v27 = vld [vmem:[%s20993_s6 + $0x604] ss:$48 sps:$4 sm:$0xff]   ;;  %v1078_v29 = vld [vmem:[%s23836_s0 + $0x20] sm:$0xff]  ;;  %s23839_s25 = scalar_lea.vmem [#allocation13], %s20999_s21 }
 0x318   : > { %v18358_v31 = vld [vmem:[%s20993_s6 + $0x600] ss:$48 sps:$4 sm:$0xff]   ;;  %v18361_v32 = vld [vmem:[%s20993_s6 + $0x608] ss:$48 sps:$4 sm:$0xff]   ;;  %v21151_v33 = vpack.c.bf16 %v1078_v29, %v1074_v28  ;;  %v18366_v34 = vld [vmem:[%s20993_s6 + $0x664] ss:$48 sps:$4 sm:$0xff]  }
 0x319   : > { %3486 = vmatprep.mubr.bf16.mxu0 %v21121_v10  ;;  %3572 = vmatprep.mubr.bf16.mxu1 %v21121_v10  ;;  %v18369_v35 = vld [vmem:[%s20993_s6 + $0x66c] ss:$48 sps:$4 sm:$0xff]   ;;  %v18364_v36 = vld [vmem:[%s20993_s6 + $0x660] ss:$48 sps:$4 sm:$0xff]   ;;  %v18367_v37 = vld [vmem:[%s20993_s6 + $0x668] ss:$48 sps:$4 sm:$0xff]  }
 0x31a   : > { %3467 = vmatpush1.bf16.msra.mxu0 %v18302_v50  ;;  %3553 = vmatpush1.bf16.msra.mxu1 %v18303_v51  ;;  %v18372_v38 = vld [vmem:[%s20993_s6 + $0x6c4] ss:$48 sps:$4 sm:$0xff]   ;;  %v18375_v39 = vld [vmem:[%s20993_s6 + $0x6cc] ss:$48 sps:$4 sm:$0xff]   ;;  %v18370_v40 = vld [vmem:[%s20993_s6 + $0x6c0] ss:$48 sps:$4 sm:$0xff]  }
 0x31b   : > { %3468 = vmatprep.subr.bf16.mxu0 %v18304_v52  ;;  %3554 = vmatprep.subr.bf16.mxu1 %v18306_v53  ;;  %v18373_v41 = vld [vmem:[%s20993_s6 + $0x6c8] ss:$48 sps:$4 sm:$0xff]   ;;  %v18378_v42 = vld [vmem:[%s20993_s6 + $0x724] ss:$48 sps:$4 sm:$0xff]   ;;  %v18381_v43 = vld [vmem:[%s20993_s6 + $0x72c] ss:$48 sps:$4 sm:$0xff]  }
 0x31c   : > { %v18376_v44 = vld [vmem:[%s20993_s6 + $0x720] ss:$48 sps:$4 sm:$0xff]   ;;  %v18379_v45 = vld [vmem:[%s20993_s6 + $0x728] ss:$48 sps:$4 sm:$0xff]   ;;  %v18384_v46 = vld [vmem:[%s20993_s6 + $0x784] ss:$48 sps:$4 sm:$0xff]  }
 0x31d   : > { %v18387_v47 = vld [vmem:[%s20993_s6 + $0x78c] ss:$48 sps:$4 sm:$0xff]   ;;  %v18382_v48 = vld [vmem:[%s20993_s6 + $0x780] ss:$48 sps:$4 sm:$0xff]   ;;  %v18385_v49 = vld [vmem:[%s20993_s6 + $0x788] ss:$48 sps:$4 sm:$0xff]  }
 0x31e   : > { %3469 = vmatpush1.bf16.msra.mxu0 %v18308_v54  ;;  %3555 = vmatpush1.bf16.msra.mxu1 %v18309_v55  ;;  %v18390_v50 = vld [vmem:[%s20993_s6 + $0x7e4] ss:$48 sps:$4 sm:$0xff]   ;;  %v18393_v51 = vld [vmem:[%s20993_s6 + $0x7ec] ss:$48 sps:$4 sm:$0xff]   ;;  %v18388_v52 = vld [vmem:[%s20993_s6 + $0x7e0] ss:$48 sps:$4 sm:$0xff]  }
 0x31f   : > { %3470 = vmatprep.subr.bf16.mxu0 %v18310_v56  ;;  %3556 = vmatprep.subr.bf16.mxu1 %v18312_v57  ;;  %v18391_v53 = vld [vmem:[%s20993_s6 + $0x7e8] ss:$48 sps:$4 sm:$0xff]   ;;  %v18396_v54 = vld [vmem:[%s20993_s6 + $0x844] ss:$48 sps:$4 sm:$0xff]   ;;  %v18399_v55 = vld [vmem:[%s20993_s6 + $0x84c] ss:$48 sps:$4 sm:$0xff]  }
 0x320   : > { %v1077_v56 = vld [vmem:[%s23836_s0 + $0x18] sm:$0xff]  ;;  %v18417_v6 = vld [vmem:[%s20993_s6 + $0x96c] ss:$48 sps:$4 sm:$0xff]   ;;  %v18445_v29 = vld [vmem:[%s20993_s6 + $0xb48] ss:$48 sps:$4 sm:$0xff]  }
 0x321   : > { %v18394_v57 = vld [vmem:[%s20993_s6 + $0x840] ss:$48 sps:$4 sm:$0xff]  }
 0x322   : > { %3471 = vmatpush1.bf16.msra.mxu0 %v18314_v58  ;;  %3557 = vmatpush1.bf16.msra.mxu1 %v18315_v59  ;;  %v18397_v58 = vld [vmem:[%s20993_s6 + $0x848] ss:$48 sps:$4 sm:$0xff]   ;;  %v1081_v59 = vld [vmem:[%s23836_s0 + $0x38] sm:$0xff] }
 0x323   : > { %3472 = vmatprep.subr.bf16.mxu0 %v18316_v60  ;;  %3558 = vmatprep.subr.bf16.mxu1 %v18318_v61  ;;  %v18402_v60 = vld [vmem:[%s20993_s6 + $0x8a4] ss:$48 sps:$4 sm:$0xff]   ;;  %v21186_v61 = vpack.c.bf16 %v1081_v59, %v1077_v56  ;;  %v18412_v7 = vld [vmem:[%s20993_s6 + $0x960] ss:$48 sps:$4 sm:$0xff]   ;;  %v18489_v59 = vld [vmem:[%s20993_s6 + $0x1fc] ss:$48 sps:$4 sm:$0xff]  }
 0x324   : > { %v18442_v28 = vld [vmem:[%s20993_s6 + $0xb40] ss:$48 sps:$4 sm:$0xff]  }
 0x325   : > { %v18478_v56 = vld [vmem:[%s20993_s6 + $0x190] ss:$48 sps:$4 sm:$0xff]  }
 0x326   : > { %3473 = vmatpush1.bf16.msra.mxu0 %v18320_v62  ;;  %3559 = vmatpush1.bf16.msra.mxu1 %v18321_v63  ;;  %v18405_v62 = vld [vmem:[%s20993_s6 + $0x8ac] ss:$48 sps:$4 sm:$0xff]   ;;  %v18400_v63 = vld [vmem:[%s20993_s6 + $0x8a0] ss:$48 sps:$4 sm:$0xff]  }
 0x327   : > { %3474 = vmatprep.subr.bf16.mxu0 %v18322_v0  ;;  %3560 = vmatprep.subr.bf16.mxu1 %v18324_v1  ;;  %v18403_v0 = vld [vmem:[%s20993_s6 + $0x8a8] ss:$48 sps:$4 sm:$0xff]   ;;  %v18408_v1 = vld [vmem:[%s20993_s6 + $0x904] ss:$48 sps:$4 sm:$0xff]  }
 0x32a   : > { %3475 = vmatpush1.bf16.msra.mxu0 %v18326_v2  ;;  %3561 = vmatpush1.bf16.msra.mxu1 %v18327_v3  ;;  %v18411_v2 = vld [vmem:[%s20993_s6 + $0x90c] ss:$48 sps:$4 sm:$0xff]   ;;  %v18406_v3 = vld [vmem:[%s20993_s6 + $0x900] ss:$48 sps:$4 sm:$0xff]  }
 0x32b   : > { %3476 = vmatprep.subr.bf16.mxu0 %v18328_v4  ;;  %3562 = vmatprep.subr.bf16.mxu1 %v18330_v5  ;;  %v18409_v4 = vld [vmem:[%s20993_s6 + $0x908] ss:$48 sps:$4 sm:$0xff]   ;;  %v18414_v5 = vld [vmem:[%s20993_s6 + $0x964] ss:$48 sps:$4 sm:$0xff]  }
 0x32e   : > { %3477 = vmatpush1.bf16.msra.mxu0 %v18332_v8  ;;  %3563 = vmatpush1.bf16.msra.mxu1 %v18333_v9  ;;  %v18415_v8 = vld [vmem:[%s20993_s6 + $0x968] ss:$48 sps:$4 sm:$0xff]   ;;  %v18420_v9 = vld [vmem:[%s20993_s6 + $0x9c4] ss:$48 sps:$4 sm:$0xff]  }
 0x32f   : > { %3478 = vmatprep.subr.bf16.mxu0 %v18334_v11  ;;  %3564 = vmatprep.subr.bf16.mxu1 %v18336_v12  ;;  %v18423_v11 = vld [vmem:[%s20993_s6 + $0x9cc] ss:$48 sps:$4 sm:$0xff]   ;;  %v18418_v12 = vld [vmem:[%s20993_s6 + $0x9c0] ss:$48 sps:$4 sm:$0xff]  }
 0x332   : > { %3479 = vmatpush1.bf16.msra.mxu0 %v18338_v13  ;;  %3565 = vmatpush1.bf16.msra.mxu1 %v18339_v14  ;;  %v18421_v13 = vld [vmem:[%s20993_s6 + $0x9c8] ss:$48 sps:$4 sm:$0xff]   ;;  %v18426_v14 = vld [vmem:[%s20993_s6 + $0xa24] ss:$48 sps:$4 sm:$0xff]  }
 0x333   : > { %3480 = vmatprep.subr.bf16.mxu0 %v18340_v15  ;;  %3566 = vmatprep.subr.bf16.mxu1 %v18342_v16  ;;  %v18429_v15 = vld [vmem:[%s20993_s6 + $0xa2c] ss:$48 sps:$4 sm:$0xff]   ;;  %v18424_v16 = vld [vmem:[%s20993_s6 + $0xa20] ss:$48 sps:$4 sm:$0xff]  }
 0x336   : > { %3481 = vmatpush1.bf16.msra.mxu0 %v18344_v17  ;;  %3567 = vmatpush1.bf16.msra.mxu1 %v18345_v18  ;;  %v18427_v17 = vld [vmem:[%s20993_s6 + $0xa28] ss:$48 sps:$4 sm:$0xff]   ;;  %v18432_v18 = vld [vmem:[%s20993_s6 + $0xa84] ss:$48 sps:$4 sm:$0xff]  }
 0x337   : > { %3482 = vmatprep.subr.bf16.mxu0 %v18346_v19  ;;  %3568 = vmatprep.subr.bf16.mxu1 %v18348_v20  ;;  %v18435_v19 = vld [vmem:[%s20993_s6 + $0xa8c] ss:$48 sps:$4 sm:$0xff]   ;;  %v18430_v20 = vld [vmem:[%s20993_s6 + $0xa80] ss:$48 sps:$4 sm:$0xff]  }
 0x33a   : > { %3483 = vmatpush1.bf16.msra.mxu0 %v18350_v21  ;;  %3569 = vmatpush1.bf16.msra.mxu1 %v18351_v22  ;;  %v18433_v21 = vld [vmem:[%s20993_s6 + $0xa88] ss:$48 sps:$4 sm:$0xff]   ;;  %v18438_v22 = vld [vmem:[%s20993_s6 + $0xae4] ss:$48 sps:$4 sm:$0xff]  }
 0x33b   : > { %3484 = vmatprep.subr.bf16.mxu0 %v18352_v23  ;;  %3570 = vmatprep.subr.bf16.mxu1 %v18354_v24  ;;  %v18441_v23 = vld [vmem:[%s20993_s6 + $0xaec] ss:$48 sps:$4 sm:$0xff]   ;;  %v18436_v24 = vld [vmem:[%s20993_s6 + $0xae0] ss:$48 sps:$4 sm:$0xff]  }
 0x33e   : > { %3485 = vmatpush1.bf16.msra.mxu0 %v18356_v25  ;;  %3571 = vmatpush1.bf16.msra.mxu1 %v18357_v26  ;;  %v18439_v25 = vld [vmem:[%s20993_s6 + $0xae8] ss:$48 sps:$4 sm:$0xff]   ;;  %v18444_v26 = vld [vmem:[%s20993_s6 + $0xb44] ss:$48 sps:$4 sm:$0xff]  }
 0x33f   : > { %3497 = vmatprep.subr.bf16.mxu0 %v18360_v27  ;;  %3583 = vmatprep.subr.bf16.mxu1 %v18363_v30  ;;  %v18447_v27 = vld [vmem:[%s20993_s6 + $0xb4c] ss:$48 sps:$4 sm:$0xff]   ;;  %v18450_v30 = vld [vmem:[%s20993_s6 + $0xba4] ss:$48 sps:$4 sm:$0xff]  }
 0x341   : > { %3487 = vmatmul.mubr.bf16.vlgmr.msra.gmra.mrb[0].mxu0 %v21151_v33  ;;  %3573 = vmatmul.mubr.bf16.vlgmr.msra.gmra.mrb[0].mxu1 %v21151_v33 }
 0x342   : > { %3498 = vmatpush1.bf16.msra.mxu0 %v18358_v31  ;;  %3584 = vmatpush1.bf16.msra.mxu1 %v18361_v32  ;;  %v18453_v31 = vld [vmem:[%s20993_s6 + $0xbac] ss:$48 sps:$4 sm:$0xff]   ;;  %v18448_v32 = vld [vmem:[%s20993_s6 + $0xba0] ss:$48 sps:$4 sm:$0xff]  }
 0x343   : > { %3499 = vmatprep.subr.bf16.mxu0 %v18366_v34  ;;  %3585 = vmatprep.subr.bf16.mxu1 %v18369_v35  ;;  %v18451_v34 = vld [vmem:[%s20993_s6 + $0xba8] ss:$48 sps:$4 sm:$0xff]  }
 0x344   : > { %3529 = vmatprep.mubr.bf16.mxu0 %v21186_v61  ;;  %3615 = vmatprep.mubr.bf16.mxu1 %v21186_v61  ;;  %v1076_v35 = vld [vmem:[%s23836_s0 + $0x10] sm:$0xff] }
 0x346   : > { %3500 = vmatpush1.bf16.msra.mxu0 %v18364_v36  ;;  %3586 = vmatpush1.bf16.msra.mxu1 %v18367_v37  ;;  %v1080_v36 = vld [vmem:[%s23836_s0 + $0x30] sm:$0xff]  ;;  %v18456_v37 = vld [vmem:[%s20993_s6 + $0x14] ss:$48 sps:$4 sm:$0xff]  }
 0x347   : > { %3501 = vmatprep.subr.bf16.mxu0 %v18372_v38  ;;  %3587 = vmatprep.subr.bf16.mxu1 %v18375_v39  ;;  %v18459_v38 = vld [vmem:[%s20993_s6 + $0x1c] ss:$48 sps:$4 sm:$0xff]   ;;  %v21233_v39 = vpack.c.bf16 %v1080_v36, %v1076_v35  ;;  %v18538_v35 = vld [vmem:[%s20993_s6 + $0x550] ss:$48 sps:$4 sm:$0xff]   ;;  %v18541_v36 = vld [vmem:[%s20993_s6 + $0x558] ss:$48 sps:$4 sm:$0xff]  }
 0x34a   : > { %3502 = vmatpush1.bf16.msra.mxu0 %v18370_v40  ;;  %3588 = vmatpush1.bf16.msra.mxu1 %v18373_v41  ;;  %v18454_v40 = vld [vmem:[%s20993_s6 + $0x10] ss:$48 sps:$4 sm:$0xff]   ;;  %v18457_v41 = vld [vmem:[%s20993_s6 + $0x18] ss:$48 sps:$4 sm:$0xff]  }
 0x34b   : > { %3503 = vmatprep.subr.bf16.mxu0 %v18378_v42  ;;  %3589 = vmatprep.subr.bf16.mxu1 %v18381_v43  ;;  %v18462_v42 = vld [vmem:[%s20993_s6 + $0x74] ss:$48 sps:$4 sm:$0xff]   ;;  %v18465_v43 = vld [vmem:[%s20993_s6 + $0x7c] ss:$48 sps:$4 sm:$0xff]  }
 0x34e   : > { %3504 = vmatpush1.bf16.msra.mxu0 %v18376_v44  ;;  %3590 = vmatpush1.bf16.msra.mxu1 %v18379_v45  ;;  %v18460_v44 = vld [vmem:[%s20993_s6 + $0x70] ss:$48 sps:$4 sm:$0xff]   ;;  %v18463_v45 = vld [vmem:[%s20993_s6 + $0x78] ss:$48 sps:$4 sm:$0xff]  }
 0x34f   : > { %3505 = vmatprep.subr.bf16.mxu0 %v18384_v46  ;;  %3591 = vmatprep.subr.bf16.mxu1 %v18387_v47  ;;  %v18468_v46 = vld [vmem:[%s20993_s6 + $0xd4] ss:$48 sps:$4 sm:$0xff]   ;;  %v18471_v47 = vld [vmem:[%s20993_s6 + $0xdc] ss:$48 sps:$4 sm:$0xff]  }
 0x352   : > { %3506 = vmatpush1.bf16.msra.mxu0 %v18382_v48  ;;  %3592 = vmatpush1.bf16.msra.mxu1 %v18385_v49  ;;  %v18466_v48 = vld [vmem:[%s20993_s6 + $0xd0] ss:$48 sps:$4 sm:$0xff]   ;;  %v18469_v49 = vld [vmem:[%s20993_s6 + $0xd8] ss:$48 sps:$4 sm:$0xff]  }
 0x353   : > { %3507 = vmatprep.subr.bf16.mxu0 %v18390_v50  ;;  %3593 = vmatprep.subr.bf16.mxu1 %v18393_v51  ;;  %v18474_v50 = vld [vmem:[%s20993_s6 + $0x134] ss:$48 sps:$4 sm:$0xff]   ;;  %v18477_v51 = vld [vmem:[%s20993_s6 + $0x13c] ss:$48 sps:$4 sm:$0xff]  }
 0x356   : > { %3508 = vmatpush1.bf16.msra.mxu0 %v18388_v52  ;;  %3594 = vmatpush1.bf16.msra.mxu1 %v18391_v53  ;;  %v18472_v52 = vld [vmem:[%s20993_s6 + $0x130] ss:$48 sps:$4 sm:$0xff]   ;;  %v18475_v53 = vld [vmem:[%s20993_s6 + $0x138] ss:$48 sps:$4 sm:$0xff]  }
 0x357   : > { %3509 = vmatprep.subr.bf16.mxu0 %v18396_v54  ;;  %3595 = vmatprep.subr.bf16.mxu1 %v18399_v55  ;;  %v18480_v54 = vld [vmem:[%s20993_s6 + $0x194] ss:$48 sps:$4 sm:$0xff]   ;;  %v18483_v55 = vld [vmem:[%s20993_s6 + $0x19c] ss:$48 sps:$4 sm:$0xff]  }
 0x35a   : > { %3510 = vmatpush1.bf16.msra.mxu0 %v18394_v57  ;;  %3596 = vmatpush1.bf16.msra.mxu1 %v18397_v58  ;;  %v18481_v57 = vld [vmem:[%s20993_s6 + $0x198] ss:$48 sps:$4 sm:$0xff]   ;;  %v18486_v58 = vld [vmem:[%s20993_s6 + $0x1f4] ss:$48 sps:$4 sm:$0xff]  }
 0x35b   : > { %3511 = vmatprep.subr.bf16.mxu0 %v18402_v60  ;;  %3597 = vmatprep.subr.bf16.mxu1 %v18405_v62  ;;  %v18484_v60 = vld [vmem:[%s20993_s6 + $0x1f0] ss:$48 sps:$4 sm:$0xff]   ;;  %v18487_v62 = vld [vmem:[%s20993_s6 + $0x1f8] ss:$48 sps:$4 sm:$0xff]  }
 0x35e   : > { %3512 = vmatpush1.bf16.msra.mxu0 %v18400_v63  ;;  %3598 = vmatpush1.bf16.msra.mxu1 %v18403_v0  ;;  %v18492_v63 = vld [vmem:[%s20993_s6 + $0x254] ss:$48 sps:$4 sm:$0xff]   ;;  %v18495_v0 = vld [vmem:[%s20993_s6 + $0x25c] ss:$48 sps:$4 sm:$0xff]  }
 0x35f   : > { %3513 = vmatprep.subr.bf16.mxu0 %v18408_v1  ;;  %3599 = vmatprep.subr.bf16.mxu1 %v18411_v2  ;;  %v18490_v1 = vld [vmem:[%s20993_s6 + $0x250] ss:$48 sps:$4 sm:$0xff]   ;;  %v18493_v2 = vld [vmem:[%s20993_s6 + $0x258] ss:$48 sps:$4 sm:$0xff]  }
 0x362   : > { %3514 = vmatpush1.bf16.msra.mxu0 %v18406_v3  ;;  %3600 = vmatpush1.bf16.msra.mxu1 %v18409_v4  ;;  %v18498_v3 = vld [vmem:[%s20993_s6 + $0x2b4] ss:$48 sps:$4 sm:$0xff]   ;;  %v18501_v4 = vld [vmem:[%s20993_s6 + $0x2bc] ss:$48 sps:$4 sm:$0xff]  }
 0x363   : > { %3515 = vmatprep.subr.bf16.mxu0 %v18414_v5  ;;  %3601 = vmatprep.subr.bf16.mxu1 %v18417_v6  ;;  %v18496_v5 = vld [vmem:[%s20993_s6 + $0x2b0] ss:$48 sps:$4 sm:$0xff]   ;;  %v18499_v6 = vld [vmem:[%s20993_s6 + $0x2b8] ss:$48 sps:$4 sm:$0xff]  }
 0x366   : > { %3516 = vmatpush1.bf16.msra.mxu0 %v18412_v7  ;;  %3602 = vmatpush1.bf16.msra.mxu1 %v18415_v8  ;;  %v18504_v7 = vld [vmem:[%s20993_s6 + $0x314] ss:$48 sps:$4 sm:$0xff]   ;;  %v18507_v8 = vld [vmem:[%s20993_s6 + $0x31c] ss:$48 sps:$4 sm:$0xff]  }
 0x367   : > { %3517 = vmatprep.subr.bf16.mxu0 %v18420_v9  ;;  %3603 = vmatprep.subr.bf16.mxu1 %v18423_v11  ;;  %v18502_v9 = vld [vmem:[%s20993_s6 + $0x310] ss:$48 sps:$4 sm:$0xff]   ;;  %v18505_v11 = vld [vmem:[%s20993_s6 + $0x318] ss:$48 sps:$4 sm:$0xff]  }
 0x36a   : > { %3518 = vmatpush1.bf16.msra.mxu0 %v18418_v12  ;;  %3604 = vmatpush1.bf16.msra.mxu1 %v18421_v13  ;;  %v18510_v12 = vld [vmem:[%s20993_s6 + $0x374] ss:$48 sps:$4 sm:$0xff]   ;;  %v18513_v13 = vld [vmem:[%s20993_s6 + $0x37c] ss:$48 sps:$4 sm:$0xff]  }
 0x36b   : > { %3519 = vmatprep.subr.bf16.mxu0 %v18426_v14  ;;  %3605 = vmatprep.subr.bf16.mxu1 %v18429_v15  ;;  %v18508_v14 = vld [vmem:[%s20993_s6 + $0x370] ss:$48 sps:$4 sm:$0xff]   ;;  %v18511_v15 = vld [vmem:[%s20993_s6 + $0x378] ss:$48 sps:$4 sm:$0xff]  }
 0x36e   : > { %3520 = vmatpush1.bf16.msra.mxu0 %v18424_v16  ;;  %3606 = vmatpush1.bf16.msra.mxu1 %v18427_v17  ;;  %v18516_v16 = vld [vmem:[%s20993_s6 + $0x3d4] ss:$48 sps:$4 sm:$0xff]   ;;  %v18519_v17 = vld [vmem:[%s20993_s6 + $0x3dc] ss:$48 sps:$4 sm:$0xff]  }
 0x36f   : > { %3521 = vmatprep.subr.bf16.mxu0 %v18432_v18  ;;  %3607 = vmatprep.subr.bf16.mxu1 %v18435_v19  ;;  %v18514_v18 = vld [vmem:[%s20993_s6 + $0x3d0] ss:$48 sps:$4 sm:$0xff]   ;;  %v18517_v19 = vld [vmem:[%s20993_s6 + $0x3d8] ss:$48 sps:$4 sm:$0xff]  }
 0x372   : > { %3522 = vmatpush1.bf16.msra.mxu0 %v18430_v20  ;;  %3608 = vmatpush1.bf16.msra.mxu1 %v18433_v21  ;;  %v18522_v20 = vld [vmem:[%s20993_s6 + $0x434] ss:$48 sps:$4 sm:$0xff]   ;;  %v18525_v21 = vld [vmem:[%s20993_s6 + $0x43c] ss:$48 sps:$4 sm:$0xff]  }
 0x373   : > { %3523 = vmatprep.subr.bf16.mxu0 %v18438_v22  ;;  %3609 = vmatprep.subr.bf16.mxu1 %v18441_v23  ;;  %v18520_v22 = vld [vmem:[%s20993_s6 + $0x430] ss:$48 sps:$4 sm:$0xff]   ;;  %v18523_v23 = vld [vmem:[%s20993_s6 + $0x438] ss:$48 sps:$4 sm:$0xff]  }
 0x376   : > { %3524 = vmatpush1.bf16.msra.mxu0 %v18436_v24  ;;  %3610 = vmatpush1.bf16.msra.mxu1 %v18439_v25  ;;  %v18528_v24 = vld [vmem:[%s20993_s6 + $0x494] ss:$48 sps:$4 sm:$0xff]   ;;  %v18531_v25 = vld [vmem:[%s20993_s6 + $0x49c] ss:$48 sps:$4 sm:$0xff]  }
 0x377   : > { %3525 = vmatprep.subr.bf16.mxu0 %v18444_v26  ;;  %3611 = vmatprep.subr.bf16.mxu1 %v18447_v27  ;;  %v18526_v26 = vld [vmem:[%s20993_s6 + $0x490] ss:$48 sps:$4 sm:$0xff]   ;;  %v18529_v27 = vld [vmem:[%s20993_s6 + $0x498] ss:$48 sps:$4 sm:$0xff]  }
 0x37a   : > { %3526 = vmatpush1.bf16.msra.mxu0 %v18442_v28  ;;  %3612 = vmatpush1.bf16.msra.mxu1 %v18445_v29  ;;  %v18534_v28 = vld [vmem:[%s20993_s6 + $0x4f4] ss:$48 sps:$4 sm:$0xff]   ;;  %v18537_v29 = vld [vmem:[%s20993_s6 + $0x4fc] ss:$48 sps:$4 sm:$0xff]  }
 0x37b   : > { %3527 = vmatprep.subr.bf16.mxu0 %v18450_v30  ;;  %3613 = vmatprep.subr.bf16.mxu1 %v18453_v31  ;;  %v18532_v30 = vld [vmem:[%s20993_s6 + $0x4f0] ss:$48 sps:$4 sm:$0xff]   ;;  %v18535_v31 = vld [vmem:[%s20993_s6 + $0x4f8] ss:$48 sps:$4 sm:$0xff]  }
 0x37e   : > { %3528 = vmatpush1.bf16.msra.mxu0 %v18448_v32  ;;  %3614 = vmatpush1.bf16.msra.mxu1 %v18451_v34  ;;  %v18540_v32 = vld [vmem:[%s20993_s6 + $0x554] ss:$48 sps:$4 sm:$0xff]   ;;  %v18543_v34 = vld [vmem:[%s20993_s6 + $0x55c] ss:$48 sps:$4 sm:$0xff]  }
 0x37f   : > { %3626 = vmatprep.subr.bf16.mxu0 %v18456_v37  ;;  %3712 = vmatprep.subr.bf16.mxu1 %v18459_v38  ;;  %v18546_v37 = vld [vmem:[%s20993_s6 + $0x5b4] ss:$48 sps:$4 sm:$0xff]   ;;  %v18549_v38 = vld [vmem:[%s20993_s6 + $0x5bc] ss:$48 sps:$4 sm:$0xff]  }
 0x381   : > { %3530 = vmatmul.mubr.bf16.vlgmr.msra.gmra.mrb[0].mxu0 %v21233_v39  ;;  %3616 = vmatmul.mubr.bf16.vlgmr.msra.gmra.mrb[0].mxu1 %v21233_v39 }
 0x382   : > { %3627 = vmatpush1.bf16.msra.mxu0 %v18454_v40  ;;  %3713 = vmatpush1.bf16.msra.mxu1 %v18457_v41  ;;  %v18544_v40 = vld [vmem:[%s20993_s6 + $0x5b0] ss:$48 sps:$4 sm:$0xff]   ;;  %v18547_v41 = vld [vmem:[%s20993_s6 + $0x5b8] ss:$48 sps:$4 sm:$0xff]  }
 0x383   : > { %3628 = vmatprep.subr.bf16.mxu0 %v18462_v42  ;;  %3714 = vmatprep.subr.bf16.mxu1 %v18465_v43  ;;  %v18552_v42 = vld [vmem:[%s20993_s6 + $0x614] ss:$48 sps:$4 sm:$0xff]   ;;  %v18555_v43 = vld [vmem:[%s20993_s6 + $0x61c] ss:$48 sps:$4 sm:$0xff]  }
 0x384   : > { %3658 = vmatprep.mubr.bf16.mxu0 %v21121_v10  ;;  %3744 = vmatprep.mubr.bf16.mxu1 %v21121_v10 }
 0x386   : > { %3629 = vmatpush1.bf16.msra.mxu0 %v18460_v44  ;;  %3715 = vmatpush1.bf16.msra.mxu1 %v18463_v45  ;;  %v18550_v44 = vld [vmem:[%s20993_s6 + $0x610] ss:$48 sps:$4 sm:$0xff]   ;;  %v18553_v45 = vld [vmem:[%s20993_s6 + $0x618] ss:$48 sps:$4 sm:$0xff]  }
 0x387   : > { %3630 = vmatprep.subr.bf16.mxu0 %v18468_v46  ;;  %3716 = vmatprep.subr.bf16.mxu1 %v18471_v47  ;;  %v18558_v46 = vld [vmem:[%s20993_s6 + $0x674] ss:$48 sps:$4 sm:$0xff]   ;;  %v18561_v47 = vld [vmem:[%s20993_s6 + $0x67c] ss:$48 sps:$4 sm:$0xff]  }
 0x38a   : > { %3631 = vmatpush1.bf16.msra.mxu0 %v18466_v48  ;;  %3717 = vmatpush1.bf16.msra.mxu1 %v18469_v49  ;;  %v18556_v48 = vld [vmem:[%s20993_s6 + $0x670] ss:$48 sps:$4 sm:$0xff]   ;;  %v18559_v49 = vld [vmem:[%s20993_s6 + $0x678] ss:$48 sps:$4 sm:$0xff]  }
 0x38b   : > { %3632 = vmatprep.subr.bf16.mxu0 %v18474_v50  ;;  %3718 = vmatprep.subr.bf16.mxu1 %v18477_v51  ;;  %v18564_v50 = vld [vmem:[%s20993_s6 + $0x6d4] ss:$48 sps:$4 sm:$0xff]   ;;  %v18567_v51 = vld [vmem:[%s20993_s6 + $0x6dc] ss:$48 sps:$4 sm:$0xff]  }
 0x38e   : > { %3633 = vmatpush1.bf16.msra.mxu0 %v18472_v52  ;;  %3719 = vmatpush1.bf16.msra.mxu1 %v18475_v53  ;;  %v18562_v52 = vld [vmem:[%s20993_s6 + $0x6d0] ss:$48 sps:$4 sm:$0xff]   ;;  %v18565_v53 = vld [vmem:[%s20993_s6 + $0x6d8] ss:$48 sps:$4 sm:$0xff]  }
 0x38f   : > { %3634 = vmatprep.subr.bf16.mxu0 %v18480_v54  ;;  %3720 = vmatprep.subr.bf16.mxu1 %v18483_v55  ;;  %v18570_v54 = vld [vmem:[%s20993_s6 + $0x734] ss:$48 sps:$4 sm:$0xff]   ;;  %v18573_v55 = vld [vmem:[%s20993_s6 + $0x73c] ss:$48 sps:$4 sm:$0xff]  }
 0x392   : > { %3635 = vmatpush1.bf16.msra.mxu0 %v18478_v56  ;;  %3721 = vmatpush1.bf16.msra.mxu1 %v18481_v57  ;;  %v18568_v56 = vld [vmem:[%s20993_s6 + $0x730] ss:$48 sps:$4 sm:$0xff]   ;;  %v18571_v57 = vld [vmem:[%s20993_s6 + $0x738] ss:$48 sps:$4 sm:$0xff]  }
 0x393   : > { %3636 = vmatprep.subr.bf16.mxu0 %v18486_v58  ;;  %3722 = vmatprep.subr.bf16.mxu1 %v18489_v59  ;;  %v18576_v58 = vld [vmem:[%s20993_s6 + $0x794] ss:$48 sps:$4 sm:$0xff]   ;;  %v18579_v59 = vld [vmem:[%s20993_s6 + $0x79c] ss:$48 sps:$4 sm:$0xff]  }
 0x396   : > { %3637 = vmatpush1.bf16.msra.mxu0 %v18484_v60  ;;  %3723 = vmatpush1.bf16.msra.mxu1 %v18487_v62  ;;  %v18574_v60 = vld [vmem:[%s20993_s6 + $0x790] ss:$48 sps:$4 sm:$0xff]   ;;  %v18577_v62 = vld [vmem:[%s20993_s6 + $0x798] ss:$48 sps:$4 sm:$0xff]  }
 0x397   : > { %3638 = vmatprep.subr.bf16.mxu0 %v18492_v63  ;;  %3724 = vmatprep.subr.bf16.mxu1 %v18495_v0  ;;  %v18582_v63 = vld [vmem:[%s20993_s6 + $0x7f4] ss:$48 sps:$4 sm:$0xff]   ;;  %v18585_v0 = vld [vmem:[%s20993_s6 + $0x7fc] ss:$48 sps:$4 sm:$0xff]  }
 0x39a   : > { %3639 = vmatpush1.bf16.msra.mxu0 %v18490_v1  ;;  %3725 = vmatpush1.bf16.msra.mxu1 %v18493_v2  ;;  %v18580_v1 = vld [vmem:[%s20993_s6 + $0x7f0] ss:$48 sps:$4 sm:$0xff]   ;;  %v18583_v2 = vld [vmem:[%s20993_s6 + $0x7f8] ss:$48 sps:$4 sm:$0xff]  }
 0x39b   : > { %3640 = vmatprep.subr.bf16.mxu0 %v18498_v3  ;;  %3726 = vmatprep.subr.bf16.mxu1 %v18501_v4  ;;  %v18588_v3 = vld [vmem:[%s20993_s6 + $0x854] ss:$48 sps:$4 sm:$0xff]   ;;  %v18591_v4 = vld [vmem:[%s20993_s6 + $0x85c] ss:$48 sps:$4 sm:$0xff]  }
 0x39e   : > { %3641 = vmatpush1.bf16.msra.mxu0 %v18496_v5  ;;  %3727 = vmatpush1.bf16.msra.mxu1 %v18499_v6  ;;  %v18586_v5 = vld [vmem:[%s20993_s6 + $0x850] ss:$48 sps:$4 sm:$0xff]   ;;  %v18589_v6 = vld [vmem:[%s20993_s6 + $0x858] ss:$48 sps:$4 sm:$0xff]  }
 0x39f   : > { %3642 = vmatprep.subr.bf16.mxu0 %v18504_v7  ;;  %3728 = vmatprep.subr.bf16.mxu1 %v18507_v8  ;;  %v18594_v7 = vld [vmem:[%s20993_s6 + $0x8b4] ss:$48 sps:$4 sm:$0xff]   ;;  %v18597_v8 = vld [vmem:[%s20993_s6 + $0x8bc] ss:$48 sps:$4 sm:$0xff]  }
 0x3a2   : > { %3643 = vmatpush1.bf16.msra.mxu0 %v18502_v9  ;;  %3729 = vmatpush1.bf16.msra.mxu1 %v18505_v11  ;;  %v18592_v9 = vld [vmem:[%s20993_s6 + $0x8b0] ss:$48 sps:$4 sm:$0xff]   ;;  %v18595_v11 = vld [vmem:[%s20993_s6 + $0x8b8] ss:$48 sps:$4 sm:$0xff]  }
 0x3a3   : > { %3644 = vmatprep.subr.bf16.mxu0 %v18510_v12  ;;  %3730 = vmatprep.subr.bf16.mxu1 %v18513_v13  ;;  %v18600_v12 = vld [vmem:[%s20993_s6 + $0x914] ss:$48 sps:$4 sm:$0xff]   ;;  %v18603_v13 = vld [vmem:[%s20993_s6 + $0x91c] ss:$48 sps:$4 sm:$0xff]  }
 0x3a6   : > { %3645 = vmatpush1.bf16.msra.mxu0 %v18508_v14  ;;  %3731 = vmatpush1.bf16.msra.mxu1 %v18511_v15  ;;  %v18598_v14 = vld [vmem:[%s20993_s6 + $0x910] ss:$48 sps:$4 sm:$0xff]   ;;  %v18601_v15 = vld [vmem:[%s20993_s6 + $0x918] ss:$48 sps:$4 sm:$0xff]  }
 0x3a7   : > { %3646 = vmatprep.subr.bf16.mxu0 %v18516_v16  ;;  %3732 = vmatprep.subr.bf16.mxu1 %v18519_v17  ;;  %v18606_v16 = vld [vmem:[%s20993_s6 + $0x974] ss:$48 sps:$4 sm:$0xff]   ;;  %v18609_v17 = vld [vmem:[%s20993_s6 + $0x97c] ss:$48 sps:$4 sm:$0xff]  }
 0x3aa   : > { %3647 = vmatpush1.bf16.msra.mxu0 %v18514_v18  ;;  %3733 = vmatpush1.bf16.msra.mxu1 %v18517_v19  ;;  %v18604_v18 = vld [vmem:[%s20993_s6 + $0x970] ss:$48 sps:$4 sm:$0xff]   ;;  %v18607_v19 = vld [vmem:[%s20993_s6 + $0x978] ss:$48 sps:$4 sm:$0xff]  }
 0x3ab   : > { %3648 = vmatprep.subr.bf16.mxu0 %v18522_v20  ;;  %3734 = vmatprep.subr.bf16.mxu1 %v18525_v21  ;;  %v18612_v20 = vld [vmem:[%s20993_s6 + $0x9d4] ss:$48 sps:$4 sm:$0xff]   ;;  %v18615_v21 = vld [vmem:[%s20993_s6 + $0x9dc] ss:$48 sps:$4 sm:$0xff]  }
 0x3ae   : > { %3649 = vmatpush1.bf16.msra.mxu0 %v18520_v22  ;;  %3735 = vmatpush1.bf16.msra.mxu1 %v18523_v23  ;;  %v18610_v22 = vld [vmem:[%s20993_s6 + $0x9d0] ss:$48 sps:$4 sm:$0xff]   ;;  %v18613_v23 = vld [vmem:[%s20993_s6 + $0x9d8] ss:$48 sps:$4 sm:$0xff]  }
 0x3af   : > { %3650 = vmatprep.subr.bf16.mxu0 %v18528_v24  ;;  %3736 = vmatprep.subr.bf16.mxu1 %v18531_v25  ;;  %v18618_v24 = vld [vmem:[%s20993_s6 + $0xa34] ss:$48 sps:$4 sm:$0xff]   ;;  %v18621_v25 = vld [vmem:[%s20993_s6 + $0xa3c] ss:$48 sps:$4 sm:$0xff]  }
 0x3b2   : > { %3651 = vmatpush1.bf16.msra.mxu0 %v18526_v26  ;;  %3737 = vmatpush1.bf16.msra.mxu1 %v18529_v27  ;;  %v18616_v26 = vld [vmem:[%s20993_s6 + $0xa30] ss:$48 sps:$4 sm:$0xff]   ;;  %v18619_v27 = vld [vmem:[%s20993_s6 + $0xa38] ss:$48 sps:$4 sm:$0xff]  }
 0x3b3   : > { %3652 = vmatprep.subr.bf16.mxu0 %v18534_v28  ;;  %3738 = vmatprep.subr.bf16.mxu1 %v18537_v29  ;;  %v18624_v28 = vld [vmem:[%s20993_s6 + $0xa94] ss:$48 sps:$4 sm:$0xff]   ;;  %v18627_v29 = vld [vmem:[%s20993_s6 + $0xa9c] ss:$48 sps:$4 sm:$0xff]  }
 0x3b6   : > { %3653 = vmatpush1.bf16.msra.mxu0 %v18532_v30  ;;  %3739 = vmatpush1.bf16.msra.mxu1 %v18535_v31  ;;  %v18622_v30 = vld [vmem:[%s20993_s6 + $0xa90] ss:$48 sps:$4 sm:$0xff]   ;;  %v18625_v31 = vld [vmem:[%s20993_s6 + $0xa98] ss:$48 sps:$4 sm:$0xff]  }
 0x3b7   : > { %3654 = vmatprep.subr.bf16.mxu0 %v18540_v32  ;;  %3740 = vmatprep.subr.bf16.mxu1 %v18543_v34  ;;  %v18630_v32 = vld [vmem:[%s20993_s6 + $0xaf4] ss:$48 sps:$4 sm:$0xff]   ;;  %v18633_v34 = vld [vmem:[%s20993_s6 + $0xafc] ss:$48 sps:$4 sm:$0xff]  }
 0x3ba   : > { %3655 = vmatpush1.bf16.msra.mxu0 %v18538_v35  ;;  %3741 = vmatpush1.bf16.msra.mxu1 %v18541_v36  ;;  %v18628_v35 = vld [vmem:[%s20993_s6 + $0xaf0] ss:$48 sps:$4 sm:$0xff]   ;;  %v18631_v36 = vld [vmem:[%s20993_s6 + $0xaf8] ss:$48 sps:$4 sm:$0xff]  }
 0x3bb   : > { %3656 = vmatprep.subr.bf16.mxu0 %v18546_v37  ;;  %3742 = vmatprep.subr.bf16.mxu1 %v18549_v38  ;;  %v18636_v37 = vld [vmem:[%s20993_s6 + $0xb54] ss:$48 sps:$4 sm:$0xff]   ;;  %v18639_v38 = vld [vmem:[%s20993_s6 + $0xb5c] ss:$48 sps:$4 sm:$0xff]  }
 0x3be   : > { %3657 = vmatpush1.bf16.msra.mxu0 %v18544_v40  ;;  %3743 = vmatpush1.bf16.msra.mxu1 %v18547_v41  ;;  %v18634_v40 = vld [vmem:[%s20993_s6 + $0xb50] ss:$48 sps:$4 sm:$0xff]   ;;  %v18637_v41 = vld [vmem:[%s20993_s6 + $0xb58] ss:$48 sps:$4 sm:$0xff]  }
 0x3bf   : > { %3669 = vmatprep.subr.bf16.mxu0 %v18552_v42  ;;  %3755 = vmatprep.subr.bf16.mxu1 %v18555_v43  ;;  %v18642_v42 = vld [vmem:[%s20993_s6 + $0xbb4] ss:$48 sps:$4 sm:$0xff]   ;;  %v18645_v43 = vld [vmem:[%s20993_s6 + $0xbbc] ss:$48 sps:$4 sm:$0xff]  }
 0x3c1   : > { %3659 = vmatmul.mubr.bf16.vlgmr.msra.gmra.mrb[4].mxu0 %v21151_v33  ;;  %3745 = vmatmul.mubr.bf16.vlgmr.msra.gmra.mrb[4].mxu1 %v21151_v33 }
 0x3c2   : > { %3670 = vmatpush1.bf16.msra.mxu0 %v18550_v44  ;;  %3756 = vmatpush1.bf16.msra.mxu1 %v18553_v45  ;;  %v18640_v44 = vld [vmem:[%s20993_s6 + $0xbb0] ss:$48 sps:$4 sm:$0xff]   ;;  %v18643_v45 = vld [vmem:[%s20993_s6 + $0xbb8] ss:$48 sps:$4 sm:$0xff]  }
 0x3c3   : > { %3671 = vmatprep.subr.bf16.mxu0 %v18558_v46  ;;  %3757 = vmatprep.subr.bf16.mxu1 %v18561_v47  ;;  %v18648_v46 = vld [vmem:[%s20993_s6 + $0x24] ss:$48 sps:$4 sm:$0xff]   ;;  %v18646_v47 = vld [vmem:[%s20993_s6 + $0x20] ss:$48 sps:$4 sm:$0xff]  }
 0x3c4   : > { %3701 = vmatprep.mubr.bf16.mxu0 %v21186_v61  ;;  %3787 = vmatprep.mubr.bf16.mxu1 %v21186_v61 }
 0x3c6   : > { %3672 = vmatpush1.bf16.msra.mxu0 %v18556_v48  ;;  %3758 = vmatpush1.bf16.msra.mxu1 %v18559_v49  ;;  %v18651_v48 = vld [vmem:[%s20993_s6 + $0x84] ss:$48 sps:$4 sm:$0xff]   ;;  %v18649_v49 = vld [vmem:[%s20993_s6 + $0x80] ss:$48 sps:$4 sm:$0xff]  }
 0x3c7   : > { %3673 = vmatprep.subr.bf16.mxu0 %v18564_v50  ;;  %3759 = vmatprep.subr.bf16.mxu1 %v18567_v51  ;;  %v18654_v50 = vld [vmem:[%s20993_s6 + $0xe4] ss:$48 sps:$4 sm:$0xff]   ;;  %v18652_v51 = vld [vmem:[%s20993_s6 + $0xe0] ss:$48 sps:$4 sm:$0xff]  }
 0x3ca   : > { %3674 = vmatpush1.bf16.msra.mxu0 %v18562_v52  ;;  %3760 = vmatpush1.bf16.msra.mxu1 %v18565_v53  ;;  %v18657_v52 = vld [vmem:[%s20993_s6 + $0x144] ss:$48 sps:$4 sm:$0xff]   ;;  %v18655_v53 = vld [vmem:[%s20993_s6 + $0x140] ss:$48 sps:$4 sm:$0xff]  }
 0x3cb   : > { %3675 = vmatprep.subr.bf16.mxu0 %v18570_v54  ;;  %3761 = vmatprep.subr.bf16.mxu1 %v18573_v55  ;;  %v18660_v54 = vld [vmem:[%s20993_s6 + $0x1a4] ss:$48 sps:$4 sm:$0xff]   ;;  %v18658_v55 = vld [vmem:[%s20993_s6 + $0x1a0] ss:$48 sps:$4 sm:$0xff]  }
 0x3ce   : > { %3676 = vmatpush1.bf16.msra.mxu0 %v18568_v56  ;;  %3762 = vmatpush1.bf16.msra.mxu1 %v18571_v57  ;;  %v18663_v56 = vld [vmem:[%s20993_s6 + $0x204] ss:$48 sps:$4 sm:$0xff]   ;;  %v18661_v57 = vld [vmem:[%s20993_s6 + $0x200] ss:$48 sps:$4 sm:$0xff]  }
 0x3cf   : > { %3677 = vmatprep.subr.bf16.mxu0 %v18576_v58  ;;  %3763 = vmatprep.subr.bf16.mxu1 %v18579_v59  ;;  %v18664_v58 = vld [vmem:[%s20993_s6 + $0x260] ss:$48 sps:$4 sm:$0xff]   ;;  %v18669_v59 = vld [vmem:[%s20993_s6 + $0x2c4] ss:$48 sps:$4 sm:$0xff]  }
 0x3d2   : > { %3678 = vmatpush1.bf16.msra.mxu0 %v18574_v60  ;;  %3764 = vmatpush1.bf16.msra.mxu1 %v18577_v62  ;;  %v18667_v60 = vld [vmem:[%s20993_s6 + $0x2c0] ss:$48 sps:$4 sm:$0xff]   ;;  %v18672_v62 = vld [vmem:[%s20993_s6 + $0x324] ss:$48 sps:$4 sm:$0xff]  }
 0x3d3   : > { %3679 = vmatprep.subr.bf16.mxu0 %v18582_v63  ;;  %3765 = vmatprep.subr.bf16.mxu1 %v18585_v0  ;;  %v18670_v63 = vld [vmem:[%s20993_s6 + $0x320] ss:$48 sps:$4 sm:$0xff]   ;;  %v18675_v0 = vld [vmem:[%s20993_s6 + $0x384] ss:$48 sps:$4 sm:$0xff]  }
 0x3d6   : > { %3680 = vmatpush1.bf16.msra.mxu0 %v18580_v1  ;;  %3766 = vmatpush1.bf16.msra.mxu1 %v18583_v2  ;;  %v18673_v1 = vld [vmem:[%s20993_s6 + $0x380] ss:$48 sps:$4 sm:$0xff]   ;;  %v18678_v2 = vld [vmem:[%s20993_s6 + $0x3e4] ss:$48 sps:$4 sm:$0xff]  }
 0x3d7   : > { %3681 = vmatprep.subr.bf16.mxu0 %v18588_v3  ;;  %3767 = vmatprep.subr.bf16.mxu1 %v18591_v4  ;;  %v18676_v3 = vld [vmem:[%s20993_s6 + $0x3e0] ss:$48 sps:$4 sm:$0xff]   ;;  %v18681_v4 = vld [vmem:[%s20993_s6 + $0x444] ss:$48 sps:$4 sm:$0xff]  }
 0x3da   : > { %3682 = vmatpush1.bf16.msra.mxu0 %v18586_v5  ;;  %3768 = vmatpush1.bf16.msra.mxu1 %v18589_v6  ;;  %v18679_v5 = vld [vmem:[%s20993_s6 + $0x440] ss:$48 sps:$4 sm:$0xff]   ;;  %v18684_v6 = vld [vmem:[%s20993_s6 + $0x4a4] ss:$48 sps:$4 sm:$0xff]  }
 0x3db   : > { %3683 = vmatprep.subr.bf16.mxu0 %v18594_v7  ;;  %3769 = vmatprep.subr.bf16.mxu1 %v18597_v8  ;;  %v18682_v7 = vld [vmem:[%s20993_s6 + $0x4a0] ss:$48 sps:$4 sm:$0xff]   ;;  %v18687_v8 = vld [vmem:[%s20993_s6 + $0x504] ss:$48 sps:$4 sm:$0xff]  }
 0x3de   : > { %3684 = vmatpush1.bf16.msra.mxu0 %v18592_v9  ;;  %3770 = vmatpush1.bf16.msra.mxu1 %v18595_v11  ;;  %v18685_v9 = vld [vmem:[%s20993_s6 + $0x500] ss:$48 sps:$4 sm:$0xff]   ;;  %v18690_v11 = vld [vmem:[%s20993_s6 + $0x564] ss:$48 sps:$4 sm:$0xff]  }
 0x3df   : > { %3685 = vmatprep.subr.bf16.mxu0 %v18600_v12  ;;  %3771 = vmatprep.subr.bf16.mxu1 %v18603_v13  ;;  %v18688_v12 = vld [vmem:[%s20993_s6 + $0x560] ss:$48 sps:$4 sm:$0xff]   ;;  %v18693_v13 = vld [vmem:[%s20993_s6 + $0x5c4] ss:$48 sps:$4 sm:$0xff]  }
 0x3e2   : > { %3686 = vmatpush1.bf16.msra.mxu0 %v18598_v14  ;;  %3772 = vmatpush1.bf16.msra.mxu1 %v18601_v15  ;;  %v18691_v14 = vld [vmem:[%s20993_s6 + $0x5c0] ss:$48 sps:$4 sm:$0xff]   ;;  %v18696_v15 = vld [vmem:[%s20993_s6 + $0x624] ss:$48 sps:$4 sm:$0xff]  }
 0x3e3   : > { %3687 = vmatprep.subr.bf16.mxu0 %v18606_v16  ;;  %3773 = vmatprep.subr.bf16.mxu1 %v18609_v17  ;;  %v18694_v16 = vld [vmem:[%s20993_s6 + $0x620] ss:$48 sps:$4 sm:$0xff]   ;;  %v18699_v17 = vld [vmem:[%s20993_s6 + $0x684] ss:$48 sps:$4 sm:$0xff]  }
 0x3e6   : > { %3688 = vmatpush1.bf16.msra.mxu0 %v18604_v18  ;;  %3774 = vmatpush1.bf16.msra.mxu1 %v18607_v19  ;;  %v18697_v18 = vld [vmem:[%s20993_s6 + $0x680] ss:$48 sps:$4 sm:$0xff]   ;;  %v18702_v19 = vld [vmem:[%s20993_s6 + $0x6e4] ss:$48 sps:$4 sm:$0xff]  }
 0x3e7   : > { %3689 = vmatprep.subr.bf16.mxu0 %v18612_v20  ;;  %3775 = vmatprep.subr.bf16.mxu1 %v18615_v21  ;;  %v18700_v20 = vld [vmem:[%s20993_s6 + $0x6e0] ss:$48 sps:$4 sm:$0xff]   ;;  %v18705_v21 = vld [vmem:[%s20993_s6 + $0x744] ss:$48 sps:$4 sm:$0xff]  }
 0x3ea   : > { %3690 = vmatpush1.bf16.msra.mxu0 %v18610_v22  ;;  %3776 = vmatpush1.bf16.msra.mxu1 %v18613_v23  ;;  %v18703_v22 = vld [vmem:[%s20993_s6 + $0x740] ss:$48 sps:$4 sm:$0xff]   ;;  %v18708_v23 = vld [vmem:[%s20993_s6 + $0x7a4] ss:$48 sps:$4 sm:$0xff]  }
 0x3eb   : > { %3691 = vmatprep.subr.bf16.mxu0 %v18618_v24  ;;  %3777 = vmatprep.subr.bf16.mxu1 %v18621_v25  ;;  %v18706_v24 = vld [vmem:[%s20993_s6 + $0x7a0] ss:$48 sps:$4 sm:$0xff]   ;;  %v18711_v25 = vld [vmem:[%s20993_s6 + $0x804] ss:$48 sps:$4 sm:$0xff]  }
 0x3ee   : > { %3692 = vmatpush1.bf16.msra.mxu0 %v18616_v26  ;;  %3778 = vmatpush1.bf16.msra.mxu1 %v18619_v27  ;;  %v18709_v26 = vld [vmem:[%s20993_s6 + $0x800] ss:$48 sps:$4 sm:$0xff]   ;;  %v18714_v27 = vld [vmem:[%s20993_s6 + $0x864] ss:$48 sps:$4 sm:$0xff]  }
 0x3ef   : > { %3693 = vmatprep.subr.bf16.mxu0 %v18624_v28  ;;  %3779 = vmatprep.subr.bf16.mxu1 %v18627_v29 }
 0x3f2   : > { %3694 = vmatpush1.bf16.msra.mxu0 %v18622_v30  ;;  %3780 = vmatpush1.bf16.msra.mxu1 %v18625_v31  ;;  %v18712_v30 = vld [vmem:[%s20993_s6 + $0x860] ss:$48 sps:$4 sm:$0xff]  }
 0x3f3   : > { %3695 = vmatprep.subr.bf16.mxu0 %v18630_v32  ;;  %3781 = vmatprep.subr.bf16.mxu1 %v18633_v34 }
 0x3f6   : > { %3696 = vmatpush1.bf16.msra.mxu0 %v18628_v35  ;;  %3782 = vmatpush1.bf16.msra.mxu1 %v18631_v36  ;;  %v18717_v36 = vld [vmem:[%s20993_s6 + $0x8c4] ss:$48 sps:$4 sm:$0xff]  }
 0x3f7   : > { %3697 = vmatprep.subr.bf16.mxu0 %v18636_v37  ;;  %3783 = vmatprep.subr.bf16.mxu1 %v18639_v38 }
 0x3fa   : > { %3698 = vmatpush1.bf16.msra.mxu0 %v18634_v40  ;;  %3784 = vmatpush1.bf16.msra.mxu1 %v18637_v41  ;;  %v18715_v40 = vld [vmem:[%s20993_s6 + $0x8c0] ss:$48 sps:$4 sm:$0xff]   ;;  %v18720_v41 = vld [vmem:[%s20993_s6 + $0x924] ss:$48 sps:$4 sm:$0xff]  }
 0x3fb   : > { %3699 = vmatprep.subr.bf16.mxu0 %v18642_v42  ;;  %3785 = vmatprep.subr.bf16.mxu1 %v18645_v43  ;;  %v18718_v42 = vld [vmem:[%s20993_s6 + $0x920] ss:$48 sps:$4 sm:$0xff]   ;;  %v18723_v43 = vld [vmem:[%s20993_s6 + $0x984] ss:$48 sps:$4 sm:$0xff]  }
 0x3fe   : > { %3700 = vmatpush1.bf16.msra.mxu0 %v18640_v44  ;;  %3786 = vmatpush1.bf16.msra.mxu1 %v18643_v45  ;;  %v18721_v44 = vld [vmem:[%s20993_s6 + $0x980] ss:$48 sps:$4 sm:$0xff]   ;;  %v18726_v45 = vld [vmem:[%s20993_s6 + $0x9e4] ss:$48 sps:$4 sm:$0xff]  }
 0x3ff   : > { %3798 = vmatprep.subr.bf16.mxu0 %v18648_v46  ;;  %v18724_v46 = vld [vmem:[%s20993_s6 + $0x9e0] ss:$48 sps:$4 sm:$0xff]  }
 0x401   : > { %3702 = vmatmul.mubr.bf16.vlgmr.msra.gmra.mrb[4].mxu0 %v21233_v39  ;;  %3788 = vmatmul.mubr.bf16.vlgmr.msra.gmra.mrb[4].mxu1 %v21233_v39 }
 0x402   : > { %3799 = vmatpush1.bf16.msra.mxu0 %v18646_v47  ;;  %3830 = vmatprep.mubr.bf16.mxu0 %v21121_v10  ;;  %v18729_v47 = vld [vmem:[%s20993_s6 + $0xa44] ss:$48 sps:$4 sm:$0xff]  }
 0x403   : > { %3800 = vmatprep.subr.bf16.mxu0 %v18651_v48  ;;  %3916 = vmatprep.mubr.bf16.mxu1 %v21121_v10  ;;  %v18666_v10 = vld [vmem:[%s20993_s6 + $0x264] ss:$48 sps:$4 sm:$0xff]   ;;  %v18727_v48 = vld [vmem:[%s20993_s6 + $0xa40] ss:$48 sps:$4 sm:$0xff]  }
 0x406   : > { %3801 = vmatpush1.bf16.msra.mxu0 %v18649_v49  ;;  %v18732_v49 = vld [vmem:[%s20993_s6 + $0xaa4] ss:$48 sps:$4 sm:$0xff]  }
 0x407   : > { %3802 = vmatprep.subr.bf16.mxu0 %v18654_v50  ;;  %v18730_v50 = vld [vmem:[%s20993_s6 + $0xaa0] ss:$48 sps:$4 sm:$0xff]  }
 0x40a   : > { %3803 = vmatpush1.bf16.msra.mxu0 %v18652_v51  ;;  %v18735_v51 = vld [vmem:[%s20993_s6 + $0xb04] ss:$48 sps:$4 sm:$0xff]  }
 0x40b   : > { %3804 = vmatprep.subr.bf16.mxu0 %v18657_v52  ;;  %v18733_v52 = vld [vmem:[%s20993_s6 + $0xb00] ss:$48 sps:$4 sm:$0xff]  }
 0x40e   : > { %3805 = vmatpush1.bf16.msra.mxu0 %v18655_v53  ;;  %v18738_v53 = vld [vmem:[%s20993_s6 + $0xb64] ss:$48 sps:$4 sm:$0xff]  }
 0x40f   : > { %3806 = vmatprep.subr.bf16.mxu0 %v18660_v54  ;;  %v18744_v54 = vld [vmem:[%s20993_s6 + $0x2c] ss:$48 sps:$4 sm:$0xff]  }
 0x410   : > { %3884 = vmatprep.subr.bf16.mxu1 %v18744_v54  ;;  %v18811_v54 = vld [vmem:[%s20993_s6 + $0x8c8] ss:$48 sps:$4 sm:$0xff]  }
 0x412   : > { %3807 = vmatpush1.bf16.msra.mxu0 %v18658_v55  ;;  %v18742_v55 = vld [vmem:[%s20993_s6 + $0x28] ss:$48 sps:$4 sm:$0xff]  }
 0x413   : > { %3808 = vmatprep.subr.bf16.mxu0 %v18663_v56  ;;  %v18747_v56 = vld [vmem:[%s20993_s6 + $0x8c] ss:$48 sps:$4 sm:$0xff]   ;;  %3885 = vmatpush1.bf16.msra.mxu1 %v18742_v55 }
 0x414   : > { %3886 = vmatprep.subr.bf16.mxu1 %v18747_v56  ;;  %v18813_v55 = vld [vmem:[%s20993_s6 + $0x8cc] ss:$48 sps:$4 sm:$0xff]  }
 0x416   : > { %3809 = vmatpush1.bf16.msra.mxu0 %v18661_v57  ;;  %v18736_v57 = vld [vmem:[%s20993_s6 + $0xb60] ss:$48 sps:$4 sm:$0xff]  }
 0x417   : > { %3810 = vmatprep.subr.bf16.mxu0 %v18666_v10  ;;  %v18745_v10 = vld [vmem:[%s20993_s6 + $0x88] ss:$48 sps:$4 sm:$0xff]  }
 0x418   : > { %3887 = vmatpush1.bf16.msra.mxu1 %v18745_v10 }
 0x41a   : > { %3811 = vmatpush1.bf16.msra.mxu0 %v18664_v58  ;;  %v18741_v58 = vld [vmem:[%s20993_s6 + $0xbc4] ss:$48 sps:$4 sm:$0xff]  }
 0x41b   : > { %3812 = vmatprep.subr.bf16.mxu0 %v18669_v59  ;;  %v18750_v59 = vld [vmem:[%s20993_s6 + $0xec] ss:$48 sps:$4 sm:$0xff]  }
 0x41c   : > { %3888 = vmatprep.subr.bf16.mxu1 %v18750_v59  ;;  %v18814_v59 = vld [vmem:[%s20993_s6 + $0x928] ss:$48 sps:$4 sm:$0xff]  }
 0x41e   : > { %3813 = vmatpush1.bf16.msra.mxu0 %v18667_v60  ;;  %v18739_v60 = vld [vmem:[%s20993_s6 + $0xbc0] ss:$48 sps:$4 sm:$0xff]  }
 0x41f   : > { %3814 = vmatprep.subr.bf16.mxu0 %v18672_v62  ;;  %v18748_v62 = vld [vmem:[%s20993_s6 + $0xe8] ss:$48 sps:$4 sm:$0xff]  }
 0x420   : > { %3889 = vmatpush1.bf16.msra.mxu1 %v18748_v62 }
 0x422   : > { %3815 = vmatpush1.bf16.msra.mxu0 %v18670_v63  ;;  %v18753_v63 = vld [vmem:[%s20993_s6 + $0x14c] ss:$48 sps:$4 sm:$0xff]  }
 0x423   : > { %3816 = vmatprep.subr.bf16.mxu0 %v18675_v0  ;;  %v18751_v0 = vld [vmem:[%s20993_s6 + $0x148] ss:$48 sps:$4 sm:$0xff]   ;;  %3890 = vmatprep.subr.bf16.mxu1 %v18753_v63 }
 0x424   : > { %3891 = vmatpush1.bf16.msra.mxu1 %v18751_v0 }
 0x426   : > { %3817 = vmatpush1.bf16.msra.mxu0 %v18673_v1  ;;  %v20422_v1 = vmov 0.0  }
 0x427   : > { %3818 = vmatprep.subr.bf16.mxu0 %v18678_v2  ;;  %v18756_v2 = vld [vmem:[%s20993_s6 + $0x1ac] ss:$48 sps:$4 sm:$0xff]  }
 0x428   : > { %3892 = vmatprep.subr.bf16.mxu1 %v18756_v2 }
 0x42a   : > { %3819 = vmatpush1.bf16.msra.mxu0 %v18676_v3  ;;  %v18754_v3 = vld [vmem:[%s20993_s6 + $0x1a8] ss:$48 sps:$4 sm:$0xff]  }
 0x42b   : > { %3820 = vmatprep.subr.bf16.mxu0 %v18681_v4  ;;  %v18759_v4 = vld [vmem:[%s20993_s6 + $0x20c] ss:$48 sps:$4 sm:$0xff]   ;;  %3893 = vmatpush1.bf16.msra.mxu1 %v18754_v3 }
 0x42c   : > { %3894 = vmatprep.subr.bf16.mxu1 %v18759_v4 }
 0x42e   : > { %3821 = vmatpush1.bf16.msra.mxu0 %v18679_v5  ;;  %v18757_v5 = vld [vmem:[%s20993_s6 + $0x208] ss:$48 sps:$4 sm:$0xff]  }
 0x42f   : > { %3822 = vmatprep.subr.bf16.mxu0 %v18684_v6  ;;  %v18762_v6 = vld [vmem:[%s20993_s6 + $0x26c] ss:$48 sps:$4 sm:$0xff]   ;;  %3895 = vmatpush1.bf16.msra.mxu1 %v18757_v5 }
 0x430   : > { %3896 = vmatprep.subr.bf16.mxu1 %v18762_v6 }
 0x432   : > { %3823 = vmatpush1.bf16.msra.mxu0 %v18682_v7  ;;  %v18760_v7 = vld [vmem:[%s20993_s6 + $0x268] ss:$48 sps:$4 sm:$0xff]  }
 0x433   : > { %3824 = vmatprep.subr.bf16.mxu0 %v18687_v8  ;;  %v18765_v8 = vld [vmem:[%s20993_s6 + $0x2cc] ss:$48 sps:$4 sm:$0xff]   ;;  %3897 = vmatpush1.bf16.msra.mxu1 %v18760_v7 }
 0x434   : > { %3898 = vmatprep.subr.bf16.mxu1 %v18765_v8 }
 0x436   : > { %3825 = vmatpush1.bf16.msra.mxu0 %v18685_v9  ;;  %v18763_v9 = vld [vmem:[%s20993_s6 + $0x2c8] ss:$48 sps:$4 sm:$0xff]  }
 0x437   : > { %3826 = vmatprep.subr.bf16.mxu0 %v18690_v11  ;;  %v18768_v11 = vld [vmem:[%s20993_s6 + $0x32c] ss:$48 sps:$4 sm:$0xff]   ;;  %3899 = vmatpush1.bf16.msra.mxu1 %v18763_v9 }
 0x438   : > { %3900 = vmatprep.subr.bf16.mxu1 %v18768_v11 }
 0x43a   : > { %3827 = vmatpush1.bf16.msra.mxu0 %v18688_v12  ;;  %v18766_v12 = vld [vmem:[%s20993_s6 + $0x328] ss:$48 sps:$4 sm:$0xff]  }
 0x43b   : > { %3828 = vmatprep.subr.bf16.mxu0 %v18693_v13  ;;  %v18771_v13 = vld [vmem:[%s20993_s6 + $0x38c] ss:$48 sps:$4 sm:$0xff]   ;;  %3901 = vmatpush1.bf16.msra.mxu1 %v18766_v12 }
 0x43c   : > { %3902 = vmatprep.subr.bf16.mxu1 %v18771_v13 }
 0x43e   : > { %3829 = vmatpush1.bf16.msra.mxu0 %v18691_v14  ;;  %v18769_v14 = vld [vmem:[%s20993_s6 + $0x388] ss:$48 sps:$4 sm:$0xff]  }
 0x43f   : > { %3841 = vmatprep.subr.bf16.mxu0 %v18696_v15  ;;  %v18774_v15 = vld [vmem:[%s20993_s6 + $0x3ec] ss:$48 sps:$4 sm:$0xff]   ;;  %3903 = vmatpush1.bf16.msra.mxu1 %v18769_v14  ;;  %v18817_v14 = vld [vmem:[%s20993_s6 + $0x988] ss:$48 sps:$4 sm:$0xff]  }
 0x440   : > { %3904 = vmatprep.subr.bf16.mxu1 %v18774_v15  ;;  %v18819_v15 = vld [vmem:[%s20993_s6 + $0x98c] ss:$48 sps:$4 sm:$0xff]  }
 0x441   : > { %3831 = vmatmul.mubr.bf16.vlgmr.msra.gmra.mrb[8].mxu0 %v21151_v33 }
 0x442   : > { %3842 = vmatpush1.bf16.msra.mxu0 %v18694_v16  ;;  %3873 = vmatprep.mubr.bf16.mxu0 %v21186_v61  ;;  %v18772_v16 = vld [vmem:[%s20993_s6 + $0x3e8] ss:$48 sps:$4 sm:$0xff]  }
 0x443   : > { %3843 = vmatprep.subr.bf16.mxu0 %v18699_v17  ;;  %v18777_v17 = vld [vmem:[%s20993_s6 + $0x44c] ss:$48 sps:$4 sm:$0xff]   ;;  %3905 = vmatpush1.bf16.msra.mxu1 %v18772_v16 }
 0x444   : > { %3906 = vmatprep.subr.bf16.mxu1 %v18777_v17 }
 0x446   : > { %3844 = vmatpush1.bf16.msra.mxu0 %v18697_v18  ;;  %v18775_v18 = vld [vmem:[%s20993_s6 + $0x448] ss:$48 sps:$4 sm:$0xff]  }
 0x447   : > { %3845 = vmatprep.subr.bf16.mxu0 %v18702_v19  ;;  %v18780_v19 = vld [vmem:[%s20993_s6 + $0x4ac] ss:$48 sps:$4 sm:$0xff]   ;;  %3907 = vmatpush1.bf16.msra.mxu1 %v18775_v18 }
 0x448   : > { %3908 = vmatprep.subr.bf16.mxu1 %v18780_v19 }
 0x44a   : > { %3846 = vmatpush1.bf16.msra.mxu0 %v18700_v20  ;;  %v18778_v20 = vld [vmem:[%s20993_s6 + $0x4a8] ss:$48 sps:$4 sm:$0xff]  }
 0x44b   : > { %3847 = vmatprep.subr.bf16.mxu0 %v18705_v21  ;;  %v18783_v21 = vld [vmem:[%s20993_s6 + $0x50c] ss:$48 sps:$4 sm:$0xff]   ;;  %3909 = vmatpush1.bf16.msra.mxu1 %v18778_v20 }
 0x44c   : > { %3910 = vmatprep.subr.bf16.mxu1 %v18783_v21 }
 0x44e   : > { %3848 = vmatpush1.bf16.msra.mxu0 %v18703_v22  ;;  %v18781_v22 = vld [vmem:[%s20993_s6 + $0x508] ss:$48 sps:$4 sm:$0xff]  }
 0x44f   : > { %3849 = vmatprep.subr.bf16.mxu0 %v18708_v23  ;;  %v18786_v23 = vld [vmem:[%s20993_s6 + $0x56c] ss:$48 sps:$4 sm:$0xff]   ;;  %3911 = vmatpush1.bf16.msra.mxu1 %v18781_v22 }
 0x450   : > { %3912 = vmatprep.subr.bf16.mxu1 %v18786_v23  ;;  %v18822_v22 = vld [vmem:[%s20993_s6 + $0x9ec] ss:$48 sps:$4 sm:$0xff]  }
 0x452   : > { %3850 = vmatpush1.bf16.msra.mxu0 %v18706_v24  ;;  %v18784_v24 = vld [vmem:[%s20993_s6 + $0x568] ss:$48 sps:$4 sm:$0xff]  }
 0x453   : > { %3851 = vmatprep.subr.bf16.mxu0 %v18711_v25  ;;  %v18789_v25 = vld [vmem:[%s20993_s6 + $0x5cc] ss:$48 sps:$4 sm:$0xff]   ;;  %3913 = vmatpush1.bf16.msra.mxu1 %v18784_v24 }
 0x454   : > { %v21420_v28 = vpop.f32.mrb[0].mxu0  ;;  %v21422_v29 = vpop.f32.mrb[0].mxu1  ;;  %3914 = vmatprep.subr.bf16.mxu1 %v18789_v25 }
 0x455   : > { %v21425_v31 = vpop.f32.mrb[1].mxu0  ;;  %v21427_v32 = vpop.f32.mrb[1].mxu1 }
 0x456   : > { %v21429_v34 = vpop.f32.mrb[2].mxu0  ;;  %v21431_v35 = vpop.f32.mrb[2].mxu1  ;;  %3852 = vmatpush1.bf16.msra.mxu0 %v18709_v26  ;;  %v18787_v26 = vld [vmem:[%s20993_s6 + $0x5c8] ss:$48 sps:$4 sm:$0xff]  }
 0x457   : > { %v21434_v37 = vpop.f32.mrb[3].mxu0  ;;  %v21436_v38 = vpop.f32.mrb[3].mxu1  ;;  %3853 = vmatprep.subr.bf16.mxu0 %v18714_v27  ;;  %v18792_v27 = vld [vmem:[%s20993_s6 + $0x62c] ss:$48 sps:$4 sm:$0xff]   ;;  %3915 = vmatpush1.bf16.msra.mxu1 %v18787_v26  ;;  %v18823_v26 = vld [vmem:[%s20993_s6 + $0xa48] ss:$48 sps:$4 sm:$0xff]  }
 0x458   : > { %3927 = vmatprep.subr.bf16.mxu1 %v18792_v27  ;;  %v18825_v27 = vld [vmem:[%s20993_s6 + $0xa4c] ss:$48 sps:$4 sm:$0xff]  }
 0x45a   : > { %3854 = vmatpush1.bf16.msra.mxu0 %v18712_v30  ;;  %v18790_v30 = vld [vmem:[%s20993_s6 + $0x628] ss:$48 sps:$4 sm:$0xff]   ;;  %3917 = vmatmul.mubr.bf16.vlgmr.msra.gmra.mrb[8].mxu1 %v21151_v33 }
 0x45b   : > { %3855 = vmatprep.subr.bf16.mxu0 %v18717_v36  ;;  %v18795_v36 = vld [vmem:[%s20993_s6 + $0x68c] ss:$48 sps:$4 sm:$0xff]   ;;  %3928 = vmatpush1.bf16.msra.mxu1 %v18790_v30  ;;  %v18805_v33 = vld [vmem:[%s20993_s6 + $0x808] ss:$48 sps:$4 sm:$0xff]  }
 0x45c   : > { %3959 = vmatprep.mubr.bf16.mxu1 %v21186_v61  ;;  %3929 = vmatprep.subr.bf16.mxu1 %v18795_v36  ;;  %v1474_v61 = vlaneseq }
 0x45e   : > { %3856 = vmatpush1.bf16.msra.mxu0 %v18715_v40  ;;  %v18793_v40 = vld [vmem:[%s20993_s6 + $0x688] ss:$48 sps:$4 sm:$0xff]  }
 0x45f   : > { %3857 = vmatprep.subr.bf16.mxu0 %v18720_v41  ;;  %v18798_v41 = vld [vmem:[%s20993_s6 + $0x6ec] ss:$48 sps:$4 sm:$0xff]   ;;  %3930 = vmatpush1.bf16.msra.mxu1 %v18793_v40 }
 0x460   : > { %3931 = vmatprep.subr.bf16.mxu1 %v18798_v41  ;;  %v18828_v40 = vld [vmem:[%s20993_s6 + $0xaac] ss:$48 sps:$4 sm:$0xff]  }
 0x462   : > { %3858 = vmatpush1.bf16.msra.mxu0 %v18718_v42  ;;  %v18796_v42 = vld [vmem:[%s20993_s6 + $0x6e8] ss:$48 sps:$4 sm:$0xff]  }
 0x463   : > { %3859 = vmatprep.subr.bf16.mxu0 %v18723_v43  ;;  %v18801_v43 = vld [vmem:[%s20993_s6 + $0x74c] ss:$48 sps:$4 sm:$0xff]   ;;  %3932 = vmatpush1.bf16.msra.mxu1 %v18796_v42 }
 0x464   : > { %3933 = vmatprep.subr.bf16.mxu1 %v18801_v43  ;;  %v18831_v43 = vld [vmem:[%s20993_s6 + $0xb0c] ss:$48 sps:$4 sm:$0xff]  }
 0x466   : > { %3860 = vmatpush1.bf16.msra.mxu0 %v18721_v44  ;;  %v18799_v44 = vld [vmem:[%s20993_s6 + $0x748] ss:$48 sps:$4 sm:$0xff]  }
 0x467   : > { %3861 = vmatprep.subr.bf16.mxu0 %v18726_v45  ;;  %v18804_v45 = vld [vmem:[%s20993_s6 + $0x7ac] ss:$48 sps:$4 sm:$0xff]   ;;  %3934 = vmatpush1.bf16.msra.mxu1 %v18799_v44 }
 0x468   : > { %3935 = vmatprep.subr.bf16.mxu1 %v18804_v45 }
 0x46a   : > { %3862 = vmatpush1.bf16.msra.mxu0 %v18724_v46  ;;  %v18802_v46 = vld [vmem:[%s20993_s6 + $0x7a8] ss:$48 sps:$4 sm:$0xff]  }
 0x46b   : > { %3863 = vmatprep.subr.bf16.mxu0 %v18729_v47  ;;  %v18807_v47 = vld [vmem:[%s20993_s6 + $0x80c] ss:$48 sps:$4 sm:$0xff]   ;;  %3936 = vmatpush1.bf16.msra.mxu1 %v18802_v46 }
 0x46c   : > { %3937 = vmatprep.subr.bf16.mxu1 %v18807_v47  ;;  %v18834_v46 = vld [vmem:[%s20993_s6 + $0xb6c] ss:$48 sps:$4 sm:$0xff]  }
 0x46e   : > { %3864 = vmatpush1.bf16.msra.mxu0 %v18727_v48  ;;  %v18808_v48 = vld [vmem:[%s20993_s6 + $0x868] ss:$48 sps:$4 sm:$0xff]  }
 0x46f   : > { %3865 = vmatprep.subr.bf16.mxu0 %v18732_v49  ;;  %3938 = vmatpush1.bf16.msra.mxu1 %v18805_v33  ;;  %v18810_v49 = vld [vmem:[%s20993_s6 + $0x86c] ss:$48 sps:$4 sm:$0xff]  }
 0x470   : > { %3939 = vmatprep.subr.bf16.mxu1 %v18810_v49 }
 0x472   : > { %3866 = vmatpush1.bf16.msra.mxu0 %v18730_v50  ;;  %v1475_v50 = vshrl.u32 %v1474_v61, 7  ;;  %v18837_v61 = vld [vmem:[%s20993_s6 + $0xbcc] ss:$48 sps:$4 sm:$0xff]  }
 0x473   : > { %3867 = vmatprep.subr.bf16.mxu0 %v18735_v51  ;;  %3940 = vmatpush1.bf16.msra.mxu1 %v18808_v48 }
 0x474   : > { %v21507_v51 = vsub.s32 4, %v1475_v50  ;;  %v21514_v56 = vsub.s32 0, %v1475_v50  ;;  %3941 = vmatprep.subr.bf16.mxu1 %v18813_v55  ;;  %v21519_v10 = vsub.s32 1, %v1475_v50  ;;  %v21528_v3 = vsub.s32 6, %v1475_v50 }
 0x475   : > { %v21530_v6 = vsub.s32 2, %v1475_v50  ;;  %v21547_v18 = vsub.s32 7, %v1475_v50  ;;  %v21553_v21 = vsub.s32 3, %v1475_v50 }
 0x476   : > { %3868 = vmatpush1.bf16.msra.mxu0 %v18733_v52  ;;  %v1470_v52 = vld [vmem:[%s21001_s2] sm:$0xff] }
 0x477   : > { %3869 = vmatprep.subr.bf16.mxu0 %v18738_v53  ;;  %v21510_v53 = vsub.s32 5, %v1475_v50  ;;  %3942 = vmatpush1.bf16.msra.mxu1 %v18811_v54  ;;  %v1477_v62 = vrot.slane %v1470_v52, %v21514_v56  ;;  %v1481_v7 = vrot.slane %v1470_v52, %v21519_v10  ;;  %v1501_v17 = vrot.slane %v1470_v52, %v21528_v3  ;;  %v21640_v50 = vld [vmem:[%s21001_s2 + $0x8] sm:$0xf] }
 0x478   : > { %v1485_v19 = vrot.slane %v1470_v52, %v21530_v6  ;;  %v1505_v23 = vrot.slane %v1470_v52, %v21547_v18  ;;  %v1489_v25 = vrot.slane %v1470_v52, %v21553_v21  ;;  %v21657_v55 = vrot.slane %v21640_v50, %v21519_v10 }
 0x479   : > { %v17936_v16 = vadd.f32 %v21420_v28, %v1477_v62  ;;  %v21551_v20 = vadd.f32 %v21425_v31, %v1481_v7  ;;  %v18820_v28 = vld [vmem:[%s20993_s6 + $0x9e8] ss:$48 sps:$4 sm:$0xff]   ;;  %v21591_v42 = vadd.f32 %v21429_v34, %v1477_v62  ;;  %v21603_v45 = vadd.f32 %v21434_v37, %v1481_v7 }
 0x47a   : > { %3870 = vmatpush1.bf16.msra.mxu0 %v18736_v57  ;;  %v21517_v57 = vrot.slane %v1470_v52, %v21507_v51  ;;  %v21567_v24 = vadd.f32 %v21422_v29, %v1485_v19  ;;  %v21579_v36 = vadd.f32 %v21427_v32, %v1489_v25  ;;  %v18826_v29 = vld [vmem:[%s20993_s6 + $0xaa8] ss:$48 sps:$4 sm:$0xff]   ;;  %v21614_v33 = vadd.f32 %v21431_v35, %v1485_v19 }
 0x47b   : > { %3871 = vmatprep.subr.bf16.mxu0 %v18741_v58  ;;  %v21522_v58 = vrot.slane %v1470_v52, %v21510_v53  ;;  %v18829_v32 = vld [vmem:[%s20993_s6 + $0xb08] ss:$48 sps:$4 sm:$0xff]   ;;  %v21626_v49 = vadd.f32 %v21436_v38, %v1489_v25 }
 0x47c   : > { %v18832_v34 = vld [vmem:[%s20993_s6 + $0xb68] ss:$48 sps:$4 sm:$0xff]  }
 0x47d   : > { %v18835_v37 = vld [vmem:[%s20993_s6 + $0xbc8] ss:$48 sps:$4 sm:$0xff]  }
 0x47e   : > { %3872 = vmatpush1.bf16.msra.mxu0 %v18739_v60  ;;  %v18816_v60 = vld [vmem:[%s20993_s6 + $0x92c] ss:$48 sps:$4 sm:$0xff]  }
 0x47f   : > { %17776 = vmatprep.subr.mxu0 %v20422_v1  ;;  %3943 = vmatprep.subr.bf16.mxu1 %v18816_v60 }
 0x480   : > { %3944 = vmatpush1.bf16.msra.mxu1 %v18814_v59 }
 0x481   : > { %3874 = vmatmul.mubr.bf16.vlgmr.msra.gmra.mrb[8].mxu0 %v21233_v39  ;;  %3945 = vmatprep.subr.bf16.mxu1 %v18819_v15 }
 0x482   : > { %17778 = vmatprep.mubr.msk.f32.mxu0 %vm20423_vm0, %v20422_v1 }
 0x484   : > { %3946 = vmatpush1.bf16.msra.mxu1 %v18817_v14 }
 0x485   : > { %3947 = vmatprep.subr.bf16.mxu1 %v18822_v22 }
 0x488   : > { %3948 = vmatpush1.bf16.msra.mxu1 %v18820_v28 }
 0x489   : > { %3949 = vmatprep.subr.bf16.mxu1 %v18825_v27 }
 0x48c   : > { %3950 = vmatpush1.bf16.msra.mxu1 %v18823_v26  ;;  %v21758_v26 = vrot.slane %v21640_v50, %v21553_v21 }
 0x48d   : > { %3951 = vmatprep.subr.bf16.mxu1 %v18828_v40 }
 0x490   : > { %3952 = vmatpush1.bf16.msra.mxu1 %v18826_v29 }
 0x491   : > { %3953 = vmatprep.subr.bf16.mxu1 %v18831_v43 }
 0x494   : > { %3954 = vmatpush1.bf16.msra.mxu1 %v18829_v32 }
 0x495   : > { %3955 = vmatprep.subr.bf16.mxu1 %v18834_v46 }
 0x498   : > { %3956 = vmatpush1.bf16.msra.mxu1 %v18832_v34 }
 0x499   : > { %3957 = vmatprep.subr.bf16.mxu1 %v18837_v61 }
 0x49c   : > { %3958 = vmatpush1.bf16.msra.mxu1 %v18835_v37 }
 0x49d   : > { %17781 = vmatprep.subr.mxu1 %v20422_v1 }
 0x49f   : > { %3960 = vmatmul.mubr.bf16.vlgmr.msra.gmra.mrb[8].mxu1 %v21233_v39  ;;  %v1509_v39 = vrot.slane %v21640_v50, %v21514_v56 }
 0x4a0   : > { %17783 = vmatprep.mubr.msk.f32.mxu1 %vm20423_vm0, %v20422_v1 }
 0x4d4   : > { %v3703_v63 = vpop.f32.mrb[4].mxu0  ;;  %v3789_v0 = vpop.f32.mrb[4].mxu1 }
 0x4d5   : > { %v17944_v2 = vadd.f32 %v3703_v63, %v21517_v57  ;;  %v3705_v4 = vpop.f32.mrb[5].mxu0  ;;  %v3791_v5 = vpop.f32.mrb[5].mxu1  ;;  %v21563_v31 = vadd.f32 %v3789_v0, %v1501_v17 }
 0x4d6   : > { %v21534_v8 = vadd.f32 %v3705_v4, %v21522_v58  ;;  %v3707_v9 = vpop.f32.mrb[6].mxu0  ;;  %v3793_v11 = vpop.f32.mrb[6].mxu1  ;;  %v21576_v30 = vadd.f32 %v3791_v5, %v1505_v23 }
 0x4d7   : > { %v3709_v12 = vpop.f32.mrb[7].mxu0  ;;  %v21536_v13 = vpop.f32.mrb[7].mxu1  ;;  %4174 = vrot.lane.b32.xlu0 %v17944_v2, %s20424_s15  ;;  %17777 = vmatpush3.xpose.msk.msra.mxu0 %vm3998_vm1, %v17944_v2  ;;  %v21588_v41 = vadd.f32 %v3707_v9, %v21517_v57  ;;  %v21611_v47 = vadd.f32 %v3793_v11, %v1501_v17  ;;  %v3994_v17 = vld [vmem:[%s23837_s30] sm:$0x3] }
 0x4d8   : > { %4519 = vrot.lane.b32.xlu1 %v21534_v8, %s20424_s15  ;;  %17786 = vmatprep.subr.mxu0 %v20422_v1  ;;  %v21600_v44 = vadd.f32 %v3709_v12, %v21522_v58  ;;  %v21623_v48 = vadd.f32 %v21536_v13, %v1505_v23  ;;  %v4079_v19 = vrot.slane %v3994_v17, %v21514_v56 }
 0x4da   : > { %17779 = vmatmul.mubr.msk.f32.vlgmr.msra.gmra.mrb[12].mxu0 %vm3998_vm1, %v17936_v16 }
 0x4db   : > { %4171 = vrot.lane.b32.xlu0 %v17936_v16, %s20424_s15  ;;  %17788 = vmatprep.mubr.msk.f32.mxu0 %vm20423_vm0, %v20422_v1 }
 0x4dc   : > { %4516 = vrot.lane.b32.xlu1 %v21551_v20, %s20424_s15 }
 0x4df   : > { %4863 = vrot.lane.b32.xlu0 %v21563_v31, %s20424_s15 }
 0x4e0   : > { %4860 = vrot.lane.b32.xlu1 %v21567_v24, %s20424_s15 }
 0x4e3   : > { %5207 = vrot.lane.b32.xlu0 %v21576_v30, %s20424_s15 }
 0x4e4   : > { %5204 = vrot.lane.b32.xlu1 %v21579_v36, %s20424_s15 }
 0x4e7   : > { %5555 = vrot.lane.b32.xlu0 %v21588_v41, %s20424_s15 }
 0x4e8   : > { %5552 = vrot.lane.b32.xlu1 %v21591_v42, %s20424_s15 }
 0x4eb   : > { %5899 = vrot.lane.b32.xlu0 %v21600_v44, %s20424_s15 }
 0x4ec   : > { %5896 = vrot.lane.b32.xlu1 %v21603_v45, %s20424_s15 }
 0x4ef   : > { %6243 = vrot.lane.b32.xlu0 %v21611_v47, %s20424_s15 }
 0x4f0   : > { %6240 = vrot.lane.b32.xlu1 %v21614_v33, %s20424_s15 }
 0x4f3   : > { %6587 = vrot.lane.b32.xlu0 %v21623_v48, %s20424_s15 }
 0x4f4   : > { %6584 = vrot.lane.b32.xlu1 %v21626_v49, %s20424_s15 }
 0x549   : > { %v4175_v35 = vpop.permute.xlu0 %4174 }
 0x54a   : > { %17787 = vmatpush3.xpose.msk.msra.mxu0 %vm3998_vm1, %v4175_v35  ;;  %v4520_v52 = vpop.permute.xlu1 %4519 }
 0x54b   : > { %17796 = vmatprep.subr.mxu0 %v20422_v1 }
 0x54d   : > { %v4172_v38 = vpop.permute.xlu0 %4171 }
 0x54e   : > { %17789 = vmatmul.mubr.msk.f32.vlgmr.msra.gmra.mrb[14].mxu0 %vm3998_vm1, %v4172_v38  ;;  %v4517_v57 = vpop.permute.xlu1 %4516 }
 0x54f   : > { %17797 = vmatpush3.xpose.msk.msra.mxu0 %vm3998_vm1, %v21534_v8  ;;  %17798 = vmatprep.mubr.msk.f32.mxu0 %vm20423_vm0, %v20422_v1 }
 0x550   : > { %17806 = vmatprep.subr.mxu0 %v20422_v1 }
 0x551   : > { %v4864_v2 = vpop.permute.xlu0 %4863 }
 0x552   : > { %17799 = vmatmul.mubr.msk.f32.vlgmr.msra.gmra.mrb[16].mxu0 %vm3998_vm1, %v21551_v20  ;;  %v4861_v4 = vpop.permute.xlu1 %4860 }
 0x553   : > { %17807 = vmatpush3.xpose.msk.msra.mxu0 %vm3998_vm1, %v4520_v52  ;;  %17808 = vmatprep.mubr.msk.f32.mxu0 %vm20423_vm0, %v20422_v1 }
 0x554   : > { %17816 = vmatprep.subr.mxu0 %v20422_v1  ;;  %v3875_v54 = vpop.f32.mrb[8].mxu0 }
 0x555   : > { %v21659_v58 = vadd.f32 %v3875_v54, %v1509_v39  ;;  %v21661_v59 = vpop.f32.mrb[9].mxu0  ;;  %v5208_v5 = vpop.permute.xlu0 %5207 }
 0x556   : > { %17809 = vmatmul.mubr.msk.f32.vlgmr.msra.gmra.mrb[18].mxu0 %vm3998_vm1, %v4517_v57  ;;  %v3879_v60 = vpop.f32.mrb[10].mxu0  ;;  %v5205_v7 = vpop.permute.xlu1 %5204 }
 0x557   : > { %17817 = vmatpush3.xpose.msk.msra.mxu0 %vm3998_vm1, %v21563_v31  ;;  %17818 = vmatprep.mubr.msk.f32.mxu0 %vm20423_vm0, %v20422_v1  ;;  %v21668_v62 = vadd.f32 %v3879_v60, %v1509_v39  ;;  %v3881_v63 = vpop.f32.mrb[11].mxu0 }
 0x558   : > { %17826 = vmatprep.subr.mxu0 %v20422_v1  ;;  %v21672_v0 = vadd.f32 %v3881_v63, %v21657_v55  ;;  %17782 = vmatpush3.msra.mxu1 %v21659_v58 }
 0x559   : > { %17791 = vmatprep.subr.mxu1 %v20422_v1  ;;  %v5556_v8 = vpop.permute.xlu0 %5555 }
 0x55a   : > { %17819 = vmatmul.mubr.msk.f32.vlgmr.msra.gmra.mrb[20].mxu0 %vm3998_vm1, %v21567_v24  ;;  %v5553_v9 = vpop.permute.xlu1 %5552  ;;  %v21752_v24 = vrot.slane %v21640_v50, %v21530_v6 }
 0x55b   : > { %17827 = vmatpush3.xpose.msk.msra.mxu0 %vm3998_vm1, %v4864_v2  ;;  %17828 = vmatprep.mubr.msk.f32.mxu0 %vm20423_vm0, %v20422_v1 }
 0x55c   : > { %17836 = vmatprep.subr.mxu0 %v20422_v1 }
 0x55d   : > { %v5900_v11 = vpop.permute.xlu0 %5899 }
 0x55e   : > { %17829 = vmatmul.mubr.msk.f32.vlgmr.msra.gmra.mrb[22].mxu0 %vm3998_vm1, %v4861_v4  ;;  %v5897_v12 = vpop.permute.xlu1 %5896 }
 0x55f   : > { %17837 = vmatpush3.xpose.msk.msra.mxu0 %vm3998_vm1, %v21576_v30  ;;  %17838 = vmatprep.mubr.msk.f32.mxu0 %vm20423_vm0, %v20422_v1 }
 0x560   : > { %17846 = vmatprep.subr.mxu0 %v20422_v1 }
 0x561   : > { %v6244_v13 = vpop.permute.xlu0 %6243 }
 0x562   : > { %17839 = vmatmul.mubr.msk.f32.vlgmr.msra.gmra.mrb[24].mxu0 %vm3998_vm1, %v21579_v36  ;;  %v6241_v14 = vpop.permute.xlu1 %6240 }
 0x563   : > { %17847 = vmatpush3.xpose.msk.msra.mxu0 %vm3998_vm1, %v5208_v5  ;;  %17848 = vmatprep.mubr.msk.f32.mxu0 %vm20423_vm0, %v20422_v1 }
 0x564   : > { %17856 = vmatprep.subr.mxu0 %v20422_v1 }
 0x565   : > { %v6588_v15 = vpop.permute.xlu0 %6587 }
 0x566   : > { %17849 = vmatmul.mubr.msk.f32.vlgmr.msra.gmra.mrb[26].mxu0 %vm3998_vm1, %v5205_v7  ;;  %v6585_v16 = vpop.permute.xlu1 %6584 }
 0x567   : > { %17857 = vmatpush3.xpose.msk.msra.mxu0 %vm3998_vm1, %v21588_v41  ;;  %17858 = vmatprep.mubr.msk.f32.mxu0 %vm20423_vm0, %v20422_v1 }
 0x568   : > { %17866 = vmatprep.subr.mxu0 %v20422_v1 }
 0x56a   : > { %17859 = vmatmul.mubr.msk.f32.vlgmr.msra.gmra.mrb[28].mxu0 %vm3998_vm1, %v21591_v42 }
 0x56b   : > { %17867 = vmatpush3.xpose.msk.msra.mxu0 %vm3998_vm1, %v5556_v8  ;;  %17868 = vmatprep.mubr.msk.f32.mxu0 %vm20423_vm0, %v20422_v1 }
 0x56c   : > { %17876 = vmatprep.subr.mxu0 %v20422_v1 }
 0x56e   : > { %17869 = vmatmul.mubr.msk.f32.vlgmr.msra.gmra.mrb[30].mxu0 %vm3998_vm1, %v5553_v9 }
 0x56f   : > { %17877 = vmatpush3.xpose.msk.msra.mxu0 %vm3998_vm1, %v21600_v44  ;;  %17878 = vmatprep.mubr.msk.f32.mxu0 %vm20423_vm0, %v20422_v1 }
 0x570   : > { %17886 = vmatprep.subr.mxu0 %v20422_v1 }
 0x572   : > { %17879 = vmatmul.mubr.msk.f32.vlgmr.msra.gmra.mrb[32].mxu0 %vm3998_vm1, %v21603_v45  ;;  %v21754_v25 = vpop.f32.mrb[8].mxu1 }
 0x573   : > { %17887 = vmatpush3.xpose.msk.msra.mxu0 %vm3998_vm1, %v5900_v11  ;;  %17888 = vmatprep.mubr.msk.f32.mxu0 %vm20423_vm0, %v20422_v1  ;;  %v21760_v27 = vpop.f32.mrb[9].mxu1 }
 0x574   : > { %17896 = vmatprep.subr.mxu0 %v20422_v1  ;;  %v3965_v30 = vpop.f32.mrb[10].mxu1 }
 0x575   : > { %v21763_v36 = vadd.f32 %v3965_v30, %v21752_v24  ;;  %v3967_v29 = vpop.f32.mrb[11].mxu1 }
 0x576   : > { %17889 = vmatmul.mubr.msk.f32.vlgmr.msra.gmra.mrb[34].mxu0 %vm3998_vm1, %v5897_v12  ;;  %v21766_v40 = vadd.f32 %v3967_v29, %v21758_v26 }
 0x577   : > { %17897 = vmatpush3.xpose.msk.msra.mxu0 %vm3998_vm1, %v21611_v47  ;;  %17898 = vmatprep.mubr.msk.f32.mxu0 %vm20423_vm0, %v20422_v1 }
 0x578   : > { %17906 = vmatprep.subr.mxu0 %v20422_v1 }
 0x57a   : > { %17899 = vmatmul.mubr.msk.f32.vlgmr.msra.gmra.mrb[36].mxu0 %vm3998_vm1, %v21614_v33 }
 0x57b   : > { %17907 = vmatpush3.xpose.msk.msra.mxu0 %vm3998_vm1, %v6244_v13  ;;  %17908 = vmatprep.mubr.msk.f32.mxu0 %vm20423_vm0, %v20422_v1 }
 0x57c   : > { %17916 = vmatprep.subr.mxu0 %v20422_v1 }
 0x57e   : > { %17909 = vmatmul.mubr.msk.f32.vlgmr.msra.gmra.mrb[38].mxu0 %vm3998_vm1, %v6241_v14 }
 0x57f   : > { %17917 = vmatpush3.xpose.msk.msra.mxu0 %vm3998_vm1, %v21623_v48  ;;  %17918 = vmatprep.mubr.msk.f32.mxu0 %vm20423_vm0, %v20422_v1 }
 0x580   : > { %17926 = vmatprep.subr.mxu0 %v20422_v1 }
 0x582   : > { %17919 = vmatmul.mubr.msk.f32.vlgmr.msra.gmra.mrb[40].mxu0 %vm3998_vm1, %v21626_v49 }
 0x583   : > { %17927 = vmatpush3.xpose.msk.msra.mxu0 %vm3998_vm1, %v6588_v15  ;;  %17928 = vmatprep.mubr.msk.f32.mxu0 %vm20423_vm0, %v20422_v1 }
 0x586   : > { %17929 = vmatmul.mubr.msk.f32.vlgmr.msra.gmra.mrb[42].mxu0 %vm3998_vm1, %v6585_v16  ;;  %v5461_v16 = vrot.slane %v3994_v17, %v21519_v10 }
 0x5ad   : > { %v4071_v20 = vpop.f32.mrb[12].mxu0 }
 0x5ae   : > { %v4075_v28 = vmul.f32 0.125, %v4071_v20  ;;  %v17780_v22 = vpop.f32.mrb[13].mxu0 }
 0x5b0   : > { %v21746_v31 = vadd.f32 %v4079_v19, %v4075_v28 }
 0x5b2   : > { %v4082_v23 = vsel %vm4081_vm2, %v21746_v31, -inf }
 0x5b3   : > { %4083 = vmax.xlane.f32.xlu0 %v4082_v23 }
 0x621   : > { %v4246_v41 = vpop.f32.mrb[14].mxu0 }
 0x622   : > { %v4250_v42 = vmul.f32 0.125, %v4246_v41  ;;  %v17790_v32 = vpop.f32.mrb[15].mxu0 }
 0x624   : > { %v21768_v43 = vadd.f32 %v4250_v42, %v4079_v19 }
 0x625   : > { %v4421_v44 = vpop.f32.mrb[16].mxu0 }
 0x626   : > { %v4425_v45 = vmul.f32 0.125, %v4421_v44  ;;  %v17800_v34 = vpop.f32.mrb[17].mxu0  ;;  %v4252_v46 = vsel %vm4081_vm2, %v21768_v43, -inf }
 0x627   : > { %4253 = vmax.xlane.f32.xlu1 %v4252_v46 }
 0x628   : > { %v21772_v47 = vadd.f32 %v4425_v45, %v4079_v19 }
 0x629   : > { %v4591_v33 = vpop.f32.mrb[18].mxu0 }
 0x62a   : > { %v4595_v37 = vmul.f32 0.125, %v4591_v33  ;;  %v17810_v61 = vpop.f32.mrb[19].mxu0  ;;  %v4427_v48 = vsel %vm4081_vm2, %v21772_v47, -inf }
 0x62b   : > { %4428 = vmax.xlane.f32.xlu0 %v4427_v48 }
 0x62c   : > { %v21776_v49 = vadd.f32 %v4595_v37, %v4079_v19 }
 0x62d   : > { %v4765_v35 = vpop.f32.mrb[20].mxu0 }
 0x62e   : > { %v4769_v38 = vmul.f32 0.125, %v4765_v35  ;;  %v17820_v50 = vpop.f32.mrb[21].mxu0  ;;  %v4597_v52 = vsel %vm4081_vm2, %v21776_v49, -inf }
 0x62f   : > { %4598 = vmax.xlane.f32.xlu0 %v4597_v52 }
 0x630   : > { %v21780_v39 = vadd.f32 %v4769_v38, %v4079_v19 }
 0x631   : > { %v4935_v54 = vpop.f32.mrb[22].mxu0 }
 0x632   : > { %v4939_v57 = vmul.f32 0.125, %v4935_v54  ;;  %v17830_v60 = vpop.f32.mrb[23].mxu0  ;;  %v4771_v63 = vsel %vm4081_vm2, %v21780_v39, -inf }
 0x633   : > { %4772 = vmax.xlane.f32.xlu1 %v4771_v63 }
 0x634   : > { %v21784_v2 = vadd.f32 %v4939_v57, %v4079_v19 }
 0x635   : > { %v5109_v4 = vpop.f32.mrb[24].mxu0 }
 0x636   : > { %v5113_v5 = vmul.f32 0.125, %v5109_v4  ;;  %v17840_v7 = vpop.f32.mrb[25].mxu0  ;;  %v4941_v8 = vsel %vm4081_vm2, %v21784_v2, -inf }
 0x637   : > { %4942 = vmax.xlane.f32.xlu0 %v4941_v8 }
 0x638   : > { %v21788_v9 = vadd.f32 %v5113_v5, %v4079_v19 }
 0x639   : > { %v5279_v11 = vpop.f32.mrb[26].mxu0 }
 0x63a   : > { %v5283_v12 = vmul.f32 0.125, %v5279_v11  ;;  %v17850_v13 = vpop.f32.mrb[27].mxu0  ;;  %v5115_v14 = vsel %vm4081_vm2, %v21788_v9, -inf }
 0x63b   : > { %5116 = vmax.xlane.f32.xlu1 %v5115_v14  ;;  %v21821_v14 = vadd.f32 %v21661_v59, %v21657_v55  ;;  %v21836_v59 = vadd.f32 %v21754_v25, %v21752_v24 }
 0x63c   : > { %v21792_v15 = vadd.f32 %v5283_v12, %v4079_v19 }
 0x63d   : > { %v5453_v20 = vpop.f32.mrb[28].mxu0 }
 0x63e   : > { %v5457_v28 = vmul.f32 0.125, %v5453_v20  ;;  %v17860_v22 = vpop.f32.mrb[29].mxu0  ;;  %v5285_v23 = vsel %vm4081_vm2, %v21792_v15, -inf }
 0x63f   : > { %5286 = vmax.xlane.f32.xlu0 %v5285_v23 }
 0x640   : > { %v21797_v30 = vadd.f32 %v5461_v16, %v5457_v28  ;;  %v4084_v20 = vpop.xlane.xlu0 %4083 }
 0x641   : > { %v5627_v29 = vpop.f32.mrb[30].mxu0 }
 0x642   : > { %v5631_v41 = vmul.f32 0.125, %v5627_v29  ;;  %v17870_v42 = vpop.f32.mrb[31].mxu0  ;;  %v5463_v32 = vsel %vm4081_vm2, %v21797_v30, -inf }
 0x643   : > { %5464 = vmax.xlane.f32.xlu1 %v5463_v32 }
 0x644   : > { %v21801_v19 = vadd.f32 %v5631_v41, %v5461_v16 }
 0x645   : > { %v5801_v44 = vpop.f32.mrb[32].mxu0 }
 0x646   : > { %v17880_v17 = vpop.f32.mrb[33].mxu0  ;;  %v5633_v45 = vsel %vm4081_vm2, %v21801_v19, -inf  ;;  %v5805_v22 = vmul.f32 0.125, %v5801_v44 }
 0x647   : > { %5634 = vmax.xlane.f32.xlu0 %v5633_v45 }
 0x648   : > { %v21826_v23 = vadd.f32 %v5805_v22, %v5461_v16 }
 0x649   : > { %v5971_v34 = vpop.f32.mrb[34].mxu0 }
 0x64a   : > { %v5975_v46 = vmul.f32 0.125, %v5971_v34  ;;  %v17890_v33 = vpop.f32.mrb[35].mxu0  ;;  %v5807_v29 = vsel %vm4081_vm2, %v21826_v23, -inf }
 0x64c   : > { %v21805_v37 = vadd.f32 %v5975_v46, %v5461_v16 }
 0x64d   : > { %v6145_v61 = vpop.f32.mrb[36].mxu0 }
 0x64e   : > { %v6149_v48 = vmul.f32 0.125, %v6145_v61  ;;  %v17900_v35 = vpop.f32.mrb[37].mxu0  ;;  %v5977_v38 = vsel %vm4081_vm2, %v21805_v37, -inf }
 0x64f   : > { %5978 = vmax.xlane.f32.xlu0 %v5977_v38 }
 0x650   : > { %v21809_v50 = vadd.f32 %v6149_v48, %v5461_v16 }
 0x651   : > { %v6315_v52 = vpop.f32.mrb[38].mxu0 }
 0x652   : > { %v6319_v54 = vmul.f32 0.125, %v6315_v52  ;;  %v17910_v57 = vpop.f32.mrb[39].mxu0 }
 0x654   : > { %4264 = vrot.lane.b32.xlu1 %v21659_v58, %s20424_s15  ;;  %v21813_v60 = vadd.f32 %v6319_v54, %v5461_v16  ;;  %v4085_v58 = vsub.f32 %v21746_v31, %v4084_v20  ;;  %v6151_v31 = vsel %vm4081_vm2, %v21809_v50, -inf }
 0x655   : > { %v6489_v63 = vpop.f32.mrb[40].mxu0 }
 0x656   : > { %v6493_v4 = vmul.f32 0.125, %v6489_v63  ;;  %v17920_v5 = vpop.f32.mrb[41].mxu0  ;;  %v4086_v28 = vmul.f32 1.442695, %v4085_v58  ;;  %v6321_v42 = vsel %vm4081_vm2, %v21813_v60, -inf }
 0x658   : > { %v21815_v7 = vadd.f32 %v6493_v4, %v5461_v16  ;;  %19798 = vpow2.f32 %v4086_v28 }
 0x659   : > { %v6659_v8 = vpop.f32.mrb[42].mxu0 }
 0x65a   : > { %v6663_v11 = vmul.f32 0.125, %v6659_v8  ;;  %v17930_v12 = vpop.f32.mrb[43].mxu0  ;;  %v6495_v24 = vsel %vm4081_vm2, %v21815_v7, -inf }
 0x65c   : > { %v21817_v13 = vadd.f32 %v6663_v11, %v5461_v16 }
 0x65e   : > { %v6665_v46 = vsel %vm4081_vm2, %v21817_v13, -inf }
 0x662   : > { %v21830_v41 = vpop.eup %19798 }
 0x663   : > { %v4088_v55 = vsel %vm4081_vm2, %v21830_v41, 0.0 }
 0x665   : > { %4609 = vrot.lane.b32.xlu0 %v21821_v14, %s20424_s15 }
 0x678   : > { %5808 = vmax.xlane.f32.xlu1 %v5807_v29 }
 0x67c   : > { %4089 = vadd.xlane.f32.xlu1 %v4088_v55 }
 0x68d   : > { %4953 = vrot.lane.b32.xlu1 %v21836_v59, %s20424_s15 }
 0x6b1   : > { %6152 = vmax.xlane.f32.xlu1 %v6151_v31 }
 0x6b4   : > { %v4254_v16 = vpop.xlane.xlu1 %4253 }
 0x6b5   : > { %v4255_v32 = vsub.f32 %v21768_v43, %v4254_v16  ;;  %6322 = vmax.xlane.f32.xlu1 %v6321_v42 }
 0x6b7   : > { %v4256_v44 = vmul.f32 1.442695, %v4255_v32 }
 0x6b8   : > { %v4429_v17 = vpop.xlane.xlu0 %4428 }
 0x6b9   : > { %19800 = vpow2.f32 %v4256_v44  ;;  %v4430_v25 = vsub.f32 %v21772_v47, %v4429_v17  ;;  %6496 = vmax.xlane.f32.xlu1 %v6495_v24 }
 0x6bb   : > { %v4431_v45 = vmul.f32 1.442695, %v4430_v25 }
 0x6bc   : > { %v4599_v34 = vpop.xlane.xlu0 %4598 }
 0x6bd   : > { %19802 = vpow2.f32 %v4431_v45  ;;  %v4600_v33 = vsub.f32 %v21776_v49, %v4599_v34  ;;  %6666 = vmax.xlane.f32.xlu1 %v6665_v46 }
 0x6bf   : > { %v4601_v43 = vmul.f32 1.442695, %v4600_v33 }
 0x6c0   : > { %v4773_v61 = vpop.xlane.xlu1 %4772 }
 0x6c1   : > { %19804 = vpow2.f32 %v4601_v43  ;;  %v4774_v48 = vsub.f32 %v21780_v39, %v4773_v61  ;;  %v21900_v61 = vadd.f32 %v21760_v27, %v21758_v26 }
 0x6c3   : > { %v21852_v35 = vpop.eup %19800  ;;  %v4775_v38 = vmul.f32 1.442695, %v4774_v48 }
 0x6c4   : > { %v4943_v52 = vpop.xlane.xlu0 %4942  ;;  %v4258_v47 = vsel %vm4081_vm2, %v21852_v35, 0.0 }
 0x6c5   : > { %19806 = vpow2.f32 %v4775_v38  ;;  %v4944_v54 = vsub.f32 %v21784_v2, %v4943_v52  ;;  %4259 = vadd.xlane.f32.xlu0 %v4258_v47 }
 0x6c7   : > { %v21857_v57 = vpop.eup %19802  ;;  %v4945_v49 = vmul.f32 1.442695, %v4944_v54 }
 0x6c8   : > { %v5117_v63 = vpop.xlane.xlu1 %5116  ;;  %v4433_v4 = vsel %vm4081_vm2, %v21857_v57, 0.0 }
 0x6c9   : > { %19808 = vpow2.f32 %v4945_v49  ;;  %v5118_v39 = vsub.f32 %v21788_v9, %v5117_v63  ;;  %4434 = vadd.xlane.f32.xlu0 %v4433_v4 }
 0x6cb   : > { %v21862_v5 = vpop.eup %19804  ;;  %v5119_v8 = vmul.f32 1.442695, %v5118_v39 }
 0x6cc   : > { %v5287_v11 = vpop.xlane.xlu0 %5286  ;;  %v4603_v12 = vsel %vm4081_vm2, %v21862_v5, 0.0 }
 0x6cd   : > { %19810 = vpow2.f32 %v5119_v8  ;;  %v5288_v2 = vsub.f32 %v21792_v15, %v5287_v11  ;;  %4604 = vadd.xlane.f32.xlu0 %v4603_v12 }
 0x6cf   : > { %v21867_v20 = vpop.eup %19806  ;;  %v5289_v58 = vmul.f32 1.442695, %v5288_v2 }
 0x6d0   : > { %v5465_v28 = vpop.xlane.xlu1 %5464  ;;  %v4777_v22 = vsel %vm4081_vm2, %v21867_v20, 0.0 }
 0x6d1   : > { %19812 = vpow2.f32 %v5289_v58  ;;  %v5466_v9 = vsub.f32 %v21797_v30, %v5465_v28  ;;  %4778 = vadd.xlane.f32.xlu0 %v4777_v22 }
 0x6d3   : > { %v21872_v29 = vpop.eup %19808  ;;  %v5467_v55 = vmul.f32 1.442695, %v5466_v9 }
 0x6d4   : > { %v5635_v31 = vpop.xlane.xlu0 %5634  ;;  %v4947_v16 = vsel %vm4081_vm2, %v21872_v29, 0.0  ;;  %v4265_v48 = vpop.permute.xlu1 %4264 }
 0x6d5   : > { %19814 = vpow2.f32 %v5467_v55  ;;  %v5636_v15 = vsub.f32 %v21801_v19, %v5635_v31  ;;  %4948 = vadd.xlane.f32.xlu0 %v4947_v16 }
 0x6d7   : > { %v21877_v42 = vpop.eup %19810  ;;  %v5637_v32 = vmul.f32 1.442695, %v5636_v15 }
 0x6d8   : > { %v5121_v44 = vsel %vm4081_vm2, %v21877_v42, 0.0 }
 0x6d9   : > { %19816 = vpow2.f32 %v5637_v32  ;;  %5122 = vadd.xlane.f32.xlu1 %v5121_v44 }
 0x6db   : > { %v21881_v30 = vpop.eup %19812 }
 0x6dc   : > { %v5979_v17 = vpop.xlane.xlu0 %5978  ;;  %v5291_v24 = vsel %vm4081_vm2, %v21881_v30, 0.0 }
 0x6dd   : > { %v5980_v25 = vsub.f32 %v21805_v37, %v5979_v17  ;;  %5292 = vadd.xlane.f32.xlu0 %v5291_v24 }
 0x6df   : > { %v21886_v45 = vpop.eup %19814  ;;  %v5981_v19 = vmul.f32 1.442695, %v5980_v25 }
 0x6e0   : > { %v5469_v34 = vsel %vm4081_vm2, %v21886_v45, 0.0  ;;  %v4610_v16 = vpop.permute.xlu0 %4609 }
 0x6e1   : > { %19818 = vpow2.f32 %v5981_v19  ;;  %5470 = vadd.xlane.f32.xlu0 %v5469_v34 }
 0x6e3   : > { %v21890_v46 = vpop.eup %19816 }
 0x6e4   : > { %v5639_v33 = vsel %vm4081_vm2, %v21890_v46, 0.0 }
 0x6e5   : > { %5640 = vadd.xlane.f32.xlu0 %v5639_v33 }
 0x6eb   : > { %v21894_v43 = vpop.eup %19818 }
 0x6ec   : > { %v5983_v37 = vsel %vm4081_vm2, %v21894_v43, 0.0 }
 0x6ed   : > { %5984 = vadd.xlane.f32.xlu0 %v5983_v37 }
 0x703   : > { %5297 = vrot.lane.b32.xlu0 %v21900_v61, %s20424_s15 }
 0x705   : > { %v5809_v38 = vpop.xlane.xlu1 %5808 }
 0x706   : > { %v5810_v52 = vsub.f32 %v21826_v23, %v5809_v38 }
 0x708   : > { %v5811_v47 = vmul.f32 1.442695, %v5810_v52 }
 0x709   : > { %v4090_v54 = vpop.xlane.xlu1 %4089 }
 0x70a   : > { %19820 = vpow2.f32 %v5811_v47 }
 0x70b   : > { %19822 = vrcp.f32 %v4090_v54 }
 0x70d   : > { %v21918_v27 = vpop.permute.xlu1 %4953 }
 0x714   : > { %v21905_v49 = vpop.eup %19820 }
 0x715   : > { %v19823_v63 = vpop.eup %19822  ;;  %v5813_v4 = vsel %vm4081_vm2, %v21905_v49, 0.0 }
 0x716   : > { %v4092_v26 = vmul.f32 %v19823_v63, %v21830_v41  ;;  %5814 = vadd.xlane.f32.xlu1 %v5813_v4 }
 0x718   : > { %17784 = vmatmul.mubr.msk.f32.vlgmr.msra.gmra.mrb[12].mxu1 %vm4081_vm2, %v4092_v26 }
 0x719   : > { %17792 = vmatpush3.msra.mxu1 %v4265_v48  ;;  %17793 = vmatprep.mubr.msk.f32.mxu1 %vm20423_vm0, %v20422_v1 }
 0x71a   : > { %17801 = vmatprep.subr.mxu1 %v20422_v1 }
 0x727   : > { %5645 = vrot.lane.b32.xlu1 %v21668_v62, %s20424_s15 }
 0x72b   : > { %5989 = vrot.lane.b32.xlu1 %v21672_v0, %s20424_s15 }
 0x73e   : > { %v6153_v23 = vpop.xlane.xlu1 %6152 }
 0x73f   : > { %v6154_v41 = vsub.f32 %v21809_v50, %v6153_v23 }
 0x741   : > { %v6155_v39 = vmul.f32 1.442695, %v6154_v41 }
 0x742   : > { %v6323_v8 = vpop.xlane.xlu1 %6322 }
 0x743   : > { %19824 = vpow2.f32 %v6155_v39  ;;  %v6324_v11 = vsub.f32 %v21813_v60, %v6323_v8 }
 0x745   : > { %v6325_v12 = vmul.f32 1.442695, %v6324_v11 }
 0x746   : > { %v6497_v2 = vpop.xlane.xlu1 %6496 }
 0x747   : > { %19826 = vpow2.f32 %v6325_v12  ;;  %v6498_v58 = vsub.f32 %v21815_v7, %v6497_v2 }
 0x749   : > { %v6499_v28 = vmul.f32 1.442695, %v6498_v58 }
 0x74a   : > { %v6667_v22 = vpop.xlane.xlu1 %6666 }
 0x74b   : > { %19828 = vpow2.f32 %v6499_v28  ;;  %v6668_v9 = vsub.f32 %v21817_v13, %v6667_v22 }
 0x74d   : > { %v21924_v55 = vpop.eup %19824  ;;  %v6669_v31 = vmul.f32 1.442695, %v6668_v9 }
 0x74e   : > { %v6157_v50 = vsel %vm4081_vm2, %v21924_v55, 0.0 }
 0x74f   : > { %19830 = vpow2.f32 %v6669_v31  ;;  %6158 = vadd.xlane.f32.xlu1 %v6157_v50 }
 0x751   : > { %v21928_v60 = vpop.eup %19826 }
 0x752   : > { %v4260_v15 = vpop.xlane.xlu0 %4259  ;;  %v6327_v7 = vsel %vm4081_vm2, %v21928_v60, 0.0 }
 0x753   : > { %19832 = vrcp.f32 %v4260_v15  ;;  %6328 = vadd.xlane.f32.xlu0 %v6327_v7 }
 0x755   : > { %v21932_v32 = vpop.eup %19828 }
 0x756   : > { %v4435_v13 = vpop.xlane.xlu0 %4434  ;;  %v6501_v44 = vsel %vm4081_vm2, %v21932_v32, 0.0 }
 0x757   : > { %19834 = vrcp.f32 %v4435_v13  ;;  %6502 = vadd.xlane.f32.xlu1 %v6501_v44 }
 0x759   : > { %v21936_v17 = vpop.eup %19830 }
 0x75a   : > { %v4605_v24 = vpop.xlane.xlu0 %4604  ;;  %v6671_v25 = vsel %vm4081_vm2, %v21936_v17, 0.0 }
 0x75b   : > { %19836 = vrcp.f32 %v4605_v24  ;;  %6672 = vadd.xlane.f32.xlu0 %v6671_v25 }
 0x75d   : > { %v19833_v19 = vpop.eup %19832 }
 0x75e   : > { %v4262_v34 = vmul.f32 %v19833_v19, %v21852_v35  ;;  %v4779_v33 = vpop.xlane.xlu0 %4778 }
 0x75f   : > { %19838 = vrcp.f32 %v4779_v33 }
 0x760   : > { %17794 = vmatmul.mubr.msk.f32.vlgmr.msra.gmra.mrb[14].mxu1 %vm4081_vm2, %v4262_v34 }
 0x761   : > { %v19835_v37 = vpop.eup %19834  ;;  %17802 = vmatpush3.msra.mxu1 %v21821_v14  ;;  %17803 = vmatprep.mubr.msk.f32.mxu1 %vm20423_vm0, %v20422_v1 }
 0x762   : > { %v4437_v48 = vmul.f32 %v19835_v37, %v21857_v57  ;;  %v4949_v38 = vpop.xlane.xlu0 %4948  ;;  %17811 = vmatprep.subr.mxu1 %v20422_v1 }
 0x763   : > { %19840 = vrcp.f32 %v4949_v38  ;;  %v18838_v38 = vld [vmem:[%s21003_s24] ss:$16 sps:$4 sm:$0xff]  }
 0x764   : > { %17804 = vmatmul.mubr.msk.f32.vlgmr.msra.gmra.mrb[16].mxu1 %vm4081_vm2, %v4437_v48 }
 0x765   : > { %v19837_v52 = vpop.eup %19836  ;;  %17812 = vmatpush3.msra.mxu1 %v4610_v16  ;;  %17813 = vmatprep.mubr.msk.f32.mxu1 %vm20423_vm0, %v20422_v1 }
 0x766   : > { %v4607_v35 = vmul.f32 %v19837_v52, %v21862_v5  ;;  %v5123_v47 = vpop.xlane.xlu1 %5122  ;;  %17821 = vmatprep.subr.mxu1 %v20422_v1  ;;  %v18840_v52 = vld [vmem:[%s21003_s24 + $0x4] ss:$16 sps:$4 sm:$0xff]  }
 0x767   : > { %19842 = vrcp.f32 %v5123_v47  ;;  %7560 = vmatprep.subr.bf16.mxu0 %v18840_v52  ;;  %v18841_v47 = vld [vmem:[%s21003_s24 + $0x8] ss:$16 sps:$4 sm:$0xff]   ;;  %v18916_v52 = vld [vmem:[%s21003_s24 + $0x1a0] ss:$16 sps:$4 sm:$0xff]  }
 0x768   : > { %17814 = vmatmul.mubr.msk.f32.vlgmr.msra.gmra.mrb[18].mxu1 %vm4081_vm2, %v4607_v35  ;;  %6333 = vrot.lane.b32.xlu1 %v21763_v36, %s20424_s15  ;;  %v18843_v35 = vld [vmem:[%s21003_s24 + $0xc] ss:$16 sps:$4 sm:$0xff]  }
 0x769   : > { %v19839_v14 = vpop.eup %19838  ;;  %17822 = vmatpush3.msra.mxu1 %v21836_v59  ;;  %17823 = vmatprep.mubr.msk.f32.mxu1 %vm20423_vm0, %v20422_v1 }
 0x76a   : > { %v4781_v57 = vmul.f32 %v19839_v14, %v21867_v20  ;;  %v5293_v54 = vpop.xlane.xlu0 %5292  ;;  %17831 = vmatprep.subr.mxu1 %v20422_v1  ;;  %v18846_v14 = vld [vmem:[%s21003_s24 + $0x24] ss:$16 sps:$4 sm:$0xff]   ;;  %7561 = vmatpush1.bf16.msra.mxu0 %v18838_v38 }
 0x76b   : > { %19844 = vrcp.f32 %v5293_v54  ;;  %v18849_v54 = vld [vmem:[%s21003_s24 + $0x2c] ss:$16 sps:$4 sm:$0xff]   ;;  %7562 = vmatprep.subr.bf16.mxu0 %v18846_v14  ;;  %v18919_v14 = vld [vmem:[%s21003_s24 + $0x1a8] ss:$16 sps:$4 sm:$0xff]  }
 0x76c   : > { %17824 = vmatmul.mubr.msk.f32.vlgmr.msra.gmra.mrb[20].mxu1 %vm4081_vm2, %v4781_v57  ;;  %v18844_v57 = vld [vmem:[%s21003_s24 + $0x20] ss:$16 sps:$4 sm:$0xff]  }
 0x76d   : > { %v19841_v5 = vpop.eup %19840  ;;  %17832 = vmatpush3.msra.mxu1 %v21918_v27  ;;  %17833 = vmatprep.mubr.msk.f32.mxu1 %vm20423_vm0, %v20422_v1 }
 0x76e   : > { %v4951_v63 = vmul.f32 %v19841_v5, %v21872_v29  ;;  %17841 = vmatprep.subr.mxu1 %v20422_v1  ;;  %v5471_v59 = vpop.xlane.xlu0 %5470  ;;  %v18847_v5 = vld [vmem:[%s21003_s24 + $0x28] ss:$16 sps:$4 sm:$0xff]   ;;  %7563 = vmatpush1.bf16.msra.mxu0 %v18844_v57  ;;  %v18921_v57 = vld [vmem:[%s21003_s24 + $0x1ac] ss:$16 sps:$4 sm:$0xff]  }
 0x76f   : > { %19846 = vrcp.f32 %v5471_v59  ;;  %v18855_v59 = vld [vmem:[%s21003_s24 + $0x4c] ss:$16 sps:$4 sm:$0xff]  }
 0x770   : > { %17834 = vmatmul.mubr.msk.f32.vlgmr.msra.gmra.mrb[22].mxu1 %vm4081_vm2, %v4951_v63  ;;  %v18852_v63 = vld [vmem:[%s21003_s24 + $0x44] ss:$16 sps:$4 sm:$0xff]  }
 0x771   : > { %v19843_v4 = vpop.eup %19842  ;;  %17842 = vmatpush3.msra.mxu1 %v21900_v61  ;;  %6677 = vrot.lane.b32.xlu0 %v21766_v40, %s20424_s15 }
 0x772   : > { %v5125_v20 = vmul.f32 %v19843_v4, %v21877_v42  ;;  %17843 = vmatprep.mubr.msk.f32.mxu1 %vm20423_vm0, %v20422_v1  ;;  %17851 = vmatprep.subr.mxu1 %v20422_v1  ;;  %v5641_v29 = vpop.xlane.xlu0 %5640  ;;  %v18850_v4 = vld [vmem:[%s21003_s24 + $0x40] ss:$16 sps:$4 sm:$0xff]  }
 0x773   : > { %19848 = vrcp.f32 %v5641_v29  ;;  %7564 = vmatprep.subr.bf16.mxu0 %v18852_v63  ;;  %v18858_v29 = vld [vmem:[%s21003_s24 + $0x64] ss:$16 sps:$4 sm:$0xff]   ;;  %v18925_v63 = vld [vmem:[%s21003_s24 + $0x1c8] ss:$16 sps:$4 sm:$0xff]  }
 0x774   : > { %17844 = vmatmul.mubr.msk.f32.vlgmr.msra.gmra.mrb[24].mxu1 %vm4081_vm2, %v5125_v20  ;;  %v18853_v20 = vld [vmem:[%s21003_s24 + $0x48] ss:$16 sps:$4 sm:$0xff]   ;;  %7565 = vmatpush1.bf16.msra.mxu0 %v18850_v4  ;;  %v18930_v4 = vld [vmem:[%s21003_s24 + $0x1e4] ss:$16 sps:$4 sm:$0xff]  }
 0x775   : > { %17853 = vmatprep.mubr.msk.f32.mxu1 %vm20423_vm0, %v20422_v1  ;;  %v19845_v27 = vpop.eup %19844  ;;  %7566 = vmatprep.subr.bf16.mxu0 %v18858_v29  ;;  %v18928_v29 = vld [vmem:[%s21003_s24 + $0x1e0] ss:$16 sps:$4 sm:$0xff]  }
 0x776   : > { %v5295_v61 = vmul.f32 %v19845_v27, %v21881_v30 }
 0x779   : > { %v19847_v41 = vpop.eup %19846 }
 0x77a   : > { %v5985_v26 = vpop.xlane.xlu0 %5984  ;;  %v5473_v42 = vmul.f32 %v19847_v41, %v21886_v45  ;;  %v18859_v41 = vld [vmem:[%s21003_s24 + $0x68] ss:$16 sps:$4 sm:$0xff]  }
 0x77d   : > { %v19849_v39 = vpop.eup %19848 }
 0x77e   : > { %v5298_v23 = vpop.permute.xlu0 %5297  ;;  %v5643_v8 = vmul.f32 %v19849_v39, %v21890_v46 }
 0x77f   : > { %17852 = vmatpush3.msra.mxu1 %v5298_v23  ;;  %v18856_v23 = vld [vmem:[%s21003_s24 + $0x60] ss:$16 sps:$4 sm:$0xff]  }
 0x780   : > { %17854 = vmatmul.mubr.msk.f32.vlgmr.msra.gmra.mrb[26].mxu1 %vm4081_vm2, %v5295_v61  ;;  %17861 = vmatprep.subr.mxu1 %v20422_v1 }
 0x781   : > { %17862 = vmatpush3.msra.mxu1 %v21668_v62  ;;  %17863 = vmatprep.mubr.msk.f32.mxu1 %vm20423_vm0, %v20422_v1 }
 0x782   : > { %17871 = vmatprep.subr.mxu1 %v20422_v1  ;;  %7567 = vmatpush1.bf16.msra.mxu0 %v18856_v23 }
 0x784   : > { %17864 = vmatmul.mubr.msk.f32.vlgmr.msra.gmra.mrb[28].mxu1 %vm4081_vm2, %v5473_v42  ;;  %v18864_v42 = vld [vmem:[%s21003_s24 + $0x84] ss:$16 sps:$4 sm:$0xff]  }
 0x785   : > { %17873 = vmatprep.mubr.msk.f32.mxu1 %vm20423_vm0, %v20422_v1  ;;  %7568 = vmatprep.subr.bf16.mxu0 %v18864_v42  ;;  %v18936_v42 = vld [vmem:[%s21003_s24 + $0x204] ss:$16 sps:$4 sm:$0xff]  }
 0x7a3   : > { %v5815_v30 = vpop.xlane.xlu1 %5814 }
 0x7a4   : > { %19850 = vrcp.f32 %v5815_v30  ;;  %v18867_v30 = vld [vmem:[%s21003_s24 + $0x8c] ss:$16 sps:$4 sm:$0xff]  }
 0x7a5   : > { %19852 = vrcp.f32 %v5985_v26  ;;  %v18861_v26 = vld [vmem:[%s21003_s24 + $0x6c] ss:$16 sps:$4 sm:$0xff]  }
 0x7a7   : > { %v5646_v62 = vpop.permute.xlu1 %5645 }
 0x7a8   : > { %17872 = vmatpush3.msra.mxu1 %v5646_v62  ;;  %v18862_v62 = vld [vmem:[%s21003_s24 + $0x80] ss:$16 sps:$4 sm:$0xff]  }
 0x7a9   : > { %17874 = vmatmul.mubr.msk.f32.vlgmr.msra.gmra.mrb[30].mxu1 %vm4081_vm2, %v5643_v8  ;;  %17881 = vmatprep.subr.mxu1 %v20422_v1 }
 0x7aa   : > { %17882 = vmatpush3.msra.mxu1 %v21672_v0  ;;  %17883 = vmatprep.mubr.msk.f32.mxu1 %vm20423_vm0, %v20422_v1 }
 0x7ab   : > { %17891 = vmatprep.subr.mxu1 %v20422_v1  ;;  %v5990_v2 = vpop.permute.xlu1 %5989  ;;  %7569 = vmatpush1.bf16.msra.mxu0 %v18862_v62 }
 0x7ae   : > { %v19851_v45 = vpop.eup %19850 }
 0x7af   : > { %v5817_v11 = vmul.f32 %v19851_v45, %v21905_v49  ;;  %v19853_v12 = vpop.eup %19852  ;;  %v18865_v45 = vld [vmem:[%s21003_s24 + $0x88] ss:$16 sps:$4 sm:$0xff]  }
 0x7b0   : > { %v5987_v46 = vmul.f32 %v19853_v12, %v21894_v43  ;;  %v18873_v12 = vld [vmem:[%s21003_s24 + $0xac] ss:$16 sps:$4 sm:$0xff]  }
 0x7b1   : > { %17884 = vmatmul.mubr.msk.f32.vlgmr.msra.gmra.mrb[32].mxu1 %vm4081_vm2, %v5817_v11  ;;  %v18870_v11 = vld [vmem:[%s21003_s24 + $0xa4] ss:$16 sps:$4 sm:$0xff]  }
 0x7b2   : > { %17892 = vmatpush3.msra.mxu1 %v5990_v2  ;;  %17893 = vmatprep.mubr.msk.f32.mxu1 %vm20423_vm0, %v20422_v1  ;;  %v18868_v2 = vld [vmem:[%s21003_s24 + $0xa0] ss:$16 sps:$4 sm:$0xff]  }
 0x7b3   : > { %17901 = vmatprep.subr.mxu1 %v20422_v1  ;;  %7570 = vmatprep.subr.bf16.mxu0 %v18870_v11 }
 0x7b4   : > { %7571 = vmatpush1.bf16.msra.mxu0 %v18868_v2 }
 0x7b5   : > { %17894 = vmatmul.mubr.msk.f32.vlgmr.msra.gmra.mrb[34].mxu1 %vm4081_vm2, %v5987_v46  ;;  %v18871_v46 = vld [vmem:[%s21003_s24 + $0xa8] ss:$16 sps:$4 sm:$0xff]  }
 0x7b6   : > { %17902 = vmatpush3.msra.mxu1 %v21763_v36  ;;  %17903 = vmatprep.mubr.msk.f32.mxu1 %vm20423_vm0, %v20422_v1 }
 0x7b7   : > { %17911 = vmatprep.subr.mxu1 %v20422_v1 }
 0x7dc   : > { %v6159_v0 = vpop.xlane.xlu1 %6158 }
 0x7dd   : > { %19854 = vrcp.f32 %v6159_v0  ;;  %v18876_v0 = vld [vmem:[%s21003_s24 + $0xc4] ss:$16 sps:$4 sm:$0xff]  }
 0x7de   : > { %7572 = vmatprep.subr.bf16.mxu0 %v18876_v0 }
 0x7e0   : > { %v6329_v49 = vpop.xlane.xlu0 %6328 }
 0x7e1   : > { %19856 = vrcp.f32 %v6329_v49  ;;  %v18879_v49 = vld [vmem:[%s21003_s24 + $0xcc] ss:$16 sps:$4 sm:$0xff]  }
 0x7e4   : > { %v6503_v58 = vpop.xlane.xlu1 %6502 }
 0x7e5   : > { %19858 = vrcp.f32 %v6503_v58  ;;  %v18874_v58 = vld [vmem:[%s21003_s24 + $0xc0] ss:$16 sps:$4 sm:$0xff]  }
 0x7e6   : > { %7573 = vmatpush1.bf16.msra.mxu0 %v18874_v58 }
 0x7e7   : > { %v19855_v28 = vpop.eup %19854 }
 0x7e8   : > { %v6161_v43 = vmul.f32 %v19855_v28, %v21924_v55  ;;  %v6673_v22 = vpop.xlane.xlu0 %6672  ;;  %v6334_v9 = vpop.permute.xlu1 %6333  ;;  %v18877_v28 = vld [vmem:[%s21003_s24 + $0xc8] ss:$16 sps:$4 sm:$0xff]  }
 0x7e9   : > { %19860 = vrcp.f32 %v6673_v22  ;;  %v18885_v22 = vld [vmem:[%s21003_s24 + $0xec] ss:$16 sps:$4 sm:$0xff]  }
 0x7ea   : > { %17904 = vmatmul.mubr.msk.f32.vlgmr.msra.gmra.mrb[36].mxu1 %vm4081_vm2, %v6161_v43  ;;  %v18882_v43 = vld [vmem:[%s21003_s24 + $0xe4] ss:$16 sps:$4 sm:$0xff]  }
 0x7eb   : > { %v19857_v36 = vpop.eup %19856  ;;  %v4162_v31 = vpop.f32.mrb[12].mxu1  ;;  %17912 = vmatpush3.msra.mxu1 %v6334_v9  ;;  %17913 = vmatprep.mubr.msk.f32.mxu1 %vm20423_vm0, %v20422_v1  ;;  %v18880_v9 = vld [vmem:[%s21003_s24 + $0xe0] ss:$16 sps:$4 sm:$0xff]  }
 0x7ec   : > { %v6331_v16 = vmul.f32 %v19857_v36, %v21928_v60  ;;  %4166 = vst.msk [vmem:[#allocation3] sm:$0xff] %vm3998_vm1, %v4162_v31  ;;  %v17785_v50 = vpop.f32.mrb[13].mxu1  ;;  %17921 = vmatprep.subr.mxu1 %v20422_v1  ;;  %v6678_v7 = vpop.permute.xlu0 %6677  ;;  %7574 = vmatprep.subr.bf16.mxu0 %v18882_v43  ;;  %v18883_v36 = vld [vmem:[%s21003_s24 + $0xe8] ss:$16 sps:$4 sm:$0xff]   ;;  %v18888_v31 = vld [vmem:[%s21003_s24 + $0x104] ss:$16 sps:$4 sm:$0xff]  }
 0x7ed   : > { %7575 = vmatpush1.bf16.msra.mxu0 %v18880_v9  ;;  %v18886_v50 = vld [vmem:[%s21003_s24 + $0x100] ss:$16 sps:$4 sm:$0xff]  }
 0x7ee   : > { %17914 = vmatmul.mubr.msk.f32.vlgmr.msra.gmra.mrb[38].mxu1 %vm4081_vm2, %v6331_v16  ;;  %v18891_v16 = vld [vmem:[%s21003_s24 + $0x10c] ss:$16 sps:$4 sm:$0xff]   ;;  %7576 = vmatprep.subr.bf16.mxu0 %v18888_v31 }
 0x7ef   : > { %v19859_v55 = vpop.eup %19858  ;;  %17922 = vmatpush3.msra.mxu1 %v21766_v40  ;;  %17923 = vmatprep.mubr.msk.f32.mxu1 %vm20423_vm0, %v20422_v1 }
 0x7f0   : > { %v6505_v15 = vmul.f32 %v19859_v55, %v21932_v32  ;;  %17931 = vmatprep.subr.mxu1 %v20422_v1  ;;  %v18889_v55 = vld [vmem:[%s21003_s24 + $0x108] ss:$16 sps:$4 sm:$0xff]  }
 0x7f1   : > { %7577 = vmatpush1.bf16.msra.mxu0 %v18886_v50 }
 0x7f2   : > { %17924 = vmatmul.mubr.msk.f32.vlgmr.msra.gmra.mrb[40].mxu1 %vm4081_vm2, %v6505_v15  ;;  %v18894_v15 = vld [vmem:[%s21003_s24 + $0x124] ss:$16 sps:$4 sm:$0xff]  }
 0x7f3   : > { %v19861_v60 = vpop.eup %19860  ;;  %17932 = vmatpush3.msra.mxu1 %v6678_v7  ;;  %17933 = vmatprep.mubr.msk.f32.mxu1 %vm20423_vm0, %v20422_v1  ;;  %v18897_v7 = vld [vmem:[%s21003_s24 + $0x12c] ss:$16 sps:$4 sm:$0xff]  }
 0x7f4   : > { %v6675_v13 = vmul.f32 %v19861_v60, %v21936_v17  ;;  %7646 = vmatprep.subr.bf16.mxu1 %v18843_v35  ;;  %v18892_v60 = vld [vmem:[%s21003_s24 + $0x120] ss:$16 sps:$4 sm:$0xff]   ;;  %7578 = vmatprep.subr.bf16.mxu0 %v18894_v15  ;;  %v18918_v35 = vld [vmem:[%s21003_s24 + $0x1a4] ss:$16 sps:$4 sm:$0xff]   ;;  %v18937_v15 = vld [vmem:[%s21003_s24 + $0x208] ss:$16 sps:$4 sm:$0xff]  }
 0x7f5   : > { %7579 = vmatpush1.bf16.msra.mxu0 %v18892_v60  ;;  %v18942_v60 = vld [vmem:[%s21003_s24 + $0x224] ss:$16 sps:$4 sm:$0xff]  }
 0x7f6   : > { %17934 = vmatmul.mubr.msk.f32.vlgmr.msra.gmra.mrb[42].mxu1 %vm4081_vm2, %v6675_v13  ;;  %v18895_v13 = vld [vmem:[%s21003_s24 + $0x128] ss:$16 sps:$4 sm:$0xff]  }
 0x7f7   : > { %7647 = vmatpush1.bf16.msra.mxu1 %v18841_v47 }
 0x7f8   : > { %7648 = vmatprep.subr.bf16.mxu1 %v18849_v54  ;;  %v18922_v54 = vld [vmem:[%s21003_s24 + $0x1c0] ss:$16 sps:$4 sm:$0xff]  }
 0x7fb   : > { %7649 = vmatpush1.bf16.msra.mxu1 %v18847_v5  ;;  %v18924_v5 = vld [vmem:[%s21003_s24 + $0x1c4] ss:$16 sps:$4 sm:$0xff]  }
 0x7fc   : > { %7650 = vmatprep.subr.bf16.mxu1 %v18855_v59  ;;  %v18927_v59 = vld [vmem:[%s21003_s24 + $0x1cc] ss:$16 sps:$4 sm:$0xff]  }
 0x7ff   : > { %7651 = vmatpush1.bf16.msra.mxu1 %v18853_v20 }
 0x800   : > { %7652 = vmatprep.subr.bf16.mxu1 %v18861_v26 }
 0x803   : > { %7653 = vmatpush1.bf16.msra.mxu1 %v18859_v41 }
 0x804   : > { %7654 = vmatprep.subr.bf16.mxu1 %v18867_v30  ;;  %v18939_v30 = vld [vmem:[%s21003_s24 + $0x20c] ss:$16 sps:$4 sm:$0xff]  }
 0x807   : > { %7655 = vmatpush1.bf16.msra.mxu1 %v18865_v45 }
 0x808   : > { %7656 = vmatprep.subr.bf16.mxu1 %v18873_v12 }
 0x80b   : > { %7657 = vmatpush1.bf16.msra.mxu1 %v18871_v46 }
 0x80c   : > { %7658 = vmatprep.subr.bf16.mxu1 %v18879_v49 }
 0x80f   : > { %7659 = vmatpush1.bf16.msra.mxu1 %v18877_v28 }
 0x810   : > { %7660 = vmatprep.subr.bf16.mxu1 %v18885_v22 }
 0x813   : > { %7661 = vmatpush1.bf16.msra.mxu1 %v18883_v36 }
 0x814   : > { %7662 = vmatprep.subr.bf16.mxu1 %v18891_v16  ;;  %v18934_v16 = vld [vmem:[%s21003_s24 + $0x200] ss:$16 sps:$4 sm:$0xff]  }
 0x817   : > { %7663 = vmatpush1.bf16.msra.mxu1 %v18889_v55 }
 0x818   : > { %7664 = vmatprep.subr.bf16.mxu1 %v18897_v7 }
 0x81b   : > { %7665 = vmatpush1.bf16.msra.mxu1 %v18895_v13  ;;  %v18945_v13 = vld [vmem:[%s21003_s24 + $0x22c] ss:$16 sps:$4 sm:$0xff]  }
 0x833   : > { %v4336_v40 = vpop.f32.mrb[14].mxu1 }
 0x834   : > { %v17795_v44 = vpop.f32.mrb[15].mxu1  ;;  %4341 = vrot.lane.b32.xlu0 %v4336_v40, %s20424_s15  ;;  %v18900_v40 = vld [vmem:[%s21003_s24 + $0x144] ss:$16 sps:$4 sm:$0xff]  }
 0x835   : > { %v18903_v44 = vld [vmem:[%s21003_s24 + $0x14c] ss:$16 sps:$4 sm:$0xff]   ;;  %7580 = vmatprep.subr.bf16.mxu0 %v18900_v40  ;;  %v18940_v40 = vld [vmem:[%s21003_s24 + $0x220] ss:$16 sps:$4 sm:$0xff]  }
 0x836   : > { %7666 = vmatprep.subr.bf16.mxu1 %v18903_v44  ;;  %v18943_v44 = vld [vmem:[%s21003_s24 + $0x228] ss:$16 sps:$4 sm:$0xff]  }
 0x837   : > { %v4507_v32 = vpop.f32.mrb[16].mxu1 }
 0x838   : > { %4511 = vst.msk [vmem:[#allocation3 + $0x8] sm:$0xff] %vm3998_vm1, %v4507_v32  ;;  %v17805_v24 = vpop.f32.mrb[17].mxu1  ;;  %v18898_v32 = vld [vmem:[%s21003_s24 + $0x140] ss:$16 sps:$4 sm:$0xff]  }
 0x839   : > { %v18901_v24 = vld [vmem:[%s21003_s24 + $0x148] ss:$16 sps:$4 sm:$0xff]   ;;  %7581 = vmatpush1.bf16.msra.mxu0 %v18898_v32  ;;  %v18948_v32 = vld [vmem:[%s21003_s24 + $0x244] ss:$16 sps:$4 sm:$0xff]  }
 0x83a   : > { %7667 = vmatpush1.bf16.msra.mxu1 %v18901_v24  ;;  %v18951_v24 = vld [vmem:[%s21003_s24 + $0x24c] ss:$16 sps:$4 sm:$0xff]  }
 0x83b   : > { %v4681_v25 = vpop.f32.mrb[18].mxu1 }
 0x83c   : > { %v17815_v19 = vpop.f32.mrb[19].mxu1  ;;  %4686 = vrot.lane.b32.xlu1 %v4681_v25, %s20424_s15  ;;  %v18906_v25 = vld [vmem:[%s21003_s24 + $0x164] ss:$16 sps:$4 sm:$0xff]  }
 0x83d   : > { %v18909_v19 = vld [vmem:[%s21003_s24 + $0x16c] ss:$16 sps:$4 sm:$0xff]   ;;  %7582 = vmatprep.subr.bf16.mxu0 %v18906_v25  ;;  %v18946_v25 = vld [vmem:[%s21003_s24 + $0x240] ss:$16 sps:$4 sm:$0xff]  }
 0x83e   : > { %7668 = vmatprep.subr.bf16.mxu1 %v18909_v19  ;;  %v18949_v19 = vld [vmem:[%s21003_s24 + $0x248] ss:$16 sps:$4 sm:$0xff]  }
 0x83f   : > { %v4851_v1 = vpop.f32.mrb[20].mxu1 }
 0x840   : > { %4855 = vst.msk [vmem:[#allocation3 + $0x10] sm:$0xff] %vm3998_vm1, %v4851_v1  ;;  %v17825_v17 = vpop.f32.mrb[21].mxu1  ;;  %v18904_v1 = vld [vmem:[%s21003_s24 + $0x160] ss:$16 sps:$4 sm:$0xff]  }
 0x841   : > { %v18907_v17 = vld [vmem:[%s21003_s24 + $0x168] ss:$16 sps:$4 sm:$0xff]   ;;  %7583 = vmatpush1.bf16.msra.mxu0 %v18904_v1  ;;  %v18954_v1 = vld [vmem:[%s21003_s24 + $0x264] ss:$16 sps:$4 sm:$0xff]  }
 0x842   : > { %7669 = vmatpush1.bf16.msra.mxu1 %v18907_v17  ;;  %v18957_v17 = vld [vmem:[%s21003_s24 + $0x26c] ss:$16 sps:$4 sm:$0xff]  }
 0x843   : > { %v5025_v34 = vpop.f32.mrb[22].mxu1 }
 0x844   : > { %v17835_v33 = vpop.f32.mrb[23].mxu1 }
 0x845   : > { %v18915_v33 = vld [vmem:[%s21003_s24 + $0x18c] ss:$16 sps:$4 sm:$0xff]  }
 0x846   : > { %7670 = vmatprep.subr.bf16.mxu1 %v18915_v33  ;;  %v18955_v33 = vld [vmem:[%s21003_s24 + $0x268] ss:$16 sps:$4 sm:$0xff]  }
 0x847   : > { %v5195_v37 = vpop.f32.mrb[24].mxu1 }
 0x848   : > { %5199 = vst.msk [vmem:[#allocation3 + $0x18] sm:$0xff] %vm3998_vm1, %v5195_v37  ;;  %v17845_v48 = vpop.f32.mrb[25].mxu1  ;;  %v18910_v37 = vld [vmem:[%s21003_s24 + $0x180] ss:$16 sps:$4 sm:$0xff]  }
 0x849   : > { %v18913_v48 = vld [vmem:[%s21003_s24 + $0x188] ss:$16 sps:$4 sm:$0xff]  }
 0x84a   : > { %7671 = vmatpush1.bf16.msra.mxu1 %v18913_v48  ;;  %v18963_v48 = vld [vmem:[%s21003_s24 + $0x28c] ss:$16 sps:$4 sm:$0xff]  }
 0x84b   : > { %7672 = vmatprep.subr.bf16.mxu1 %v18921_v57  ;;  %v18967_v57 = vld [vmem:[%s21003_s24 + $0x2a8] ss:$16 sps:$4 sm:$0xff]  }
 0x84e   : > { %7673 = vmatpush1.bf16.msra.mxu1 %v18919_v14  ;;  %v18964_v14 = vld [vmem:[%s21003_s24 + $0x2a0] ss:$16 sps:$4 sm:$0xff]  }
 0x84f   : > { %7674 = vmatprep.subr.bf16.mxu1 %v18927_v59  ;;  %v18973_v59 = vld [vmem:[%s21003_s24 + $0x2c8] ss:$16 sps:$4 sm:$0xff]  }
 0x852   : > { %7675 = vmatpush1.bf16.msra.mxu1 %v18925_v63  ;;  %v18970_v63 = vld [vmem:[%s21003_s24 + $0x2c0] ss:$16 sps:$4 sm:$0xff]  }
 0x853   : > { %v5369_v27 = vpop.f32.mrb[26].mxu1 }
 0x854   : > { %5374 = vrot.lane.b32.xlu0 %v5369_v27, %s20424_s15  ;;  %v17855_v61 = vpop.f32.mrb[27].mxu1  ;;  %v18931_v27 = vld [vmem:[%s21003_s24 + $0x1e8] ss:$16 sps:$4 sm:$0xff]  }
 0x855   : > { %v18933_v61 = vld [vmem:[%s21003_s24 + $0x1ec] ss:$16 sps:$4 sm:$0xff]  }
 0x856   : > { %7676 = vmatprep.subr.bf16.mxu1 %v18933_v61  ;;  %v18987_v61 = vld [vmem:[%s21003_s24 + $0x30c] ss:$16 sps:$4 sm:$0xff]  }
 0x857   : > { %v5543_v39 = vpop.f32.mrb[28].mxu1  ;;  %7677 = vmatpush1.bf16.msra.mxu1 %v18931_v27  ;;  %v18984_v27 = vld [vmem:[%s21003_s24 + $0x304] ss:$16 sps:$4 sm:$0xff]  }
 0x858   : > { %5547 = vst.msk [vmem:[#allocation3 + $0x20] sm:$0xff] %vm3998_vm1, %v5543_v39  ;;  %5030 = vrot.lane.b32.xlu0 %v5025_v34, %s20424_s15  ;;  %v17865_v8 = vpop.f32.mrb[29].mxu1  ;;  %v18912_v34 = vld [vmem:[%s21003_s24 + $0x184] ss:$16 sps:$4 sm:$0xff]   ;;  %7689 = vmatprep.subr.bf16.mxu1 %v18939_v30  ;;  %v18993_v30 = vld [vmem:[%s21003_s24 + $0x32c] ss:$16 sps:$4 sm:$0xff]  }
 0x859   : > { %7584 = vmatprep.subr.bf16.mxu0 %v18912_v34  ;;  %v18952_v34 = vld [vmem:[%s21003_s24 + $0x260] ss:$16 sps:$4 sm:$0xff]  }
 0x85a   : > { %7585 = vmatpush1.bf16.msra.mxu0 %v18910_v37  ;;  %v18960_v37 = vld [vmem:[%s21003_s24 + $0x284] ss:$16 sps:$4 sm:$0xff]  }
 0x85b   : > { %7586 = vmatprep.subr.bf16.mxu0 %v18918_v35  ;;  %v18966_v35 = vld [vmem:[%s21003_s24 + $0x2a4] ss:$16 sps:$4 sm:$0xff]  }
 0x85e   : > { %7587 = vmatpush1.bf16.msra.mxu0 %v18916_v52  ;;  %v18961_v52 = vld [vmem:[%s21003_s24 + $0x288] ss:$16 sps:$4 sm:$0xff]  }
 0x85f   : > { %7588 = vmatprep.subr.bf16.mxu0 %v18924_v5  ;;  %v18975_v5 = vld [vmem:[%s21003_s24 + $0x2cc] ss:$16 sps:$4 sm:$0xff]  }
 0x862   : > { %7589 = vmatpush1.bf16.msra.mxu0 %v18922_v54  ;;  %v18972_v54 = vld [vmem:[%s21003_s24 + $0x2c4] ss:$16 sps:$4 sm:$0xff]  }
 0x863   : > { %7590 = vmatprep.subr.bf16.mxu0 %v18930_v4  ;;  %v18978_v4 = vld [vmem:[%s21003_s24 + $0x2e4] ss:$16 sps:$4 sm:$0xff]  }
 0x866   : > { %7591 = vmatpush1.bf16.msra.mxu0 %v18928_v29  ;;  %v18976_v29 = vld [vmem:[%s21003_s24 + $0x2e0] ss:$16 sps:$4 sm:$0xff]  }
 0x867   : > { %7603 = vmatprep.subr.bf16.mxu0 %v18936_v42  ;;  %v18990_v42 = vld [vmem:[%s21003_s24 + $0x324] ss:$16 sps:$4 sm:$0xff]  }
 0x87c   : > { %v5717_v38 = vpop.f32.mrb[30].mxu1 }
 0x87d   : > { %v17875_v47 = vpop.f32.mrb[31].mxu1 }
 0x87e   : > { %v18969_v47 = vld [vmem:[%s21003_s24 + $0x2ac] ss:$16 sps:$4 sm:$0xff]  }
 0x884   : > { %v5887_v20 = vpop.f32.mrb[32].mxu1 }
 0x885   : > { %5891 = vst.msk [vmem:[#allocation3 + $0x28] sm:$0xff] %vm3998_vm1, %v5887_v20  ;;  %v17885_v26 = vpop.f32.mrb[33].mxu1  ;;  %v18981_v20 = vld [vmem:[%s21003_s24 + $0x2ec] ss:$16 sps:$4 sm:$0xff]  }
 0x886   : > { %v18979_v26 = vld [vmem:[%s21003_s24 + $0x2e8] ss:$16 sps:$4 sm:$0xff]  }
 0x888   : > { %v6061_v23 = vpop.f32.mrb[34].mxu1 }
 0x889   : > { %6066 = vrot.lane.b32.xlu1 %v6061_v23, %s20424_s15  ;;  %v17895_v41 = vpop.f32.mrb[35].mxu1  ;;  %v18982_v23 = vld [vmem:[%s21003_s24 + $0x300] ss:$16 sps:$4 sm:$0xff]  }
 0x88a   : > { %v18985_v41 = vld [vmem:[%s21003_s24 + $0x308] ss:$16 sps:$4 sm:$0xff]  }
 0x88d   : > { %5722 = vrot.lane.b32.xlu1 %v5717_v38, %s20424_s15  ;;  %v18958_v38 = vld [vmem:[%s21003_s24 + $0x280] ss:$16 sps:$4 sm:$0xff]  }
 0x8a6   : > { %v4342_v39 = vpop.permute.xlu0 %4341 }
 0x8a7   : > { %4345 = vst.msk [vmem:[#allocation3] sm:$0xff] %vm4344_vm3, %v4342_v39  ;;  %v18988_v39 = vld [vmem:[%s21003_s24 + $0x320] ss:$16 sps:$4 sm:$0xff]  }
 0x8ae   : > { %v4687_v8 = vpop.permute.xlu1 %4686  ;;  %v6758_v50 = vld [vmem:[#allocation3] sm:$0xff] }
 0x8af   : > { %4689 = vst.msk [vmem:[#allocation3 + $0x8] sm:$0xff] %vm4344_vm3, %v4687_v8  ;;  %v18991_v8 = vld [vmem:[%s21003_s24 + $0x328] ss:$16 sps:$4 sm:$0xff]  }
 0x8b6   : > { %v6759_v9 = vld [vmem:[#allocation3 + $0x8] sm:$0xff] }
 0x8bd   : > { %v6231_v62 = vpop.f32.mrb[36].mxu1 }
 0x8be   : > { %6235 = vst.msk [vmem:[#allocation3 + $0x30] sm:$0xff] %vm3998_vm1, %v6231_v62  ;;  %v17905_v45 = vpop.f32.mrb[37].mxu1  ;;  %v18996_v62 = vld [vmem:[%s21003_s24 + $0x344] ss:$16 sps:$4 sm:$0xff]  }
 0x8bf   : > { %v18999_v45 = vld [vmem:[%s21003_s24 + $0x34c] ss:$16 sps:$4 sm:$0xff]  }
 0x8c1   : > { %v6405_v11 = vpop.f32.mrb[38].mxu1 }
 0x8c2   : > { %v17915_v12 = vpop.f32.mrb[39].mxu1 }
 0x8c3   : > { %v18997_v12 = vld [vmem:[%s21003_s24 + $0x348] ss:$16 sps:$4 sm:$0xff]  }
 0x8c5   : > { %v6575_v2 = vpop.f32.mrb[40].mxu1 }
 0x8c6   : > { %6579 = vst.msk [vmem:[#allocation3 + $0x38] sm:$0xff] %vm3998_vm1, %v6575_v2  ;;  %v5375_v46 = vpop.permute.xlu0 %5374  ;;  %v17925_v0 = vpop.f32.mrb[41].mxu1  ;;  %v19002_v2 = vld [vmem:[%s21003_s24 + $0x364] ss:$16 sps:$4 sm:$0xff]  }
 0x8c7   : > { %5377 = vst.msk [vmem:[#allocation3 + $0x18] sm:$0xff] %vm4344_vm3, %v5375_v46  ;;  %v19005_v46 = vld [vmem:[%s21003_s24 + $0x36c] ss:$16 sps:$4 sm:$0xff]   ;;  %v19000_v0 = vld [vmem:[%s21003_s24 + $0x360] ss:$16 sps:$4 sm:$0xff]  }
 0x8c9   : > { %v6749_v49 = vpop.f32.mrb[42].mxu1 }
 0x8ca   : > { %v5031_v58 = vpop.permute.xlu0 %5030  ;;  %6754 = vrot.lane.b32.xlu1 %v6749_v49, %s20424_s15  ;;  %v17935_v28 = vpop.f32.mrb[43].mxu1  ;;  %v19003_v49 = vld [vmem:[%s21003_s24 + $0x368] ss:$16 sps:$4 sm:$0xff]  }
 0x8cb   : > { %5033 = vst.msk [vmem:[#allocation3 + $0x10] sm:$0xff] %vm4344_vm3, %v5031_v58  ;;  %v19008_v58 = vld [vmem:[%s21003_s24 + $0x384] ss:$16 sps:$4 sm:$0xff]   ;;  %v19011_v28 = vld [vmem:[%s21003_s24 + $0x38c] ss:$16 sps:$4 sm:$0xff]  }
 0x8ce   : > { %6410 = vrot.lane.b32.xlu1 %v6405_v11, %s20424_s15  ;;  %v18994_v11 = vld [vmem:[%s21003_s24 + $0x340] ss:$16 sps:$4 sm:$0xff]  }
 0x8fb   : > { %v6067_v43 = vpop.permute.xlu1 %6066 }
 0x8fc   : > { %6069 = vst.msk [vmem:[#allocation3 + $0x28] sm:$0xff] %vm4344_vm3, %v6067_v43  ;;  %v19006_v43 = vld [vmem:[%s21003_s24 + $0x380] ss:$16 sps:$4 sm:$0xff]  }
 0x8ff   : > { %v5723_v22 = vpop.permute.xlu1 %5722 }
 0x900   : > { %5725 = vst.msk [vmem:[#allocation3 + $0x20] sm:$0xff] %vm4344_vm3, %v5723_v22  ;;  %v19009_v22 = vld [vmem:[%s21003_s24 + $0x388] ss:$16 sps:$4 sm:$0xff]  }
 0x903   : > { %v6763_v36 = vld [vmem:[#allocation3 + $0x28] sm:$0xff] }
 0x904   : > { %v6767_v31 = vpack.c.bf16 %v6763_v36, %v6759_v9  ;;  %v19014_v9 = vld [vmem:[%s21003_s24 + $0x3a4] ss:$16 sps:$4 sm:$0xff]   ;;  %v19017_v36 = vld [vmem:[%s21003_s24 + $0x3ac] ss:$16 sps:$4 sm:$0xff]  }
 0x906   : > { %7592 = vmatprep.mubr.bf16.mxu0 %v6767_v31  ;;  %7678 = vmatprep.mubr.bf16.mxu1 %v6767_v31  ;;  %v19012_v31 = vld [vmem:[%s21003_s24 + $0x3a0] ss:$16 sps:$4 sm:$0xff]  }
 0x907   : > { %v6762_v55 = vld [vmem:[#allocation3 + $0x20] sm:$0xff] }
 0x908   : > { %v6766_v7 = vpack.c.bf16 %v6762_v55, %v6758_v50  ;;  %v19020_v55 = vld [vmem:[%s21003_s24 + $0x3c4] ss:$16 sps:$4 sm:$0xff]  }
 0x90a   : > { %7593 = vmatmul.mubr.bf16.vlgmr.msra.gmra.mrb[44].mxu0 %v6766_v7  ;;  %7679 = vmatmul.mubr.bf16.vlgmr.msra.gmra.mrb[44].mxu1 %v6766_v7  ;;  %v19018_v7 = vld [vmem:[%s21003_s24 + $0x3c0] ss:$16 sps:$4 sm:$0xff]  }
 0x90b   : > { %7604 = vmatpush1.bf16.msra.mxu0 %v18934_v16  ;;  %7690 = vmatpush1.bf16.msra.mxu1 %v18937_v15  ;;  %v19015_v16 = vld [vmem:[%s21003_s24 + $0x3a8] ss:$16 sps:$4 sm:$0xff]   ;;  %v19023_v15 = vld [vmem:[%s21003_s24 + $0x3cc] ss:$16 sps:$4 sm:$0xff]  }
 0x90c   : > { %7605 = vmatprep.subr.bf16.mxu0 %v18942_v60  ;;  %7691 = vmatprep.subr.bf16.mxu1 %v18945_v13  ;;  %v19021_v60 = vld [vmem:[%s21003_s24 + $0x3c8] ss:$16 sps:$4 sm:$0xff]  }
 0x90f   : > { %7606 = vmatpush1.bf16.msra.mxu0 %v18940_v40  ;;  %7692 = vmatpush1.bf16.msra.mxu1 %v18943_v44  ;;  %v19026_v40 = vld [vmem:[%s21003_s24 + $0x3e4] ss:$16 sps:$4 sm:$0xff]   ;;  %v19029_v44 = vld [vmem:[%s21003_s24 + $0x3ec] ss:$16 sps:$4 sm:$0xff]  }
 0x910   : > { %7607 = vmatprep.subr.bf16.mxu0 %v18948_v32  ;;  %7693 = vmatprep.subr.bf16.mxu1 %v18951_v24  ;;  %v19024_v32 = vld [vmem:[%s21003_s24 + $0x3e0] ss:$16 sps:$4 sm:$0xff]   ;;  %v6761_v24 = vld [vmem:[#allocation3 + $0x18] sm:$0xff] }
 0x913   : > { %7608 = vmatpush1.bf16.msra.mxu0 %v18946_v25  ;;  %7694 = vmatpush1.bf16.msra.mxu1 %v18949_v19  ;;  %v19027_v19 = vld [vmem:[%s21003_s24 + $0x3e8] ss:$16 sps:$4 sm:$0xff]  }
 0x914   : > { %7609 = vmatprep.subr.bf16.mxu0 %v18954_v1  ;;  %7695 = vmatprep.subr.bf16.mxu1 %v18957_v17  ;;  %v6760_v17 = vld [vmem:[#allocation3 + $0x10] sm:$0xff] }
 0x917   : > { %7610 = vmatpush1.bf16.msra.mxu0 %v18952_v34  ;;  %7696 = vmatpush1.bf16.msra.mxu1 %v18955_v33 }
 0x918   : > { %7611 = vmatprep.subr.bf16.mxu0 %v18960_v37  ;;  %7697 = vmatprep.subr.bf16.mxu1 %v18963_v48  ;;  %v6898_v37 = vld [vmem:[%s770_s4] sm:$0xf]  ;;  %s23838_s4 = scalar_lea.vmem [#allocation12], %s20999_s21 }
 0x919   : > { %v6903_v48 = vrot.slane %v6898_v37, %v21514_v56 }
 0x91b   : > { %7612 = vmatpush1.bf16.msra.mxu0 %v18958_v38  ;;  %7698 = vmatpush1.bf16.msra.mxu1 %v18961_v52  ;;  %v6911_v38 = vrot.slane %v6898_v37, %v21530_v6  ;;  %v6907_v52 = vrot.slane %v6898_v37, %v21519_v10 }
 0x91c   : > { %7613 = vmatprep.subr.bf16.mxu0 %v18966_v35  ;;  %7699 = vmatprep.subr.bf16.mxu1 %v18969_v47 }
 0x91f   : > { %7614 = vmatpush1.bf16.msra.mxu0 %v18964_v14  ;;  %7700 = vmatpush1.bf16.msra.mxu1 %v18967_v57  ;;  %v6915_v14 = vrot.slane %v6898_v37, %v21553_v21  ;;  %v7889_v37 = vld [vmem:[%s21008_s20 + $0x100] sm:$0xff] }
 0x920   : > { %7615 = vmatprep.subr.bf16.mxu0 %v18972_v54  ;;  %7701 = vmatprep.subr.bf16.mxu1 %v18975_v5 }
 0x923   : > { %7616 = vmatpush1.bf16.msra.mxu0 %v18970_v63  ;;  %7702 = vmatpush1.bf16.msra.mxu1 %v18973_v59 }
 0x924   : > { %7617 = vmatprep.subr.bf16.mxu0 %v18978_v4  ;;  %7703 = vmatprep.subr.bf16.mxu1 %v18981_v20 }
 0x927   : > { %7618 = vmatpush1.bf16.msra.mxu0 %v18976_v29  ;;  %7704 = vmatpush1.bf16.msra.mxu1 %v18979_v26  ;;  %v19934_v29 = vld [vmem:[%s23836_s0] sm:$0xff] }
 0x928   : > { %7619 = vmatprep.subr.bf16.mxu0 %v18984_v27  ;;  %7705 = vmatprep.subr.bf16.mxu1 %v18987_v61 }
 0x92b   : > { %7620 = vmatpush1.bf16.msra.mxu0 %v18982_v23  ;;  %7706 = vmatpush1.bf16.msra.mxu1 %v18985_v41  ;;  %v19935_v41 = vld [vmem:[%s23836_s0 + $0x8] sm:$0xff] }
 0x92c   : > { %7621 = vmatprep.subr.bf16.mxu0 %v18990_v42  ;;  %7707 = vmatprep.subr.bf16.mxu1 %v18993_v30 }
 0x92f   : > { %7622 = vmatpush1.bf16.msra.mxu0 %v18988_v39  ;;  %7708 = vmatpush1.bf16.msra.mxu1 %v18991_v8 }
 0x930   : > { %7623 = vmatprep.subr.bf16.mxu0 %v18996_v62  ;;  %7709 = vmatprep.subr.bf16.mxu1 %v18999_v45  ;;  %v19936_v62 = vld [vmem:[%s23836_s0 + $0x20] sm:$0xff] }
 0x933   : > { %7624 = vmatpush1.bf16.msra.mxu0 %v18994_v11  ;;  %7710 = vmatpush1.bf16.msra.mxu1 %v18997_v12  ;;  %v19937_v11 = vld [vmem:[%s23836_s0 + $0x10] sm:$0xff] }
 0x934   : > { %7625 = vmatprep.subr.bf16.mxu0 %v19002_v2  ;;  %7711 = vmatprep.subr.bf16.mxu1 %v19005_v46  ;;  %v19938_v46 = vld [vmem:[%s23836_s0 + $0x28] sm:$0xff] }
 0x937   : > { %7626 = vmatpush1.bf16.msra.mxu0 %v19000_v0  ;;  %7712 = vmatpush1.bf16.msra.mxu1 %v19003_v49 }
 0x938   : > { %7627 = vmatprep.subr.bf16.mxu0 %v19008_v58  ;;  %7713 = vmatprep.subr.bf16.mxu1 %v19011_v28  ;;  %v19939_v58 = vld [vmem:[%s23836_s0 + $0x18] sm:$0xff] }
 0x93b   : > { %7628 = vmatpush1.bf16.msra.mxu0 %v19006_v43  ;;  %7714 = vmatpush1.bf16.msra.mxu1 %v19009_v22  ;;  %v19940_v43 = vld [vmem:[%s23836_s0 + $0x30] sm:$0xff] }
 0x93c   : > { %v6755_v50 = vpop.permute.xlu1 %6754  ;;  %7629 = vmatprep.subr.bf16.mxu0 %v19014_v9  ;;  %7715 = vmatprep.subr.bf16.mxu1 %v19017_v36 }
 0x93d   : > { %6757 = vst.msk [vmem:[#allocation3 + $0x38] sm:$0xff] %vm4344_vm3, %v6755_v50 }
 0x93f   : > { %7630 = vmatpush1.bf16.msra.mxu0 %v19012_v31  ;;  %7716 = vmatpush1.bf16.msra.mxu1 %v19015_v16  ;;  %v19941_v31 = vld [vmem:[%s23836_s0 + $0x38] sm:$0xff] }
 0x940   : > { %v6411_v13 = vpop.permute.xlu1 %6410  ;;  %7631 = vmatprep.subr.bf16.mxu0 %v19020_v55  ;;  %7717 = vmatprep.subr.bf16.mxu1 %v19023_v15 }
 0x941   : > { %6413 = vst.msk [vmem:[#allocation3 + $0x30] sm:$0xff] %vm4344_vm3, %v6411_v13  ;;  %v7858_v13 = vld [vmem:[%s21008_s20 + $0x8] sm:$0xff] }
 0x943   : > { %7632 = vmatpush1.bf16.msra.mxu0 %v19018_v7  ;;  %7718 = vmatpush1.bf16.msra.mxu1 %v19021_v60  ;;  %v7857_v7 = vld [vmem:[%s21008_s20] sm:$0xff] }
 0x944   : > { %7633 = vmatprep.subr.bf16.mxu0 %v19026_v40  ;;  %v6765_v25 = vld [vmem:[#allocation3 + $0x38] sm:$0xff]  ;;  %7719 = vmatprep.subr.bf16.mxu1 %v19029_v44 }
 0x945   : > { %v6769_v1 = vpack.c.bf16 %v6765_v25, %v6761_v24  ;;  %v7865_v60 = vld [vmem:[%s21008_s20 + $0x40] sm:$0xff] }
 0x946   : > { %v16676_v40 = vcombine.low %v7857_v7, %v7865_v60  ;;  %v16677_v44 = vcombine.high %v7857_v7, %v7865_v60  ;;  %v7873_v24 = vld [vmem:[%s21008_s20 + $0x80] sm:$0xff]  ;;  %v7954_v7 = vld [vmem:[%s21008_s20 + $0x308] sm:$0xff] }
 0x947   : > { %7635 = vmatprep.mubr.bf16.mxu0 %v6769_v1  ;;  %7721 = vmatprep.mubr.bf16.mxu1 %v6769_v1  ;;  %v7881_v25 = vld [vmem:[%s21008_s20 + $0xc0] sm:$0xff]  ;;  %v7962_v60 = vld [vmem:[%s21008_s20 + $0x348] sm:$0xff] }
 0x948   : > { %7634 = vmatpush1.bf16.msra.mxu0 %v19024_v32  ;;  %7720 = vmatpush1.bf16.msra.mxu1 %v19027_v19  ;;  %v6764_v34 = vld [vmem:[#allocation3 + $0x30] sm:$0xff]  ;;  %v7866_v32 = vld [vmem:[%s21008_s20 + $0x48] sm:$0xff] }
 0x949   : > { %v6768_v33 = vpack.c.bf16 %v6764_v34, %v6760_v17  ;;  %v16678_v19 = vcombine.low %v7858_v13, %v7866_v32  ;;  %v16679_v1 = vcombine.high %v7858_v13, %v7866_v32  ;;  %v16693_v17 = vcombine.high %v7873_v24, %v7881_v25  ;;  %v7874_v34 = vld [vmem:[%s21008_s20 + $0x88] sm:$0xff]  ;;  %11013 = vmatprep.subr.bf16.mxu0 %v16677_v44 }
 0x94a   : > { %v16775_v32 = vcombine.high %v7954_v7, %v7962_v60 }
 0x94b   : > { %7636 = vmatmul.mubr.bf16.vlgmr.msra.gmra.mrb[44].mxu0 %v6768_v33  ;;  %7722 = vmatmul.mubr.bf16.vlgmr.msra.gmra.mrb[44].mxu1 %v6768_v33  ;;  %v7882_v33 = vld [vmem:[%s21008_s20 + $0xc8] sm:$0xff] }
 0x94c   : > { %11099 = vmatprep.subr.bf16.mxu1 %v16679_v1  ;;  %11014 = vmatpush1.bf16.msra.mxu0 %v16676_v40  ;;  %v7978_v1 = vld [vmem:[%s21008_s20 + $0x3c8] sm:$0xff] }
 0x94d   : > { %11100 = vmatpush1.bf16.msra.mxu1 %v16678_v19  ;;  %11015 = vmatprep.subr.bf16.mxu0 %v16693_v17  ;;  %v7970_v19 = vld [vmem:[%s21008_s20 + $0x388] sm:$0xff] }
 0xa1e   : > { %v7637_v35 = vpop.f32.mrb[44].mxu0  ;;  %v7723_v47 = vpop.f32.mrb[44].mxu1 }
 0xa1f   : > { %v17960_v57 = vadd.f32 %v7637_v35, %v6903_v48  ;;  %v7639_v54 = vpop.f32.mrb[45].mxu0  ;;  %v7725_v5 = vpop.f32.mrb[45].mxu1  ;;  %v17964_v63 = vadd.f32 %v7723_v47, %v6911_v38  ;;  %v7898_v35 = vld [vmem:[%s21008_s20 + $0x148] sm:$0xff]  ;;  %v16692_v47 = vcombine.low %v7873_v24, %v7881_v25  ;;  %v7969_v24 = vld [vmem:[%s21008_s20 + $0x380] sm:$0xff] }
 0xa20   : > { %v17961_v59 = vadd.f32 %v7639_v54, %v6907_v52  ;;  %v7641_v4 = vpop.f32.mrb[46].mxu0  ;;  %v7727_v20 = vpop.f32.mrb[46].mxu1  ;;  %v17965_v30 = vadd.f32 %v7725_v5, %v6915_v14  ;;  %v7905_v5 = vld [vmem:[%s21008_s20 + $0x180] sm:$0xff] }
 0xa21   : > { %v22184_v26 = vadd.f32 %v19934_v29, %v17960_v57  ;;  %v17962_v27 = vadd.f32 %v7641_v4, %v6903_v48  ;;  %v7643_v61 = vpop.f32.mrb[47].mxu0  ;;  %v7729_v23 = vpop.f32.mrb[47].mxu1  ;;  %v17966_v39 = vadd.f32 %v7727_v20, %v6911_v38  ;;  %v22199_v12 = vadd.f32 %v19937_v11, %v17964_v63  ;;  %v7897_v38 = vld [vmem:[%s21008_s20 + $0x140] sm:$0xff]  ;;  %v7914_v4 = vld [vmem:[%s21008_s20 + $0x1c8] sm:$0xff]  ;;  %11016 = vmatpush1.bf16.msra.mxu0 %v16692_v47 }
 0xa22   : > { %v22189_v42 = vadd.f32 %v19935_v41, %v17961_v59  ;;  %v17963_v8 = vadd.f32 %v7643_v61, %v6907_v52  ;;  %v17967_v49 = vadd.f32 %v7729_v23, %v6915_v14  ;;  %v22211_v28 = vadd.f32 %v19939_v58, %v17965_v30  ;;  %v7890_v52 = vld [vmem:[%s21008_s20 + $0x108] sm:$0xff]  ;;  %v7913_v63 = vld [vmem:[%s21008_s20 + $0x1c0] sm:$0xff] }
 0xa23   : > { %v22194_v45 = vadd.f32 %v19936_v62, %v17962_v27  ;;  %v22216_v22 = vadd.f32 %v19940_v43, %v17966_v39  ;;  %v16695_v48 = vcombine.high %v7874_v34, %v7882_v33  ;;  %v16694_v14 = vcombine.low %v7874_v34, %v7882_v33  ;;  %v7906_v59 = vld [vmem:[%s21008_s20 + $0x188] sm:$0xff]  ;;  %v7921_v23 = vld [vmem:[%s21008_s20 + $0x200] sm:$0xff] }
 0xa24   : > { %v7742_v2 = vadd.f32 %v22189_v42, %v22184_v26  ;;  %v22206_v0 = vadd.f32 %v19938_v46, %v17963_v8  ;;  %v22224_v16 = vadd.f32 %v19941_v31, %v17967_v49  ;;  %v16709_v57 = vcombine.high %v7889_v37, %v7897_v38  ;;  %v7929_v41 = vld [vmem:[%s21008_s20 + $0x240] sm:$0xff]  ;;  %v7922_v30 = vld [vmem:[%s21008_s20 + $0x208] sm:$0xff] }
 0xa25   : > { %11101 = vmatprep.subr.bf16.mxu1 %v16695_v48  ;;  %v16711_v54 = vcombine.high %v7890_v52, %v7898_v35  ;;  %v16708_v20 = vcombine.low %v7889_v37, %v7897_v38  ;;  %v16710_v29 = vcombine.low %v7890_v52, %v7898_v35  ;;  %v16725_v27 = vcombine.high %v7905_v5, %v7913_v63  ;;  %v7930_v39 = vld [vmem:[%s21008_s20 + $0x248] sm:$0xff]  ;;  %v7937_v46 = vld [vmem:[%s21008_s20 + $0x280] sm:$0xff] }
 0xa26   : > { %v7747_v9 = vadd.f32 %v22206_v0, %v22194_v45  ;;  %v7743_v36 = vadd.f32 %v7742_v2, %v22199_v12  ;;  %11102 = vmatpush1.bf16.msra.mxu1 %v16694_v14  ;;  %11017 = vmatprep.subr.bf16.mxu0 %v16709_v57  ;;  %v16727_v61 = vcombine.high %v7906_v59, %v7914_v4  ;;  %v7945_v49 = vld [vmem:[%s21008_s20 + $0x2c0] sm:$0xff]  ;;  %v7938_v58 = vld [vmem:[%s21008_s20 + $0x288] sm:$0xff] }
 0xa27   : > { %11103 = vmatprep.subr.bf16.mxu1 %v16711_v54  ;;  %11018 = vmatpush1.bf16.msra.mxu0 %v16708_v20  ;;  %v16724_v8 = vcombine.low %v7905_v5, %v7913_v63  ;;  %v16726_v62 = vcombine.low %v7906_v59, %v7914_v4  ;;  %v16741_v11 = vcombine.high %v7921_v23, %v7929_v41  ;;  %v7946_v43 = vld [vmem:[%s21008_s20 + $0x2c8] sm:$0xff]  ;;  %v7977_v25 = vld [vmem:[%s21008_s20 + $0x3c0] sm:$0xff] }
 0xa28   : > { %v7744_v50 = vadd.f32 %v7743_v36, %v22211_v28  ;;  %v7748_v55 = vadd.f32 %v7747_v9, %v22216_v22  ;;  %11019 = vmatprep.subr.bf16.mxu0 %v16725_v27  ;;  %v16743_v2 = vcombine.high %v7922_v30, %v7930_v39  ;;  %v16740_v9 = vcombine.low %v7921_v23, %v7929_v41  ;;  %v7985_v48 = vld [vmem:[%s21008_s20 + $0x400] sm:$0xff]  ;;  %v7986_v52 = vld [vmem:[%s21008_s20 + $0x408] sm:$0xff] }
 0xa29   : > { %v16742_v36 = vcombine.low %v7922_v30, %v7930_v39  ;;  %v16757_v31 = vcombine.high %v7937_v46, %v7945_v49  ;;  %v16756_v13 = vcombine.low %v7937_v46, %v7945_v49  ;;  %v16758_v40 = vcombine.low %v7938_v58, %v7946_v43  ;;  %v7993_v38 = vld [vmem:[%s21008_s20 + $0x440] sm:$0xff]  ;;  %v7994_v35 = vld [vmem:[%s21008_s20 + $0x448] sm:$0xff] }
 0xa2a   : > { %7745 = vadd.xlane.f32.xlu0 %v7744_v50  ;;  %v7749_v15 = vadd.f32 %v7748_v55, %v22224_v16  ;;  %11104 = vmatpush1.bf16.msra.mxu1 %v16710_v29  ;;  %v16759_v50 = vcombine.high %v7938_v58, %v7946_v43  ;;  %v7953_v55 = vld [vmem:[%s21008_s20 + $0x300] sm:$0xff]  ;;  %v16774_v34 = vcombine.low %v7954_v7, %v7962_v60  ;;  %v8002_v59 = vld [vmem:[%s21008_s20 + $0x488] sm:$0xff] }
 0xa2b   : > { %11105 = vmatprep.subr.bf16.mxu1 %v16727_v61  ;;  %11020 = vmatpush1.bf16.msra.mxu0 %v16724_v8  ;;  %v16789_v33 = vcombine.high %v7969_v24, %v7977_v25  ;;  %v16791_v37 = vcombine.high %v7970_v19, %v7978_v1  ;;  %v16788_v47 = vcombine.low %v7969_v24, %v7977_v25  ;;  %v8001_v5 = vld [vmem:[%s21008_s20 + $0x480] sm:$0xff]  ;;  %v8010_v4 = vld [vmem:[%s21008_s20 + $0x4c8] sm:$0xff] }
 0xa2c   : > { %7750 = vadd.xlane.f32.xlu1 %v7749_v15  ;;  %11021 = vmatprep.subr.bf16.mxu0 %v16741_v11  ;;  %v7961_v15 = vld [vmem:[%s21008_s20 + $0x340] sm:$0xff]  ;;  %v16790_v14 = vcombine.low %v7970_v19, %v7978_v1  ;;  %v16805_v57 = vcombine.high %v7985_v48, %v7993_v38  ;;  %v16807_v54 = vcombine.high %v7986_v52, %v7994_v35  ;;  %v8026_v24 = vld [vmem:[%s21008_s20 + $0x548] sm:$0xff] }
 0xa2d   : > { %v16773_v44 = vcombine.high %v7953_v55, %v7961_v15  ;;  %v16772_v17 = vcombine.low %v7953_v55, %v7961_v15  ;;  %v8009_v63 = vld [vmem:[%s21008_s20 + $0x4c0] sm:$0xff]  ;;  %v16804_v20 = vcombine.low %v7985_v48, %v7993_v38  ;;  %v16806_v29 = vcombine.low %v7986_v52, %v7994_v35  ;;  %v8042_v48 = vld [vmem:[%s21008_s20 + $0x5c8] sm:$0xff] }
 0xa2e   : > { %11106 = vmatpush1.bf16.msra.mxu1 %v16726_v62  ;;  %v16821_v27 = vcombine.high %v8001_v5, %v8009_v63  ;;  %v16823_v61 = vcombine.high %v8002_v59, %v8010_v4  ;;  %v16820_v23 = vcombine.low %v8001_v5, %v8009_v63  ;;  %v16822_v41 = vcombine.low %v8002_v59, %v8010_v4  ;;  %v8058_v5 = vld [vmem:[%s21008_s20 + $0x648] sm:$0xff]  ;;  %v8065_v63 = vld [vmem:[%s21008_s20 + $0x680] sm:$0xff] }
 0xa2f   : > { %11107 = vmatprep.subr.bf16.mxu1 %v16743_v2  ;;  %11022 = vmatpush1.bf16.msra.mxu0 %v16740_v9  ;;  %v8073_v59 = vld [vmem:[%s21008_s20 + $0x6c0] sm:$0xff] }
 0xa30   : > { %11023 = vmatprep.subr.bf16.mxu0 %v16757_v31 }
 0xa32   : > { %11108 = vmatpush1.bf16.msra.mxu1 %v16742_v36 }
 0xa33   : > { %11109 = vmatprep.subr.bf16.mxu1 %v16759_v50  ;;  %11024 = vmatpush1.bf16.msra.mxu0 %v16756_v13 }
 0xa34   : > { %11025 = vmatprep.subr.bf16.mxu0 %v16773_v44  ;;  %v8025_v44 = vld [vmem:[%s21008_s20 + $0x540] sm:$0xff] }
 0xa36   : > { %11110 = vmatpush1.bf16.msra.mxu1 %v16758_v40  ;;  %v8017_v40 = vld [vmem:[%s21008_s20 + $0x500] sm:$0xff] }
 0xa37   : > { %11111 = vmatprep.subr.bf16.mxu1 %v16775_v32  ;;  %11026 = vmatpush1.bf16.msra.mxu0 %v16772_v17  ;;  %v16837_v32 = vcombine.high %v8017_v40, %v8025_v44  ;;  %v16836_v25 = vcombine.low %v8017_v40, %v8025_v44  ;;  %v8033_v17 = vld [vmem:[%s21008_s20 + $0x580] sm:$0xff] }
 0xa38   : > { %11027 = vmatprep.subr.bf16.mxu0 %v16789_v33  ;;  %v8034_v33 = vld [vmem:[%s21008_s20 + $0x588] sm:$0xff]  ;;  %v22334_v40 = vld [vmem:[%s21008_s20 + $0x800] sm:$0xff] }
 0xa39   : > { %v16854_v52 = vcombine.low %v8034_v33, %v8042_v48  ;;  %v16855_v35 = vcombine.high %v8034_v33, %v8042_v48  ;;  %v22337_v44 = vld [vmem:[%s21008_s20 + $0x840] sm:$0xff] }
 0xa3a   : > { %11112 = vmatpush1.bf16.msra.mxu1 %v16774_v34  ;;  %v8041_v34 = vld [vmem:[%s21008_s20 + $0x5c0] sm:$0xff] }
 0xa3b   : > { %11113 = vmatprep.subr.bf16.mxu1 %v16791_v37  ;;  %11028 = vmatpush1.bf16.msra.mxu0 %v16788_v47  ;;  %v16853_v37 = vcombine.high %v8033_v17, %v8041_v34  ;;  %v16852_v38 = vcombine.low %v8033_v17, %v8041_v34  ;;  %v8049_v47 = vld [vmem:[%s21008_s20 + $0x600] sm:$0xff] }
 0xa3c   : > { %11029 = vmatprep.subr.bf16.mxu0 %v16805_v57  ;;  %v8050_v57 = vld [vmem:[%s21008_s20 + $0x608] sm:$0xff] }
 0xa3e   : > { %11114 = vmatpush1.bf16.msra.mxu1 %v16790_v14  ;;  %v8057_v14 = vld [vmem:[%s21008_s20 + $0x640] sm:$0xff] }
 0xa3f   : > { %11115 = vmatprep.subr.bf16.mxu1 %v16807_v54  ;;  %11030 = vmatpush1.bf16.msra.mxu0 %v16804_v20  ;;  %v16869_v54 = vcombine.high %v8049_v47, %v8057_v14  ;;  %v16868_v4 = vcombine.low %v8049_v47, %v8057_v14  ;;  %v16871_v20 = vcombine.high %v8050_v57, %v8058_v5 }
 0xa40   : > { %11031 = vmatprep.subr.bf16.mxu0 %v16821_v27  ;;  %v8074_v27 = vld [vmem:[%s21008_s20 + $0x6c8] sm:$0xff] }
 0xa42   : > { %11116 = vmatpush1.bf16.msra.mxu1 %v16806_v29  ;;  %v8066_v29 = vld [vmem:[%s21008_s20 + $0x688] sm:$0xff] }
 0xa43   : > { %11117 = vmatprep.subr.bf16.mxu1 %v16823_v61  ;;  %11032 = vmatpush1.bf16.msra.mxu0 %v16820_v23  ;;  %v16870_v61 = vcombine.low %v8050_v57, %v8058_v5  ;;  %v16885_v23 = vcombine.high %v8065_v63, %v8073_v59 }
 0xa44   : > { %11033 = vmatprep.subr.bf16.mxu0 %v16837_v32  ;;  %v16932_v32 = vcombine.low %v22334_v40, %v22337_v44 }
 0xa46   : > { %11118 = vmatpush1.bf16.msra.mxu1 %v16822_v41  ;;  %v16887_v41 = vcombine.high %v8066_v29, %v8074_v27 }
 0xa47   : > { %11034 = vmatpush1.bf16.msra.mxu0 %v16836_v25  ;;  %v22347_v25 = vld [vmem:[%s21008_s20 + $0x848] sm:$0xff] }
 0xa48   : > { %11035 = vmatprep.subr.bf16.mxu0 %v16853_v37 }
 0xa4b   : > { %11036 = vmatpush1.bf16.msra.mxu0 %v16852_v38 }
 0xa4c   : > { %11037 = vmatprep.subr.bf16.mxu0 %v16869_v54 }
 0xa4f   : > { %11038 = vmatpush1.bf16.msra.mxu0 %v16868_v4 }
 0xa50   : > { %11039 = vmatprep.subr.bf16.mxu0 %v16885_v23 }
 0xab7   : > { %v7746_v30 = vpop.xlane.xlu0 %7745 }
 0xab8   : > { %v7753_v39 = vmul.f32 0.001953125, %v7746_v30  ;;  %v8081_v30 = vld [vmem:[%s21008_s20 + $0x700] sm:$0xff] }
 0xab9   : > { %v7751_v8 = vpop.xlane.xlu1 %7750 }
 0xaba   : > { %v22270_v62 = vsub.f32 %v22184_v26, %v7753_v39  ;;  %v22273_v11 = vsub.f32 %v22189_v42, %v7753_v39  ;;  %v7754_v2 = vmul.f32 0.001953125, %v7751_v8  ;;  %v22276_v46 = vsub.f32 %v22199_v12, %v7753_v39  ;;  %v8082_v8 = vld [vmem:[%s21008_s20 + $0x708] sm:$0xff] }
 0xabb   : > { %v22279_v49 = vsub.f32 %v22211_v28, %v7753_v39  ;;  %v8089_v39 = vld [vmem:[%s21008_s20 + $0x740] sm:$0xff] }
 0xabc   : > { %v22282_v58 = vsub.f32 %v22194_v45, %v7754_v2  ;;  %v22285_v43 = vsub.f32 %v22206_v0, %v7754_v2  ;;  %v7763_v26 = vmul.f32 %v22270_v62, %v22270_v62  ;;  %v7764_v42 = vmul.f32 %v22273_v11, %v22273_v11 }
 0xabd   : > { %v22292_v9 = vsub.f32 %v22216_v22, %v7754_v2  ;;  %v7765_v12 = vmul.f32 %v22276_v46, %v22276_v46  ;;  %v7766_v36 = vmul.f32 %v22279_v49, %v22279_v49  ;;  %v22303_v22 = vsub.f32 %v22224_v16, %v7754_v2  ;;  %v8018_v16 = vld [vmem:[%s21008_s20 + $0x508] sm:$0xff] }
 0xabe   : > { %v7771_v28 = vadd.f32 %v7764_v42, %v7763_v26  ;;  %v7767_v45 = vmul.f32 %v22282_v58, %v22282_v58  ;;  %v7768_v0 = vmul.f32 %v22285_v43, %v22285_v43  ;;  %v16838_v19 = vcombine.low %v8018_v16, %v8026_v24  ;;  %v8090_v2 = vld [vmem:[%s21008_s20 + $0x748] sm:$0xff] }
 0xabf   : > { %v7769_v50 = vmul.f32 %v22292_v9, %v22292_v9  ;;  %v7770_v60 = vmul.f32 %v22303_v22, %v22303_v22  ;;  %v16839_v1 = vcombine.high %v8018_v16, %v8026_v24  ;;  %v16884_v26 = vcombine.low %v8065_v63, %v8073_v59  ;;  %v22340_v16 = vld [vmem:[%s21008_s20 + $0x808] sm:$0xff] }
 0xac0   : > { %v7772_v31 = vadd.f32 %v7771_v28, %v7765_v12  ;;  %v7776_v55 = vadd.f32 %v7768_v0, %v7767_v45  ;;  %v16886_v42 = vcombine.low %v8066_v29, %v8074_v27  ;;  %v16901_v12 = vcombine.high %v8081_v30, %v8089_v39  ;;  %v8097_v45 = vld [vmem:[%s21008_s20 + $0x780] sm:$0xff] }
 0xac1   : > { %11119 = vmatprep.subr.bf16.mxu1 %v16839_v1  ;;  %v16903_v28 = vcombine.high %v8082_v8, %v8090_v2  ;;  %v8105_v0 = vld [vmem:[%s21008_s20 + $0x7c0] sm:$0xff]  ;;  %11040 = vmatpush1.bf16.msra.mxu0 %v16884_v26  ;;  %v16933_v24 = vcombine.high %v22334_v40, %v22337_v44  ;;  %v16935_v1 = vcombine.high %v22340_v16, %v22347_v25  ;;  %v8162_v44 = vld [vmem:[%s21008_s20 + $0x988] sm:$0xff] }
 0xac2   : > { %v7773_v15 = vadd.f32 %v7772_v31, %v7766_v36  ;;  %v7777_v7 = vadd.f32 %v7776_v55, %v7769_v50  ;;  %11120 = vmatpush1.bf16.msra.mxu1 %v16838_v19  ;;  %v8098_v36 = vld [vmem:[%s21008_s20 + $0x788] sm:$0xff]  ;;  %v16900_v50 = vcombine.low %v8081_v30, %v8089_v39  ;;  %11041 = vmatprep.subr.bf16.mxu0 %v16901_v12  ;;  %v8169_v40 = vld [vmem:[%s21008_s20 + $0x9c0] sm:$0xff] }
 0xac3   : > { %11121 = vmatprep.subr.bf16.mxu1 %v16855_v35  ;;  %v8106_v31 = vld [vmem:[%s21008_s20 + $0x7c8] sm:$0xff]  ;;  %v16902_v55 = vcombine.low %v8082_v8, %v8090_v2  ;;  %v16934_v19 = vcombine.low %v22340_v16, %v22347_v25  ;;  %v7741_v35 = vld [vmem:[%s23839_s25] sm:$0xf] }
 0xac4   : > { %7774 = vadd.xlane.f32.xlu0 %v7773_v15  ;;  %v7778_v13 = vadd.f32 %v7777_v7, %v7770_v60  ;;  %v16917_v15 = vcombine.high %v8097_v45, %v8105_v0  ;;  %v16919_v7 = vcombine.high %v8098_v36, %v8106_v31  ;;  %v16916_v60 = vcombine.low %v8097_v45, %v8105_v0 }
 0xac5   : > { %11042 = vmatpush1.bf16.msra.mxu0 %v16900_v50  ;;  %v7836_v4 = vrot.slane %v7741_v35, %v21530_v6  ;;  %v7832_v27 = vrot.slane %v7741_v35, %v21519_v10  ;;  %v8130_v50 = vld [vmem:[%s21008_s20 + $0x888] sm:$0xff] }
 0xac6   : > { %11122 = vmatpush1.bf16.msra.mxu1 %v16854_v52  ;;  %11043 = vmatprep.subr.bf16.mxu0 %v16917_v15  ;;  %v7740_v52 = vld [vmem:[%s23838_s4] sm:$0xf] }
 0xac7   : > { %11123 = vmatprep.subr.bf16.mxu1 %v16871_v20  ;;  %v7807_v47 = vrot.slane %v7740_v52, %v21530_v6  ;;  %v7803_v57 = vrot.slane %v7740_v52, %v21519_v10  ;;  %v7799_v63 = vrot.slane %v7740_v52, %v21514_v56 }
 0xac8   : > { %7779 = vadd.xlane.f32.xlu0 %v7778_v13  ;;  %v16918_v13 = vcombine.low %v8098_v36, %v8106_v31  ;;  %v8137_v31 = vld [vmem:[%s21008_s20 + $0x8c0] sm:$0xff] }
 0xac9   : > { %11044 = vmatpush1.bf16.msra.mxu0 %v16916_v60 }
 0xaca   : > { %11124 = vmatpush1.bf16.msra.mxu1 %v16870_v61  ;;  %11056 = vmatprep.subr.bf16.mxu0 %v16933_v24  ;;  %v7828_v61 = vrot.slane %v7741_v35, %v21514_v56  ;;  %v8145_v24 = vld [vmem:[%s21008_s20 + $0x900] sm:$0xff] }
 0xacb   : > { %11125 = vmatprep.subr.bf16.mxu1 %v16887_v41  ;;  %v7811_v41 = vrot.slane %v7740_v52, %v21553_v21 }
 0xace   : > { %11126 = vmatpush1.bf16.msra.mxu1 %v16886_v42 }
 0xacf   : > { %11127 = vmatprep.subr.bf16.mxu1 %v16903_v28 }
 0xad2   : > { %11128 = vmatpush1.bf16.msra.mxu1 %v16902_v55  ;;  %v8138_v55 = vld [vmem:[%s21008_s20 + $0x8c8] sm:$0xff] }
 0xad3   : > { %11129 = vmatprep.subr.bf16.mxu1 %v16919_v7  ;;  %v16950_v52 = vcombine.low %v8130_v50, %v8138_v55 }
 0xad6   : > { %11130 = vmatpush1.bf16.msra.mxu1 %v16918_v13 }
 0xad7   : > { %11142 = vmatprep.subr.bf16.mxu1 %v16935_v1 }
 0xb51   : > { %v7775_v17 = vpop.xlane.xlu0 %7774 }
 0xb52   : > { %v7781_v34 = vmul.f32 0.001953125, %v7775_v17  ;;  %v16951_v17 = vcombine.high %v8130_v50, %v8138_v55  ;;  %v8233_v50 = vld [vmem:[%s21008_s20 + $0xbc0] sm:$0xff]  ;;  %v8226_v55 = vld [vmem:[%s21008_s20 + $0xb88] sm:$0xff] }
 0xb54   : > { %v7783_v33 = vadd.f32 1e-12, %v7781_v34  ;;  %v8153_v34 = vld [vmem:[%s21008_s20 + $0x940] sm:$0xff] }
 0xb55   : > { %v7780_v37 = vpop.xlane.xlu0 %7779  ;;  %v16964_v16 = vcombine.low %v8145_v24, %v8153_v34 }
 0xb56   : > { %19862 = vrsqrt.f32 %v7783_v33  ;;  %v7782_v48 = vmul.f32 0.001953125, %v7780_v37  ;;  %v8146_v33 = vld [vmem:[%s21008_s20 + $0x908] sm:$0xff] }
 0xb57   : > { %v8154_v37 = vld [vmem:[%s21008_s20 + $0x948] sm:$0xff] }
 0xb58   : > { %v7784_v38 = vadd.f32 1e-12, %v7782_v48  ;;  %v16966_v25 = vcombine.low %v8146_v33, %v8154_v37 }
 0xb5a   : > { %19864 = vrsqrt.f32 %v7784_v38 }
 0xb60   : > { %v19863_v14 = vpop.eup %19862 }
 0xb61   : > { %v7788_v54 = vmul.f32 %v19863_v14, %v22273_v11  ;;  %v7787_v5 = vmul.f32 %v19863_v14, %v22270_v62  ;;  %v7789_v59 = vmul.f32 %v19863_v14, %v22276_v46  ;;  %v7790_v23 = vmul.f32 %v19863_v14, %v22279_v49  ;;  %v8161_v14 = vld [vmem:[%s21008_s20 + $0x980] sm:$0xff] }
 0xb63   : > { %v7818_v20 = vmul.f32 %v7807_v47, %v7789_v59  ;;  %v7817_v30 = vmul.f32 %v7803_v57, %v7788_v54  ;;  %v7816_v39 = vmul.f32 %v7799_v63, %v7787_v5  ;;  %v7819_v42 = vmul.f32 %v7811_v41, %v7790_v23  ;;  %v8177_v54 = vld [vmem:[%s21008_s20 + $0xa00] sm:$0xff]  ;;  %v8186_v59 = vld [vmem:[%s21008_s20 + $0xa48] sm:$0xff] }
 0xb64   : > { %v19865_v29 = vpop.eup %19864  ;;  %v8185_v5 = vld [vmem:[%s21008_s20 + $0xa40] sm:$0xff] }
 0xb65   : > { %v7792_v11 = vmul.f32 %v19865_v29, %v22285_v43  ;;  %v7791_v62 = vmul.f32 %v19865_v29, %v22282_v58  ;;  %v7794_v46 = vmul.f32 %v19865_v29, %v22303_v22  ;;  %v7793_v8 = vmul.f32 %v19865_v29, %v22292_v9  ;;  %v8129_v9 = vld [vmem:[%s21008_s20 + $0x880] sm:$0xff] }
 0xb66   : > { %v22372_v2 = vadd.f32 %v7836_v4, %v7818_v20  ;;  %v7840_v43 = vrot.slane %v7741_v35, %v21553_v21  ;;  %v22375_v45 = vadd.f32 %v7832_v27, %v7817_v30  ;;  %v22379_v0 = vadd.f32 %v7828_v61, %v7816_v39  ;;  %v8201_v23 = vld [vmem:[%s21008_s20 + $0xac0] sm:$0xff] }
 0xb67   : > { %v7821_v26 = vmul.f32 %v7803_v57, %v7792_v11  ;;  %v7820_v49 = vmul.f32 %v7799_v63, %v7791_v62  ;;  %v7823_v12 = vmul.f32 %v7811_v41, %v7794_v46  ;;  %v7822_v28 = vmul.f32 %v7807_v47, %v7793_v8  ;;  %v8178_v63 = vld [vmem:[%s21008_s20 + $0xa08] sm:$0xff]  ;;  %v8209_v8 = vld [vmem:[%s21008_s20 + $0xb00] sm:$0xff] }
 0xb68   : > { %v22399_v13 = vadd.f32 %v7840_v43, %v7819_v42  ;;  %v16949_v1 = vcombine.high %v8129_v9, %v8137_v31  ;;  %v16948_v38 = vcombine.low %v8129_v9, %v8137_v31  ;;  %v16965_v35 = vcombine.high %v8145_v24, %v8153_v34  ;;  %v8194_v41 = vld [vmem:[%s21008_s20 + $0xa88] sm:$0xff]  ;;  %v8225_v31 = vld [vmem:[%s21008_s20 + $0xb80] sm:$0xff] }
 0xb69   : > { %v22377_v58 = vadd.f32 %v7832_v27, %v7821_v26  ;;  %v22381_v22 = vadd.f32 %v7828_v61, %v7820_v49  ;;  %v22384_v36 = vadd.f32 %v7840_v43, %v7823_v12  ;;  %v22389_v15 = vadd.f32 %v7836_v4, %v7822_v28  ;;  %v8193_v61 = vld [vmem:[%s21008_s20 + $0xa80] sm:$0xff]  ;;  %v8202_v11 = vld [vmem:[%s21008_s20 + $0xac8] sm:$0xff] }
 0xb6a   : > { %v16967_v47 = vcombine.high %v8146_v33, %v8154_v37  ;;  %v16980_v4 = vcombine.low %v8161_v14, %v8169_v40  ;;  %v16997_v29 = vcombine.high %v8177_v54, %v8185_v5  ;;  %v16999_v27 = vcombine.high %v8178_v63, %v8186_v59  ;;  %v8217_v26 = vld [vmem:[%s21008_s20 + $0xb40] sm:$0xff]  ;;  %v8210_v49 = vld [vmem:[%s21008_s20 + $0xb08] sm:$0xff] }
 0xb6b   : > { %v22393_v7 = vpack.c.bf16 %v22377_v58, %v22375_v45  ;;  %v22397_v60 = vpack.c.bf16 %v22381_v22, %v22379_v0  ;;  %v22411_v48 = vpack.c.bf16 %v22384_v36, %v22399_v13  ;;  %v16996_v30 = vcombine.low %v8177_v54, %v8185_v5  ;;  %v8218_v42 = vld [vmem:[%s21008_s20 + $0xb48] sm:$0xff]  ;;  %v8241_v37 = vld [vmem:[%s21008_s20 + $0xc00] sm:$0xff] }
 0xb6c   : > { %v16998_v62 = vcombine.low %v8178_v63, %v8186_v59  ;;  %v17013_v39 = vcombine.high %v8193_v61, %v8201_v23  ;;  %v17015_v46 = vcombine.high %v8194_v41, %v8202_v11  ;;  %v17012_v12 = vcombine.low %v8193_v61, %v8201_v23  ;;  %v8234_v24 = vld [vmem:[%s21008_s20 + $0xbc8] sm:$0xff]  ;;  %v8273_v59 = vld [vmem:[%s21008_s20 + $0xd00] sm:$0xff] }
 0xb6d   : > { %11045 = vmatprep.mubr.bf16.mxu0 %v22393_v7  ;;  %11131 = vmatprep.mubr.bf16.mxu1 %v22393_v7  ;;  %v17014_v43 = vcombine.low %v8194_v41, %v8202_v11  ;;  %v17029_v28 = vcombine.high %v8209_v8, %v8217_v26  ;;  %v17031_v9 = vcombine.high %v8210_v49, %v8218_v42  ;;  %v8289_v11 = vld [vmem:[%s21008_s20 + $0xd80] sm:$0xff] }
 0xb6e   : > { %11046 = vmatmul.mubr.bf16.vlgmr.msra.gmra.mrb[48].mxu0 %v22397_v60  ;;  %11132 = vmatmul.mubr.bf16.vlgmr.msra.gmra.mrb[48].mxu1 %v22397_v60  ;;  %v17045_v34 = vcombine.high %v8225_v31, %v8233_v50  ;;  %v17047_v33 = vcombine.high %v8226_v55, %v8234_v24 }
 0xb6f   : > { %11057 = vmatpush1.bf16.msra.mxu0 %v16932_v32  ;;  %11143 = vmatpush1.bf16.msra.mxu1 %v16934_v19  ;;  %v8170_v32 = vld [vmem:[%s21008_s20 + $0x9c8] sm:$0xff]  ;;  %v16981_v19 = vcombine.high %v8161_v14, %v8169_v40  ;;  %v17046_v14 = vcombine.low %v8226_v55, %v8234_v24  ;;  %v8321_v24 = vld [vmem:[%s21008_s20 + $0xe80] sm:$0xff] }
 0xb70   : > { %11088 = vmatprep.mubr.bf16.mxu0 %v22411_v48  ;;  %11174 = vmatprep.mubr.bf16.mxu1 %v22411_v48  ;;  %v16983_v57 = vcombine.high %v8162_v44, %v8170_v32  ;;  %v16982_v20 = vcombine.low %v8162_v44, %v8170_v32  ;;  %v8257_v32 = vld [vmem:[%s21008_s20 + $0xc80] sm:$0xff] }
 0xb71   : > { %11058 = vmatprep.subr.bf16.mxu0 %v16949_v1  ;;  %11144 = vmatprep.subr.bf16.mxu1 %v16951_v17  ;;  %v17028_v1 = vcombine.low %v8209_v8, %v8217_v26  ;;  %v17030_v17 = vcombine.low %v8210_v49, %v8218_v42  ;;  %v8305_v42 = vld [vmem:[%s21008_s20 + $0xe00] sm:$0xff] }
 0xb73   : > { %11059 = vmatpush1.bf16.msra.mxu0 %v16948_v38  ;;  %11145 = vmatpush1.bf16.msra.mxu1 %v16950_v52  ;;  %v8249_v38 = vld [vmem:[%s21008_s20 + $0xc40] sm:$0xff]  ;;  %v8242_v52 = vld [vmem:[%s21008_s20 + $0xc08] sm:$0xff] }
 0xb74   : > { %11060 = vmatprep.subr.bf16.mxu0 %v16965_v35  ;;  %11146 = vmatprep.subr.bf16.mxu1 %v16967_v47  ;;  %v8250_v35 = vld [vmem:[%s21008_s20 + $0xc48] sm:$0xff]  ;;  %v17044_v47 = vcombine.low %v8225_v31, %v8233_v50  ;;  %v17061_v40 = vcombine.high %v8241_v37, %v8249_v38 }
 0xb75   : > { %v17063_v44 = vcombine.high %v8242_v52, %v8250_v35  ;;  %v17062_v54 = vcombine.low %v8242_v52, %v8250_v35  ;;  %v8337_v35 = vld [vmem:[%s21008_s20 + $0xf00] sm:$0xff] }
 0xb77   : > { %11061 = vmatpush1.bf16.msra.mxu0 %v16964_v16  ;;  %11147 = vmatpush1.bf16.msra.mxu1 %v16966_v25  ;;  %v8265_v16 = vld [vmem:[%s21008_s20 + $0xcc0] sm:$0xff]  ;;  %v8258_v25 = vld [vmem:[%s21008_s20 + $0xc88] sm:$0xff] }
 0xb78   : > { %11062 = vmatprep.subr.bf16.mxu0 %v16981_v19  ;;  %11148 = vmatprep.subr.bf16.mxu1 %v16983_v57  ;;  %v8266_v19 = vld [vmem:[%s21008_s20 + $0xcc8] sm:$0xff]  ;;  %v17060_v57 = vcombine.low %v8241_v37, %v8249_v38  ;;  %v17077_v5 = vcombine.high %v8257_v32, %v8265_v16 }
 0xb79   : > { %v17079_v63 = vcombine.high %v8258_v25, %v8266_v19  ;;  %v17078_v61 = vcombine.low %v8258_v25, %v8266_v19  ;;  %v8353_v19 = vld [vmem:[%s21008_s20 + $0xf80] sm:$0xff] }
 0xb7b   : > { %11063 = vmatpush1.bf16.msra.mxu0 %v16980_v4  ;;  %11149 = vmatpush1.bf16.msra.mxu1 %v16982_v20  ;;  %v8281_v4 = vld [vmem:[%s21008_s20 + $0xd40] sm:$0xff]  ;;  %v8274_v20 = vld [vmem:[%s21008_s20 + $0xd08] sm:$0xff] }
 0xb7c   : > { %11064 = vmatprep.subr.bf16.mxu0 %v16997_v29  ;;  %11150 = vmatprep.subr.bf16.mxu1 %v16999_v27  ;;  %v8282_v29 = vld [vmem:[%s21008_s20 + $0xd48] sm:$0xff]  ;;  %v17076_v27 = vcombine.low %v8257_v32, %v8265_v16  ;;  %v17093_v23 = vcombine.high %v8273_v59, %v8281_v4 }
 0xb7d   : > { %v17095_v41 = vcombine.high %v8274_v20, %v8282_v29  ;;  %v17094_v8 = vcombine.low %v8274_v20, %v8282_v29  ;;  %v7859_v29 = vld [vmem:[%s21008_s20 + $0x10] sm:$0xff] }
 0xb7f   : > { %11065 = vmatpush1.bf16.msra.mxu0 %v16996_v30  ;;  %11151 = vmatpush1.bf16.msra.mxu1 %v16998_v62  ;;  %v8297_v30 = vld [vmem:[%s21008_s20 + $0xdc0] sm:$0xff]  ;;  %v8290_v62 = vld [vmem:[%s21008_s20 + $0xd88] sm:$0xff] }
 0xb80   : > { %11066 = vmatprep.subr.bf16.mxu0 %v17013_v39  ;;  %11152 = vmatprep.subr.bf16.mxu1 %v17015_v46  ;;  %v8298_v39 = vld [vmem:[%s21008_s20 + $0xdc8] sm:$0xff]  ;;  %v17092_v46 = vcombine.low %v8273_v59, %v8281_v4  ;;  %v17109_v26 = vcombine.high %v8289_v11, %v8297_v30 }
 0xb81   : > { %v17111_v49 = vcombine.high %v8290_v62, %v8298_v39  ;;  %v17110_v31 = vcombine.low %v8290_v62, %v8298_v39  ;;  %v7875_v39 = vld [vmem:[%s21008_s20 + $0x90] sm:$0xff] }
 0xb83   : > { %11067 = vmatpush1.bf16.msra.mxu0 %v17012_v12  ;;  %11153 = vmatpush1.bf16.msra.mxu1 %v17014_v43  ;;  %v8313_v12 = vld [vmem:[%s21008_s20 + $0xe40] sm:$0xff]  ;;  %v8306_v43 = vld [vmem:[%s21008_s20 + $0xe08] sm:$0xff] }
 0xb84   : > { %11068 = vmatprep.subr.bf16.mxu0 %v17029_v28  ;;  %11154 = vmatprep.subr.bf16.mxu1 %v17031_v9  ;;  %v8314_v28 = vld [vmem:[%s21008_s20 + $0xe48] sm:$0xff]  ;;  %v17108_v9 = vcombine.low %v8289_v11, %v8297_v30  ;;  %v17125_v50 = vcombine.high %v8305_v42, %v8313_v12 }
 0xb85   : > { %v17127_v55 = vcombine.high %v8306_v43, %v8314_v28  ;;  %v17126_v37 = vcombine.low %v8306_v43, %v8314_v28 }
 0xb87   : > { %11069 = vmatpush1.bf16.msra.mxu0 %v17028_v1  ;;  %11155 = vmatpush1.bf16.msra.mxu1 %v17030_v17  ;;  %v8329_v1 = vld [vmem:[%s21008_s20 + $0xec0] sm:$0xff]  ;;  %v8322_v17 = vld [vmem:[%s21008_s20 + $0xe88] sm:$0xff] }
 0xb88   : > { %11070 = vmatprep.subr.bf16.mxu0 %v17045_v34  ;;  %11156 = vmatprep.subr.bf16.mxu1 %v17047_v33  ;;  %v8330_v34 = vld [vmem:[%s21008_s20 + $0xec8] sm:$0xff]  ;;  %v17124_v33 = vcombine.low %v8305_v42, %v8313_v12  ;;  %v17141_v38 = vcombine.high %v8321_v24, %v8329_v1  ;;  %v22483_v42 = vpack.c.bf16 %v22389_v15, %v22372_v2 }
 0xb89   : > { %v17143_v52 = vcombine.high %v8322_v17, %v8330_v34  ;;  %v17142_v32 = vcombine.low %v8322_v17, %v8330_v34 }
 0xb8b   : > { %11071 = vmatpush1.bf16.msra.mxu0 %v17044_v47  ;;  %11157 = vmatpush1.bf16.msra.mxu1 %v17046_v14  ;;  %v8345_v47 = vld [vmem:[%s21008_s20 + $0xf40] sm:$0xff]  ;;  %v8338_v14 = vld [vmem:[%s21008_s20 + $0xf08] sm:$0xff] }
 0xb8c   : > { %11072 = vmatprep.subr.bf16.mxu0 %v17061_v40  ;;  %11158 = vmatprep.subr.bf16.mxu1 %v17063_v44  ;;  %v8346_v40 = vld [vmem:[%s21008_s20 + $0xf48] sm:$0xff]  ;;  %v17140_v44 = vcombine.low %v8321_v24, %v8329_v1  ;;  %v17157_v16 = vcombine.high %v8337_v35, %v8345_v47 }
 0xb8d   : > { %v17159_v25 = vcombine.high %v8338_v14, %v8346_v40  ;;  %v17158_v59 = vcombine.low %v8338_v14, %v8346_v40 }
 0xb8f   : > { %11073 = vmatpush1.bf16.msra.mxu0 %v17060_v57  ;;  %11159 = vmatpush1.bf16.msra.mxu1 %v17062_v54  ;;  %v8361_v57 = vld [vmem:[%s21008_s20 + $0xfc0] sm:$0xff]  ;;  %v8354_v54 = vld [vmem:[%s21008_s20 + $0xf88] sm:$0xff] }
 0xb90   : > { %11074 = vmatprep.subr.bf16.mxu0 %v17077_v5  ;;  %11160 = vmatprep.subr.bf16.mxu1 %v17079_v63  ;;  %v8362_v5 = vld [vmem:[%s21008_s20 + $0xfc8] sm:$0xff]  ;;  %v17156_v63 = vcombine.low %v8337_v35, %v8345_v47  ;;  %v17173_v4 = vcombine.high %v8353_v19, %v8361_v57 }
 0xb91   : > { %v17175_v20 = vcombine.high %v8354_v54, %v8362_v5  ;;  %v17174_v11 = vcombine.low %v8354_v54, %v8362_v5 }
 0xb93   : > { %11075 = vmatpush1.bf16.msra.mxu0 %v17076_v27  ;;  %11161 = vmatpush1.bf16.msra.mxu1 %v17078_v61  ;;  %v7867_v27 = vld [vmem:[%s21008_s20 + $0x50] sm:$0xff]  ;;  %v7860_v61 = vld [vmem:[%s21008_s20 + $0x18] sm:$0xff] }
 0xb94   : > { %11076 = vmatprep.subr.bf16.mxu0 %v17093_v23  ;;  %11162 = vmatprep.subr.bf16.mxu1 %v17095_v41  ;;  %v7868_v23 = vld [vmem:[%s21008_s20 + $0x58] sm:$0xff]  ;;  %v17172_v41 = vcombine.low %v8353_v19, %v8361_v57  ;;  %v16681_v30 = vcombine.high %v7859_v29, %v7867_v27 }
 0xb95   : > { %v16683_v62 = vcombine.high %v7860_v61, %v7868_v23  ;;  %v16682_v12 = vcombine.low %v7860_v61, %v7868_v23 }
 0xb97   : > { %11077 = vmatpush1.bf16.msra.mxu0 %v17092_v46  ;;  %11163 = vmatpush1.bf16.msra.mxu1 %v17094_v8  ;;  %v7883_v46 = vld [vmem:[%s21008_s20 + $0xd0] sm:$0xff]  ;;  %v7876_v8 = vld [vmem:[%s21008_s20 + $0x98] sm:$0xff] }
 0xb98   : > { %11078 = vmatprep.subr.bf16.mxu0 %v17109_v26  ;;  %11164 = vmatprep.subr.bf16.mxu1 %v17111_v49  ;;  %v7884_v26 = vld [vmem:[%s21008_s20 + $0xd8] sm:$0xff]  ;;  %v16680_v49 = vcombine.low %v7859_v29, %v7867_v27  ;;  %v16697_v43 = vcombine.high %v7875_v39, %v7883_v46  ;;  %v16696_v24 = vcombine.low %v7875_v39, %v7883_v46 }
 0xb99   : > { %v16699_v28 = vcombine.high %v7876_v8, %v7884_v26  ;;  %v16698_v1 = vcombine.low %v7876_v8, %v7884_v26 }
 0xb9b   : > { %11079 = vmatpush1.bf16.msra.mxu0 %v17108_v9  ;;  %11165 = vmatpush1.bf16.msra.mxu1 %v17110_v31  ;;  %v7891_v9 = vld [vmem:[%s21008_s20 + $0x110] sm:$0xff] }
 0xb9c   : > { %11080 = vmatprep.subr.bf16.mxu0 %v17125_v50  ;;  %11166 = vmatprep.subr.bf16.mxu1 %v17127_v55  ;;  %v7899_v31 = vld [vmem:[%s21008_s20 + $0x150] sm:$0xff]  ;;  %v7892_v50 = vld [vmem:[%s21008_s20 + $0x118] sm:$0xff] }
 0xb9d   : > { %v7900_v55 = vld [vmem:[%s21008_s20 + $0x158] sm:$0xff]  ;;  %v16713_v17 = vcombine.high %v7891_v9, %v7899_v31  ;;  %v16712_v35 = vcombine.low %v7891_v9, %v7899_v31 }
 0xb9e   : > { %v16715_v34 = vcombine.high %v7892_v50, %v7900_v55  ;;  %v16714_v47 = vcombine.low %v7892_v50, %v7900_v55 }
 0xb9f   : > { %11081 = vmatpush1.bf16.msra.mxu0 %v17124_v33  ;;  %11167 = vmatpush1.bf16.msra.mxu1 %v17126_v37  ;;  %v7907_v33 = vld [vmem:[%s21008_s20 + $0x190] sm:$0xff] }
 0xba0   : > { %11082 = vmatprep.subr.bf16.mxu0 %v17141_v38  ;;  %11168 = vmatprep.subr.bf16.mxu1 %v17143_v52  ;;  %v7915_v37 = vld [vmem:[%s21008_s20 + $0x1d0] sm:$0xff]  ;;  %v7908_v38 = vld [vmem:[%s21008_s20 + $0x198] sm:$0xff] }
 0xba1   : > { %v7916_v52 = vld [vmem:[%s21008_s20 + $0x1d8] sm:$0xff]  ;;  %v16729_v14 = vcombine.high %v7907_v33, %v7915_v37  ;;  %v16728_v19 = vcombine.low %v7907_v33, %v7915_v37 }
 0xba2   : > { %v16731_v40 = vcombine.high %v7908_v38, %v7916_v52  ;;  %v16730_v57 = vcombine.low %v7908_v38, %v7916_v52 }
 0xba3   : > { %11083 = vmatpush1.bf16.msra.mxu0 %v17140_v44  ;;  %11169 = vmatpush1.bf16.msra.mxu1 %v17142_v32  ;;  %v7923_v44 = vld [vmem:[%s21008_s20 + $0x210] sm:$0xff] }
 0xba4   : > { %11084 = vmatprep.subr.bf16.mxu0 %v17157_v16  ;;  %11170 = vmatprep.subr.bf16.mxu1 %v17159_v25  ;;  %v7931_v32 = vld [vmem:[%s21008_s20 + $0x250] sm:$0xff]  ;;  %v7924_v16 = vld [vmem:[%s21008_s20 + $0x218] sm:$0xff] }
 0xba5   : > { %v7932_v25 = vld [vmem:[%s21008_s20 + $0x258] sm:$0xff]  ;;  %v16745_v54 = vcombine.high %v7923_v44, %v7931_v32  ;;  %v16744_v29 = vcombine.low %v7923_v44, %v7931_v32 }
 0xba6   : > { %v16747_v5 = vcombine.high %v7924_v16, %v7932_v25  ;;  %v16746_v27 = vcombine.low %v7924_v16, %v7932_v25 }
 0xba7   : > { %11085 = vmatpush1.bf16.msra.mxu0 %v17156_v63  ;;  %11171 = vmatpush1.bf16.msra.mxu1 %v17158_v59  ;;  %v7939_v63 = vld [vmem:[%s21008_s20 + $0x290] sm:$0xff] }
 0xba8   : > { %11086 = vmatprep.subr.bf16.mxu0 %v17173_v4  ;;  %11172 = vmatprep.subr.bf16.mxu1 %v17175_v20  ;;  %v7947_v59 = vld [vmem:[%s21008_s20 + $0x2d0] sm:$0xff]  ;;  %v7940_v4 = vld [vmem:[%s21008_s20 + $0x298] sm:$0xff] }
 0xba9   : > { %v7948_v20 = vld [vmem:[%s21008_s20 + $0x2d8] sm:$0xff]  ;;  %v16761_v61 = vcombine.high %v7939_v63, %v7947_v59  ;;  %v16760_v39 = vcombine.low %v7939_v63, %v7947_v59 }
 0xbaa   : > { %v16763_v23 = vcombine.high %v7940_v4, %v7948_v20  ;;  %v16762_v46 = vcombine.low %v7940_v4, %v7948_v20 }
 0xbab   : > { %11087 = vmatpush1.bf16.msra.mxu0 %v17172_v41  ;;  %11173 = vmatpush1.bf16.msra.mxu1 %v17174_v11  ;;  %v7955_v41 = vld [vmem:[%s21008_s20 + $0x310] sm:$0xff] }
 0xbac   : > { %11185 = vmatprep.subr.bf16.mxu0 %v16681_v30  ;;  %11271 = vmatprep.subr.bf16.mxu1 %v16683_v62  ;;  %v7963_v11 = vld [vmem:[%s21008_s20 + $0x350] sm:$0xff]  ;;  %v7956_v30 = vld [vmem:[%s21008_s20 + $0x318] sm:$0xff] }
 0xbad   : > { %v7964_v62 = vld [vmem:[%s21008_s20 + $0x358] sm:$0xff]  ;;  %v16777_v8 = vcombine.high %v7955_v41, %v7963_v11  ;;  %v16776_v9 = vcombine.low %v7955_v41, %v7963_v11 }
 0xbae   : > { %11089 = vmatmul.mubr.bf16.vlgmr.msra.gmra.mrb[48].mxu0 %v22483_v42  ;;  %11175 = vmatmul.mubr.bf16.vlgmr.msra.gmra.mrb[48].mxu1 %v22483_v42  ;;  %v16779_v26 = vcombine.high %v7956_v30, %v7964_v62  ;;  %v16778_v31 = vcombine.low %v7956_v30, %v7964_v62 }
 0xbaf   : > { %11186 = vmatpush1.bf16.msra.mxu0 %v16680_v49  ;;  %11217 = vmatprep.mubr.bf16.mxu0 %v22393_v7  ;;  %v7971_v49 = vld [vmem:[%s21008_s20 + $0x390] sm:$0xff] }
 0xbb0   : > { %11272 = vmatpush1.bf16.msra.mxu1 %v16682_v12  ;;  %11303 = vmatprep.mubr.bf16.mxu1 %v22393_v7  ;;  %v7979_v12 = vld [vmem:[%s21008_s20 + $0x3d0] sm:$0xff] }
 0xbb1   : > { %11187 = vmatprep.subr.bf16.mxu0 %v16697_v43  ;;  %11273 = vmatprep.subr.bf16.mxu1 %v16699_v28  ;;  %v7972_v43 = vld [vmem:[%s21008_s20 + $0x398] sm:$0xff]  ;;  %v16793_v50 = vcombine.high %v7971_v49, %v7979_v12  ;;  %v16792_v33 = vcombine.low %v7971_v49, %v7979_v12 }
 0xbb2   : > { %v7980_v28 = vld [vmem:[%s21008_s20 + $0x3d8] sm:$0xff] }
 0xbb3   : > { %11188 = vmatpush1.bf16.msra.mxu0 %v16696_v24  ;;  %v16795_v55 = vcombine.high %v7972_v43, %v7980_v28  ;;  %v7987_v24 = vld [vmem:[%s21008_s20 + $0x410] sm:$0xff]  ;;  %v16794_v37 = vcombine.low %v7972_v43, %v7980_v28 }
 0xbb4   : > { %11274 = vmatpush1.bf16.msra.mxu1 %v16698_v1  ;;  %11189 = vmatprep.subr.bf16.mxu0 %v16713_v17  ;;  %v7995_v1 = vld [vmem:[%s21008_s20 + $0x450] sm:$0xff]  ;;  %v7988_v17 = vld [vmem:[%s21008_s20 + $0x418] sm:$0xff] }
 0xbb5   : > { %11275 = vmatprep.subr.bf16.mxu1 %v16715_v34  ;;  %v7996_v34 = vld [vmem:[%s21008_s20 + $0x458] sm:$0xff]  ;;  %v16809_v38 = vcombine.high %v7987_v24, %v7995_v1  ;;  %v16808_v44 = vcombine.low %v7987_v24, %v7995_v1 }
 0xbb6   : > { %v16811_v52 = vcombine.high %v7988_v17, %v7996_v34  ;;  %v16810_v32 = vcombine.low %v7988_v17, %v7996_v34 }
 0xbb7   : > { %11190 = vmatpush1.bf16.msra.mxu0 %v16712_v35  ;;  %v8003_v35 = vld [vmem:[%s21008_s20 + $0x490] sm:$0xff] }
 0xbb8   : > { %11276 = vmatpush1.bf16.msra.mxu1 %v16714_v47  ;;  %11191 = vmatprep.subr.bf16.mxu0 %v16729_v14  ;;  %v8011_v47 = vld [vmem:[%s21008_s20 + $0x4d0] sm:$0xff]  ;;  %v8004_v14 = vld [vmem:[%s21008_s20 + $0x498] sm:$0xff] }
 0xbb9   : > { %11277 = vmatprep.subr.bf16.mxu1 %v16731_v40  ;;  %v8012_v40 = vld [vmem:[%s21008_s20 + $0x4d8] sm:$0xff]  ;;  %v16825_v16 = vcombine.high %v8003_v35, %v8011_v47  ;;  %v16824_v63 = vcombine.low %v8003_v35, %v8011_v47 }
 0xbba   : > { %v16827_v25 = vcombine.high %v8004_v14, %v8012_v40  ;;  %v16826_v59 = vcombine.low %v8004_v14, %v8012_v40 }
 0xbbb   : > { %11192 = vmatpush1.bf16.msra.mxu0 %v16728_v19  ;;  %v8019_v19 = vld [vmem:[%s21008_s20 + $0x510] sm:$0xff] }
 0xbbc   : > { %11278 = vmatpush1.bf16.msra.mxu1 %v16730_v57  ;;  %11193 = vmatprep.subr.bf16.mxu0 %v16745_v54  ;;  %v8027_v57 = vld [vmem:[%s21008_s20 + $0x550] sm:$0xff]  ;;  %v8020_v54 = vld [vmem:[%s21008_s20 + $0x518] sm:$0xff] }
 0xbbd   : > { %11279 = vmatprep.subr.bf16.mxu1 %v16747_v5  ;;  %v8028_v5 = vld [vmem:[%s21008_s20 + $0x558] sm:$0xff]  ;;  %v16841_v4 = vcombine.high %v8019_v19, %v8027_v57  ;;  %v16840_v41 = vcombine.low %v8019_v19, %v8027_v57 }
 0xbbe   : > { %v16843_v20 = vcombine.high %v8020_v54, %v8028_v5  ;;  %v16842_v11 = vcombine.low %v8020_v54, %v8028_v5 }
 0xbbf   : > { %11194 = vmatpush1.bf16.msra.mxu0 %v16744_v29  ;;  %v8035_v29 = vld [vmem:[%s21008_s20 + $0x590] sm:$0xff] }
 0xbc0   : > { %11280 = vmatpush1.bf16.msra.mxu1 %v16746_v27  ;;  %11195 = vmatprep.subr.bf16.mxu0 %v16761_v61  ;;  %v8043_v27 = vld [vmem:[%s21008_s20 + $0x5d0] sm:$0xff]  ;;  %v8036_v61 = vld [vmem:[%s21008_s20 + $0x598] sm:$0xff] }
 0xbc1   : > { %11281 = vmatprep.subr.bf16.mxu1 %v16763_v23  ;;  %v8044_v23 = vld [vmem:[%s21008_s20 + $0x5d8] sm:$0xff]  ;;  %v16857_v30 = vcombine.high %v8035_v29, %v8043_v27  ;;  %v16856_v49 = vcombine.low %v8035_v29, %v8043_v27 }
 0xbc2   : > { %v16859_v62 = vcombine.high %v8036_v61, %v8044_v23  ;;  %v16858_v12 = vcombine.low %v8036_v61, %v8044_v23 }
 0xbc3   : > { %11196 = vmatpush1.bf16.msra.mxu0 %v16760_v39  ;;  %v8051_v39 = vld [vmem:[%s21008_s20 + $0x610] sm:$0xff] }
 0xbc4   : > { %11282 = vmatpush1.bf16.msra.mxu1 %v16762_v46  ;;  %11197 = vmatprep.subr.bf16.mxu0 %v16777_v8  ;;  %v8059_v46 = vld [vmem:[%s21008_s20 + $0x650] sm:$0xff]  ;;  %v8052_v8 = vld [vmem:[%s21008_s20 + $0x618] sm:$0xff] }
 0xbc5   : > { %11283 = vmatprep.subr.bf16.mxu1 %v16779_v26  ;;  %v8060_v26 = vld [vmem:[%s21008_s20 + $0x658] sm:$0xff]  ;;  %v16873_v43 = vcombine.high %v8051_v39, %v8059_v46  ;;  %v16872_v24 = vcombine.low %v8051_v39, %v8059_v46 }
 0xbc6   : > { %v16875_v28 = vcombine.high %v8052_v8, %v8060_v26  ;;  %v16874_v1 = vcombine.low %v8052_v8, %v8060_v26  ;;  %v8140_v39 = vld [vmem:[%s21008_s20 + $0x8d8] sm:$0xff]  ;;  %v8147_v26 = vld [vmem:[%s21008_s20 + $0x910] sm:$0xff] }
 0xbc7   : > { %11198 = vmatpush1.bf16.msra.mxu0 %v16776_v9  ;;  %v8067_v9 = vld [vmem:[%s21008_s20 + $0x690] sm:$0xff] }
 0xbc8   : > { %11284 = vmatpush1.bf16.msra.mxu1 %v16778_v31  ;;  %11199 = vmatprep.subr.bf16.mxu0 %v16793_v50  ;;  %v8075_v31 = vld [vmem:[%s21008_s20 + $0x6d0] sm:$0xff]  ;;  %v8068_v50 = vld [vmem:[%s21008_s20 + $0x698] sm:$0xff] }
 0xbc9   : > { %11285 = vmatprep.subr.bf16.mxu1 %v16795_v55  ;;  %v8076_v55 = vld [vmem:[%s21008_s20 + $0x6d8] sm:$0xff]  ;;  %v16889_v17 = vcombine.high %v8067_v9, %v8075_v31  ;;  %v16888_v35 = vcombine.low %v8067_v9, %v8075_v31 }
 0xbca   : > { %v16891_v34 = vcombine.high %v8068_v50, %v8076_v55  ;;  %v16890_v47 = vcombine.low %v8068_v50, %v8076_v55 }
 0xbcb   : > { %11200 = vmatpush1.bf16.msra.mxu0 %v16792_v33  ;;  %v8083_v33 = vld [vmem:[%s21008_s20 + $0x710] sm:$0xff] }
 0xbcc   : > { %11286 = vmatpush1.bf16.msra.mxu1 %v16794_v37  ;;  %11201 = vmatprep.subr.bf16.mxu0 %v16809_v38  ;;  %v8091_v37 = vld [vmem:[%s21008_s20 + $0x750] sm:$0xff]  ;;  %v8084_v38 = vld [vmem:[%s21008_s20 + $0x718] sm:$0xff] }
 0xbcd   : > { %11287 = vmatprep.subr.bf16.mxu1 %v16811_v52  ;;  %v8092_v52 = vld [vmem:[%s21008_s20 + $0x758] sm:$0xff]  ;;  %v16905_v14 = vcombine.high %v8083_v33, %v8091_v37  ;;  %v16904_v19 = vcombine.low %v8083_v33, %v8091_v37 }
 0xbce   : > { %v16907_v40 = vcombine.high %v8084_v38, %v8092_v52  ;;  %v16906_v57 = vcombine.low %v8084_v38, %v8092_v52 }
 0xbcf   : > { %11202 = vmatpush1.bf16.msra.mxu0 %v16808_v44  ;;  %v8099_v44 = vld [vmem:[%s21008_s20 + $0x790] sm:$0xff] }
 0xbd0   : > { %11288 = vmatpush1.bf16.msra.mxu1 %v16810_v32  ;;  %11203 = vmatprep.subr.bf16.mxu0 %v16825_v16  ;;  %v8107_v32 = vld [vmem:[%s21008_s20 + $0x7d0] sm:$0xff]  ;;  %v8100_v16 = vld [vmem:[%s21008_s20 + $0x798] sm:$0xff] }
 0xbd1   : > { %11289 = vmatprep.subr.bf16.mxu1 %v16827_v25  ;;  %v8108_v25 = vld [vmem:[%s21008_s20 + $0x7d8] sm:$0xff]  ;;  %v16921_v54 = vcombine.high %v8099_v44, %v8107_v32  ;;  %v16920_v29 = vcombine.low %v8099_v44, %v8107_v32 }
 0xbd2   : > { %v16923_v5 = vcombine.high %v8100_v16, %v8108_v25  ;;  %v16922_v27 = vcombine.low %v8100_v16, %v8108_v25 }
 0xbd3   : > { %11204 = vmatpush1.bf16.msra.mxu0 %v16824_v63  ;;  %v8115_v63 = vld [vmem:[%s21008_s20 + $0x810] sm:$0xff] }
 0xbd4   : > { %11290 = vmatpush1.bf16.msra.mxu1 %v16826_v59  ;;  %11205 = vmatprep.subr.bf16.mxu0 %v16841_v4  ;;  %v8123_v59 = vld [vmem:[%s21008_s20 + $0x850] sm:$0xff]  ;;  %v8116_v4 = vld [vmem:[%s21008_s20 + $0x818] sm:$0xff] }
 0xbd5   : > { %11291 = vmatprep.subr.bf16.mxu1 %v16843_v20  ;;  %v8124_v20 = vld [vmem:[%s21008_s20 + $0x858] sm:$0xff]  ;;  %v16937_v61 = vcombine.high %v8115_v63, %v8123_v59 }
 0xbd6   : > { %v16939_v23 = vcombine.high %v8116_v4, %v8124_v20  ;;  %v16938_v46 = vcombine.low %v8116_v4, %v8124_v20 }
 0xbd7   : > { %11206 = vmatpush1.bf16.msra.mxu0 %v16840_v41  ;;  %v8131_v41 = vld [vmem:[%s21008_s20 + $0x890] sm:$0xff] }
 0xbd8   : > { %11292 = vmatpush1.bf16.msra.mxu1 %v16842_v11  ;;  %11207 = vmatprep.subr.bf16.mxu0 %v16857_v30  ;;  %v8139_v11 = vld [vmem:[%s21008_s20 + $0x8d0] sm:$0xff]  ;;  %v16936_v30 = vcombine.low %v8115_v63, %v8123_v59 }
 0xbd9   : > { %11293 = vmatprep.subr.bf16.mxu1 %v16859_v62  ;;  %v8132_v62 = vld [vmem:[%s21008_s20 + $0x898] sm:$0xff]  ;;  %v16953_v8 = vcombine.high %v8131_v41, %v8139_v11  ;;  %v16952_v9 = vcombine.low %v8131_v41, %v8139_v11 }
 0xbda   : > { %v16954_v31 = vcombine.low %v8132_v62, %v8140_v39 }
 0xbdb   : > { %11208 = vmatpush1.bf16.msra.mxu0 %v16856_v49  ;;  %v8155_v49 = vld [vmem:[%s21008_s20 + $0x950] sm:$0xff] }
 0xbdc   : > { %11294 = vmatpush1.bf16.msra.mxu1 %v16858_v12  ;;  %11209 = vmatprep.subr.bf16.mxu0 %v16873_v43  ;;  %v16955_v12 = vcombine.high %v8132_v62, %v8140_v39  ;;  %v8148_v43 = vld [vmem:[%s21008_s20 + $0x918] sm:$0xff]  ;;  %v16969_v50 = vcombine.high %v8147_v26, %v8155_v49  ;;  %v16968_v33 = vcombine.low %v8147_v26, %v8155_v49  ;;  %v8227_v39 = vld [vmem:[%s21008_s20 + $0xb90] sm:$0xff] }
 0xbdd   : > { %11295 = vmatprep.subr.bf16.mxu1 %v16875_v28  ;;  %v8156_v28 = vld [vmem:[%s21008_s20 + $0x958] sm:$0xff] }
 0xbde   : > { %v16971_v55 = vcombine.high %v8148_v43, %v8156_v28  ;;  %v16970_v37 = vcombine.low %v8148_v43, %v8156_v28  ;;  %v8236_v26 = vld [vmem:[%s21008_s20 + $0xbd8] sm:$0xff] }
 0xbdf   : > { %11210 = vmatpush1.bf16.msra.mxu0 %v16872_v24  ;;  %v8163_v24 = vld [vmem:[%s21008_s20 + $0x990] sm:$0xff] }
 0xbe0   : > { %11296 = vmatpush1.bf16.msra.mxu1 %v16874_v1  ;;  %11211 = vmatprep.subr.bf16.mxu0 %v16889_v17  ;;  %v8171_v1 = vld [vmem:[%s21008_s20 + $0x9d0] sm:$0xff]  ;;  %v8164_v17 = vld [vmem:[%s21008_s20 + $0x998] sm:$0xff] }
 0xbe1   : > { %11297 = vmatprep.subr.bf16.mxu1 %v16891_v34  ;;  %v8172_v34 = vld [vmem:[%s21008_s20 + $0x9d8] sm:$0xff]  ;;  %v16985_v38 = vcombine.high %v8163_v24, %v8171_v1  ;;  %v16984_v44 = vcombine.low %v8163_v24, %v8171_v1 }
 0xbe2   : > { %v16987_v52 = vcombine.high %v8164_v17, %v8172_v34  ;;  %v16986_v32 = vcombine.low %v8164_v17, %v8172_v34 }
 0xbe3   : > { %11212 = vmatpush1.bf16.msra.mxu0 %v16888_v35  ;;  %v8179_v35 = vld [vmem:[%s21008_s20 + $0xa10] sm:$0xff] }
 0xbe4   : > { %11298 = vmatpush1.bf16.msra.mxu1 %v16890_v47  ;;  %11213 = vmatprep.subr.bf16.mxu0 %v16905_v14  ;;  %v8187_v47 = vld [vmem:[%s21008_s20 + $0xa50] sm:$0xff]  ;;  %v8180_v14 = vld [vmem:[%s21008_s20 + $0xa18] sm:$0xff] }
 0xbe5   : > { %11299 = vmatprep.subr.bf16.mxu1 %v16907_v40  ;;  %v8188_v40 = vld [vmem:[%s21008_s20 + $0xa58] sm:$0xff]  ;;  %v17001_v16 = vcombine.high %v8179_v35, %v8187_v47  ;;  %v17000_v63 = vcombine.low %v8179_v35, %v8187_v47 }
 0xbe6   : > { %v17003_v25 = vcombine.high %v8180_v14, %v8188_v40  ;;  %v17002_v59 = vcombine.low %v8180_v14, %v8188_v40 }
 0xbe7   : > { %11214 = vmatpush1.bf16.msra.mxu0 %v16904_v19  ;;  %v8195_v19 = vld [vmem:[%s21008_s20 + $0xa90] sm:$0xff] }
 0xbe8   : > { %11300 = vmatpush1.bf16.msra.mxu1 %v16906_v57  ;;  %11215 = vmatprep.subr.bf16.mxu0 %v16921_v54  ;;  %v8203_v57 = vld [vmem:[%s21008_s20 + $0xad0] sm:$0xff]  ;;  %v8196_v54 = vld [vmem:[%s21008_s20 + $0xa98] sm:$0xff] }
 0xbe9   : > { %11301 = vmatprep.subr.bf16.mxu1 %v16923_v5  ;;  %v8204_v5 = vld [vmem:[%s21008_s20 + $0xad8] sm:$0xff]  ;;  %v17017_v4 = vcombine.high %v8195_v19, %v8203_v57  ;;  %v17016_v41 = vcombine.low %v8195_v19, %v8203_v57 }
 0xbea   : > { %v17019_v20 = vcombine.high %v8196_v54, %v8204_v5  ;;  %v17018_v11 = vcombine.low %v8196_v54, %v8204_v5 }
 0xbeb   : > { %11216 = vmatpush1.bf16.msra.mxu0 %v16920_v29  ;;  %v8211_v29 = vld [vmem:[%s21008_s20 + $0xb10] sm:$0xff] }
 0xbec   : > { %11302 = vmatpush1.bf16.msra.mxu1 %v16922_v27  ;;  %11228 = vmatprep.subr.bf16.mxu0 %v16937_v61  ;;  %v8219_v27 = vld [vmem:[%s21008_s20 + $0xb50] sm:$0xff]  ;;  %v8212_v61 = vld [vmem:[%s21008_s20 + $0xb18] sm:$0xff] }
 0xbed   : > { %11314 = vmatprep.subr.bf16.mxu1 %v16939_v23  ;;  %v8220_v23 = vld [vmem:[%s21008_s20 + $0xb58] sm:$0xff]  ;;  %v17032_v49 = vcombine.low %v8211_v29, %v8219_v27 }
 0xbee   : > { %11218 = vmatmul.mubr.bf16.vlgmr.msra.gmra.mrb[52].mxu0 %v22397_v60  ;;  %v17035_v62 = vcombine.high %v8212_v61, %v8220_v23 }
 0xbef   : > { %11304 = vmatmul.mubr.bf16.vlgmr.msra.gmra.mrb[52].mxu1 %v22397_v60  ;;  %11229 = vmatpush1.bf16.msra.mxu0 %v16936_v30  ;;  %v17033_v30 = vcombine.high %v8211_v29, %v8219_v27 }
 0xbf0   : > { %11260 = vmatprep.mubr.bf16.mxu0 %v22411_v48  ;;  %11315 = vmatpush1.bf16.msra.mxu1 %v16938_v46  ;;  %v8235_v46 = vld [vmem:[%s21008_s20 + $0xbd0] sm:$0xff] }
 0xbf1   : > { %11346 = vmatprep.mubr.bf16.mxu1 %v22411_v48  ;;  %11230 = vmatprep.subr.bf16.mxu0 %v16953_v8  ;;  %v8228_v8 = vld [vmem:[%s21008_s20 + $0xb98] sm:$0xff]  ;;  %v17049_v43 = vcombine.high %v8227_v39, %v8235_v46  ;;  %v17048_v24 = vcombine.low %v8227_v39, %v8235_v46 }
 0xbf2   : > { %11316 = vmatprep.subr.bf16.mxu1 %v16955_v12  ;;  %v17034_v12 = vcombine.low %v8212_v61, %v8220_v23  ;;  %v17051_v28 = vcombine.high %v8228_v8, %v8236_v26  ;;  %v17050_v1 = vcombine.low %v8228_v8, %v8236_v26 }
 0xbf3   : > { %11231 = vmatpush1.bf16.msra.mxu0 %v16952_v9  ;;  %v8243_v9 = vld [vmem:[%s21008_s20 + $0xc10] sm:$0xff] }
 0xbf4   : > { %11317 = vmatpush1.bf16.msra.mxu1 %v16954_v31  ;;  %11232 = vmatprep.subr.bf16.mxu0 %v16969_v50  ;;  %v8251_v31 = vld [vmem:[%s21008_s20 + $0xc50] sm:$0xff]  ;;  %v8244_v50 = vld [vmem:[%s21008_s20 + $0xc18] sm:$0xff] }
 0xbf5   : > { %11318 = vmatprep.subr.bf16.mxu1 %v16971_v55  ;;  %v8252_v55 = vld [vmem:[%s21008_s20 + $0xc58] sm:$0xff]  ;;  %v17065_v17 = vcombine.high %v8243_v9, %v8251_v31  ;;  %v17064_v35 = vcombine.low %v8243_v9, %v8251_v31 }
 0xbf6   : > { %v17067_v34 = vcombine.high %v8244_v50, %v8252_v55  ;;  %v17066_v47 = vcombine.low %v8244_v50, %v8252_v55 }
 0xbf7   : > { %11233 = vmatpush1.bf16.msra.mxu0 %v16968_v33  ;;  %v8259_v33 = vld [vmem:[%s21008_s20 + $0xc90] sm:$0xff] }
 0xbf8   : > { %11319 = vmatpush1.bf16.msra.mxu1 %v16970_v37  ;;  %11234 = vmatprep.subr.bf16.mxu0 %v16985_v38  ;;  %v8267_v37 = vld [vmem:[%s21008_s20 + $0xcd0] sm:$0xff]  ;;  %v8260_v38 = vld [vmem:[%s21008_s20 + $0xc98] sm:$0xff] }
 0xbf9   : > { %11320 = vmatprep.subr.bf16.mxu1 %v16987_v52  ;;  %v8268_v52 = vld [vmem:[%s21008_s20 + $0xcd8] sm:$0xff]  ;;  %v17081_v14 = vcombine.high %v8259_v33, %v8267_v37  ;;  %v17080_v19 = vcombine.low %v8259_v33, %v8267_v37 }
 0xbfa   : > { %v17083_v40 = vcombine.high %v8260_v38, %v8268_v52  ;;  %v17082_v57 = vcombine.low %v8260_v38, %v8268_v52 }
 0xbfb   : > { %11235 = vmatpush1.bf16.msra.mxu0 %v16984_v44  ;;  %v8275_v44 = vld [vmem:[%s21008_s20 + $0xd10] sm:$0xff] }
 0xbfc   : > { %11321 = vmatpush1.bf16.msra.mxu1 %v16986_v32  ;;  %11236 = vmatprep.subr.bf16.mxu0 %v17001_v16  ;;  %v8283_v32 = vld [vmem:[%s21008_s20 + $0xd50] sm:$0xff]  ;;  %v8276_v16 = vld [vmem:[%s21008_s20 + $0xd18] sm:$0xff] }
 0xbfd   : > { %11322 = vmatprep.subr.bf16.mxu1 %v17003_v25  ;;  %v8284_v25 = vld [vmem:[%s21008_s20 + $0xd58] sm:$0xff]  ;;  %v17097_v54 = vcombine.high %v8275_v44, %v8283_v32  ;;  %v17096_v29 = vcombine.low %v8275_v44, %v8283_v32 }
 0xbfe   : > { %v17099_v5 = vcombine.high %v8276_v16, %v8284_v25  ;;  %v17098_v27 = vcombine.low %v8276_v16, %v8284_v25 }
 0xbff   : > { %11237 = vmatpush1.bf16.msra.mxu0 %v17000_v63  ;;  %v8291_v63 = vld [vmem:[%s21008_s20 + $0xd90] sm:$0xff] }
 0xc00   : > { %11323 = vmatpush1.bf16.msra.mxu1 %v17002_v59  ;;  %11238 = vmatprep.subr.bf16.mxu0 %v17017_v4  ;;  %v8299_v59 = vld [vmem:[%s21008_s20 + $0xdd0] sm:$0xff]  ;;  %v8292_v4 = vld [vmem:[%s21008_s20 + $0xd98] sm:$0xff] }
 0xc01   : > { %11324 = vmatprep.subr.bf16.mxu1 %v17019_v20  ;;  %v8300_v20 = vld [vmem:[%s21008_s20 + $0xdd8] sm:$0xff]  ;;  %v17113_v61 = vcombine.high %v8291_v63, %v8299_v59  ;;  %v17112_v39 = vcombine.low %v8291_v63, %v8299_v59 }
 0xc02   : > { %v17115_v23 = vcombine.high %v8292_v4, %v8300_v20  ;;  %v17114_v46 = vcombine.low %v8292_v4, %v8300_v20 }
 0xc03   : > { %11239 = vmatpush1.bf16.msra.mxu0 %v17016_v41  ;;  %v8307_v41 = vld [vmem:[%s21008_s20 + $0xe10] sm:$0xff] }
 0xc04   : > { %11325 = vmatpush1.bf16.msra.mxu1 %v17018_v11  ;;  %11240 = vmatprep.subr.bf16.mxu0 %v17033_v30  ;;  %v8315_v11 = vld [vmem:[%s21008_s20 + $0xe50] sm:$0xff]  ;;  %v8308_v30 = vld [vmem:[%s21008_s20 + $0xe18] sm:$0xff] }
 0xc05   : > { %11326 = vmatprep.subr.bf16.mxu1 %v17035_v62  ;;  %v8316_v62 = vld [vmem:[%s21008_s20 + $0xe58] sm:$0xff]  ;;  %v17129_v8 = vcombine.high %v8307_v41, %v8315_v11  ;;  %v17128_v9 = vcombine.low %v8307_v41, %v8315_v11  ;;  %v7886_v41 = vld [vmem:[%s21008_s20 + $0xe8] sm:$0xff] }
 0xc06   : > { %v17131_v26 = vcombine.high %v8308_v30, %v8316_v62  ;;  %v17130_v31 = vcombine.low %v8308_v30, %v8316_v62  ;;  %v7893_v62 = vld [vmem:[%s21008_s20 + $0x120] sm:$0xff] }
 0xc07   : > { %11241 = vmatpush1.bf16.msra.mxu0 %v17032_v49  ;;  %v8323_v49 = vld [vmem:[%s21008_s20 + $0xe90] sm:$0xff] }
 0xc08   : > { %11327 = vmatpush1.bf16.msra.mxu1 %v17034_v12  ;;  %11242 = vmatprep.subr.bf16.mxu0 %v17049_v43  ;;  %v8331_v12 = vld [vmem:[%s21008_s20 + $0xed0] sm:$0xff]  ;;  %v8324_v43 = vld [vmem:[%s21008_s20 + $0xe98] sm:$0xff] }
 0xc09   : > { %11328 = vmatprep.subr.bf16.mxu1 %v17051_v28  ;;  %v8332_v28 = vld [vmem:[%s21008_s20 + $0xed8] sm:$0xff]  ;;  %v17145_v50 = vcombine.high %v8323_v49, %v8331_v12  ;;  %v17144_v33 = vcombine.low %v8323_v49, %v8331_v12 }
 0xc0a   : > { %v17147_v55 = vcombine.high %v8324_v43, %v8332_v28  ;;  %v17146_v37 = vcombine.low %v8324_v43, %v8332_v28 }
 0xc0b   : > { %11243 = vmatpush1.bf16.msra.mxu0 %v17048_v24  ;;  %v8339_v24 = vld [vmem:[%s21008_s20 + $0xf10] sm:$0xff] }
 0xc0c   : > { %11329 = vmatpush1.bf16.msra.mxu1 %v17050_v1  ;;  %11244 = vmatprep.subr.bf16.mxu0 %v17065_v17  ;;  %v8347_v1 = vld [vmem:[%s21008_s20 + $0xf50] sm:$0xff]  ;;  %v8340_v17 = vld [vmem:[%s21008_s20 + $0xf18] sm:$0xff] }
 0xc0d   : > { %11330 = vmatprep.subr.bf16.mxu1 %v17067_v34  ;;  %v8348_v34 = vld [vmem:[%s21008_s20 + $0xf58] sm:$0xff]  ;;  %v17161_v38 = vcombine.high %v8339_v24, %v8347_v1  ;;  %v17160_v44 = vcombine.low %v8339_v24, %v8347_v1 }
 0xc0e   : > { %v17163_v52 = vcombine.high %v8340_v17, %v8348_v34  ;;  %v17162_v32 = vcombine.low %v8340_v17, %v8348_v34 }
 0xc0f   : > { %11245 = vmatpush1.bf16.msra.mxu0 %v17064_v35  ;;  %v8355_v35 = vld [vmem:[%s21008_s20 + $0xf90] sm:$0xff] }
 0xc10   : > { %11331 = vmatpush1.bf16.msra.mxu1 %v17066_v47  ;;  %11246 = vmatprep.subr.bf16.mxu0 %v17081_v14  ;;  %v8363_v47 = vld [vmem:[%s21008_s20 + $0xfd0] sm:$0xff]  ;;  %v8356_v14 = vld [vmem:[%s21008_s20 + $0xf98] sm:$0xff] }
 0xc11   : > { %11332 = vmatprep.subr.bf16.mxu1 %v17083_v40  ;;  %v8364_v40 = vld [vmem:[%s21008_s20 + $0xfd8] sm:$0xff]  ;;  %v17177_v16 = vcombine.high %v8355_v35, %v8363_v47  ;;  %v17176_v63 = vcombine.low %v8355_v35, %v8363_v47 }
 0xc12   : > { %v17179_v25 = vcombine.high %v8356_v14, %v8364_v40  ;;  %v17178_v59 = vcombine.low %v8356_v14, %v8364_v40 }
 0xc13   : > { %11247 = vmatpush1.bf16.msra.mxu0 %v17080_v19  ;;  %v7861_v19 = vld [vmem:[%s21008_s20 + $0x20] sm:$0xff] }
 0xc14   : > { %11333 = vmatpush1.bf16.msra.mxu1 %v17082_v57  ;;  %11248 = vmatprep.subr.bf16.mxu0 %v17097_v54  ;;  %v7869_v57 = vld [vmem:[%s21008_s20 + $0x60] sm:$0xff]  ;;  %v7862_v54 = vld [vmem:[%s21008_s20 + $0x28] sm:$0xff] }
 0xc15   : > { %11334 = vmatprep.subr.bf16.mxu1 %v17099_v5  ;;  %v7870_v5 = vld [vmem:[%s21008_s20 + $0x68] sm:$0xff]  ;;  %v16685_v4 = vcombine.high %v7861_v19, %v7869_v57 }
 0xc16   : > { %v16687_v20 = vcombine.high %v7862_v54, %v7870_v5  ;;  %v16686_v11 = vcombine.low %v7862_v54, %v7870_v5 }
 0xc17   : > { %11249 = vmatpush1.bf16.msra.mxu0 %v17096_v29  ;;  %v7877_v29 = vld [vmem:[%s21008_s20 + $0xa0] sm:$0xff] }
 0xc18   : > { %11335 = vmatpush1.bf16.msra.mxu1 %v17098_v27  ;;  %11250 = vmatprep.subr.bf16.mxu0 %v17113_v61  ;;  %v7885_v27 = vld [vmem:[%s21008_s20 + $0xe0] sm:$0xff]  ;;  %v16684_v61 = vcombine.low %v7861_v19, %v7869_v57 }
 0xc19   : > { %11336 = vmatprep.subr.bf16.mxu1 %v17115_v23  ;;  %v7878_v23 = vld [vmem:[%s21008_s20 + $0xa8] sm:$0xff]  ;;  %v16701_v30 = vcombine.high %v7877_v29, %v7885_v27  ;;  %v16700_v49 = vcombine.low %v7877_v29, %v7885_v27 }
 0xc1a   : > { %v16702_v12 = vcombine.low %v7878_v23, %v7886_v41 }
 0xc1b   : > { %11251 = vmatpush1.bf16.msra.mxu0 %v17112_v39  ;;  %v7901_v39 = vld [vmem:[%s21008_s20 + $0x160] sm:$0xff] }
 0xc1c   : > { %11337 = vmatpush1.bf16.msra.mxu1 %v17114_v46  ;;  %11252 = vmatprep.subr.bf16.mxu0 %v17129_v8  ;;  %v16703_v46 = vcombine.high %v7878_v23, %v7886_v41  ;;  %v7894_v8 = vld [vmem:[%s21008_s20 + $0x128] sm:$0xff]  ;;  %v16717_v43 = vcombine.high %v7893_v62, %v7901_v39  ;;  %v16716_v24 = vcombine.low %v7893_v62, %v7901_v39  ;;  %v7973_v41 = vld [vmem:[%s21008_s20 + $0x3a0] sm:$0xff] }
 0xc1d   : > { %11338 = vmatprep.subr.bf16.mxu1 %v17131_v26  ;;  %v7902_v26 = vld [vmem:[%s21008_s20 + $0x168] sm:$0xff] }
 0xc1e   : > { %v16719_v28 = vcombine.high %v7894_v8, %v7902_v26  ;;  %v16718_v1 = vcombine.low %v7894_v8, %v7902_v26  ;;  %v7982_v62 = vld [vmem:[%s21008_s20 + $0x3e8] sm:$0xff] }
 0xc1f   : > { %11253 = vmatpush1.bf16.msra.mxu0 %v17128_v9  ;;  %v7909_v9 = vld [vmem:[%s21008_s20 + $0x1a0] sm:$0xff] }
 0xc20   : > { %11339 = vmatpush1.bf16.msra.mxu1 %v17130_v31  ;;  %11254 = vmatprep.subr.bf16.mxu0 %v17145_v50  ;;  %v7917_v31 = vld [vmem:[%s21008_s20 + $0x1e0] sm:$0xff]  ;;  %v7910_v50 = vld [vmem:[%s21008_s20 + $0x1a8] sm:$0xff] }
 0xc21   : > { %11340 = vmatprep.subr.bf16.mxu1 %v17147_v55  ;;  %v7918_v55 = vld [vmem:[%s21008_s20 + $0x1e8] sm:$0xff]  ;;  %v16733_v17 = vcombine.high %v7909_v9, %v7917_v31  ;;  %v16732_v35 = vcombine.low %v7909_v9, %v7917_v31 }
 0xc22   : > { %v16735_v34 = vcombine.high %v7910_v50, %v7918_v55  ;;  %v16734_v47 = vcombine.low %v7910_v50, %v7918_v55 }
 0xc23   : > { %11255 = vmatpush1.bf16.msra.mxu0 %v17144_v33  ;;  %v7925_v33 = vld [vmem:[%s21008_s20 + $0x220] sm:$0xff] }
 0xc24   : > { %11341 = vmatpush1.bf16.msra.mxu1 %v17146_v37  ;;  %11256 = vmatprep.subr.bf16.mxu0 %v17161_v38  ;;  %v7933_v37 = vld [vmem:[%s21008_s20 + $0x260] sm:$0xff]  ;;  %v7926_v38 = vld [vmem:[%s21008_s20 + $0x228] sm:$0xff] }
 0xc25   : > { %11342 = vmatprep.subr.bf16.mxu1 %v17163_v52  ;;  %v7934_v52 = vld [vmem:[%s21008_s20 + $0x268] sm:$0xff]  ;;  %v16749_v14 = vcombine.high %v7925_v33, %v7933_v37  ;;  %v16748_v19 = vcombine.low %v7925_v33, %v7933_v37 }
 0xc26   : > { %v16751_v40 = vcombine.high %v7926_v38, %v7934_v52  ;;  %v16750_v57 = vcombine.low %v7926_v38, %v7934_v52 }
 0xc27   : > { %11257 = vmatpush1.bf16.msra.mxu0 %v17160_v44  ;;  %v7941_v44 = vld [vmem:[%s21008_s20 + $0x2a0] sm:$0xff] }
 0xc28   : > { %11343 = vmatpush1.bf16.msra.mxu1 %v17162_v32  ;;  %11258 = vmatprep.subr.bf16.mxu0 %v17177_v16  ;;  %v7949_v32 = vld [vmem:[%s21008_s20 + $0x2e0] sm:$0xff]  ;;  %v7942_v16 = vld [vmem:[%s21008_s20 + $0x2a8] sm:$0xff] }
 0xc29   : > { %11344 = vmatprep.subr.bf16.mxu1 %v17179_v25  ;;  %v7950_v25 = vld [vmem:[%s21008_s20 + $0x2e8] sm:$0xff]  ;;  %v16765_v54 = vcombine.high %v7941_v44, %v7949_v32  ;;  %v16764_v29 = vcombine.low %v7941_v44, %v7949_v32 }
 0xc2a   : > { %v16767_v5 = vcombine.high %v7942_v16, %v7950_v25  ;;  %v16766_v27 = vcombine.low %v7942_v16, %v7950_v25 }
 0xc2b   : > { %11259 = vmatpush1.bf16.msra.mxu0 %v17176_v63  ;;  %v7957_v63 = vld [vmem:[%s21008_s20 + $0x320] sm:$0xff] }
 0xc2c   : > { %11345 = vmatpush1.bf16.msra.mxu1 %v17178_v59  ;;  %11357 = vmatprep.subr.bf16.mxu0 %v16685_v4  ;;  %v7965_v59 = vld [vmem:[%s21008_s20 + $0x360] sm:$0xff]  ;;  %v7958_v4 = vld [vmem:[%s21008_s20 + $0x328] sm:$0xff] }
 0xc2d   : > { %11443 = vmatprep.subr.bf16.mxu1 %v16687_v20  ;;  %v7966_v20 = vld [vmem:[%s21008_s20 + $0x368] sm:$0xff]  ;;  %v16780_v39 = vcombine.low %v7957_v63, %v7965_v59 }
 0xc2e   : > { %11261 = vmatmul.mubr.bf16.vlgmr.msra.gmra.mrb[52].mxu0 %v22483_v42  ;;  %v16783_v23 = vcombine.high %v7958_v4, %v7966_v20 }
 0xc2f   : > { %11347 = vmatmul.mubr.bf16.vlgmr.msra.gmra.mrb[52].mxu1 %v22483_v42  ;;  %11358 = vmatpush1.bf16.msra.mxu0 %v16684_v61  ;;  %v16781_v61 = vcombine.high %v7957_v63, %v7965_v59 }
 0xc30   : > { %11389 = vmatprep.mubr.bf16.mxu0 %v22393_v7  ;;  %11444 = vmatpush1.bf16.msra.mxu1 %v16686_v11  ;;  %v7981_v11 = vld [vmem:[%s21008_s20 + $0x3e0] sm:$0xff] }
 0xc31   : > { %11475 = vmatprep.mubr.bf16.mxu1 %v22393_v7  ;;  %11359 = vmatprep.subr.bf16.mxu0 %v16701_v30  ;;  %v7974_v30 = vld [vmem:[%s21008_s20 + $0x3a8] sm:$0xff]  ;;  %v16797_v8 = vcombine.high %v7973_v41, %v7981_v11  ;;  %v16796_v9 = vcombine.low %v7973_v41, %v7981_v11 }
 0xc32   : > { %11445 = vmatprep.subr.bf16.mxu1 %v16703_v46  ;;  %v16782_v46 = vcombine.low %v7958_v4, %v7966_v20  ;;  %v16799_v26 = vcombine.high %v7974_v30, %v7982_v62  ;;  %v16798_v31 = vcombine.low %v7974_v30, %v7982_v62 }
 0xc33   : > { %11360 = vmatpush1.bf16.msra.mxu0 %v16700_v49  ;;  %v7989_v49 = vld [vmem:[%s21008_s20 + $0x420] sm:$0xff] }
 0xc34   : > { %11446 = vmatpush1.bf16.msra.mxu1 %v16702_v12  ;;  %11361 = vmatprep.subr.bf16.mxu0 %v16717_v43  ;;  %v7997_v12 = vld [vmem:[%s21008_s20 + $0x460] sm:$0xff]  ;;  %v7990_v43 = vld [vmem:[%s21008_s20 + $0x428] sm:$0xff] }
 0xc35   : > { %11447 = vmatprep.subr.bf16.mxu1 %v16719_v28  ;;  %v7998_v28 = vld [vmem:[%s21008_s20 + $0x468] sm:$0xff]  ;;  %v16813_v50 = vcombine.high %v7989_v49, %v7997_v12  ;;  %v16812_v33 = vcombine.low %v7989_v49, %v7997_v12 }
 0xc36   : > { %v16815_v55 = vcombine.high %v7990_v43, %v7998_v28  ;;  %v16814_v37 = vcombine.low %v7990_v43, %v7998_v28 }
 0xc37   : > { %11362 = vmatpush1.bf16.msra.mxu0 %v16716_v24  ;;  %v8005_v24 = vld [vmem:[%s21008_s20 + $0x4a0] sm:$0xff] }
 0xc38   : > { %11448 = vmatpush1.bf16.msra.mxu1 %v16718_v1  ;;  %11363 = vmatprep.subr.bf16.mxu0 %v16733_v17  ;;  %v8013_v1 = vld [vmem:[%s21008_s20 + $0x4e0] sm:$0xff]  ;;  %v8006_v17 = vld [vmem:[%s21008_s20 + $0x4a8] sm:$0xff] }
 0xc39   : > { %11449 = vmatprep.subr.bf16.mxu1 %v16735_v34  ;;  %v8014_v34 = vld [vmem:[%s21008_s20 + $0x4e8] sm:$0xff]  ;;  %v16829_v38 = vcombine.high %v8005_v24, %v8013_v1  ;;  %v16828_v44 = vcombine.low %v8005_v24, %v8013_v1 }
 0xc3a   : > { %v16831_v52 = vcombine.high %v8006_v17, %v8014_v34  ;;  %v16830_v32 = vcombine.low %v8006_v17, %v8014_v34 }
 0xc3b   : > { %11364 = vmatpush1.bf16.msra.mxu0 %v16732_v35  ;;  %v8021_v35 = vld [vmem:[%s21008_s20 + $0x520] sm:$0xff] }
 0xc3c   : > { %11450 = vmatpush1.bf16.msra.mxu1 %v16734_v47  ;;  %11365 = vmatprep.subr.bf16.mxu0 %v16749_v14  ;;  %v8029_v47 = vld [vmem:[%s21008_s20 + $0x560] sm:$0xff]  ;;  %v8022_v14 = vld [vmem:[%s21008_s20 + $0x528] sm:$0xff] }
 0xc3d   : > { %11451 = vmatprep.subr.bf16.mxu1 %v16751_v40  ;;  %v8030_v40 = vld [vmem:[%s21008_s20 + $0x568] sm:$0xff]  ;;  %v16845_v16 = vcombine.high %v8021_v35, %v8029_v47  ;;  %v16844_v63 = vcombine.low %v8021_v35, %v8029_v47 }
 0xc3e   : > { %v16847_v25 = vcombine.high %v8022_v14, %v8030_v40  ;;  %v16846_v59 = vcombine.low %v8022_v14, %v8030_v40 }
 0xc3f   : > { %11366 = vmatpush1.bf16.msra.mxu0 %v16748_v19  ;;  %v8037_v19 = vld [vmem:[%s21008_s20 + $0x5a0] sm:$0xff] }
 0xc40   : > { %11452 = vmatpush1.bf16.msra.mxu1 %v16750_v57  ;;  %11367 = vmatprep.subr.bf16.mxu0 %v16765_v54  ;;  %v8045_v57 = vld [vmem:[%s21008_s20 + $0x5e0] sm:$0xff]  ;;  %v8038_v54 = vld [vmem:[%s21008_s20 + $0x5a8] sm:$0xff] }
 0xc41   : > { %11453 = vmatprep.subr.bf16.mxu1 %v16767_v5  ;;  %v8046_v5 = vld [vmem:[%s21008_s20 + $0x5e8] sm:$0xff]  ;;  %v16861_v4 = vcombine.high %v8037_v19, %v8045_v57  ;;  %v16860_v41 = vcombine.low %v8037_v19, %v8045_v57 }
 0xc42   : > { %v16863_v20 = vcombine.high %v8038_v54, %v8046_v5  ;;  %v16862_v11 = vcombine.low %v8038_v54, %v8046_v5 }
 0xc43   : > { %11368 = vmatpush1.bf16.msra.mxu0 %v16764_v29  ;;  %v8053_v29 = vld [vmem:[%s21008_s20 + $0x620] sm:$0xff] }
 0xc44   : > { %11454 = vmatpush1.bf16.msra.mxu1 %v16766_v27  ;;  %11369 = vmatprep.subr.bf16.mxu0 %v16781_v61  ;;  %v8061_v27 = vld [vmem:[%s21008_s20 + $0x660] sm:$0xff]  ;;  %v8054_v61 = vld [vmem:[%s21008_s20 + $0x628] sm:$0xff] }
 0xc45   : > { %11455 = vmatprep.subr.bf16.mxu1 %v16783_v23  ;;  %v8062_v23 = vld [vmem:[%s21008_s20 + $0x668] sm:$0xff]  ;;  %v16877_v30 = vcombine.high %v8053_v29, %v8061_v27  ;;  %v16876_v49 = vcombine.low %v8053_v29, %v8061_v27 }
 0xc46   : > { %v16879_v62 = vcombine.high %v8054_v61, %v8062_v23  ;;  %v16878_v12 = vcombine.low %v8054_v61, %v8062_v23  ;;  %v8142_v29 = vld [vmem:[%s21008_s20 + $0x8e8] sm:$0xff]  ;;  %v8149_v23 = vld [vmem:[%s21008_s20 + $0x920] sm:$0xff] }
 0xc47   : > { %11370 = vmatpush1.bf16.msra.mxu0 %v16780_v39  ;;  %v8069_v39 = vld [vmem:[%s21008_s20 + $0x6a0] sm:$0xff] }
 0xc48   : > { %11456 = vmatpush1.bf16.msra.mxu1 %v16782_v46  ;;  %11371 = vmatprep.subr.bf16.mxu0 %v16797_v8  ;;  %v8077_v46 = vld [vmem:[%s21008_s20 + $0x6e0] sm:$0xff]  ;;  %v8070_v8 = vld [vmem:[%s21008_s20 + $0x6a8] sm:$0xff] }
 0xc49   : > { %11457 = vmatprep.subr.bf16.mxu1 %v16799_v26  ;;  %v8078_v26 = vld [vmem:[%s21008_s20 + $0x6e8] sm:$0xff]  ;;  %v16893_v43 = vcombine.high %v8069_v39, %v8077_v46  ;;  %v16892_v24 = vcombine.low %v8069_v39, %v8077_v46 }
 0xc4a   : > { %v16895_v28 = vcombine.high %v8070_v8, %v8078_v26  ;;  %v16894_v1 = vcombine.low %v8070_v8, %v8078_v26 }
 0xc4b   : > { %11372 = vmatpush1.bf16.msra.mxu0 %v16796_v9  ;;  %v8085_v9 = vld [vmem:[%s21008_s20 + $0x720] sm:$0xff] }
 0xc4c   : > { %11458 = vmatpush1.bf16.msra.mxu1 %v16798_v31  ;;  %11373 = vmatprep.subr.bf16.mxu0 %v16813_v50  ;;  %v8093_v31 = vld [vmem:[%s21008_s20 + $0x760] sm:$0xff]  ;;  %v8086_v50 = vld [vmem:[%s21008_s20 + $0x728] sm:$0xff] }
 0xc4d   : > { %11459 = vmatprep.subr.bf16.mxu1 %v16815_v55  ;;  %v8094_v55 = vld [vmem:[%s21008_s20 + $0x768] sm:$0xff]  ;;  %v16909_v17 = vcombine.high %v8085_v9, %v8093_v31  ;;  %v16908_v35 = vcombine.low %v8085_v9, %v8093_v31 }
 0xc4e   : > { %v16911_v34 = vcombine.high %v8086_v50, %v8094_v55  ;;  %v16910_v47 = vcombine.low %v8086_v50, %v8094_v55 }
 0xc4f   : > { %11374 = vmatpush1.bf16.msra.mxu0 %v16812_v33  ;;  %v8101_v33 = vld [vmem:[%s21008_s20 + $0x7a0] sm:$0xff] }
 0xc50   : > { %11460 = vmatpush1.bf16.msra.mxu1 %v16814_v37  ;;  %11375 = vmatprep.subr.bf16.mxu0 %v16829_v38  ;;  %v8109_v37 = vld [vmem:[%s21008_s20 + $0x7e0] sm:$0xff]  ;;  %v8102_v38 = vld [vmem:[%s21008_s20 + $0x7a8] sm:$0xff] }
 0xc51   : > { %11461 = vmatprep.subr.bf16.mxu1 %v16831_v52  ;;  %v8110_v52 = vld [vmem:[%s21008_s20 + $0x7e8] sm:$0xff]  ;;  %v16925_v14 = vcombine.high %v8101_v33, %v8109_v37  ;;  %v16924_v19 = vcombine.low %v8101_v33, %v8109_v37 }
 0xc52   : > { %v16927_v40 = vcombine.high %v8102_v38, %v8110_v52  ;;  %v16926_v57 = vcombine.low %v8102_v38, %v8110_v52 }
 0xc53   : > { %11376 = vmatpush1.bf16.msra.mxu0 %v16828_v44  ;;  %v8117_v44 = vld [vmem:[%s21008_s20 + $0x820] sm:$0xff] }
 0xc54   : > { %11462 = vmatpush1.bf16.msra.mxu1 %v16830_v32  ;;  %11377 = vmatprep.subr.bf16.mxu0 %v16845_v16  ;;  %v8125_v32 = vld [vmem:[%s21008_s20 + $0x860] sm:$0xff]  ;;  %v8118_v16 = vld [vmem:[%s21008_s20 + $0x828] sm:$0xff] }
 0xc55   : > { %11463 = vmatprep.subr.bf16.mxu1 %v16847_v25  ;;  %v8126_v25 = vld [vmem:[%s21008_s20 + $0x868] sm:$0xff]  ;;  %v16941_v54 = vcombine.high %v8117_v44, %v8125_v32 }
 0xc56   : > { %v16943_v5 = vcombine.high %v8118_v16, %v8126_v25  ;;  %v16942_v27 = vcombine.low %v8118_v16, %v8126_v25 }
 0xc57   : > { %11378 = vmatpush1.bf16.msra.mxu0 %v16844_v63  ;;  %v8133_v63 = vld [vmem:[%s21008_s20 + $0x8a0] sm:$0xff] }
 0xc58   : > { %11464 = vmatpush1.bf16.msra.mxu1 %v16846_v59  ;;  %11379 = vmatprep.subr.bf16.mxu0 %v16861_v4  ;;  %v8141_v59 = vld [vmem:[%s21008_s20 + $0x8e0] sm:$0xff]  ;;  %v16940_v4 = vcombine.low %v8117_v44, %v8125_v32 }
 0xc59   : > { %11465 = vmatprep.subr.bf16.mxu1 %v16863_v20  ;;  %v8134_v20 = vld [vmem:[%s21008_s20 + $0x8a8] sm:$0xff]  ;;  %v16957_v61 = vcombine.high %v8133_v63, %v8141_v59  ;;  %v16956_v39 = vcombine.low %v8133_v63, %v8141_v59  ;;  %v22710_v32 = vld [vmem:[%s21010_s22] sm:$0xff] }
 0xc5a   : > { %v16958_v46 = vcombine.low %v8134_v20, %v8142_v29  ;;  %v8384_v63 = vrot.slane %v22710_v32, %v21530_v6  ;;  %v8214_v59 = vld [vmem:[%s21008_s20 + $0xb28] sm:$0xff] }
 0xc5b   : > { %11380 = vmatpush1.bf16.msra.mxu0 %v16860_v41  ;;  %v8157_v41 = vld [vmem:[%s21008_s20 + $0x960] sm:$0xff] }
 0xc5c   : > { %11466 = vmatpush1.bf16.msra.mxu1 %v16862_v11  ;;  %11381 = vmatprep.subr.bf16.mxu0 %v16877_v30  ;;  %v16959_v11 = vcombine.high %v8134_v20, %v8142_v29  ;;  %v8150_v30 = vld [vmem:[%s21008_s20 + $0x928] sm:$0xff]  ;;  %v16973_v8 = vcombine.high %v8149_v23, %v8157_v41  ;;  %v16972_v9 = vcombine.low %v8149_v23, %v8157_v41 }
 0xc5d   : > { %11467 = vmatprep.subr.bf16.mxu1 %v16879_v62  ;;  %v8158_v62 = vld [vmem:[%s21008_s20 + $0x968] sm:$0xff]  ;;  %v8380_v20 = vrot.slane %v22710_v32, %v21519_v10  ;;  %v8388_v29 = vrot.slane %v22710_v32, %v21553_v21 }
 0xc5e   : > { %v16975_v26 = vcombine.high %v8150_v30, %v8158_v62  ;;  %v16974_v31 = vcombine.low %v8150_v30, %v8158_v62  ;;  %v8229_v62 = vld [vmem:[%s21008_s20 + $0xba0] sm:$0xff] }
 0xc5f   : > { %11382 = vmatpush1.bf16.msra.mxu0 %v16876_v49  ;;  %v8165_v49 = vld [vmem:[%s21008_s20 + $0x9a0] sm:$0xff] }
 0xc60   : > { %11468 = vmatpush1.bf16.msra.mxu1 %v16878_v12  ;;  %11383 = vmatprep.subr.bf16.mxu0 %v16893_v43  ;;  %v8173_v12 = vld [vmem:[%s21008_s20 + $0x9e0] sm:$0xff]  ;;  %v8166_v43 = vld [vmem:[%s21008_s20 + $0x9a8] sm:$0xff] }
 0xc61   : > { %11469 = vmatprep.subr.bf16.mxu1 %v16895_v28  ;;  %v8174_v28 = vld [vmem:[%s21008_s20 + $0x9e8] sm:$0xff]  ;;  %v16989_v50 = vcombine.high %v8165_v49, %v8173_v12  ;;  %v16988_v33 = vcombine.low %v8165_v49, %v8173_v12 }
 0xc62   : > { %v16991_v55 = vcombine.high %v8166_v43, %v8174_v28  ;;  %v16990_v37 = vcombine.low %v8166_v43, %v8174_v28  ;;  %v8230_v12 = vld [vmem:[%s21008_s20 + $0xba8] sm:$0xff] }
 0xc63   : > { %11384 = vmatpush1.bf16.msra.mxu0 %v16892_v24  ;;  %v8181_v24 = vld [vmem:[%s21008_s20 + $0xa20] sm:$0xff]  ;;  %v8238_v43 = vld [vmem:[%s21008_s20 + $0xbe8] sm:$0xff] }
 0xc64   : > { %11470 = vmatpush1.bf16.msra.mxu1 %v16894_v1  ;;  %11385 = vmatprep.subr.bf16.mxu0 %v16909_v17  ;;  %v8189_v1 = vld [vmem:[%s21008_s20 + $0xa60] sm:$0xff]  ;;  %v8182_v17 = vld [vmem:[%s21008_s20 + $0xa28] sm:$0xff] }
 0xc65   : > { %11471 = vmatprep.subr.bf16.mxu1 %v16911_v34  ;;  %v8190_v34 = vld [vmem:[%s21008_s20 + $0xa68] sm:$0xff]  ;;  %v17005_v38 = vcombine.high %v8181_v24, %v8189_v1  ;;  %v17004_v44 = vcombine.low %v8181_v24, %v8189_v1 }
 0xc66   : > { %v17007_v52 = vcombine.high %v8182_v17, %v8190_v34  ;;  %v17006_v16 = vcombine.low %v8182_v17, %v8190_v34 }
 0xc67   : > { %11386 = vmatpush1.bf16.msra.mxu0 %v16908_v35  ;;  %v8197_v35 = vld [vmem:[%s21008_s20 + $0xaa0] sm:$0xff] }
 0xc68   : > { %11472 = vmatpush1.bf16.msra.mxu1 %v16910_v47  ;;  %11387 = vmatprep.subr.bf16.mxu0 %v16925_v14  ;;  %v8205_v47 = vld [vmem:[%s21008_s20 + $0xae0] sm:$0xff]  ;;  %v8198_v14 = vld [vmem:[%s21008_s20 + $0xaa8] sm:$0xff] }
 0xc69   : > { %11473 = vmatprep.subr.bf16.mxu1 %v16927_v40  ;;  %v8206_v40 = vld [vmem:[%s21008_s20 + $0xae8] sm:$0xff]  ;;  %v17021_v25 = vcombine.high %v8197_v35, %v8205_v47 }
 0xc6b   : > { %11388 = vmatpush1.bf16.msra.mxu0 %v16924_v19  ;;  %v17023_v19 = vcombine.high %v8198_v14, %v8206_v40 }
 0xc6c   : > { %11474 = vmatpush1.bf16.msra.mxu1 %v16926_v57  ;;  %11400 = vmatprep.subr.bf16.mxu0 %v16941_v54  ;;  %v8213_v57 = vld [vmem:[%s21008_s20 + $0xb20] sm:$0xff] }
 0xc6d   : > { %11486 = vmatprep.subr.bf16.mxu1 %v16943_v5  ;;  %v8221_v54 = vld [vmem:[%s21008_s20 + $0xb60] sm:$0xff]  ;;  %v8376_v5 = vrot.slane %v22710_v32, %v21514_v56 }
 0xc6e   : > { %11390 = vmatmul.mubr.bf16.vlgmr.msra.gmra.mrb[56].mxu0 %v22397_v60  ;;  %v17037_v23 = vcombine.high %v8213_v57, %v8221_v54 }
 0xc6f   : > { %11476 = vmatmul.mubr.bf16.vlgmr.msra.gmra.mrb[56].mxu1 %v22397_v60  ;;  %11401 = vmatpush1.bf16.msra.mxu0 %v16940_v4  ;;  %v8222_v4 = vld [vmem:[%s21008_s20 + $0xb68] sm:$0xff] }
 0xc70   : > { %11432 = vmatprep.mubr.bf16.mxu0 %v22411_v48  ;;  %11487 = vmatpush1.bf16.msra.mxu1 %v16942_v27  ;;  %v17020_v27 = vcombine.low %v8197_v35, %v8205_v47  ;;  %v17039_v30 = vcombine.high %v8214_v59, %v8222_v4  ;;  %v17038_v17 = vcombine.low %v8214_v59, %v8222_v4  ;;  %v8253_v35 = vld [vmem:[%s21008_s20 + $0xc60] sm:$0xff] }
 0xc71   : > { %11518 = vmatprep.mubr.bf16.mxu1 %v22411_v48  ;;  %11402 = vmatprep.subr.bf16.mxu0 %v16957_v61  ;;  %v17022_v61 = vcombine.low %v8198_v14, %v8206_v40 }
 0xc72   : > { %11488 = vmatprep.subr.bf16.mxu1 %v16959_v11 }
 0xc73   : > { %11403 = vmatpush1.bf16.msra.mxu0 %v16956_v39  ;;  %v8237_v39 = vld [vmem:[%s21008_s20 + $0xbe0] sm:$0xff] }
 0xc74   : > { %11489 = vmatpush1.bf16.msra.mxu1 %v16958_v46  ;;  %11404 = vmatprep.subr.bf16.mxu0 %v16973_v8  ;;  %v17053_v34 = vcombine.high %v8229_v62, %v8237_v39 }
 0xc75   : > { %11490 = vmatprep.subr.bf16.mxu1 %v16975_v26 }
 0xc77   : > { %11405 = vmatpush1.bf16.msra.mxu0 %v16972_v9 }
 0xc78   : > { %11491 = vmatpush1.bf16.msra.mxu1 %v16974_v31  ;;  %11406 = vmatprep.subr.bf16.mxu0 %v16989_v50 }
 0xc79   : > { %11492 = vmatprep.subr.bf16.mxu1 %v16991_v55  ;;  %v17036_v55 = vcombine.low %v8213_v57, %v8221_v54  ;;  %v17052_v54 = vcombine.low %v8229_v62, %v8237_v39 }
 0xc7b   : > { %11407 = vmatpush1.bf16.msra.mxu0 %v16988_v33 }
 0xc7c   : > { %11493 = vmatpush1.bf16.msra.mxu1 %v16990_v37  ;;  %11408 = vmatprep.subr.bf16.mxu0 %v17005_v38  ;;  %v17055_v38 = vcombine.high %v8230_v12, %v8238_v43 }
 0xc7d   : > { %11494 = vmatprep.subr.bf16.mxu1 %v17007_v52  ;;  %v8245_v52 = vld [vmem:[%s21008_s20 + $0xc20] sm:$0xff] }
 0xc7e   : > { %v17069_v59 = vcombine.high %v8245_v52, %v8253_v35 }
 0xc7f   : > { %11409 = vmatpush1.bf16.msra.mxu0 %v17004_v44 }
 0xc80   : > { %11495 = vmatpush1.bf16.msra.mxu1 %v17006_v16  ;;  %11410 = vmatprep.subr.bf16.mxu0 %v17021_v25  ;;  %v8246_v16 = vld [vmem:[%s21008_s20 + $0xc28] sm:$0xff] }
 0xc81   : > { %v11090_v41 = vpop.f32.mrb[48].mxu0  ;;  %v11176_v11 = vpop.f32.mrb[48].mxu1  ;;  %11496 = vmatprep.subr.bf16.mxu1 %v17023_v19  ;;  %v8254_v25 = vld [vmem:[%s21008_s20 + $0xc68] sm:$0xff] }
 0xc82   : > { %v22726_v46 = vadd.f32 %v11090_v41, %v8376_v5  ;;  %v22728_v8 = vadd.f32 %v11176_v11, %v8384_v63  ;;  %v11092_v26 = vpop.f32.mrb[49].mxu0  ;;  %v11178_v49 = vpop.f32.mrb[49].mxu1  ;;  %v8262_v41 = vld [vmem:[%s21008_s20 + $0xca8] sm:$0xff]  ;;  %v17070_v62 = vcombine.low %v8246_v16, %v8254_v25 }
 0xc83   : > { %v22732_v28 = vadd.f32 %v11092_v26, %v8380_v20  ;;  %v22734_v9 = vadd.f32 %v11178_v49, %v8388_v29  ;;  %v11094_v31 = vpop.f32.mrb[50].mxu0  ;;  %v11180_v50 = vpop.f32.mrb[50].mxu1  ;;  %11411 = vmatpush1.bf16.msra.mxu0 %v17020_v27  ;;  %v17071_v27 = vcombine.high %v8246_v16, %v8254_v25  ;;  %v8270_v11 = vld [vmem:[%s21008_s20 + $0xce8] sm:$0xff]  ;;  %v8277_v49 = vld [vmem:[%s21008_s20 + $0xd20] sm:$0xff] }
 0xc84   : > { %v11733_v24 = vmul.f32 0.70710677, %v22726_v46  ;;  %v11735_v1 = vmul.f32 0.70710677, %v22728_v8  ;;  %11497 = vmatpush1.bf16.msra.mxu1 %v17022_v61  ;;  %11412 = vmatprep.subr.bf16.mxu0 %v17037_v23  ;;  %v22742_v47 = vadd.f32 %v11094_v31, %v8376_v5  ;;  %v22744_v14 = vadd.f32 %v11180_v50, %v8384_v63  ;;  %v11096_v40 = vpop.f32.mrb[51].mxu0  ;;  %v11182_v44 = vpop.f32.mrb[51].mxu1 }
 0xc85   : > { %v11734_v33 = vmul.f32 0.70710677, %v22732_v28  ;;  %v11736_v37 = vmul.f32 0.70710677, %v22734_v9  ;;  %11498 = vmatprep.subr.bf16.mxu1 %v17039_v30  ;;  %v22748_v19 = vadd.f32 %v11096_v40, %v8380_v20  ;;  %v22750_v57 = vadd.f32 %v11182_v44, %v8388_v29  ;;  %v8261_v29 = vld [vmem:[%s21008_s20 + $0xca0] sm:$0xff]  ;;  %v8286_v31 = vld [vmem:[%s21008_s20 + $0xd68] sm:$0xff] }
 0xc86   : > { %19866 = verf.f32 %v11733_v24  ;;  %v11749_v5 = vmul.f32 0.70710677, %v22742_v47  ;;  %v17054_v63 = vcombine.low %v8230_v12, %v8238_v43  ;;  %v11751_v4 = vmul.f32 0.70710677, %v22744_v14  ;;  %v8269_v61 = vld [vmem:[%s21008_s20 + $0xce0] sm:$0xff]  ;;  %v8278_v43 = vld [vmem:[%s21008_s20 + $0xd28] sm:$0xff] }
 0xc87   : > { %19868 = verf.f32 %v11735_v1  ;;  %11413 = vmatpush1.bf16.msra.mxu0 %v17036_v55  ;;  %v11750_v20 = vmul.f32 0.70710677, %v22748_v19  ;;  %v11752_v23 = vmul.f32 0.70710677, %v22750_v57  ;;  %v17068_v30 = vcombine.low %v8245_v52, %v8253_v35  ;;  %v8285_v12 = vld [vmem:[%s21008_s20 + $0xd60] sm:$0xff] }
 0xc88   : > { %19870 = verf.f32 %v11734_v33  ;;  %11499 = vmatpush1.bf16.msra.mxu1 %v17038_v17  ;;  %11414 = vmatprep.subr.bf16.mxu0 %v17053_v34  ;;  %v17085_v39 = vcombine.high %v8261_v29, %v8269_v61  ;;  %v17087_v26 = vcombine.high %v8262_v41, %v8270_v11  ;;  %v17084_v50 = vcombine.low %v8261_v29, %v8269_v61  ;;  %v22765_v55 = vld [vmem:[%s21008_s20 + $0xda0] sm:$0xff]  ;;  %v22771_v33 = vld [vmem:[%s21008_s20 + $0xda8] sm:$0xff] }
 0xc89   : > { %19872 = verf.f32 %v11736_v37  ;;  %11500 = vmatprep.subr.bf16.mxu1 %v17055_v38  ;;  %v22768_v24 = vld [vmem:[%s21008_s20 + $0xde0] sm:$0xff]  ;;  %v17086_v17 = vcombine.low %v8262_v41, %v8270_v11  ;;  %v17101_v34 = vcombine.high %v8277_v49, %v8285_v12  ;;  %v22774_v37 = vld [vmem:[%s21008_s20 + $0xde8] sm:$0xff]  ;;  %v17103_v52 = vcombine.high %v8278_v43, %v8286_v31 }
 0xc8a   : > { %19874 = verf.f32 %v11749_v5  ;;  %v22777_v35 = vld [vmem:[%s21008_s20 + $0xe20] sm:$0xff]  ;;  %v17100_v16 = vcombine.low %v8277_v49, %v8285_v12  ;;  %v17102_v25 = vcombine.low %v8278_v43, %v8286_v31  ;;  %v11701_v29 = vmul.f32 0.5, %v22726_v46  ;;  %v8310_v31 = vld [vmem:[%s21008_s20 + $0xe28] sm:$0xff] }
 0xc8b   : > { %19876 = verf.f32 %v11751_v4  ;;  %11415 = vmatpush1.bf16.msra.mxu0 %v17052_v54  ;;  %v22780_v40 = vld [vmem:[%s21008_s20 + $0xe60] sm:$0xff]  ;;  %v17116_v54 = vcombine.low %v22765_v55, %v22768_v24  ;;  %v17118_v4 = vcombine.low %v22771_v33, %v22774_v37  ;;  %v11703_v61 = vmul.f32 0.5, %v22728_v8 }
 0xc8c   : > { %19878 = verf.f32 %v11750_v20  ;;  %11501 = vmatpush1.bf16.msra.mxu1 %v17054_v63  ;;  %11416 = vmatprep.subr.bf16.mxu0 %v17069_v59  ;;  %v17117_v59 = vcombine.high %v22765_v55, %v22768_v24  ;;  %v17119_v20 = vcombine.high %v22771_v33, %v22774_v37  ;;  %v17133_v41 = vcombine.high %v22777_v35, %v22780_v40 }
 0xc8d   : > { %19880 = verf.f32 %v11752_v23  ;;  %11502 = vmatprep.subr.bf16.mxu1 %v17071_v27  ;;  %v11704_v46 = vmul.f32 0.5, %v22734_v9  ;;  %v11719_v12 = vmul.f32 0.5, %v22744_v14  ;;  %v11720_v9 = vmul.f32 0.5, %v22750_v57  ;;  %v8326_v57 = vld [vmem:[%s21008_s20 + $0xea8] sm:$0xff] }
 0xc8f   : > { %11417 = vmatpush1.bf16.msra.mxu0 %v17068_v30  ;;  %v11702_v30 = vmul.f32 0.5, %v22732_v28  ;;  %v11718_v28 = vmul.f32 0.5, %v22748_v19 }
 0xc90   : > { %v19867_v1 = vpop.eup %19866  ;;  %11503 = vmatpush1.bf16.msra.mxu1 %v17070_v62  ;;  %11418 = vmatprep.subr.bf16.mxu0 %v17085_v39  ;;  %v11717_v39 = vmul.f32 0.5, %v22742_v47 }
 0xc91   : > { %v19869_v38 = vpop.eup %19868  ;;  %11504 = vmatprep.subr.bf16.mxu1 %v17087_v26  ;;  %v11797_v63 = vadd.f32 1.0, %v19867_v1 }
 0xc92   : > { %v19871_v44 = vpop.eup %19870  ;;  %v11799_v23 = vadd.f32 1.0, %v19869_v38 }
 0xc93   : > { %v19873_v5 = vpop.eup %19872  ;;  %11419 = vmatpush1.bf16.msra.mxu0 %v17084_v50  ;;  %v11798_v62 = vadd.f32 1.0, %v19871_v44  ;;  %v8318_v50 = vld [vmem:[%s21008_s20 + $0xe68] sm:$0xff]  ;;  %v11829_v24 = vmul.f32 %v11797_v63, %v11701_v29  ;;  %v8325_v44 = vld [vmem:[%s21008_s20 + $0xea0] sm:$0xff] }
 0xc94   : > { %v19875_v27 = vpop.eup %19874  ;;  %11505 = vmatpush1.bf16.msra.mxu1 %v17086_v17  ;;  %11420 = vmatprep.subr.bf16.mxu0 %v17101_v34  ;;  %v11800_v8 = vadd.f32 1.0, %v19873_v5  ;;  %v11831_v47 = vmul.f32 %v11799_v23, %v11703_v61  ;;  %v8333_v5 = vld [vmem:[%s21008_s20 + $0xee0] sm:$0xff] }
 0xc95   : > { %v19877_v11 = vpop.eup %19876  ;;  %v11813_v26 = vadd.f32 1.0, %v19875_v27  ;;  %11506 = vmatprep.subr.bf16.mxu1 %v17103_v52  ;;  %v11830_v14 = vmul.f32 %v11798_v62, %v11702_v30  ;;  %v17135_v52 = vcombine.high %v8310_v31, %v8318_v50  ;;  %v8334_v27 = vld [vmem:[%s21008_s20 + $0xee8] sm:$0xff]  ;;  %v17149_v29 = vcombine.high %v8325_v44, %v8333_v5  ;;  %v8349_v30 = vld [vmem:[%s21008_s20 + $0xf60] sm:$0xff] }
 0xc96   : > { %v19879_v49 = vpop.eup %19878  ;;  %v11815_v43 = vadd.f32 1.0, %v19877_v11  ;;  %v11832_v19 = vmul.f32 %v11800_v8, %v11704_v46  ;;  %v17151_v23 = vcombine.high %v8326_v57, %v8334_v27  ;;  %v8341_v11 = vld [vmem:[%s21008_s20 + $0xf20] sm:$0xff]  ;;  %v8350_v62 = vld [vmem:[%s21008_s20 + $0xf68] sm:$0xff] }
 0xc97   : > { %v19881_v55 = vpop.eup %19880  ;;  %v11845_v1 = vmul.f32 %v11813_v26, %v11717_v39  ;;  %v11814_v17 = vadd.f32 1.0, %v19879_v49  ;;  %11421 = vmatpush1.bf16.msra.mxu0 %v17100_v16  ;;  %v8357_v39 = vld [vmem:[%s21008_s20 + $0xfa0] sm:$0xff]  ;;  %v8358_v49 = vld [vmem:[%s21008_s20 + $0xfa8] sm:$0xff]  ;;  %v17164_v8 = vcombine.low %v8341_v11, %v8349_v30 }
 0xc98   : > { %v11847_v34 = vmul.f32 %v11815_v43, %v11719_v12  ;;  %v11816_v33 = vadd.f32 1.0, %v19881_v55  ;;  %11507 = vmatpush1.bf16.msra.mxu1 %v17102_v25  ;;  %11422 = vmatprep.subr.bf16.mxu0 %v17117_v59  ;;  %v17132_v25 = vcombine.low %v22777_v35, %v22780_v40  ;;  %v17148_v35 = vcombine.low %v8325_v44, %v8333_v5  ;;  %v8365_v26 = vld [vmem:[%s21008_s20 + $0xfe0] sm:$0xff]  ;;  %v8366_v46 = vld [vmem:[%s21008_s20 + $0xfe8] sm:$0xff]  ;;  %v7871_v55 = vld [vmem:[%s21008_s20 + $0x70] sm:$0xff] }
 0xc99   : > { %v22802_v37 = vpack.c.bf16 %v11845_v1, %v11829_v24  ;;  %v11846_v38 = vmul.f32 %v11814_v17, %v11718_v28  ;;  %11508 = vmatprep.subr.bf16.mxu1 %v17119_v20  ;;  %v17134_v20 = vcombine.low %v8310_v31, %v8318_v50  ;;  %v17150_v40 = vcombine.low %v8326_v57, %v8334_v27  ;;  %v7863_v50 = vld [vmem:[%s21008_s20 + $0x30] sm:$0xff]  ;;  %v7864_v24 = vld [vmem:[%s21008_s20 + $0x38] sm:$0xff] }
 0xc9a   : > { %v22806_v16 = vpack.c.bf16 %v11847_v34, %v11831_v47  ;;  %v11848_v63 = vmul.f32 %v11816_v33, %v11720_v9  ;;  %v17181_v43 = vcombine.high %v8357_v39, %v8365_v26  ;;  %v17183_v31 = vcombine.high %v8358_v49, %v8366_v46  ;;  %v7872_v1 = vld [vmem:[%s21008_s20 + $0x78] sm:$0xff]  ;;  %v7879_v9 = vld [vmem:[%s21008_s20 + $0xb0] sm:$0xff] }
 0xc9b   : > { %11423 = vmatpush1.bf16.msra.mxu0 %v17116_v54  ;;  %v22812_v59 = vpack.c.bf16 %v11846_v38, %v11830_v14  ;;  %v8342_v54 = vld [vmem:[%s21008_s20 + $0xf28] sm:$0xff]  ;;  %v17180_v28 = vcombine.low %v8357_v39, %v8365_v26  ;;  %v17182_v17 = vcombine.low %v8358_v49, %v8366_v46  ;;  %v16689_v47 = vcombine.high %v7863_v50, %v7871_v55  ;;  %v7887_v33 = vld [vmem:[%s21008_s20 + $0xf0] sm:$0xff]  ;;  %v7880_v38 = vld [vmem:[%s21008_s20 + $0xb8] sm:$0xff] }
 0xc9c   : > { %11509 = vmatpush1.bf16.msra.mxu1 %v17118_v4  ;;  %11424 = vmatprep.subr.bf16.mxu0 %v17133_v41  ;;  %v22814_v61 = vpack.c.bf16 %v11848_v63, %v11832_v19  ;;  %v17165_v4 = vcombine.high %v8341_v11, %v8349_v30  ;;  %v17167_v41 = vcombine.high %v8342_v54, %v8350_v62  ;;  %v7895_v19 = vld [vmem:[%s21008_s20 + $0x130] sm:$0xff]  ;;  %v7896_v27 = vld [vmem:[%s21008_s20 + $0x138] sm:$0xff] }
 0xc9d   : > { %11510 = vmatprep.subr.bf16.mxu1 %v17135_v52  ;;  %v17166_v12 = vcombine.low %v8342_v54, %v8350_v62  ;;  %v16691_v34 = vcombine.high %v7864_v24, %v7872_v1  ;;  %v16688_v14 = vcombine.low %v7863_v50, %v7871_v55  ;;  %v7888_v52 = vld [vmem:[%s21008_s20 + $0xf8] sm:$0xff]  ;;  %v16690_v44 = vcombine.low %v7864_v24, %v7872_v1  ;;  %v7903_v63 = vld [vmem:[%s21008_s20 + $0x170] sm:$0xff] }
 0xc9e   : > { %v16705_v5 = vcombine.high %v7879_v9, %v7887_v33  ;;  %v16707_v57 = vcombine.high %v7880_v38, %v7888_v52  ;;  %v7911_v30 = vld [vmem:[%s21008_s20 + $0x1b0] sm:$0xff]  ;;  %v7912_v62 = vld [vmem:[%s21008_s20 + $0x1b8] sm:$0xff] }
 0xc9f   : > { %11425 = vmatpush1.bf16.msra.mxu0 %v17132_v25  ;;  %v7904_v25 = vld [vmem:[%s21008_s20 + $0x178] sm:$0xff]  ;;  %v7919_v54 = vld [vmem:[%s21008_s20 + $0x1f0] sm:$0xff] }
 0xca0   : > { %11511 = vmatpush1.bf16.msra.mxu1 %v17134_v20  ;;  %11426 = vmatprep.subr.bf16.mxu0 %v17149_v29  ;;  %v16704_v20 = vcombine.low %v7879_v9, %v7887_v33  ;;  %v16706_v29 = vcombine.low %v7880_v38, %v7888_v52  ;;  %v16723_v11 = vcombine.high %v7896_v27, %v7904_v25  ;;  %v7927_v39 = vld [vmem:[%s21008_s20 + $0x230] sm:$0xff]  ;;  %v7928_v49 = vld [vmem:[%s21008_s20 + $0x238] sm:$0xff] }
 0xca1   : > { %11512 = vmatprep.subr.bf16.mxu1 %v17151_v23  ;;  %v16721_v23 = vcombine.high %v7895_v19, %v7903_v63  ;;  %v7935_v26 = vld [vmem:[%s21008_s20 + $0x270] sm:$0xff]  ;;  %v7936_v46 = vld [vmem:[%s21008_s20 + $0x278] sm:$0xff] }
 0xca2   : > { %v7943_v50 = vld [vmem:[%s21008_s20 + $0x2b0] sm:$0xff]  ;;  %v7944_v24 = vld [vmem:[%s21008_s20 + $0x2b8] sm:$0xff] }
 0xca3   : > { %11427 = vmatpush1.bf16.msra.mxu0 %v17148_v35  ;;  %v7920_v35 = vld [vmem:[%s21008_s20 + $0x1f8] sm:$0xff]  ;;  %v7951_v55 = vld [vmem:[%s21008_s20 + $0x2f0] sm:$0xff] }
 0xca4   : > { %11513 = vmatpush1.bf16.msra.mxu1 %v17150_v40  ;;  %11428 = vmatprep.subr.bf16.mxu0 %v17165_v4  ;;  %v16720_v40 = vcombine.low %v7895_v19, %v7903_v63  ;;  %v16722_v4 = vcombine.low %v7896_v27, %v7904_v25  ;;  %v7952_v1 = vld [vmem:[%s21008_s20 + $0x2f8] sm:$0xff]  ;;  %v7959_v9 = vld [vmem:[%s21008_s20 + $0x330] sm:$0xff]  ;;  %v16768_v52 = vcombine.low %v7943_v50, %v7951_v55 }
 0xca5   : > { %11514 = vmatprep.subr.bf16.mxu1 %v17167_v41  ;;  %v16737_v41 = vcombine.high %v7911_v30, %v7919_v54  ;;  %v7967_v33 = vld [vmem:[%s21008_s20 + $0x370] sm:$0xff]  ;;  %v7968_v38 = vld [vmem:[%s21008_s20 + $0x378] sm:$0xff] }
 0xca6   : > { %v7975_v63 = vld [vmem:[%s21008_s20 + $0x3b0] sm:$0xff]  ;;  %v7976_v27 = vld [vmem:[%s21008_s20 + $0x3b8] sm:$0xff] }
 0xca7   : > { %11429 = vmatpush1.bf16.msra.mxu0 %v17164_v8  ;;  %v16736_v8 = vcombine.low %v7911_v30, %v7919_v54  ;;  %v7984_v25 = vld [vmem:[%s21008_s20 + $0x3f8] sm:$0xff]  ;;  %v7991_v30 = vld [vmem:[%s21008_s20 + $0x430] sm:$0xff] }
 0xca8   : > { %11515 = vmatpush1.bf16.msra.mxu1 %v17166_v12  ;;  %11430 = vmatprep.subr.bf16.mxu0 %v17181_v43  ;;  %v16738_v12 = vcombine.low %v7912_v62, %v7920_v35  ;;  %v16753_v43 = vcombine.high %v7927_v39, %v7935_v26  ;;  %v7999_v54 = vld [vmem:[%s21008_s20 + $0x470] sm:$0xff] }
 0xca9   : > { %11516 = vmatprep.subr.bf16.mxu1 %v17183_v31  ;;  %v16755_v31 = vcombine.high %v7928_v49, %v7936_v46 }
 0xcab   : > { %11431 = vmatpush1.bf16.msra.mxu0 %v17180_v28  ;;  %v16752_v28 = vcombine.low %v7927_v39, %v7935_v26  ;;  %v8007_v39 = vld [vmem:[%s21008_s20 + $0x4b0] sm:$0xff] }
 0xcac   : > { %11517 = vmatpush1.bf16.msra.mxu1 %v17182_v17  ;;  %11529 = vmatprep.subr.bf16.mxu0 %v16689_v47  ;;  %v16754_v17 = vcombine.low %v7928_v49, %v7936_v46  ;;  %v16769_v47 = vcombine.high %v7943_v50, %v7951_v55  ;;  %v8015_v26 = vld [vmem:[%s21008_s20 + $0x4f0] sm:$0xff]  ;;  %v8008_v49 = vld [vmem:[%s21008_s20 + $0x4b8] sm:$0xff] }
 0xcad   : > { %11615 = vmatprep.subr.bf16.mxu1 %v16691_v34  ;;  %v16771_v34 = vcombine.high %v7944_v24, %v7952_v1  ;;  %v8016_v46 = vld [vmem:[%s21008_s20 + $0x4f8] sm:$0xff]  ;;  %v8023_v50 = vld [vmem:[%s21008_s20 + $0x530] sm:$0xff] }
 0xcae   : > { %11433 = vmatmul.mubr.bf16.vlgmr.msra.gmra.mrb[56].mxu0 %v22483_v42  ;;  %v8031_v55 = vld [vmem:[%s21008_s20 + $0x570] sm:$0xff] }
 0xcaf   : > { %11519 = vmatmul.mubr.bf16.vlgmr.msra.gmra.mrb[56].mxu1 %v22483_v42  ;;  %11530 = vmatpush1.bf16.msra.mxu0 %v16688_v14  ;;  %v7960_v14 = vld [vmem:[%s21008_s20 + $0x338] sm:$0xff] }
 0xcb0   : > { %11561 = vmatprep.mubr.bf16.mxu0 %v22393_v7  ;;  %11616 = vmatpush1.bf16.msra.mxu1 %v16690_v44  ;;  %v16770_v44 = vcombine.low %v7944_v24, %v7952_v1  ;;  %v16787_v19 = vcombine.high %v7960_v14, %v7968_v38  ;;  %v8024_v24 = vld [vmem:[%s21008_s20 + $0x538] sm:$0xff] }
 0xcb1   : > { %11647 = vmatprep.mubr.bf16.mxu1 %v22393_v7  ;;  %11531 = vmatprep.subr.bf16.mxu0 %v16705_v5  ;;  %v16739_v7 = vcombine.high %v7912_v62, %v7920_v35  ;;  %v16785_v5 = vcombine.high %v7959_v9, %v7967_v33  ;;  %v7992_v62 = vld [vmem:[%s21008_s20 + $0x438] sm:$0xff] }
 0xcb2   : > { %11617 = vmatprep.subr.bf16.mxu1 %v16707_v57  ;;  %v7983_v57 = vld [vmem:[%s21008_s20 + $0x3f0] sm:$0xff]  ;;  %v8000_v35 = vld [vmem:[%s21008_s20 + $0x478] sm:$0xff] }
 0xcb3   : > { %11532 = vmatpush1.bf16.msra.mxu0 %v16704_v20  ;;  %v16784_v20 = vcombine.low %v7959_v9, %v7967_v33  ;;  %v8032_v1 = vld [vmem:[%s21008_s20 + $0x578] sm:$0xff]  ;;  %v8039_v9 = vld [vmem:[%s21008_s20 + $0x5b0] sm:$0xff] }
 0xcb4   : > { %11618 = vmatpush1.bf16.msra.mxu1 %v16706_v29  ;;  %11533 = vmatprep.subr.bf16.mxu0 %v16721_v23  ;;  %v16786_v29 = vcombine.low %v7960_v14, %v7968_v38  ;;  %v16801_v23 = vcombine.high %v7975_v63, %v7983_v57  ;;  %v8047_v33 = vld [vmem:[%s21008_s20 + $0x5f0] sm:$0xff]  ;;  %v8040_v14 = vld [vmem:[%s21008_s20 + $0x5b8] sm:$0xff] }
 0xcb5   : > { %11619 = vmatprep.subr.bf16.mxu1 %v16723_v11  ;;  %v16803_v11 = vcombine.high %v7976_v27, %v7984_v25  ;;  %v8048_v38 = vld [vmem:[%s21008_s20 + $0x5f8] sm:$0xff] }
 0xcb7   : > { %11534 = vmatpush1.bf16.msra.mxu0 %v16720_v40  ;;  %v16800_v40 = vcombine.low %v7975_v63, %v7983_v57  ;;  %v8055_v63 = vld [vmem:[%s21008_s20 + $0x630] sm:$0xff] }
 0xcb8   : > { %11620 = vmatpush1.bf16.msra.mxu1 %v16722_v4  ;;  %11535 = vmatprep.subr.bf16.mxu0 %v16737_v41  ;;  %v16802_v4 = vcombine.low %v7976_v27, %v7984_v25  ;;  %v16817_v41 = vcombine.high %v7991_v30, %v7999_v54  ;;  %v8063_v57 = vld [vmem:[%s21008_s20 + $0x670] sm:$0xff]  ;;  %v8056_v27 = vld [vmem:[%s21008_s20 + $0x638] sm:$0xff] }
 0xcb9   : > { %11621 = vmatprep.subr.bf16.mxu1 %v16739_v7  ;;  %v16819_v7 = vcombine.high %v7992_v62, %v8000_v35  ;;  %v8064_v25 = vld [vmem:[%s21008_s20 + $0x678] sm:$0xff] }
 0xcbb   : > { %11536 = vmatpush1.bf16.msra.mxu0 %v16736_v8  ;;  %v16816_v8 = vcombine.low %v7991_v30, %v7999_v54  ;;  %v8071_v30 = vld [vmem:[%s21008_s20 + $0x6b0] sm:$0xff] }
 0xcbc   : > { %11622 = vmatpush1.bf16.msra.mxu1 %v16738_v12  ;;  %11537 = vmatprep.subr.bf16.mxu0 %v16753_v43  ;;  %v16818_v12 = vcombine.low %v7992_v62, %v8000_v35  ;;  %v16833_v43 = vcombine.high %v8007_v39, %v8015_v26  ;;  %v8079_v54 = vld [vmem:[%s21008_s20 + $0x6f0] sm:$0xff]  ;;  %v8072_v62 = vld [vmem:[%s21008_s20 + $0x6b8] sm:$0xff] }
 0xcbd   : > { %11623 = vmatprep.subr.bf16.mxu1 %v16755_v31  ;;  %v16835_v31 = vcombine.high %v8008_v49, %v8016_v46  ;;  %v8080_v35 = vld [vmem:[%s21008_s20 + $0x6f8] sm:$0xff] }
 0xcbf   : > { %11538 = vmatpush1.bf16.msra.mxu0 %v16752_v28  ;;  %v16832_v28 = vcombine.low %v8007_v39, %v8015_v26  ;;  %v8087_v39 = vld [vmem:[%s21008_s20 + $0x730] sm:$0xff] }
 0xcc0   : > { %11624 = vmatpush1.bf16.msra.mxu1 %v16754_v17  ;;  %11539 = vmatprep.subr.bf16.mxu0 %v16769_v47  ;;  %v16834_v17 = vcombine.low %v8008_v49, %v8016_v46  ;;  %v16849_v47 = vcombine.high %v8023_v50, %v8031_v55  ;;  %v8095_v26 = vld [vmem:[%s21008_s20 + $0x770] sm:$0xff]  ;;  %v8088_v49 = vld [vmem:[%s21008_s20 + $0x738] sm:$0xff] }
 0xcc1   : > { %11625 = vmatprep.subr.bf16.mxu1 %v16771_v34  ;;  %v16851_v34 = vcombine.high %v8024_v24, %v8032_v1  ;;  %v8096_v46 = vld [vmem:[%s21008_s20 + $0x778] sm:$0xff] }
 0xcc3   : > { %11540 = vmatpush1.bf16.msra.mxu0 %v16768_v52  ;;  %v16848_v52 = vcombine.low %v8023_v50, %v8031_v55  ;;  %v8103_v50 = vld [vmem:[%s21008_s20 + $0x7b0] sm:$0xff] }
 0xcc4   : > { %11626 = vmatpush1.bf16.msra.mxu1 %v16770_v44  ;;  %11541 = vmatprep.subr.bf16.mxu0 %v16785_v5  ;;  %v16850_v44 = vcombine.low %v8024_v24, %v8032_v1  ;;  %v16865_v5 = vcombine.high %v8039_v9, %v8047_v33  ;;  %v8111_v55 = vld [vmem:[%s21008_s20 + $0x7f0] sm:$0xff]  ;;  %v8104_v24 = vld [vmem:[%s21008_s20 + $0x7b8] sm:$0xff] }
 0xcc5   : > { %11627 = vmatprep.subr.bf16.mxu1 %v16787_v19  ;;  %v16867_v19 = vcombine.high %v8040_v14, %v8048_v38  ;;  %v8112_v1 = vld [vmem:[%s21008_s20 + $0x7f8] sm:$0xff] }
 0xcc7   : > { %11542 = vmatpush1.bf16.msra.mxu0 %v16784_v20  ;;  %v16864_v20 = vcombine.low %v8039_v9, %v8047_v33  ;;  %v8119_v9 = vld [vmem:[%s21008_s20 + $0x830] sm:$0xff] }
 0xcc8   : > { %11628 = vmatpush1.bf16.msra.mxu1 %v16786_v29  ;;  %11543 = vmatprep.subr.bf16.mxu0 %v16801_v23  ;;  %v16866_v29 = vcombine.low %v8040_v14, %v8048_v38  ;;  %v16881_v23 = vcombine.high %v8055_v63, %v8063_v57  ;;  %v8127_v33 = vld [vmem:[%s21008_s20 + $0x870] sm:$0xff]  ;;  %v8120_v14 = vld [vmem:[%s21008_s20 + $0x838] sm:$0xff] }
 0xcc9   : > { %11629 = vmatprep.subr.bf16.mxu1 %v16803_v11  ;;  %v16883_v11 = vcombine.high %v8056_v27, %v8064_v25  ;;  %v8128_v38 = vld [vmem:[%s21008_s20 + $0x878] sm:$0xff] }
 0xccb   : > { %11544 = vmatpush1.bf16.msra.mxu0 %v16800_v40  ;;  %v16880_v40 = vcombine.low %v8055_v63, %v8063_v57  ;;  %v8135_v63 = vld [vmem:[%s21008_s20 + $0x8b0] sm:$0xff] }
 0xccc   : > { %11630 = vmatpush1.bf16.msra.mxu1 %v16802_v4  ;;  %11545 = vmatprep.subr.bf16.mxu0 %v16817_v41  ;;  %v16882_v4 = vcombine.low %v8056_v27, %v8064_v25  ;;  %v16897_v41 = vcombine.high %v8071_v30, %v8079_v54  ;;  %v8143_v57 = vld [vmem:[%s21008_s20 + $0x8f0] sm:$0xff]  ;;  %v16944_v27 = vcombine.low %v8119_v9, %v8127_v33  ;;  %v8136_v25 = vld [vmem:[%s21008_s20 + $0x8b8] sm:$0xff] }
 0xccd   : > { %11631 = vmatprep.subr.bf16.mxu1 %v16819_v7  ;;  %v16899_v7 = vcombine.high %v8072_v62, %v8080_v35 }
 0xccf   : > { %11546 = vmatpush1.bf16.msra.mxu0 %v16816_v8  ;;  %v16896_v8 = vcombine.low %v8071_v30, %v8079_v54  ;;  %v8159_v30 = vld [vmem:[%s21008_s20 + $0x970] sm:$0xff] }
 0xcd0   : > { %11632 = vmatpush1.bf16.msra.mxu1 %v16818_v12  ;;  %11547 = vmatprep.subr.bf16.mxu0 %v16833_v43  ;;  %v16898_v12 = vcombine.low %v8072_v62, %v8080_v35  ;;  %v16913_v43 = vcombine.high %v8087_v39, %v8095_v26  ;;  %v8152_v62 = vld [vmem:[%s21008_s20 + $0x938] sm:$0xff] }
 0xcd1   : > { %11633 = vmatprep.subr.bf16.mxu1 %v16835_v31  ;;  %v16915_v31 = vcombine.high %v8088_v49, %v8096_v46  ;;  %v8160_v35 = vld [vmem:[%s21008_s20 + $0x978] sm:$0xff] }
 0xcd3   : > { %11548 = vmatpush1.bf16.msra.mxu0 %v16832_v28  ;;  %v16912_v28 = vcombine.low %v8087_v39, %v8095_v26  ;;  %v8167_v39 = vld [vmem:[%s21008_s20 + $0x9b0] sm:$0xff] }
 0xcd4   : > { %11634 = vmatpush1.bf16.msra.mxu1 %v16834_v17  ;;  %11549 = vmatprep.subr.bf16.mxu0 %v16849_v47  ;;  %v16914_v17 = vcombine.low %v8088_v49, %v8096_v46  ;;  %v16929_v47 = vcombine.high %v8103_v50, %v8111_v55  ;;  %v8175_v26 = vld [vmem:[%s21008_s20 + $0x9f0] sm:$0xff]  ;;  %v8168_v49 = vld [vmem:[%s21008_s20 + $0x9b8] sm:$0xff] }
 0xcd5   : > { %11635 = vmatprep.subr.bf16.mxu1 %v16851_v34  ;;  %v16931_v34 = vcombine.high %v8104_v24, %v8112_v1 }
 0xcd7   : > { %11550 = vmatpush1.bf16.msra.mxu0 %v16848_v52  ;;  %v16928_v52 = vcombine.low %v8103_v50, %v8111_v55  ;;  %v8184_v50 = vld [vmem:[%s21008_s20 + $0xa38] sm:$0xff] }
 0xcd8   : > { %11636 = vmatpush1.bf16.msra.mxu1 %v16850_v44  ;;  %11551 = vmatprep.subr.bf16.mxu0 %v16865_v5  ;;  %v16930_v44 = vcombine.low %v8104_v24, %v8112_v1  ;;  %v16945_v5 = vcombine.high %v8119_v9, %v8127_v33  ;;  %v8192_v55 = vld [vmem:[%s21008_s20 + $0xa78] sm:$0xff]  ;;  %v16992_v24 = vcombine.low %v8167_v39, %v8175_v26 }
 0xcd9   : > { %11637 = vmatprep.subr.bf16.mxu1 %v16867_v19  ;;  %v16947_v19 = vcombine.high %v8120_v14, %v8128_v38  ;;  %v8200_v9 = vld [vmem:[%s21008_s20 + $0xab8] sm:$0xff] }
 0xcda   : > { %v8208_v33 = vld [vmem:[%s21008_s20 + $0xaf8] sm:$0xff] }
 0xcdb   : > { %11552 = vmatpush1.bf16.msra.mxu0 %v16864_v20  ;;  %v8144_v20 = vld [vmem:[%s21008_s20 + $0x8f8] sm:$0xff] }
 0xcdc   : > { %11638 = vmatpush1.bf16.msra.mxu1 %v16866_v29  ;;  %11553 = vmatprep.subr.bf16.mxu0 %v16881_v23  ;;  %v16946_v29 = vcombine.low %v8120_v14, %v8128_v38  ;;  %v16961_v23 = vcombine.high %v8135_v63, %v8143_v57  ;;  %v16963_v54 = vcombine.high %v8136_v25, %v8144_v20 }
 0xcdd   : > { %11639 = vmatprep.subr.bf16.mxu1 %v16883_v11  ;;  %v8151_v11 = vld [vmem:[%s21008_s20 + $0x930] sm:$0xff]  ;;  %v17010_v38 = vcombine.low %v8184_v50, %v8192_v55 }
 0xcde   : > { %v16976_v46 = vcombine.low %v8151_v11, %v8159_v30 }
 0xcdf   : > { %11554 = vmatpush1.bf16.msra.mxu0 %v16880_v40  ;;  %v16960_v40 = vcombine.low %v8135_v63, %v8143_v57  ;;  %v8392_v63 = vrot.slane %v22710_v32, %v21507_v51  ;;  %v8216_v57 = vld [vmem:[%s21008_s20 + $0xb38] sm:$0xff] }
 0xce0   : > { %11640 = vmatpush1.bf16.msra.mxu1 %v16882_v4  ;;  %11555 = vmatprep.subr.bf16.mxu0 %v16897_v41  ;;  %v16962_v4 = vcombine.low %v8136_v25, %v8144_v20  ;;  %v16977_v41 = vcombine.high %v8151_v11, %v8159_v30  ;;  %v8400_v25 = vrot.slane %v22710_v32, %v21528_v3 }
 0xce1   : > { %11641 = vmatprep.subr.bf16.mxu1 %v16899_v7  ;;  %v16979_v7 = vcombine.high %v8152_v62, %v8160_v35  ;;  %v8396_v20 = vrot.slane %v22710_v32, %v21510_v53  ;;  %v17026_v11 = vcombine.low %v8200_v9, %v8208_v33 }
 0xce3   : > { %11556 = vmatpush1.bf16.msra.mxu0 %v16896_v8  ;;  %v16978_v8 = vcombine.low %v8152_v62, %v8160_v35  ;;  %v8231_v35 = vld [vmem:[%s21008_s20 + $0xbb0] sm:$0xff] }
 0xce4   : > { %11642 = vmatpush1.bf16.msra.mxu1 %v16898_v12  ;;  %11557 = vmatprep.subr.bf16.mxu0 %v16913_v43  ;;  %v16993_v12 = vcombine.high %v8167_v39, %v8175_v26  ;;  %v8183_v43 = vld [vmem:[%s21008_s20 + $0xa30] sm:$0xff]  ;;  %v8232_v39 = vld [vmem:[%s21008_s20 + $0xbb8] sm:$0xff] }
 0xce5   : > { %11643 = vmatprep.subr.bf16.mxu1 %v16915_v31  ;;  %v8191_v31 = vld [vmem:[%s21008_s20 + $0xa70] sm:$0xff]  ;;  %v8240_v26 = vld [vmem:[%s21008_s20 + $0xbf8] sm:$0xff] }
 0xce6   : > { %v17008_v14 = vcombine.low %v8183_v43, %v8191_v31 }
 0xce7   : > { %11558 = vmatpush1.bf16.msra.mxu0 %v16912_v28  ;;  %v17009_v28 = vcombine.high %v8183_v43, %v8191_v31 }
 0xce8   : > { %11644 = vmatpush1.bf16.msra.mxu1 %v16914_v17  ;;  %11559 = vmatprep.subr.bf16.mxu0 %v16929_v47  ;;  %v17011_v17 = vcombine.high %v8184_v50, %v8192_v55  ;;  %v8199_v47 = vld [vmem:[%s21008_s20 + $0xab0] sm:$0xff] }
 0xce9   : > { %11645 = vmatprep.subr.bf16.mxu1 %v16931_v34  ;;  %v8207_v34 = vld [vmem:[%s21008_s20 + $0xaf0] sm:$0xff] }
 0xceb   : > { %11560 = vmatpush1.bf16.msra.mxu0 %v16928_v52  ;;  %v17025_v52 = vcombine.high %v8199_v47, %v8207_v34 }
 0xcec   : > { %11646 = vmatpush1.bf16.msra.mxu1 %v16930_v44  ;;  %11572 = vmatprep.subr.bf16.mxu0 %v16945_v5  ;;  %v17027_v44 = vcombine.high %v8200_v9, %v8208_v33  ;;  %v8215_v5 = vld [vmem:[%s21008_s20 + $0xb30] sm:$0xff] }
 0xced   : > { %11658 = vmatprep.subr.bf16.mxu1 %v16947_v19  ;;  %v8223_v19 = vld [vmem:[%s21008_s20 + $0xb70] sm:$0xff] }
 0xcee   : > { %11562 = vmatmul.mubr.bf16.vlgmr.msra.gmra.mrb[60].mxu0 %v22397_v60  ;;  %v17041_v30 = vcombine.high %v8215_v5, %v8223_v19 }
 0xcef   : > { %11648 = vmatmul.mubr.bf16.vlgmr.msra.gmra.mrb[60].mxu1 %v22397_v60  ;;  %11573 = vmatpush1.bf16.msra.mxu0 %v16944_v27  ;;  %v8176_v60 = vld [vmem:[%s21008_s20 + $0x9f8] sm:$0xff] }
 0xcf0   : > { %11604 = vmatprep.mubr.bf16.mxu0 %v22411_v48  ;;  %11659 = vmatpush1.bf16.msra.mxu1 %v16946_v29  ;;  %v16994_v1 = vcombine.low %v8168_v49, %v8176_v60  ;;  %v8224_v27 = vld [vmem:[%s21008_s20 + $0xb78] sm:$0xff]  ;;  %v17024_v29 = vcombine.low %v8199_v47, %v8207_v34  ;;  %v8247_v47 = vld [vmem:[%s21008_s20 + $0xc30] sm:$0xff] }
 0xcf1   : > { %11690 = vmatprep.mubr.bf16.mxu1 %v22411_v48  ;;  %11574 = vmatprep.subr.bf16.mxu0 %v16961_v23  ;;  %v16995_v48 = vcombine.high %v8168_v49, %v8176_v60  ;;  %v8404_v23 = vrot.slane %v22710_v32, %v21547_v18  ;;  %v17043_v62 = vcombine.high %v8216_v57, %v8224_v27  ;;  %v8255_v34 = vld [vmem:[%s21008_s20 + $0xc70] sm:$0xff] }
 0xcf2   : > { %11660 = vmatprep.subr.bf16.mxu1 %v16963_v54 }
 0xcf3   : > { %11575 = vmatpush1.bf16.msra.mxu0 %v16960_v40  ;;  %v8239_v40 = vld [vmem:[%s21008_s20 + $0xbf0] sm:$0xff] }
 0xcf4   : > { %11661 = vmatpush1.bf16.msra.mxu1 %v16962_v4  ;;  %11576 = vmatprep.subr.bf16.mxu0 %v16977_v41 }
 0xcf5   : > { %11662 = vmatprep.subr.bf16.mxu1 %v16979_v7 }
 0xcf7   : > { %11577 = vmatpush1.bf16.msra.mxu0 %v16976_v46 }
 0xcf8   : > { %11663 = vmatpush1.bf16.msra.mxu1 %v16978_v8  ;;  %11578 = vmatprep.subr.bf16.mxu0 %v16993_v12  ;;  %v17040_v8 = vcombine.low %v8215_v5, %v8223_v19  ;;  %v17042_v12 = vcombine.low %v8216_v57, %v8224_v27  ;;  %v17058_v57 = vcombine.low %v8232_v39, %v8240_v26 }
 0xcf9   : > { %11664 = vmatprep.subr.bf16.mxu1 %v16995_v48  ;;  %v17073_v27 = vcombine.high %v8247_v47, %v8255_v34 }
 0xcfb   : > { %11579 = vmatpush1.bf16.msra.mxu0 %v16992_v24  ;;  %v17057_v24 = vcombine.high %v8231_v35, %v8239_v40 }
 0xcfc   : > { %11665 = vmatpush1.bf16.msra.mxu1 %v16994_v1  ;;  %11580 = vmatprep.subr.bf16.mxu0 %v17009_v28 }
 0xcfd   : > { %11666 = vmatprep.subr.bf16.mxu1 %v17011_v17  ;;  %v17059_v17 = vcombine.high %v8232_v39, %v8240_v26  ;;  %v8279_v39 = vld [vmem:[%s21008_s20 + $0xd30] sm:$0xff] }
 0xcfe   : > { %v8287_v26 = vld [vmem:[%s21008_s20 + $0xd70] sm:$0xff] }
 0xcff   : > { %11581 = vmatpush1.bf16.msra.mxu0 %v17008_v14  ;;  %v17056_v14 = vcombine.low %v8231_v35, %v8239_v40  ;;  %v17072_v35 = vcombine.low %v8247_v47, %v8255_v34  ;;  %v22985_v34 = vld [vmem:[%s21008_s20 + $0xe30] sm:$0xff] }
 0xd00   : > { %11667 = vmatpush1.bf16.msra.mxu1 %v17010_v38  ;;  %11582 = vmatprep.subr.bf16.mxu0 %v17025_v52  ;;  %v8248_v38 = vld [vmem:[%s21008_s20 + $0xc38] sm:$0xff] }
 0xd01   : > { %v11262_v54 = vpop.f32.mrb[52].mxu0  ;;  %11668 = vmatprep.subr.bf16.mxu1 %v17027_v44  ;;  %v8256_v52 = vld [vmem:[%s21008_s20 + $0xc78] sm:$0xff] }
 0xd02   : > { %v22934_v4 = vadd.f32 %v11262_v54, %v8392_v63  ;;  %v11348_v41 = vpop.f32.mrb[52].mxu1  ;;  %v11264_v7 = vpop.f32.mrb[53].mxu0  ;;  %v17074_v40 = vcombine.low %v8248_v38, %v8256_v52 }
 0xd03   : > { %v22938_v49 = vadd.f32 %v11348_v41, %v8400_v25  ;;  %v22940_v60 = vadd.f32 %v11264_v7, %v8396_v20  ;;  %v11350_v46 = vpop.f32.mrb[53].mxu1  ;;  %v11266_v32 = vpop.f32.mrb[54].mxu0  ;;  %11583 = vmatpush1.bf16.msra.mxu0 %v17024_v29 }
 0xd04   : > { %v11737_v48 = vmul.f32 0.70710677, %v22934_v4  ;;  %v22943_v43 = vadd.f32 %v11350_v46, %v8404_v23  ;;  %v22945_v31 = vadd.f32 %v11266_v32, %v8392_v63  ;;  %v11352_v50 = vpop.f32.mrb[54].mxu1  ;;  %11669 = vmatpush1.bf16.msra.mxu1 %v17026_v11  ;;  %v11268_v55 = vpop.f32.mrb[55].mxu0  ;;  %11584 = vmatprep.subr.bf16.mxu0 %v17041_v30  ;;  %v17075_v11 = vcombine.high %v8248_v38, %v8256_v52  ;;  %v8263_v30 = vld [vmem:[%s21008_s20 + $0xcb0] sm:$0xff]  ;;  %v8280_v46 = vld [vmem:[%s21008_s20 + $0xd38] sm:$0xff] }
 0xd05   : > { %v11739_v1 = vmul.f32 0.70710677, %v22938_v49  ;;  %v11738_v28 = vmul.f32 0.70710677, %v22940_v60  ;;  %11670 = vmatprep.subr.bf16.mxu1 %v17043_v62  ;;  %v11354_v33 = vpop.f32.mrb[55].mxu1  ;;  %v22955_v5 = vadd.f32 %v11352_v50, %v8400_v25  ;;  %v22957_v19 = vadd.f32 %v11268_v55, %v8396_v20  ;;  %v8271_v25 = vld [vmem:[%s21008_s20 + $0xcf0] sm:$0xff] }
 0xd06   : > { %19882 = verf.f32 %v11737_v48  ;;  %v11740_v9 = vmul.f32 0.70710677, %v22943_v43  ;;  %v11753_v44 = vmul.f32 0.70710677, %v22945_v31  ;;  %v22959_v63 = vadd.f32 %v11354_v33, %v8404_v23  ;;  %v8264_v23 = vld [vmem:[%s21008_s20 + $0xcb8] sm:$0xff]  ;;  %v22976_v48 = vld [vmem:[%s21008_s20 + $0xdf0] sm:$0xff] }
 0xd07   : > { %19884 = verf.f32 %v11739_v1  ;;  %11585 = vmatpush1.bf16.msra.mxu0 %v17040_v8  ;;  %v11755_v29 = vmul.f32 0.70710677, %v22955_v5  ;;  %v11754_v20 = vmul.f32 0.70710677, %v22957_v19  ;;  %v8272_v62 = vld [vmem:[%s21008_s20 + $0xcf8] sm:$0xff]  ;;  %v17089_v41 = vcombine.high %v8263_v30, %v8271_v25 }
 0xd08   : > { %19886 = verf.f32 %v11738_v28  ;;  %11671 = vmatpush1.bf16.msra.mxu1 %v17042_v12  ;;  %11586 = vmatprep.subr.bf16.mxu0 %v17057_v24  ;;  %v11756_v54 = vmul.f32 0.70710677, %v22959_v63  ;;  %v17091_v7 = vcombine.high %v8264_v23, %v8272_v62  ;;  %v8288_v32 = vld [vmem:[%s21008_s20 + $0xd78] sm:$0xff]  ;;  %v17088_v8 = vcombine.low %v8263_v30, %v8271_v25  ;;  %v22973_v12 = vld [vmem:[%s21008_s20 + $0xdb0] sm:$0xff] }
 0xd09   : > { %19888 = verf.f32 %v11740_v9  ;;  %11672 = vmatprep.subr.bf16.mxu1 %v17059_v17  ;;  %v17090_v55 = vcombine.low %v8264_v23, %v8272_v62  ;;  %v17105_v24 = vcombine.high %v8279_v39, %v8287_v26  ;;  %v22979_v1 = vld [vmem:[%s21008_s20 + $0xdb8] sm:$0xff]  ;;  %v17107_v47 = vcombine.high %v8280_v46, %v8288_v32  ;;  %v22988_v9 = vld [vmem:[%s21008_s20 + $0xe70] sm:$0xff] }
 0xd0a   : > { %19890 = verf.f32 %v11753_v44  ;;  %v22982_v28 = vld [vmem:[%s21008_s20 + $0xdf8] sm:$0xff]  ;;  %v17106_v38 = vcombine.low %v8280_v46, %v8288_v32  ;;  %v17120_v52 = vcombine.low %v22973_v12, %v22976_v48  ;;  %v11705_v25 = vmul.f32 0.5, %v22934_v4 }
 0xd0b   : > { %19892 = verf.f32 %v11755_v29  ;;  %11587 = vmatpush1.bf16.msra.mxu0 %v17056_v14  ;;  %v17104_v14 = vcombine.low %v8279_v39, %v8287_v26  ;;  %v17122_v29 = vcombine.low %v22979_v1, %v22982_v28  ;;  %v17137_v23 = vcombine.high %v22985_v34, %v22988_v9  ;;  %v8312_v32 = vld [vmem:[%s21008_s20 + $0xe38] sm:$0xff] }
 0xd0c   : > { %19894 = verf.f32 %v11754_v20  ;;  %11673 = vmatpush1.bf16.msra.mxu1 %v17058_v57  ;;  %11588 = vmatprep.subr.bf16.mxu0 %v17073_v27  ;;  %v17121_v27 = vcombine.high %v22973_v12, %v22976_v48  ;;  %v11707_v20 = vmul.f32 0.5, %v22938_v49  ;;  %v11708_v4 = vmul.f32 0.5, %v22943_v43 }
 0xd0d   : > { %19896 = verf.f32 %v11756_v54  ;;  %11674 = vmatprep.subr.bf16.mxu1 %v17075_v11  ;;  %v17123_v11 = vcombine.high %v22979_v1, %v22982_v28  ;;  %v11723_v26 = vmul.f32 0.5, %v22955_v5  ;;  %v11724_v43 = vmul.f32 0.5, %v22959_v63  ;;  %v8328_v63 = vld [vmem:[%s21008_s20 + $0xeb8] sm:$0xff] }
 0xd0f   : > { %11589 = vmatpush1.bf16.msra.mxu0 %v17072_v35  ;;  %v11706_v35 = vmul.f32 0.5, %v22940_v60  ;;  %v11722_v60 = vmul.f32 0.5, %v22957_v19 }
 0xd10   : > { %v19883_v50 = vpop.eup %19882  ;;  %11675 = vmatpush1.bf16.msra.mxu1 %v17074_v40  ;;  %11590 = vmatprep.subr.bf16.mxu0 %v17089_v41  ;;  %v11721_v41 = vmul.f32 0.5, %v22945_v31 }
 0xd11   : > { %v19885_v17 = vpop.eup %19884  ;;  %11676 = vmatprep.subr.bf16.mxu1 %v17091_v7  ;;  %v11801_v57 = vadd.f32 1.0, %v19883_v50 }
 0xd12   : > { %v19887_v33 = vpop.eup %19886  ;;  %v11803_v54 = vadd.f32 1.0, %v19885_v17 }
 0xd13   : > { %v19889_v44 = vpop.eup %19888  ;;  %11591 = vmatpush1.bf16.msra.mxu0 %v17088_v8  ;;  %v11802_v40 = vadd.f32 1.0, %v19887_v33  ;;  %v8320_v8 = vld [vmem:[%s21008_s20 + $0xe78] sm:$0xff]  ;;  %v11833_v48 = vmul.f32 %v11801_v57, %v11705_v25  ;;  %v8327_v33 = vld [vmem:[%s21008_s20 + $0xeb0] sm:$0xff] }
 0xd14   : > { %v19891_v30 = vpop.eup %19890  ;;  %11677 = vmatpush1.bf16.msra.mxu1 %v17090_v55  ;;  %11592 = vmatprep.subr.bf16.mxu0 %v17105_v24  ;;  %v11804_v49 = vadd.f32 1.0, %v19889_v44  ;;  %v11835_v31 = vmul.f32 %v11803_v54, %v11707_v20  ;;  %v8335_v44 = vld [vmem:[%s21008_s20 + $0xef0] sm:$0xff] }
 0xd15   : > { %v19893_v62 = vpop.eup %19892  ;;  %v11817_v7 = vadd.f32 1.0, %v19891_v30  ;;  %11678 = vmatprep.subr.bf16.mxu1 %v17107_v47  ;;  %v11834_v5 = vmul.f32 %v11802_v40, %v11706_v35  ;;  %v17139_v47 = vcombine.high %v8312_v32, %v8320_v8  ;;  %v8336_v30 = vld [vmem:[%s21008_s20 + $0xef8] sm:$0xff]  ;;  %v17153_v25 = vcombine.high %v8327_v33, %v8335_v44  ;;  %v8351_v35 = vld [vmem:[%s21008_s20 + $0xf70] sm:$0xff] }
 0xd16   : > { %v19895_v39 = vpop.eup %19894  ;;  %v11819_v46 = vadd.f32 1.0, %v19893_v62  ;;  %v11836_v19 = vmul.f32 %v11804_v49, %v11708_v4  ;;  %v17155_v54 = vcombine.high %v8328_v63, %v8336_v30  ;;  %v8343_v62 = vld [vmem:[%s21008_s20 + $0xf30] sm:$0xff]  ;;  %v8352_v40 = vld [vmem:[%s21008_s20 + $0xf78] sm:$0xff] }
 0xd17   : > { %v19897_v12 = vpop.eup %19896  ;;  %v11849_v50 = vmul.f32 %v11817_v7, %v11721_v41  ;;  %v11818_v55 = vadd.f32 1.0, %v19895_v39  ;;  %11593 = vmatpush1.bf16.msra.mxu0 %v17104_v14  ;;  %v8359_v41 = vld [vmem:[%s21008_s20 + $0xfb0] sm:$0xff]  ;;  %v8360_v39 = vld [vmem:[%s21008_s20 + $0xfb8] sm:$0xff]  ;;  %v17168_v49 = vcombine.low %v8343_v62, %v8351_v35 }
 0xd18   : > { %v11851_v24 = vmul.f32 %v11819_v46, %v11723_v26  ;;  %v11820_v1 = vadd.f32 1.0, %v19897_v12  ;;  %11679 = vmatpush1.bf16.msra.mxu1 %v17106_v38  ;;  %11594 = vmatprep.subr.bf16.mxu0 %v17121_v27  ;;  %v17136_v38 = vcombine.low %v22985_v34, %v22988_v9  ;;  %v17152_v34 = vcombine.low %v8327_v33, %v8335_v44  ;;  %v8367_v7 = vld [vmem:[%s21008_s20 + $0xff0] sm:$0xff]  ;;  %v8368_v4 = vld [vmem:[%s21008_s20 + $0xff8] sm:$0xff] }
 0xd19   : > { %v23010_v28 = vpack.c.bf16 %v11849_v50, %v11833_v48  ;;  %v11850_v17 = vmul.f32 %v11818_v55, %v11722_v60  ;;  %11680 = vmatprep.subr.bf16.mxu1 %v17123_v11  ;;  %v17138_v11 = vcombine.low %v8312_v32, %v8320_v8  ;;  %v17154_v9 = vcombine.low %v8328_v63, %v8336_v30  ;;  %v19032_v48 = vld [vmem:[%s21012_s17 + $0x4] ss:$16 sps:$4 sm:$0xff]   ;;  %v19035_v50 = vld [vmem:[%s21012_s17 + $0xc] ss:$16 sps:$4 sm:$0xff]   ;;  %v19030_v60 = vld [vmem:[%s21012_s17] ss:$16 sps:$4 sm:$0xff]  }
 0xd1a   : > { %v23014_v14 = vpack.c.bf16 %v11851_v24, %v11835_v31  ;;  %v11852_v57 = vmul.f32 %v11820_v1, %v11724_v43  ;;  %v17185_v46 = vcombine.high %v8359_v41, %v8367_v7  ;;  %v17187_v32 = vcombine.high %v8360_v39, %v8368_v4  ;;  %v19033_v55 = vld [vmem:[%s21012_s17 + $0x8] ss:$16 sps:$4 sm:$0xff]   ;;  %v19038_v31 = vld [vmem:[%s21012_s17 + $0x24] ss:$16 sps:$4 sm:$0xff]   ;;  %v19041_v24 = vld [vmem:[%s21012_s17 + $0x2c] ss:$16 sps:$4 sm:$0xff]  }
 0xd1b   : > { %11595 = vmatpush1.bf16.msra.mxu0 %v17120_v52  ;;  %v23020_v27 = vpack.c.bf16 %v11850_v17, %v11834_v5  ;;  %v8344_v52 = vld [vmem:[%s21008_s20 + $0xf38] sm:$0xff]  ;;  %v17184_v8 = vcombine.low %v8359_v41, %v8367_v7  ;;  %v17186_v12 = vcombine.low %v8360_v39, %v8368_v4  ;;  %v19036_v43 = vld [vmem:[%s21012_s17 + $0x20] ss:$16 sps:$4 sm:$0xff]   ;;  %v19044_v5 = vld [vmem:[%s21012_s17 + $0x44] ss:$16 sps:$4 sm:$0xff]   ;;  %s23840_s20 = scalar_lea.vmem [#allocation18], %s20999_s21 }
 0xd1c   : > { %11681 = vmatpush1.bf16.msra.mxu1 %v17122_v29  ;;  %11596 = vmatprep.subr.bf16.mxu0 %v17137_v23  ;;  %v23022_v20 = vpack.c.bf16 %v11852_v57, %v11836_v19  ;;  %v17169_v29 = vcombine.high %v8343_v62, %v8351_v35  ;;  %v17171_v23 = vcombine.high %v8344_v52, %v8352_v40  ;;  %v19039_v1 = vld [vmem:[%s21012_s17 + $0x28] ss:$16 sps:$4 sm:$0xff]   ;;  %v19047_v17 = vld [vmem:[%s21012_s17 + $0x4c] ss:$16 sps:$4 sm:$0xff]   ;;  %v19050_v33 = vld [vmem:[%s21012_s17 + $0x64] ss:$16 sps:$4 sm:$0xff]  }
 0xd1d   : > { %11682 = vmatprep.subr.bf16.mxu1 %v17139_v47  ;;  %v17170_v26 = vcombine.low %v8344_v52, %v8352_v40  ;;  %v19045_v47 = vld [vmem:[%s21012_s17 + $0x48] ss:$16 sps:$4 sm:$0xff]   ;;  %v19053_v44 = vld [vmem:[%s21012_s17 + $0x6c] ss:$16 sps:$4 sm:$0xff]   ;;  %v19056_v57 = vld [vmem:[%s21012_s17 + $0x84] ss:$16 sps:$4 sm:$0xff]  }
 0xd1e   : > { %v19051_v19 = vld [vmem:[%s21012_s17 + $0x68] ss:$16 sps:$4 sm:$0xff]   ;;  %v19059_v63 = vld [vmem:[%s21012_s17 + $0x8c] ss:$16 sps:$4 sm:$0xff]   ;;  %v19054_v30 = vld [vmem:[%s21012_s17 + $0x80] ss:$16 sps:$4 sm:$0xff]  }
 0xd1f   : > { %11597 = vmatpush1.bf16.msra.mxu0 %v17136_v38  ;;  %v19057_v38 = vld [vmem:[%s21012_s17 + $0x88] ss:$16 sps:$4 sm:$0xff]   ;;  %v19068_v35 = vld [vmem:[%s21012_s17 + $0xc4] ss:$16 sps:$4 sm:$0xff]   ;;  %v19071_v52 = vld [vmem:[%s21012_s17 + $0xcc] ss:$16 sps:$4 sm:$0xff]  }
 0xd20   : > { %11683 = vmatpush1.bf16.msra.mxu1 %v17138_v11  ;;  %11598 = vmatprep.subr.bf16.mxu0 %v17153_v25  ;;  %v19062_v11 = vld [vmem:[%s21012_s17 + $0xa4] ss:$16 sps:$4 sm:$0xff]   ;;  %v19065_v25 = vld [vmem:[%s21012_s17 + $0xac] ss:$16 sps:$4 sm:$0xff]   ;;  %v19063_v62 = vld [vmem:[%s21012_s17 + $0xa8] ss:$16 sps:$4 sm:$0xff]  }
 0xd21   : > { %11684 = vmatprep.subr.bf16.mxu1 %v17155_v54  ;;  %v19060_v54 = vld [vmem:[%s21012_s17 + $0xa0] ss:$16 sps:$4 sm:$0xff]   ;;  %v19075_v41 = vld [vmem:[%s21012_s17 + $0xe8] ss:$16 sps:$4 sm:$0xff]   ;;  %v19080_v7 = vld [vmem:[%s21012_s17 + $0x104] ss:$16 sps:$4 sm:$0xff]  }
 0xd22   : > { %v19066_v40 = vld [vmem:[%s21012_s17 + $0xc0] ss:$16 sps:$4 sm:$0xff]   ;;  %v19083_v39 = vld [vmem:[%s21012_s17 + $0x10c] ss:$16 sps:$4 sm:$0xff]  }
 0xd23   : > { %11599 = vmatpush1.bf16.msra.mxu0 %v17152_v34  ;;  %v19069_v34 = vld [vmem:[%s21012_s17 + $0xc8] ss:$16 sps:$4 sm:$0xff]   ;;  %v19078_v4 = vld [vmem:[%s21012_s17 + $0x100] ss:$16 sps:$4 sm:$0xff]  }
 0xd24   : > { %11685 = vmatpush1.bf16.msra.mxu1 %v17154_v9  ;;  %11600 = vmatprep.subr.bf16.mxu0 %v17169_v29  ;;  %v19074_v9 = vld [vmem:[%s21012_s17 + $0xe4] ss:$16 sps:$4 sm:$0xff]   ;;  %v19077_v29 = vld [vmem:[%s21012_s17 + $0xec] ss:$16 sps:$4 sm:$0xff]  }
 0xd25   : > { %11686 = vmatprep.subr.bf16.mxu1 %v17171_v23  ;;  %v19072_v23 = vld [vmem:[%s21012_s17 + $0xe0] ss:$16 sps:$4 sm:$0xff]  }
 0xd27   : > { %11601 = vmatpush1.bf16.msra.mxu0 %v17168_v49  ;;  %v19081_v49 = vld [vmem:[%s21012_s17 + $0x108] ss:$16 sps:$4 sm:$0xff]  }
 0xd28   : > { %11687 = vmatpush1.bf16.msra.mxu1 %v17170_v26  ;;  %11602 = vmatprep.subr.bf16.mxu0 %v17185_v46  ;;  %v19086_v26 = vld [vmem:[%s21012_s17 + $0x124] ss:$16 sps:$4 sm:$0xff]   ;;  %v19089_v46 = vld [vmem:[%s21012_s17 + $0x12c] ss:$16 sps:$4 sm:$0xff]  }
 0xd29   : > { %11688 = vmatprep.subr.bf16.mxu1 %v17187_v32  ;;  %v19084_v32 = vld [vmem:[%s21012_s17 + $0x120] ss:$16 sps:$4 sm:$0xff]  }
 0xd2b   : > { %11603 = vmatpush1.bf16.msra.mxu0 %v17184_v8  ;;  %v19087_v8 = vld [vmem:[%s21012_s17 + $0x128] ss:$16 sps:$4 sm:$0xff]  }
 0xd2c   : > { %11689 = vmatpush1.bf16.msra.mxu1 %v17186_v12  ;;  %14971 = vmatprep.subr.bf16.mxu0 %v19032_v48  ;;  %v19092_v12 = vld [vmem:[%s21012_s17 + $0x144] ss:$16 sps:$4 sm:$0xff]   ;;  %v19095_v48 = vld [vmem:[%s21012_s17 + $0x14c] ss:$16 sps:$4 sm:$0xff]  }
 0xd2d   : > { %15315 = vmatprep.subr.bf16.mxu1 %v19035_v50  ;;  %v19090_v50 = vld [vmem:[%s21012_s17 + $0x140] ss:$16 sps:$4 sm:$0xff]  }
 0xd2e   : > { %11605 = vmatmul.mubr.bf16.vlgmr.msra.gmra.mrb[60].mxu0 %v22483_v42 }
 0xd2f   : > { %11691 = vmatmul.mubr.bf16.vlgmr.msra.gmra.mrb[60].mxu1 %v22483_v42  ;;  %14972 = vmatpush1.bf16.msra.mxu0 %v19030_v60  ;;  %v19042_v42 = vld [vmem:[%s21012_s17 + $0x40] ss:$16 sps:$4 sm:$0xff]   ;;  %v19093_v60 = vld [vmem:[%s21012_s17 + $0x148] ss:$16 sps:$4 sm:$0xff]  }
 0xd30   : > { %15003 = vmatprep.mubr.bf16.mxu0 %v22812_v59  ;;  %15316 = vmatpush1.bf16.msra.mxu1 %v19033_v55  ;;  %v19098_v55 = vld [vmem:[%s21012_s17 + $0x164] ss:$16 sps:$4 sm:$0xff]  }
 0xd31   : > { %15347 = vmatprep.mubr.bf16.mxu1 %v22812_v59  ;;  %14973 = vmatprep.subr.bf16.mxu0 %v19038_v31  ;;  %v19048_v59 = vld [vmem:[%s21012_s17 + $0x60] ss:$16 sps:$4 sm:$0xff]   ;;  %v19101_v31 = vld [vmem:[%s21012_s17 + $0x16c] ss:$16 sps:$4 sm:$0xff]  }
 0xd32   : > { %15317 = vmatprep.subr.bf16.mxu1 %v19041_v24  ;;  %v19096_v24 = vld [vmem:[%s21012_s17 + $0x160] ss:$16 sps:$4 sm:$0xff]  }
 0xd33   : > { %14974 = vmatpush1.bf16.msra.mxu0 %v19036_v43  ;;  %v19099_v43 = vld [vmem:[%s21012_s17 + $0x168] ss:$16 sps:$4 sm:$0xff]  }
 0xd34   : > { %15318 = vmatpush1.bf16.msra.mxu1 %v19039_v1  ;;  %14975 = vmatprep.subr.bf16.mxu0 %v19044_v5  ;;  %v19104_v1 = vld [vmem:[%s21012_s17 + $0x184] ss:$16 sps:$4 sm:$0xff]   ;;  %v19107_v5 = vld [vmem:[%s21012_s17 + $0x18c] ss:$16 sps:$4 sm:$0xff]  }
 0xd35   : > { %15319 = vmatprep.subr.bf16.mxu1 %v19047_v17  ;;  %v19102_v17 = vld [vmem:[%s21012_s17 + $0x180] ss:$16 sps:$4 sm:$0xff]  }
 0xd37   : > { %14976 = vmatpush1.bf16.msra.mxu0 %v19042_v42  ;;  %v19105_v42 = vld [vmem:[%s21012_s17 + $0x188] ss:$16 sps:$4 sm:$0xff]  }
 0xd38   : > { %15320 = vmatpush1.bf16.msra.mxu1 %v19045_v47  ;;  %14977 = vmatprep.subr.bf16.mxu0 %v19050_v33  ;;  %v19110_v47 = vld [vmem:[%s21012_s17 + $0x1a4] ss:$16 sps:$4 sm:$0xff]   ;;  %v19113_v33 = vld [vmem:[%s21012_s17 + $0x1ac] ss:$16 sps:$4 sm:$0xff]  }
 0xd39   : > { %15321 = vmatprep.subr.bf16.mxu1 %v19053_v44  ;;  %v19108_v44 = vld [vmem:[%s21012_s17 + $0x1a0] ss:$16 sps:$4 sm:$0xff]  }
 0xd3b   : > { %14978 = vmatpush1.bf16.msra.mxu0 %v19048_v59  ;;  %v19111_v59 = vld [vmem:[%s21012_s17 + $0x1a8] ss:$16 sps:$4 sm:$0xff]  }
 0xd3c   : > { %15322 = vmatpush1.bf16.msra.mxu1 %v19051_v19  ;;  %14979 = vmatprep.subr.bf16.mxu0 %v19056_v57  ;;  %v19116_v19 = vld [vmem:[%s21012_s17 + $0x1c4] ss:$16 sps:$4 sm:$0xff]   ;;  %v19119_v57 = vld [vmem:[%s21012_s17 + $0x1cc] ss:$16 sps:$4 sm:$0xff]  }
 0xd3d   : > { %15323 = vmatprep.subr.bf16.mxu1 %v19059_v63  ;;  %v19114_v63 = vld [vmem:[%s21012_s17 + $0x1c0] ss:$16 sps:$4 sm:$0xff]  }
 0xd3f   : > { %14980 = vmatpush1.bf16.msra.mxu0 %v19054_v30  ;;  %v19117_v30 = vld [vmem:[%s21012_s17 + $0x1c8] ss:$16 sps:$4 sm:$0xff]  }
 0xd40   : > { %15324 = vmatpush1.bf16.msra.mxu1 %v19057_v38  ;;  %14981 = vmatprep.subr.bf16.mxu0 %v19062_v11  ;;  %v19122_v38 = vld [vmem:[%s21012_s17 + $0x1e4] ss:$16 sps:$4 sm:$0xff]   ;;  %v19125_v11 = vld [vmem:[%s21012_s17 + $0x1ec] ss:$16 sps:$4 sm:$0xff]  }
 0xd41   : > { %15325 = vmatprep.subr.bf16.mxu1 %v19065_v25  ;;  %v19120_v25 = vld [vmem:[%s21012_s17 + $0x1e0] ss:$16 sps:$4 sm:$0xff]  }
 0xd43   : > { %14982 = vmatpush1.bf16.msra.mxu0 %v19060_v54  ;;  %v19123_v54 = vld [vmem:[%s21012_s17 + $0x1e8] ss:$16 sps:$4 sm:$0xff]  }
 0xd44   : > { %15326 = vmatpush1.bf16.msra.mxu1 %v19063_v62  ;;  %14983 = vmatprep.subr.bf16.mxu0 %v19068_v35  ;;  %v19128_v62 = vld [vmem:[%s21012_s17 + $0x204] ss:$16 sps:$4 sm:$0xff]   ;;  %v19131_v35 = vld [vmem:[%s21012_s17 + $0x20c] ss:$16 sps:$4 sm:$0xff]  }
 0xd45   : > { %15327 = vmatprep.subr.bf16.mxu1 %v19071_v52  ;;  %v19126_v52 = vld [vmem:[%s21012_s17 + $0x200] ss:$16 sps:$4 sm:$0xff]  }
 0xd47   : > { %14984 = vmatpush1.bf16.msra.mxu0 %v19066_v40  ;;  %v19129_v40 = vld [vmem:[%s21012_s17 + $0x208] ss:$16 sps:$4 sm:$0xff]  }
 0xd48   : > { %15328 = vmatpush1.bf16.msra.mxu1 %v19069_v34  ;;  %14985 = vmatprep.subr.bf16.mxu0 %v19074_v9  ;;  %v19134_v34 = vld [vmem:[%s21012_s17 + $0x224] ss:$16 sps:$4 sm:$0xff]   ;;  %v19137_v9 = vld [vmem:[%s21012_s17 + $0x22c] ss:$16 sps:$4 sm:$0xff]  }
 0xd49   : > { %15329 = vmatprep.subr.bf16.mxu1 %v19077_v29  ;;  %v19132_v29 = vld [vmem:[%s21012_s17 + $0x220] ss:$16 sps:$4 sm:$0xff]  }
 0xd4b   : > { %14986 = vmatpush1.bf16.msra.mxu0 %v19072_v23  ;;  %v19135_v23 = vld [vmem:[%s21012_s17 + $0x228] ss:$16 sps:$4 sm:$0xff]  }
 0xd4c   : > { %15330 = vmatpush1.bf16.msra.mxu1 %v19075_v41  ;;  %14987 = vmatprep.subr.bf16.mxu0 %v19080_v7  ;;  %v19140_v41 = vld [vmem:[%s21012_s17 + $0x244] ss:$16 sps:$4 sm:$0xff]   ;;  %v19143_v7 = vld [vmem:[%s21012_s17 + $0x24c] ss:$16 sps:$4 sm:$0xff]  }
 0xd4d   : > { %15331 = vmatprep.subr.bf16.mxu1 %v19083_v39  ;;  %v19141_v39 = vld [vmem:[%s21012_s17 + $0x248] ss:$16 sps:$4 sm:$0xff]  }
 0xd4f   : > { %14988 = vmatpush1.bf16.msra.mxu0 %v19078_v4  ;;  %v19146_v4 = vld [vmem:[%s21012_s17 + $0x264] ss:$16 sps:$4 sm:$0xff]  }
 0xd50   : > { %15332 = vmatpush1.bf16.msra.mxu1 %v19081_v49  ;;  %14989 = vmatprep.subr.bf16.mxu0 %v19086_v26  ;;  %v19149_v49 = vld [vmem:[%s21012_s17 + $0x26c] ss:$16 sps:$4 sm:$0xff]   ;;  %v19147_v26 = vld [vmem:[%s21012_s17 + $0x268] ss:$16 sps:$4 sm:$0xff]  }
 0xd51   : > { %15333 = vmatprep.subr.bf16.mxu1 %v19089_v46  ;;  %v19152_v46 = vld [vmem:[%s21012_s17 + $0x284] ss:$16 sps:$4 sm:$0xff]  }
 0xd53   : > { %14990 = vmatpush1.bf16.msra.mxu0 %v19084_v32  ;;  %v19155_v32 = vld [vmem:[%s21012_s17 + $0x28c] ss:$16 sps:$4 sm:$0xff]  }
 0xd54   : > { %15334 = vmatpush1.bf16.msra.mxu1 %v19087_v8  ;;  %14991 = vmatprep.subr.bf16.mxu0 %v19092_v12  ;;  %v19150_v8 = vld [vmem:[%s21012_s17 + $0x280] ss:$16 sps:$4 sm:$0xff]   ;;  %v23124_v12 = vld [vmem:[%s21010_s22 + $0x8] sm:$0xff]  ;;  %s23841_s22 = scalar_lea.vmem [#allocation19], %s20999_s21 }
 0xd55   : > { %15335 = vmatprep.subr.bf16.mxu1 %v19095_v48  ;;  %v19153_v48 = vld [vmem:[%s21012_s17 + $0x288] ss:$16 sps:$4 sm:$0xff]  }
 0xd57   : > { %14992 = vmatpush1.bf16.msra.mxu0 %v19090_v50  ;;  %v19158_v50 = vld [vmem:[%s21012_s17 + $0x2a4] ss:$16 sps:$4 sm:$0xff]  }
 0xd58   : > { %15336 = vmatpush1.bf16.msra.mxu1 %v19093_v60  ;;  %14993 = vmatprep.subr.bf16.mxu0 %v19098_v55  ;;  %v19161_v60 = vld [vmem:[%s21012_s17 + $0x2ac] ss:$16 sps:$4 sm:$0xff]   ;;  %v8408_v55 = vrot.slane %v23124_v12, %v21514_v56 }
 0xd59   : > { %15337 = vmatprep.subr.bf16.mxu1 %v19101_v31  ;;  %v8416_v31 = vrot.slane %v23124_v12, %v21530_v6 }
 0xd5b   : > { %14994 = vmatpush1.bf16.msra.mxu0 %v19096_v24  ;;  %v8412_v24 = vrot.slane %v23124_v12, %v21519_v10 }
 0xd5c   : > { %15338 = vmatpush1.bf16.msra.mxu1 %v19099_v43  ;;  %14995 = vmatprep.subr.bf16.mxu0 %v19104_v1  ;;  %v19156_v43 = vld [vmem:[%s21012_s17 + $0x2a0] ss:$16 sps:$4 sm:$0xff]   ;;  %v8420_v1 = vrot.slane %v23124_v12, %v21553_v21 }
 0xd5d   : > { %15339 = vmatprep.subr.bf16.mxu1 %v19107_v5  ;;  %v19159_v5 = vld [vmem:[%s21012_s17 + $0x2a8] ss:$16 sps:$4 sm:$0xff]  }
 0xd5f   : > { %14996 = vmatpush1.bf16.msra.mxu0 %v19102_v17  ;;  %v19164_v17 = vld [vmem:[%s21012_s17 + $0x2c4] ss:$16 sps:$4 sm:$0xff]  }
 0xd60   : > { %15340 = vmatpush1.bf16.msra.mxu1 %v19105_v42  ;;  %14997 = vmatprep.subr.bf16.mxu0 %v19110_v47  ;;  %v19167_v47 = vld [vmem:[%s21012_s17 + $0x2cc] ss:$16 sps:$4 sm:$0xff]  }
 0xd61   : > { %15341 = vmatprep.subr.bf16.mxu1 %v19113_v33 }
 0xd63   : > { %14998 = vmatpush1.bf16.msra.mxu0 %v19108_v44 }
 0xd64   : > { %15342 = vmatpush1.bf16.msra.mxu1 %v19111_v59  ;;  %14999 = vmatprep.subr.bf16.mxu0 %v19116_v19 }
 0xd65   : > { %15343 = vmatprep.subr.bf16.mxu1 %v19119_v57 }
 0xd67   : > { %15000 = vmatpush1.bf16.msra.mxu0 %v19114_v63 }
 0xd68   : > { %15344 = vmatpush1.bf16.msra.mxu1 %v19117_v30  ;;  %15001 = vmatprep.subr.bf16.mxu0 %v19122_v38  ;;  %v19162_v38 = vld [vmem:[%s21012_s17 + $0x2c0] ss:$16 sps:$4 sm:$0xff]  }
 0xd69   : > { %15345 = vmatprep.subr.bf16.mxu1 %v19125_v11  ;;  %v19165_v11 = vld [vmem:[%s21012_s17 + $0x2c8] ss:$16 sps:$4 sm:$0xff]  }
 0xd6b   : > { %15002 = vmatpush1.bf16.msra.mxu0 %v19120_v25 }
 0xd6c   : > { %15346 = vmatpush1.bf16.msra.mxu1 %v19123_v54  ;;  %15014 = vmatprep.subr.bf16.mxu0 %v19128_v62 }
 0xd6d   : > { %15358 = vmatprep.subr.bf16.mxu1 %v19131_v35 }
 0xd6e   : > { %15004 = vmatmul.mubr.bf16.vlgmr.msra.gmra.mrb[64].mxu0 %v22802_v37 }
 0xd6f   : > { %15348 = vmatmul.mubr.bf16.vlgmr.msra.gmra.mrb[64].mxu1 %v22802_v37  ;;  %15015 = vmatpush1.bf16.msra.mxu0 %v19126_v52  ;;  %v19138_v37 = vld [vmem:[%s21012_s17 + $0x240] ss:$16 sps:$4 sm:$0xff]  }
 0xd70   : > { %15046 = vmatprep.mubr.bf16.mxu0 %v22814_v61  ;;  %15359 = vmatpush1.bf16.msra.mxu1 %v19129_v40  ;;  %v19170_v40 = vld [vmem:[%s21012_s17 + $0x2e4] ss:$16 sps:$4 sm:$0xff]  }
 0xd71   : > { %15390 = vmatprep.mubr.bf16.mxu1 %v22814_v61  ;;  %15016 = vmatprep.subr.bf16.mxu0 %v19134_v34  ;;  %v19144_v61 = vld [vmem:[%s21012_s17 + $0x260] ss:$16 sps:$4 sm:$0xff]  }
 0xd72   : > { %15360 = vmatprep.subr.bf16.mxu1 %v19137_v9 }
 0xd73   : > { %15017 = vmatpush1.bf16.msra.mxu0 %v19132_v29  ;;  %v19173_v29 = vld [vmem:[%s21012_s17 + $0x2ec] ss:$16 sps:$4 sm:$0xff]  }
 0xd74   : > { %15361 = vmatpush1.bf16.msra.mxu1 %v19135_v23  ;;  %15018 = vmatprep.subr.bf16.mxu0 %v19140_v41 }
 0xd75   : > { %15362 = vmatprep.subr.bf16.mxu1 %v19143_v7 }
 0xd77   : > { %15019 = vmatpush1.bf16.msra.mxu0 %v19138_v37 }
 0xd78   : > { %15363 = vmatpush1.bf16.msra.mxu1 %v19141_v39  ;;  %15020 = vmatprep.subr.bf16.mxu0 %v19146_v4  ;;  %v19168_v4 = vld [vmem:[%s21012_s17 + $0x2e0] ss:$16 sps:$4 sm:$0xff]  }
 0xd79   : > { %15364 = vmatprep.subr.bf16.mxu1 %v19149_v49 }
 0xd7b   : > { %15021 = vmatpush1.bf16.msra.mxu0 %v19144_v61  ;;  %v19171_v61 = vld [vmem:[%s21012_s17 + $0x2e8] ss:$16 sps:$4 sm:$0xff]  }
 0xd7c   : > { %15365 = vmatpush1.bf16.msra.mxu1 %v19147_v26  ;;  %15022 = vmatprep.subr.bf16.mxu0 %v19152_v46  ;;  %v19176_v26 = vld [vmem:[%s21012_s17 + $0x304] ss:$16 sps:$4 sm:$0xff]  }
 0xd7d   : > { %15366 = vmatprep.subr.bf16.mxu1 %v19155_v32  ;;  %v19179_v32 = vld [vmem:[%s21012_s17 + $0x30c] ss:$16 sps:$4 sm:$0xff]  }
 0xd7f   : > { %15023 = vmatpush1.bf16.msra.mxu0 %v19150_v8 }
 0xd80   : > { %15367 = vmatpush1.bf16.msra.mxu1 %v19153_v48  ;;  %15024 = vmatprep.subr.bf16.mxu0 %v19158_v50  ;;  %v19174_v50 = vld [vmem:[%s21012_s17 + $0x300] ss:$16 sps:$4 sm:$0xff]  }
 0xd81   : > { %v11434_v42 = vpop.f32.mrb[56].mxu0  ;;  %15368 = vmatprep.subr.bf16.mxu1 %v19161_v60  ;;  %v19177_v60 = vld [vmem:[%s21012_s17 + $0x308] ss:$16 sps:$4 sm:$0xff]  }
 0xd82   : > { %v23141_v33 = vadd.f32 %v11434_v42, %v8408_v55  ;;  %v11520_v44 = vpop.f32.mrb[56].mxu1  ;;  %v11436_v59 = vpop.f32.mrb[57].mxu0  ;;  %v19191_v42 = vld [vmem:[%s21012_s17 + $0x34c] ss:$16 sps:$4 sm:$0xff]  }
 0xd83   : > { %v23143_v19 = vadd.f32 %v11520_v44, %v8416_v31  ;;  %v23145_v57 = vadd.f32 %v11436_v59, %v8412_v24  ;;  %v11522_v63 = vpop.f32.mrb[57].mxu1  ;;  %v11438_v30 = vpop.f32.mrb[58].mxu0  ;;  %15025 = vmatpush1.bf16.msra.mxu0 %v19156_v43 }
 0xd84   : > { %v11741_v25 = vmul.f32 0.70710677, %v23141_v33  ;;  %v23150_v54 = vadd.f32 %v11522_v63, %v8420_v1  ;;  %v23152_v62 = vadd.f32 %v11438_v30, %v8408_v55  ;;  %v11524_v35 = vpop.f32.mrb[58].mxu1  ;;  %15369 = vmatpush1.bf16.msra.mxu1 %v19159_v5  ;;  %v11440_v52 = vpop.f32.mrb[59].mxu0  ;;  %15026 = vmatprep.subr.bf16.mxu0 %v19164_v17  ;;  %v19182_v55 = vld [vmem:[%s21012_s17 + $0x324] ss:$16 sps:$4 sm:$0xff]  }
 0xd85   : > { %v11743_v34 = vmul.f32 0.70710677, %v23143_v19  ;;  %v11742_v9 = vmul.f32 0.70710677, %v23145_v57  ;;  %15370 = vmatprep.subr.bf16.mxu1 %v19167_v47  ;;  %v11526_v41 = vpop.f32.mrb[59].mxu1  ;;  %v17990_v37 = vadd.f32 %v11524_v35, %v8416_v31  ;;  %v23160_v39 = vadd.f32 %v11440_v52, %v8412_v24 }
 0xd86   : > { %19898 = verf.f32 %v11741_v25  ;;  %v11744_v23 = vmul.f32 0.70710677, %v23150_v54  ;;  %v11757_v7 = vmul.f32 0.70710677, %v23152_v62  ;;  %v23163_v49 = vadd.f32 %v11526_v41, %v8420_v1  ;;  %v19185_v31 = vld [vmem:[%s21012_s17 + $0x32c] ss:$16 sps:$4 sm:$0xff]  }
 0xd87   : > { %19900 = verf.f32 %v11743_v34  ;;  %15027 = vmatpush1.bf16.msra.mxu0 %v19162_v38  ;;  %v11759_v46 = vmul.f32 0.70710677, %v17990_v37  ;;  %v11758_v8 = vmul.f32 0.70710677, %v23160_v39  ;;  %v19180_v24 = vld [vmem:[%s21012_s17 + $0x320] ss:$16 sps:$4 sm:$0xff]  }
 0xd88   : > { %19902 = verf.f32 %v11742_v9  ;;  %15371 = vmatpush1.bf16.msra.mxu1 %v19165_v11  ;;  %15028 = vmatprep.subr.bf16.mxu0 %v19170_v40  ;;  %v11760_v48 = vmul.f32 0.70710677, %v23163_v49  ;;  %v19183_v1 = vld [vmem:[%s21012_s17 + $0x328] ss:$16 sps:$4 sm:$0xff]   ;;  %v19188_v5 = vld [vmem:[%s21012_s17 + $0x344] ss:$16 sps:$4 sm:$0xff]  }
 0xd89   : > { %19904 = verf.f32 %v11744_v23  ;;  %15372 = vmatprep.subr.bf16.mxu1 %v19173_v29  ;;  %v19186_v63 = vld [vmem:[%s21012_s17 + $0x340] ss:$16 sps:$4 sm:$0xff]   ;;  %v19189_v30 = vld [vmem:[%s21012_s17 + $0x348] ss:$16 sps:$4 sm:$0xff]   ;;  %v11709_v11 = vmul.f32 0.5, %v23141_v33  ;;  %v11711_v25 = vmul.f32 0.5, %v23143_v19 }
 0xd8a   : > { %19906 = verf.f32 %v11757_v7  ;;  %v19194_v52 = vld [vmem:[%s21012_s17 + $0x364] ss:$16 sps:$4 sm:$0xff]   ;;  %v11710_v34 = vmul.f32 0.5, %v23145_v57  ;;  %v11725_v29 = vmul.f32 0.5, %v23152_v62  ;;  %v19197_v41 = vld [vmem:[%s21012_s17 + $0x36c] ss:$16 sps:$4 sm:$0xff]  }
 0xd8b   : > { %19908 = verf.f32 %v11759_v46  ;;  %15029 = vmatpush1.bf16.msra.mxu0 %v19168_v4  ;;  %v11712_v4 = vmul.f32 0.5, %v23150_v54  ;;  %v11727_v19 = vmul.f32 0.5, %v17990_v37  ;;  %v11726_v57 = vmul.f32 0.5, %v23160_v39  ;;  %v19192_v62 = vld [vmem:[%s21012_s17 + $0x360] ss:$16 sps:$4 sm:$0xff]  }
 0xd8c   : > { %19910 = verf.f32 %v11758_v8  ;;  %15373 = vmatpush1.bf16.msra.mxu1 %v19171_v61  ;;  %15030 = vmatprep.subr.bf16.mxu0 %v19176_v26  ;;  %v19195_v37 = vld [vmem:[%s21012_s17 + $0x368] ss:$16 sps:$4 sm:$0xff]  }
 0xd8d   : > { %19912 = verf.f32 %v11760_v48  ;;  %15374 = vmatprep.subr.bf16.mxu1 %v19179_v32 }
 0xd8f   : > { %15031 = vmatpush1.bf16.msra.mxu0 %v19174_v50 }
 0xd90   : > { %v19899_v43 = vpop.eup %19898  ;;  %15375 = vmatpush1.bf16.msra.mxu1 %v19177_v60  ;;  %15032 = vmatprep.subr.bf16.mxu0 %v19182_v55  ;;  %v11728_v60 = vmul.f32 0.5, %v23163_v49  ;;  %v19200_v55 = vld [vmem:[%s21012_s17 + $0x384] ss:$16 sps:$4 sm:$0xff]  }
 0xd91   : > { %v19901_v17 = vpop.eup %19900  ;;  %15376 = vmatprep.subr.bf16.mxu1 %v19185_v31  ;;  %v11805_v59 = vadd.f32 1.0, %v19899_v43  ;;  %v19203_v43 = vld [vmem:[%s21012_s17 + $0x38c] ss:$16 sps:$4 sm:$0xff]  }
 0xd92   : > { %v19903_v47 = vpop.eup %19902  ;;  %v11807_v35 = vadd.f32 1.0, %v19901_v17  ;;  %v19198_v17 = vld [vmem:[%s21012_s17 + $0x380] ss:$16 sps:$4 sm:$0xff]  }
 0xd93   : > { %v19905_v44 = vpop.eup %19904  ;;  %15033 = vmatpush1.bf16.msra.mxu0 %v19180_v24  ;;  %v11806_v9 = vadd.f32 1.0, %v19903_v47  ;;  %v11837_v46 = vmul.f32 %v11805_v59, %v11709_v11  ;;  %v19201_v47 = vld [vmem:[%s21012_s17 + $0x388] ss:$16 sps:$4 sm:$0xff]   ;;  %v19212_v11 = vld [vmem:[%s21012_s17 + $0x3c4] ss:$16 sps:$4 sm:$0xff]  }
 0xd94   : > { %v19907_v38 = vpop.eup %19906  ;;  %15377 = vmatpush1.bf16.msra.mxu1 %v19183_v1  ;;  %15034 = vmatprep.subr.bf16.mxu0 %v19188_v5  ;;  %v11808_v33 = vadd.f32 1.0, %v19905_v44  ;;  %v11839_v48 = vmul.f32 %v11807_v35, %v11711_v25  ;;  %v19206_v44 = vld [vmem:[%s21012_s17 + $0x3a4] ss:$16 sps:$4 sm:$0xff]   ;;  %v19215_v25 = vld [vmem:[%s21012_s17 + $0x3cc] ss:$16 sps:$4 sm:$0xff]  }
 0xd95   : > { %v19909_v40 = vpop.eup %19908  ;;  %v11821_v23 = vadd.f32 1.0, %v19907_v38  ;;  %15378 = vmatprep.subr.bf16.mxu1 %v19191_v42  ;;  %v11838_v31 = vmul.f32 %v11806_v9, %v11710_v34  ;;  %v19207_v38 = vld [vmem:[%s21012_s17 + $0x3a8] ss:$16 sps:$4 sm:$0xff]   ;;  %v19210_v35 = vld [vmem:[%s21012_s17 + $0x3c0] ss:$16 sps:$4 sm:$0xff]  }
 0xd96   : > { %v19911_v7 = vpop.eup %19910  ;;  %v11823_v61 = vadd.f32 1.0, %v19909_v40  ;;  %v11840_v1 = vmul.f32 %v11808_v33, %v11712_v4  ;;  %v19218_v40 = vld [vmem:[%s21012_s17 + $0x3e4] ss:$16 sps:$4 sm:$0xff]   ;;  %v19221_v34 = vld [vmem:[%s21012_s17 + $0x3ec] ss:$16 sps:$4 sm:$0xff]  }
 0xd97   : > { %v19913_v26 = vpop.eup %19912  ;;  %v11853_v32 = vmul.f32 %v11821_v23, %v11725_v29  ;;  %v11822_v8 = vadd.f32 1.0, %v19911_v7  ;;  %15035 = vmatpush1.bf16.msra.mxu0 %v19186_v63  ;;  %v19209_v63 = vld [vmem:[%s21012_s17 + $0x3ac] ss:$16 sps:$4 sm:$0xff]   ;;  %v19216_v9 = vld [vmem:[%s21012_s17 + $0x3e0] ss:$16 sps:$4 sm:$0xff]  }
 0xd98   : > { %v11855_v50 = vmul.f32 %v11823_v61, %v11727_v19  ;;  %v11824_v54 = vadd.f32 1.0, %v19913_v26  ;;  %15379 = vmatpush1.bf16.msra.mxu1 %v19189_v30  ;;  %15036 = vmatprep.subr.bf16.mxu0 %v19194_v52  ;;  %v19204_v30 = vld [vmem:[%s21012_s17 + $0x3a0] ss:$16 sps:$4 sm:$0xff]   ;;  %v19213_v52 = vld [vmem:[%s21012_s17 + $0x3c8] ss:$16 sps:$4 sm:$0xff]  }
 0xd99   : > { %v23192_v24 = vpack.c.bf16 %v11853_v32, %v11837_v46  ;;  %v11854_v39 = vmul.f32 %v11822_v8, %v11726_v57  ;;  %15380 = vmatprep.subr.bf16.mxu1 %v19197_v41  ;;  %v19219_v29 = vld [vmem:[%s21012_s17 + $0x3e8] ss:$16 sps:$4 sm:$0xff]   ;;  %v19224_v23 = vld [vmem:[%s21012_s17 + $0x404] ss:$16 sps:$4 sm:$0xff]   ;;  %v19227_v41 = vld [vmem:[%s21012_s17 + $0x40c] ss:$16 sps:$4 sm:$0xff]  }
 0xd9a   : > { %v23195_v5 = vpack.c.bf16 %v11855_v50, %v11839_v48  ;;  %v11856_v49 = vmul.f32 %v11824_v54, %v11728_v60  ;;  %v19222_v7 = vld [vmem:[%s21012_s17 + $0x400] ss:$16 sps:$4 sm:$0xff]   ;;  %v19225_v4 = vld [vmem:[%s21012_s17 + $0x408] ss:$16 sps:$4 sm:$0xff]   ;;  %v19230_v33 = vld [vmem:[%s21012_s17 + $0x424] ss:$16 sps:$4 sm:$0xff]  }
 0xd9b   : > { %15037 = vmatpush1.bf16.msra.mxu0 %v19192_v62  ;;  %v23198_v42 = vpack.c.bf16 %v11854_v39, %v11838_v31  ;;  %v19233_v19 = vld [vmem:[%s21012_s17 + $0x42c] ss:$16 sps:$4 sm:$0xff]   ;;  %v19228_v61 = vld [vmem:[%s21012_s17 + $0x420] ss:$16 sps:$4 sm:$0xff]   ;;  %v19231_v26 = vld [vmem:[%s21012_s17 + $0x428] ss:$16 sps:$4 sm:$0xff]  }
 0xd9c   : > { %15381 = vmatpush1.bf16.msra.mxu1 %v19195_v37  ;;  %15038 = vmatprep.subr.bf16.mxu0 %v19200_v55  ;;  %v23202_v59 = vpack.c.bf16 %v11856_v49, %v11840_v1  ;;  %v19236_v46 = vld [vmem:[%s21012_s17 + $0x444] ss:$16 sps:$4 sm:$0xff]   ;;  %v19239_v32 = vld [vmem:[%s21012_s17 + $0x44c] ss:$16 sps:$4 sm:$0xff]   ;;  %v19237_v57 = vld [vmem:[%s21012_s17 + $0x448] ss:$16 sps:$4 sm:$0xff]  }
 0xd9d   : > { %15382 = vmatprep.subr.bf16.mxu1 %v19203_v43  ;;  %v19242_v8 = vld [vmem:[%s21012_s17 + $0x464] ss:$16 sps:$4 sm:$0xff]   ;;  %v19245_v62 = vld [vmem:[%s21012_s17 + $0x46c] ss:$16 sps:$4 sm:$0xff]   ;;  %v19243_v48 = vld [vmem:[%s21012_s17 + $0x468] ss:$16 sps:$4 sm:$0xff]  }
 0xd9e   : > { %v19248_v50 = vld [vmem:[%s21012_s17 + $0x484] ss:$16 sps:$4 sm:$0xff]   ;;  %v19251_v60 = vld [vmem:[%s21012_s17 + $0x48c] ss:$16 sps:$4 sm:$0xff]   ;;  %v19246_v54 = vld [vmem:[%s21012_s17 + $0x480] ss:$16 sps:$4 sm:$0xff]  }
 0xd9f   : > { %15039 = vmatpush1.bf16.msra.mxu0 %v19198_v17  ;;  %v19249_v37 = vld [vmem:[%s21012_s17 + $0x488] ss:$16 sps:$4 sm:$0xff]   ;;  %v19254_v55 = vld [vmem:[%s21012_s17 + $0x4a4] ss:$16 sps:$4 sm:$0xff]   ;;  %v19257_v31 = vld [vmem:[%s21012_s17 + $0x4ac] ss:$16 sps:$4 sm:$0xff]  }
 0xda0   : > { %15383 = vmatpush1.bf16.msra.mxu1 %v19201_v47  ;;  %15040 = vmatprep.subr.bf16.mxu0 %v19206_v44  ;;  %v19252_v39 = vld [vmem:[%s21012_s17 + $0x4a0] ss:$16 sps:$4 sm:$0xff]   ;;  %v19255_v43 = vld [vmem:[%s21012_s17 + $0x4a8] ss:$16 sps:$4 sm:$0xff]   ;;  %v19260_v1 = vld [vmem:[%s21012_s17 + $0x4c4] ss:$16 sps:$4 sm:$0xff]  }
 0xda1   : > { %15384 = vmatprep.subr.bf16.mxu1 %v19209_v63  ;;  %v19263_v49 = vld [vmem:[%s21012_s17 + $0x4cc] ss:$16 sps:$4 sm:$0xff]   ;;  %v19258_v17 = vld [vmem:[%s21012_s17 + $0x4c0] ss:$16 sps:$4 sm:$0xff]   ;;  %v19261_v47 = vld [vmem:[%s21012_s17 + $0x4c8] ss:$16 sps:$4 sm:$0xff]  }
 0xda2   : > { %v19266_v44 = vld [vmem:[%s21012_s17 + $0x4e4] ss:$16 sps:$4 sm:$0xff]   ;;  %v19269_v63 = vld [vmem:[%s21012_s17 + $0x4ec] ss:$16 sps:$4 sm:$0xff]  }
 0xda3   : > { %15041 = vmatpush1.bf16.msra.mxu0 %v19204_v30  ;;  %v19264_v30 = vld [vmem:[%s21012_s17 + $0x4e0] ss:$16 sps:$4 sm:$0xff]  }
 0xda4   : > { %15385 = vmatpush1.bf16.msra.mxu1 %v19207_v38  ;;  %15042 = vmatprep.subr.bf16.mxu0 %v19212_v11  ;;  %v19267_v38 = vld [vmem:[%s21012_s17 + $0x4e8] ss:$16 sps:$4 sm:$0xff]   ;;  %v19272_v11 = vld [vmem:[%s21012_s17 + $0x504] ss:$16 sps:$4 sm:$0xff]  }
 0xda5   : > { %15386 = vmatprep.subr.bf16.mxu1 %v19215_v25  ;;  %v19275_v25 = vld [vmem:[%s21012_s17 + $0x50c] ss:$16 sps:$4 sm:$0xff]  }
 0xda7   : > { %15043 = vmatpush1.bf16.msra.mxu0 %v19210_v35  ;;  %v19270_v35 = vld [vmem:[%s21012_s17 + $0x500] ss:$16 sps:$4 sm:$0xff]  }
 0xda8   : > { %15387 = vmatpush1.bf16.msra.mxu1 %v19213_v52  ;;  %15044 = vmatprep.subr.bf16.mxu0 %v19218_v40  ;;  %v19273_v52 = vld [vmem:[%s21012_s17 + $0x508] ss:$16 sps:$4 sm:$0xff]   ;;  %v19278_v40 = vld [vmem:[%s21012_s17 + $0x524] ss:$16 sps:$4 sm:$0xff]  }
 0xda9   : > { %15388 = vmatprep.subr.bf16.mxu1 %v19221_v34  ;;  %v19281_v34 = vld [vmem:[%s21012_s17 + $0x52c] ss:$16 sps:$4 sm:$0xff]  }
 0xdab   : > { %15045 = vmatpush1.bf16.msra.mxu0 %v19216_v9  ;;  %v19276_v9 = vld [vmem:[%s21012_s17 + $0x520] ss:$16 sps:$4 sm:$0xff]  }
 0xdac   : > { %15389 = vmatpush1.bf16.msra.mxu1 %v19219_v29  ;;  %15057 = vmatprep.subr.bf16.mxu0 %v19224_v23  ;;  %v19279_v29 = vld [vmem:[%s21012_s17 + $0x528] ss:$16 sps:$4 sm:$0xff]   ;;  %v19284_v23 = vld [vmem:[%s21012_s17 + $0x544] ss:$16 sps:$4 sm:$0xff]  }
 0xdad   : > { %15401 = vmatprep.subr.bf16.mxu1 %v19227_v41  ;;  %v19287_v41 = vld [vmem:[%s21012_s17 + $0x54c] ss:$16 sps:$4 sm:$0xff]  }
 0xdae   : > { %15047 = vmatmul.mubr.bf16.vlgmr.msra.gmra.mrb[64].mxu0 %v22806_v16 }
 0xdaf   : > { %15391 = vmatmul.mubr.bf16.vlgmr.msra.gmra.mrb[64].mxu1 %v22806_v16  ;;  %15058 = vmatpush1.bf16.msra.mxu0 %v19222_v7  ;;  %v19234_v16 = vld [vmem:[%s21012_s17 + $0x440] ss:$16 sps:$4 sm:$0xff]  }
 0xdb0   : > { %15089 = vmatprep.mubr.bf16.mxu0 %v23020_v27  ;;  %15402 = vmatpush1.bf16.msra.mxu1 %v19225_v4  ;;  %v19282_v7 = vld [vmem:[%s21012_s17 + $0x540] ss:$16 sps:$4 sm:$0xff]   ;;  %v19285_v4 = vld [vmem:[%s21012_s17 + $0x548] ss:$16 sps:$4 sm:$0xff]  }
 0xdb1   : > { %15433 = vmatprep.mubr.bf16.mxu1 %v23020_v27  ;;  %15059 = vmatprep.subr.bf16.mxu0 %v19230_v33  ;;  %v19240_v27 = vld [vmem:[%s21012_s17 + $0x460] ss:$16 sps:$4 sm:$0xff]   ;;  %v19290_v33 = vld [vmem:[%s21012_s17 + $0x564] ss:$16 sps:$4 sm:$0xff]  }
 0xdb2   : > { %15403 = vmatprep.subr.bf16.mxu1 %v19233_v19  ;;  %v19293_v19 = vld [vmem:[%s21012_s17 + $0x56c] ss:$16 sps:$4 sm:$0xff]  }
 0xdb3   : > { %15060 = vmatpush1.bf16.msra.mxu0 %v19228_v61  ;;  %v19288_v61 = vld [vmem:[%s21012_s17 + $0x560] ss:$16 sps:$4 sm:$0xff]  }
 0xdb4   : > { %15404 = vmatpush1.bf16.msra.mxu1 %v19231_v26  ;;  %15061 = vmatprep.subr.bf16.mxu0 %v19236_v46  ;;  %v19291_v26 = vld [vmem:[%s21012_s17 + $0x568] ss:$16 sps:$4 sm:$0xff]   ;;  %v19296_v46 = vld [vmem:[%s21012_s17 + $0x584] ss:$16 sps:$4 sm:$0xff]  }
 0xdb5   : > { %15405 = vmatprep.subr.bf16.mxu1 %v19239_v32  ;;  %v19299_v32 = vld [vmem:[%s21012_s17 + $0x58c] ss:$16 sps:$4 sm:$0xff]  }
 0xdb7   : > { %15062 = vmatpush1.bf16.msra.mxu0 %v19234_v16  ;;  %v19294_v16 = vld [vmem:[%s21012_s17 + $0x580] ss:$16 sps:$4 sm:$0xff]  }
 0xdb8   : > { %15406 = vmatpush1.bf16.msra.mxu1 %v19237_v57  ;;  %15063 = vmatprep.subr.bf16.mxu0 %v19242_v8  ;;  %v19297_v57 = vld [vmem:[%s21012_s17 + $0x588] ss:$16 sps:$4 sm:$0xff]   ;;  %v19302_v8 = vld [vmem:[%s21012_s17 + $0x5a4] ss:$16 sps:$4 sm:$0xff]  }
 0xdb9   : > { %15407 = vmatprep.subr.bf16.mxu1 %v19245_v62  ;;  %v19305_v62 = vld [vmem:[%s21012_s17 + $0x5ac] ss:$16 sps:$4 sm:$0xff]  }
 0xdbb   : > { %15064 = vmatpush1.bf16.msra.mxu0 %v19240_v27  ;;  %v19300_v27 = vld [vmem:[%s21012_s17 + $0x5a0] ss:$16 sps:$4 sm:$0xff]  }
 0xdbc   : > { %15408 = vmatpush1.bf16.msra.mxu1 %v19243_v48  ;;  %15065 = vmatprep.subr.bf16.mxu0 %v19248_v50  ;;  %v19303_v48 = vld [vmem:[%s21012_s17 + $0x5a8] ss:$16 sps:$4 sm:$0xff]   ;;  %v19308_v50 = vld [vmem:[%s21012_s17 + $0x5c4] ss:$16 sps:$4 sm:$0xff]  }
 0xdbd   : > { %15409 = vmatprep.subr.bf16.mxu1 %v19251_v60  ;;  %v19311_v60 = vld [vmem:[%s21012_s17 + $0x5cc] ss:$16 sps:$4 sm:$0xff]  }
 0xdbf   : > { %15066 = vmatpush1.bf16.msra.mxu0 %v19246_v54  ;;  %v19306_v54 = vld [vmem:[%s21012_s17 + $0x5c0] ss:$16 sps:$4 sm:$0xff]  }
 0xdc0   : > { %15410 = vmatpush1.bf16.msra.mxu1 %v19249_v37  ;;  %15067 = vmatprep.subr.bf16.mxu0 %v19254_v55  ;;  %v19309_v37 = vld [vmem:[%s21012_s17 + $0x5c8] ss:$16 sps:$4 sm:$0xff]   ;;  %v19314_v55 = vld [vmem:[%s21012_s17 + $0x5e4] ss:$16 sps:$4 sm:$0xff]  }
 0xdc1   : > { %15411 = vmatprep.subr.bf16.mxu1 %v19257_v31  ;;  %v19317_v31 = vld [vmem:[%s21012_s17 + $0x5ec] ss:$16 sps:$4 sm:$0xff]  }
 0xdc3   : > { %15068 = vmatpush1.bf16.msra.mxu0 %v19252_v39  ;;  %v19312_v39 = vld [vmem:[%s21012_s17 + $0x5e0] ss:$16 sps:$4 sm:$0xff]  }
 0xdc4   : > { %15412 = vmatpush1.bf16.msra.mxu1 %v19255_v43  ;;  %15069 = vmatprep.subr.bf16.mxu0 %v19260_v1  ;;  %v19315_v43 = vld [vmem:[%s21012_s17 + $0x5e8] ss:$16 sps:$4 sm:$0xff]   ;;  %v19320_v1 = vld [vmem:[%s21012_s17 + $0x604] ss:$16 sps:$4 sm:$0xff]  }
 0xdc5   : > { %15413 = vmatprep.subr.bf16.mxu1 %v19263_v49  ;;  %v19323_v49 = vld [vmem:[%s21012_s17 + $0x60c] ss:$16 sps:$4 sm:$0xff]  }
 0xdc7   : > { %15070 = vmatpush1.bf16.msra.mxu0 %v19258_v17  ;;  %v19318_v17 = vld [vmem:[%s21012_s17 + $0x600] ss:$16 sps:$4 sm:$0xff]  }
 0xdc8   : > { %15414 = vmatpush1.bf16.msra.mxu1 %v19261_v47  ;;  %15071 = vmatprep.subr.bf16.mxu0 %v19266_v44  ;;  %v19321_v47 = vld [vmem:[%s21012_s17 + $0x608] ss:$16 sps:$4 sm:$0xff]   ;;  %v19326_v44 = vld [vmem:[%s21012_s17 + $0x624] ss:$16 sps:$4 sm:$0xff]  }
 0xdc9   : > { %15415 = vmatprep.subr.bf16.mxu1 %v19269_v63  ;;  %v19329_v63 = vld [vmem:[%s21012_s17 + $0x62c] ss:$16 sps:$4 sm:$0xff]  }
 0xdcb   : > { %15072 = vmatpush1.bf16.msra.mxu0 %v19264_v30  ;;  %v19324_v30 = vld [vmem:[%s21012_s17 + $0x620] ss:$16 sps:$4 sm:$0xff]  }
 0xdcc   : > { %15416 = vmatpush1.bf16.msra.mxu1 %v19267_v38  ;;  %15073 = vmatprep.subr.bf16.mxu0 %v19272_v11  ;;  %v19327_v38 = vld [vmem:[%s21012_s17 + $0x628] ss:$16 sps:$4 sm:$0xff]   ;;  %v19332_v11 = vld [vmem:[%s21012_s17 + $0x644] ss:$16 sps:$4 sm:$0xff]  }
 0xdcd   : > { %15417 = vmatprep.subr.bf16.mxu1 %v19275_v25  ;;  %v19335_v25 = vld [vmem:[%s21012_s17 + $0x64c] ss:$16 sps:$4 sm:$0xff]  }
 0xdcf   : > { %15074 = vmatpush1.bf16.msra.mxu0 %v19270_v35  ;;  %v19333_v35 = vld [vmem:[%s21012_s17 + $0x648] ss:$16 sps:$4 sm:$0xff]  }
 0xdd0   : > { %15418 = vmatpush1.bf16.msra.mxu1 %v19273_v52  ;;  %15075 = vmatprep.subr.bf16.mxu0 %v19278_v40  ;;  %v19338_v52 = vld [vmem:[%s21012_s17 + $0x664] ss:$16 sps:$4 sm:$0xff]   ;;  %v19341_v40 = vld [vmem:[%s21012_s17 + $0x66c] ss:$16 sps:$4 sm:$0xff]  }
 0xdd1   : > { %15419 = vmatprep.subr.bf16.mxu1 %v19281_v34  ;;  %v19339_v34 = vld [vmem:[%s21012_s17 + $0x668] ss:$16 sps:$4 sm:$0xff]  }
 0xdd3   : > { %15076 = vmatpush1.bf16.msra.mxu0 %v19276_v9  ;;  %v19344_v9 = vld [vmem:[%s21012_s17 + $0x684] ss:$16 sps:$4 sm:$0xff]  }
 0xdd4   : > { %15420 = vmatpush1.bf16.msra.mxu1 %v19279_v29  ;;  %15077 = vmatprep.subr.bf16.mxu0 %v19284_v23  ;;  %v19347_v29 = vld [vmem:[%s21012_s17 + $0x68c] ss:$16 sps:$4 sm:$0xff]   ;;  %v19342_v23 = vld [vmem:[%s21012_s17 + $0x680] ss:$16 sps:$4 sm:$0xff]  }
 0xdd5   : > { %15421 = vmatprep.subr.bf16.mxu1 %v19287_v41  ;;  %v19345_v41 = vld [vmem:[%s21012_s17 + $0x688] ss:$16 sps:$4 sm:$0xff]  }
 0xdd7   : > { %15078 = vmatpush1.bf16.msra.mxu0 %v19282_v7  ;;  %v19350_v7 = vld [vmem:[%s21012_s17 + $0x6a4] ss:$16 sps:$4 sm:$0xff]  }
 0xdd8   : > { %15422 = vmatpush1.bf16.msra.mxu1 %v19285_v4  ;;  %15079 = vmatprep.subr.bf16.mxu0 %v19290_v33  ;;  %v19353_v4 = vld [vmem:[%s21012_s17 + $0x6ac] ss:$16 sps:$4 sm:$0xff]   ;;  %v8424_v33 = vrot.slane %v23124_v12, %v21507_v51 }
 0xdd9   : > { %15423 = vmatprep.subr.bf16.mxu1 %v19293_v19  ;;  %v8432_v19 = vrot.slane %v23124_v12, %v21528_v3  ;;  %v19359_v51 = vld [vmem:[%s21012_s17 + $0x6cc] ss:$16 sps:$4 sm:$0xff]  }
 0xddb   : > { %15080 = vmatpush1.bf16.msra.mxu0 %v19288_v61  ;;  %v8428_v61 = vrot.slane %v23124_v12, %v21510_v53 }
 0xddc   : > { %15424 = vmatpush1.bf16.msra.mxu1 %v19291_v26  ;;  %15081 = vmatprep.subr.bf16.mxu0 %v19296_v46  ;;  %v19348_v26 = vld [vmem:[%s21012_s17 + $0x6a0] ss:$16 sps:$4 sm:$0xff]   ;;  %v8436_v46 = vrot.slane %v23124_v12, %v21547_v18  ;;  %v19357_v12 = vld [vmem:[%s21012_s17 + $0x6c8] ss:$16 sps:$4 sm:$0xff]  }
 0xddd   : > { %15425 = vmatprep.subr.bf16.mxu1 %v19299_v32  ;;  %v19351_v32 = vld [vmem:[%s21012_s17 + $0x6a8] ss:$16 sps:$4 sm:$0xff]   ;;  %v19354_v18 = vld [vmem:[%s21012_s17 + $0x6c0] ss:$16 sps:$4 sm:$0xff]  }
 0xddf   : > { %15082 = vmatpush1.bf16.msra.mxu0 %v19294_v16  ;;  %v19356_v16 = vld [vmem:[%s21012_s17 + $0x6c4] ss:$16 sps:$4 sm:$0xff]  }
 0xde0   : > { %15426 = vmatpush1.bf16.msra.mxu1 %v19297_v57  ;;  %15083 = vmatprep.subr.bf16.mxu0 %v19302_v8 }
 0xde1   : > { %15427 = vmatprep.subr.bf16.mxu1 %v19305_v62 }
 0xde3   : > { %15084 = vmatpush1.bf16.msra.mxu0 %v19300_v27 }
 0xde4   : > { %15428 = vmatpush1.bf16.msra.mxu1 %v19303_v48  ;;  %15085 = vmatprep.subr.bf16.mxu0 %v19308_v50 }
 0xde5   : > { %15429 = vmatprep.subr.bf16.mxu1 %v19311_v60 }
 0xde7   : > { %15086 = vmatpush1.bf16.msra.mxu0 %v19306_v54 }
 0xde8   : > { %15430 = vmatpush1.bf16.msra.mxu1 %v19309_v37  ;;  %15087 = vmatprep.subr.bf16.mxu0 %v19314_v55 }
 0xde9   : > { %15431 = vmatprep.subr.bf16.mxu1 %v19317_v31 }
 0xdeb   : > { %15088 = vmatpush1.bf16.msra.mxu0 %v19312_v39  ;;  %v19362_v39 = vld [vmem:[%s21012_s17 + $0x6e4] ss:$16 sps:$4 sm:$0xff]  }
 0xdec   : > { %15432 = vmatpush1.bf16.msra.mxu1 %v19315_v43  ;;  %15100 = vmatprep.subr.bf16.mxu0 %v19320_v1 }
 0xded   : > { %15444 = vmatprep.subr.bf16.mxu1 %v19323_v49  ;;  %v19365_v49 = vld [vmem:[%s21012_s17 + $0x6ec] ss:$16 sps:$4 sm:$0xff]  }
 0xdee   : > { %15090 = vmatmul.mubr.bf16.vlgmr.msra.gmra.mrb[64].mxu0 %v23010_v28 }
 0xdef   : > { %15434 = vmatmul.mubr.bf16.vlgmr.msra.gmra.mrb[64].mxu1 %v23010_v28  ;;  %15101 = vmatpush1.bf16.msra.mxu0 %v19318_v17  ;;  %v19330_v28 = vld [vmem:[%s21012_s17 + $0x640] ss:$16 sps:$4 sm:$0xff]  }
 0xdf0   : > { %15132 = vmatprep.mubr.bf16.mxu0 %v23022_v20  ;;  %15445 = vmatpush1.bf16.msra.mxu1 %v19321_v47 }
 0xdf1   : > { %15476 = vmatprep.mubr.bf16.mxu1 %v23022_v20  ;;  %15102 = vmatprep.subr.bf16.mxu0 %v19326_v44  ;;  %v19336_v20 = vld [vmem:[%s21012_s17 + $0x660] ss:$16 sps:$4 sm:$0xff]  }
 0xdf2   : > { %15446 = vmatprep.subr.bf16.mxu1 %v19329_v63 }
 0xdf3   : > { %15103 = vmatpush1.bf16.msra.mxu0 %v19324_v30 }
 0xdf4   : > { %15447 = vmatpush1.bf16.msra.mxu1 %v19327_v38  ;;  %15104 = vmatprep.subr.bf16.mxu0 %v19332_v11  ;;  %v19360_v38 = vld [vmem:[%s21012_s17 + $0x6e0] ss:$16 sps:$4 sm:$0xff]  }
 0xdf5   : > { %15448 = vmatprep.subr.bf16.mxu1 %v19335_v25  ;;  %v19363_v25 = vld [vmem:[%s21012_s17 + $0x6e8] ss:$16 sps:$4 sm:$0xff]  }
 0xdf7   : > { %15105 = vmatpush1.bf16.msra.mxu0 %v19330_v28  ;;  %v19368_v28 = vld [vmem:[%s21012_s17 + $0x704] ss:$16 sps:$4 sm:$0xff]  }
 0xdf8   : > { %15449 = vmatpush1.bf16.msra.mxu1 %v19333_v35  ;;  %15106 = vmatprep.subr.bf16.mxu0 %v19338_v52  ;;  %v19371_v52 = vld [vmem:[%s21012_s17 + $0x70c] ss:$16 sps:$4 sm:$0xff]  }
 0xdf9   : > { %15450 = vmatprep.subr.bf16.mxu1 %v19341_v40 }
 0xdfb   : > { %15107 = vmatpush1.bf16.msra.mxu0 %v19336_v20 }
 0xdfc   : > { %15451 = vmatpush1.bf16.msra.mxu1 %v19339_v34  ;;  %15108 = vmatprep.subr.bf16.mxu0 %v19344_v9  ;;  %v19366_v34 = vld [vmem:[%s21012_s17 + $0x700] ss:$16 sps:$4 sm:$0xff]   ;;  %v19369_v9 = vld [vmem:[%s21012_s17 + $0x708] ss:$16 sps:$4 sm:$0xff]  }
 0xdfd   : > { %15452 = vmatprep.subr.bf16.mxu1 %v19347_v29  ;;  %v19374_v29 = vld [vmem:[%s21012_s17 + $0x724] ss:$16 sps:$4 sm:$0xff]  }
 0xdff   : > { %15109 = vmatpush1.bf16.msra.mxu0 %v19342_v23  ;;  %v19377_v23 = vld [vmem:[%s21012_s17 + $0x72c] ss:$16 sps:$4 sm:$0xff]  }
 0xe00   : > { %15453 = vmatpush1.bf16.msra.mxu1 %v19345_v41  ;;  %15110 = vmatprep.subr.bf16.mxu0 %v19350_v7  ;;  %v19372_v41 = vld [vmem:[%s21012_s17 + $0x720] ss:$16 sps:$4 sm:$0xff]  }
 0xe01   : > { %v11606_v57 = vpop.f32.mrb[60].mxu0  ;;  %15454 = vmatprep.subr.bf16.mxu1 %v19353_v4  ;;  %v19375_v4 = vld [vmem:[%s21012_s17 + $0x728] ss:$16 sps:$4 sm:$0xff]  }
 0xe02   : > { %v23321_v8 = vadd.f32 %v11606_v57, %v8424_v33  ;;  %v11692_v62 = vpop.f32.mrb[60].mxu1  ;;  %v11608_v3 = vpop.f32.mrb[61].mxu0  ;;  %v19381_v57 = vld [vmem:[%s21012_s17 + $0x748] ss:$16 sps:$4 sm:$0xff]  }
 0xe03   : > { %v23323_v27 = vadd.f32 %v11692_v62, %v8432_v19  ;;  %v23325_v53 = vadd.f32 %v11608_v3, %v8428_v61  ;;  %v11694_v48 = vpop.f32.mrb[61].mxu1  ;;  %v11610_v50 = vpop.f32.mrb[62].mxu0  ;;  %15111 = vmatpush1.bf16.msra.mxu0 %v19348_v26 }
 0xe04   : > { %v11745_v60 = vmul.f32 0.70710677, %v23321_v8  ;;  %v23330_v54 = vadd.f32 %v11694_v48, %v8436_v46  ;;  %v23332_v37 = vadd.f32 %v11610_v50, %v8424_v33  ;;  %v11696_v55 = vpop.f32.mrb[62].mxu1  ;;  %15455 = vmatpush1.bf16.msra.mxu1 %v19351_v32  ;;  %v11612_v31 = vpop.f32.mrb[63].mxu0  ;;  %15112 = vmatprep.subr.bf16.mxu0 %v19356_v16  ;;  %v19380_v33 = vld [vmem:[%s21012_s17 + $0x744] ss:$16 sps:$4 sm:$0xff]  }
 0xe05   : > { %v11747_v43 = vmul.f32 0.70710677, %v23323_v27  ;;  %v11746_v1 = vmul.f32 0.70710677, %v23325_v53  ;;  %15456 = vmatprep.subr.bf16.mxu1 %v19359_v51  ;;  %v11698_v47 = vpop.f32.mrb[63].mxu1  ;;  %v17998_v63 = vadd.f32 %v11696_v55, %v8432_v19  ;;  %v23340_v30 = vadd.f32 %v11612_v31, %v8428_v61 }
 0xe06   : > { %19914 = verf.f32 %v11745_v60  ;;  %v11748_v17 = vmul.f32 0.70710677, %v23330_v54  ;;  %v11761_v44 = vmul.f32 0.70710677, %v23332_v37  ;;  %v23343_v11 = vadd.f32 %v11698_v47, %v8436_v46  ;;  %v19383_v61 = vld [vmem:[%s21012_s17 + $0x74c] ss:$16 sps:$4 sm:$0xff]  }
 0xe07   : > { %19916 = verf.f32 %v11747_v43  ;;  %15113 = vmatpush1.bf16.msra.mxu0 %v19354_v18  ;;  %v11763_v35 = vmul.f32 0.70710677, %v17998_v63  ;;  %v11762_v40 = vmul.f32 0.70710677, %v23340_v30  ;;  %v19378_v16 = vld [vmem:[%s21012_s17 + $0x740] ss:$16 sps:$4 sm:$0xff]  }
 0xe08   : > { %19918 = verf.f32 %v11746_v1  ;;  %15457 = vmatpush1.bf16.msra.mxu1 %v19357_v12  ;;  %15114 = vmatprep.subr.bf16.mxu0 %v19362_v39  ;;  %v11764_v20 = vmul.f32 0.70710677, %v23343_v11  ;;  %v11713_v62 = vmul.f32 0.5, %v23321_v8  ;;  %v11715_v3 = vmul.f32 0.5, %v23323_v27  ;;  %v19386_v50 = vld [vmem:[%s21012_s17 + $0x764] ss:$16 sps:$4 sm:$0xff]  }
 0xe09   : > { %19920 = verf.f32 %v11748_v17  ;;  %15458 = vmatprep.subr.bf16.mxu1 %v19365_v49  ;;  %v11714_v12 = vmul.f32 0.5, %v23325_v53  ;;  %v11729_v55 = vmul.f32 0.5, %v23332_v37  ;;  %v19389_v39 = vld [vmem:[%s21012_s17 + $0x76c] ss:$16 sps:$4 sm:$0xff]   ;;  %v11716_v1 = vmul.f32 0.5, %v23330_v54 }
 0xe0a   : > { %19922 = verf.f32 %v11761_v44  ;;  %v11731_v27 = vmul.f32 0.5, %v17998_v63  ;;  %v11730_v53 = vmul.f32 0.5, %v23340_v30  ;;  %v19384_v37 = vld [vmem:[%s21012_s17 + $0x760] ss:$16 sps:$4 sm:$0xff]   ;;  %v19387_v63 = vld [vmem:[%s21012_s17 + $0x768] ss:$16 sps:$4 sm:$0xff]  }
 0xe0b   : > { %19924 = verf.f32 %v11763_v35  ;;  %15115 = vmatpush1.bf16.msra.mxu0 %v19360_v38  ;;  %v11732_v35 = vmul.f32 0.5, %v23343_v11 }
 0xe0c   : > { %19926 = verf.f32 %v11762_v40  ;;  %15459 = vmatpush1.bf16.msra.mxu1 %v19363_v25  ;;  %15116 = vmatprep.subr.bf16.mxu0 %v19368_v28 }
 0xe0d   : > { %19928 = verf.f32 %v11764_v20  ;;  %15460 = vmatprep.subr.bf16.mxu1 %v19371_v52  ;;  %v19392_v52 = vld [vmem:[%s21012_s17 + $0x784] ss:$16 sps:$4 sm:$0xff]  }
 0xe0f   : > { %15117 = vmatpush1.bf16.msra.mxu0 %v19366_v34  ;;  %v19395_v34 = vld [vmem:[%s21012_s17 + $0x78c] ss:$16 sps:$4 sm:$0xff]  }
 0xe10   : > { %v19915_v7 = vpop.eup %19914  ;;  %15461 = vmatpush1.bf16.msra.mxu1 %v19369_v9  ;;  %15118 = vmatprep.subr.bf16.mxu0 %v19374_v29 }
 0xe11   : > { %v19917_v19 = vpop.eup %19916  ;;  %15462 = vmatprep.subr.bf16.mxu1 %v19377_v23  ;;  %v11809_v32 = vadd.f32 1.0, %v19915_v7  ;;  %v19390_v23 = vld [vmem:[%s21012_s17 + $0x780] ss:$16 sps:$4 sm:$0xff]   ;;  %v19393_v7 = vld [vmem:[%s21012_s17 + $0x788] ss:$16 sps:$4 sm:$0xff]  }
 0xe12   : > { %v19919_v26 = vpop.eup %19918  ;;  %v11811_v48 = vadd.f32 1.0, %v19917_v19  ;;  %v19401_v19 = vld [vmem:[%s21012_s17 + $0x7ac] ss:$16 sps:$4 sm:$0xff]  }
 0xe13   : > { %v19921_v46 = vpop.eup %19920  ;;  %15119 = vmatpush1.bf16.msra.mxu0 %v19372_v41  ;;  %v11810_v60 = vadd.f32 1.0, %v19919_v26  ;;  %v11841_v47 = vmul.f32 %v11809_v32, %v11713_v62  ;;  %v19399_v26 = vld [vmem:[%s21012_s17 + $0x7a8] ss:$16 sps:$4 sm:$0xff]   ;;  %v19407_v32 = vld [vmem:[%s21012_s17 + $0x7cc] ss:$16 sps:$4 sm:$0xff]  }
 0xe14   : > { %v19923_v51 = vpop.eup %19922  ;;  %15463 = vmatpush1.bf16.msra.mxu1 %v19375_v4  ;;  %15120 = vmatprep.subr.bf16.mxu0 %v19380_v33  ;;  %v11812_v8 = vadd.f32 1.0, %v19921_v46  ;;  %v11843_v25 = vmul.f32 %v11811_v48, %v11715_v3  ;;  %v19398_v4 = vld [vmem:[%s21012_s17 + $0x7a4] ss:$16 sps:$4 sm:$0xff]   ;;  %v19413_v62 = vld [vmem:[%s21012_s17 + $0x7ec] ss:$16 sps:$4 sm:$0xff]  }
 0xe15   : > { %v19925_v18 = vpop.eup %19924  ;;  %v11825_v31 = vadd.f32 1.0, %v19923_v51  ;;  %15464 = vmatprep.subr.bf16.mxu1 %v19383_v61  ;;  %v11842_v40 = vmul.f32 %v11810_v60, %v11714_v12  ;;  %v19396_v61 = vld [vmem:[%s21012_s17 + $0x7a0] ss:$16 sps:$4 sm:$0xff]   ;;  %v19404_v46 = vld [vmem:[%s21012_s17 + $0x7c4] ss:$16 sps:$4 sm:$0xff]  }
 0xe16   : > { %v19927_v43 = vpop.eup %19926  ;;  %v11827_v49 = vadd.f32 1.0, %v19925_v18  ;;  %v11844_v9 = vmul.f32 %v11812_v8, %v11716_v1  ;;  %v19410_v51 = vld [vmem:[%s21012_s17 + $0x7e4] ss:$16 sps:$4 sm:$0xff]   ;;  %v19408_v3 = vld [vmem:[%s21012_s17 + $0x7e0] ss:$16 sps:$4 sm:$0xff]  }
 0xe17   : > { %v19929_v17 = vpop.eup %19928  ;;  %v11857_v44 = vmul.f32 %v11825_v31, %v11729_v55  ;;  %v11826_v38 = vadd.f32 1.0, %v19927_v43  ;;  %15121 = vmatpush1.bf16.msra.mxu0 %v19378_v16  ;;  %v19402_v16 = vld [vmem:[%s21012_s17 + $0x7c0] ss:$16 sps:$4 sm:$0xff]   ;;  %v19411_v48 = vld [vmem:[%s21012_s17 + $0x7e8] ss:$16 sps:$4 sm:$0xff]  }
 0xe18   : > { %v11859_v28 = vmul.f32 %v11827_v49, %v11731_v27  ;;  %v11828_v54 = vadd.f32 1.0, %v19929_v17  ;;  %15465 = vmatpush1.bf16.msra.mxu1 %v19381_v57  ;;  %15122 = vmatprep.subr.bf16.mxu0 %v19386_v50  ;;  %v19405_v57 = vld [vmem:[%s21012_s17 + $0x7c8] ss:$16 sps:$4 sm:$0xff]   ;;  %v19416_v50 = vld [vmem:[%s21012_s17 + $0x804] ss:$16 sps:$4 sm:$0xff]  }
 0xe19   : > { %v23372_v20 = vpack.c.bf16 %v11857_v44, %v11841_v47  ;;  %v11858_v30 = vmul.f32 %v11826_v38, %v11730_v53  ;;  %15466 = vmatprep.subr.bf16.mxu1 %v19389_v39  ;;  %v19419_v18 = vld [vmem:[%s21012_s17 + $0x80c] ss:$16 sps:$4 sm:$0xff]   ;;  %v19414_v12 = vld [vmem:[%s21012_s17 + $0x800] ss:$16 sps:$4 sm:$0xff]   ;;  %v19417_v60 = vld [vmem:[%s21012_s17 + $0x808] ss:$16 sps:$4 sm:$0xff]  }
 0xe1a   : > { %v23375_v29 = vpack.c.bf16 %v11859_v28, %v11843_v25  ;;  %v11860_v11 = vmul.f32 %v11828_v54, %v11732_v35  ;;  %v19422_v55 = vld [vmem:[%s21012_s17 + $0x824] ss:$16 sps:$4 sm:$0xff]   ;;  %v19425_v31 = vld [vmem:[%s21012_s17 + $0x82c] ss:$16 sps:$4 sm:$0xff]   ;;  %v19420_v39 = vld [vmem:[%s21012_s17 + $0x820] ss:$16 sps:$4 sm:$0xff]  }
 0xe1b   : > { %15123 = vmatpush1.bf16.msra.mxu0 %v19384_v37  ;;  %v23378_v41 = vpack.c.bf16 %v11858_v30, %v11842_v40  ;;  %v19423_v43 = vld [vmem:[%s21012_s17 + $0x828] ss:$16 sps:$4 sm:$0xff]   ;;  %v19428_v1 = vld [vmem:[%s21012_s17 + $0x844] ss:$16 sps:$4 sm:$0xff]   ;;  %v19431_v8 = vld [vmem:[%s21012_s17 + $0x84c] ss:$16 sps:$4 sm:$0xff]  }
 0xe1c   : > { %15467 = vmatpush1.bf16.msra.mxu1 %v19387_v63  ;;  %15124 = vmatprep.subr.bf16.mxu0 %v19392_v52  ;;  %v23382_v33 = vpack.c.bf16 %v11860_v11, %v11844_v9  ;;  %v19429_v27 = vld [vmem:[%s21012_s17 + $0x848] ss:$16 sps:$4 sm:$0xff]   ;;  %v19434_v49 = vld [vmem:[%s21012_s17 + $0x864] ss:$16 sps:$4 sm:$0xff]   ;;  %v19437_v17 = vld [vmem:[%s21012_s17 + $0x86c] ss:$16 sps:$4 sm:$0xff]  }
 0xe1d   : > { %15468 = vmatprep.subr.bf16.mxu1 %v19395_v34  ;;  %v19435_v47 = vld [vmem:[%s21012_s17 + $0x868] ss:$16 sps:$4 sm:$0xff]   ;;  %v19440_v44 = vld [vmem:[%s21012_s17 + $0x884] ss:$16 sps:$4 sm:$0xff]   ;;  %v19443_v53 = vld [vmem:[%s21012_s17 + $0x88c] ss:$16 sps:$4 sm:$0xff]  }
 0xe1e   : > { %v19438_v38 = vld [vmem:[%s21012_s17 + $0x880] ss:$16 sps:$4 sm:$0xff]   ;;  %v19441_v37 = vld [vmem:[%s21012_s17 + $0x888] ss:$16 sps:$4 sm:$0xff]   ;;  %v19446_v25 = vld [vmem:[%s21012_s17 + $0x8a4] ss:$16 sps:$4 sm:$0xff]  }
 0xe1f   : > { %15125 = vmatpush1.bf16.msra.mxu0 %v19390_v23  ;;  %v19449_v28 = vld [vmem:[%s21012_s17 + $0x8ac] ss:$16 sps:$4 sm:$0xff]   ;;  %v19444_v35 = vld [vmem:[%s21012_s17 + $0x8a0] ss:$16 sps:$4 sm:$0xff]   ;;  %v19447_v54 = vld [vmem:[%s21012_s17 + $0x8a8] ss:$16 sps:$4 sm:$0xff]  }
 0xe20   : > { %15469 = vmatpush1.bf16.msra.mxu1 %v19393_v7  ;;  %15126 = vmatprep.subr.bf16.mxu0 %v19398_v4  ;;  %v19452_v63 = vld [vmem:[%s21012_s17 + $0x8c4] ss:$16 sps:$4 sm:$0xff]   ;;  %v19455_v52 = vld [vmem:[%s21012_s17 + $0x8cc] ss:$16 sps:$4 sm:$0xff]   ;;  %v19450_v40 = vld [vmem:[%s21012_s17 + $0x8c0] ss:$16 sps:$4 sm:$0xff]  }
 0xe21   : > { %15470 = vmatprep.subr.bf16.mxu1 %v19401_v19  ;;  %v19453_v30 = vld [vmem:[%s21012_s17 + $0x8c8] ss:$16 sps:$4 sm:$0xff]   ;;  %v19458_v34 = vld [vmem:[%s21012_s17 + $0x8e4] ss:$16 sps:$4 sm:$0xff]   ;;  %v19461_v9 = vld [vmem:[%s21012_s17 + $0x8ec] ss:$16 sps:$4 sm:$0xff]  }
 0xe22   : > { %v19456_v11 = vld [vmem:[%s21012_s17 + $0x8e0] ss:$16 sps:$4 sm:$0xff]   ;;  %v19459_v23 = vld [vmem:[%s21012_s17 + $0x8e8] ss:$16 sps:$4 sm:$0xff]   ;;  %v19464_v7 = vld [vmem:[%s21012_s17 + $0x904] ss:$16 sps:$4 sm:$0xff]  }
 0xe23   : > { %15127 = vmatpush1.bf16.msra.mxu0 %v19396_v61  ;;  %v19467_v4 = vld [vmem:[%s21012_s17 + $0x90c] ss:$16 sps:$4 sm:$0xff]   ;;  %v19462_v19 = vld [vmem:[%s21012_s17 + $0x900] ss:$16 sps:$4 sm:$0xff]   ;;  %v19465_v61 = vld [vmem:[%s21012_s17 + $0x908] ss:$16 sps:$4 sm:$0xff]  }
 0xe24   : > { %15471 = vmatpush1.bf16.msra.mxu1 %v19399_v26  ;;  %15128 = vmatprep.subr.bf16.mxu0 %v19404_v46  ;;  %v19470_v26 = vld [vmem:[%s21012_s17 + $0x924] ss:$16 sps:$4 sm:$0xff]   ;;  %v19473_v46 = vld [vmem:[%s21012_s17 + $0x92c] ss:$16 sps:$4 sm:$0xff]  }
 0xe25   : > { %15472 = vmatprep.subr.bf16.mxu1 %v19407_v32  ;;  %v19468_v32 = vld [vmem:[%s21012_s17 + $0x920] ss:$16 sps:$4 sm:$0xff]  }
 0xe27   : > { %15129 = vmatpush1.bf16.msra.mxu0 %v19402_v16  ;;  %v19471_v16 = vld [vmem:[%s21012_s17 + $0x928] ss:$16 sps:$4 sm:$0xff]  }
 0xe28   : > { %15473 = vmatpush1.bf16.msra.mxu1 %v19405_v57  ;;  %15130 = vmatprep.subr.bf16.mxu0 %v19410_v51  ;;  %v19476_v57 = vld [vmem:[%s21012_s17 + $0x944] ss:$16 sps:$4 sm:$0xff]   ;;  %v19479_v51 = vld [vmem:[%s21012_s17 + $0x94c] ss:$16 sps:$4 sm:$0xff]  }
 0xe29   : > { %15474 = vmatprep.subr.bf16.mxu1 %v19413_v62  ;;  %v19474_v62 = vld [vmem:[%s21012_s17 + $0x940] ss:$16 sps:$4 sm:$0xff]  }
 0xe2b   : > { %15131 = vmatpush1.bf16.msra.mxu0 %v19408_v3  ;;  %v19477_v3 = vld [vmem:[%s21012_s17 + $0x948] ss:$16 sps:$4 sm:$0xff]  }
 0xe2c   : > { %15475 = vmatpush1.bf16.msra.mxu1 %v19411_v48  ;;  %15143 = vmatprep.subr.bf16.mxu0 %v19416_v50  ;;  %v19482_v48 = vld [vmem:[%s21012_s17 + $0x964] ss:$16 sps:$4 sm:$0xff]   ;;  %v19485_v50 = vld [vmem:[%s21012_s17 + $0x96c] ss:$16 sps:$4 sm:$0xff]  }
 0xe2d   : > { %15487 = vmatprep.subr.bf16.mxu1 %v19419_v18  ;;  %v19480_v18 = vld [vmem:[%s21012_s17 + $0x960] ss:$16 sps:$4 sm:$0xff]  }
 0xe2e   : > { %15133 = vmatmul.mubr.bf16.vlgmr.msra.gmra.mrb[64].mxu0 %v23014_v14 }
 0xe2f   : > { %15477 = vmatmul.mubr.bf16.vlgmr.msra.gmra.mrb[64].mxu1 %v23014_v14  ;;  %15144 = vmatpush1.bf16.msra.mxu0 %v19414_v12  ;;  %v19426_v14 = vld [vmem:[%s21012_s17 + $0x840] ss:$16 sps:$4 sm:$0xff]   ;;  %v19483_v12 = vld [vmem:[%s21012_s17 + $0x968] ss:$16 sps:$4 sm:$0xff]  }
 0xe30   : > { %15175 = vmatprep.mubr.bf16.mxu0 %v23198_v42  ;;  %15488 = vmatpush1.bf16.msra.mxu1 %v19417_v60  ;;  %v19488_v60 = vld [vmem:[%s21012_s17 + $0x984] ss:$16 sps:$4 sm:$0xff]  }
 0xe31   : > { %15519 = vmatprep.mubr.bf16.mxu1 %v23198_v42  ;;  %15145 = vmatprep.subr.bf16.mxu0 %v19422_v55  ;;  %v19432_v42 = vld [vmem:[%s21012_s17 + $0x860] ss:$16 sps:$4 sm:$0xff]   ;;  %v19491_v55 = vld [vmem:[%s21012_s17 + $0x98c] ss:$16 sps:$4 sm:$0xff]  }
 0xe32   : > { %15489 = vmatprep.subr.bf16.mxu1 %v19425_v31  ;;  %v19486_v31 = vld [vmem:[%s21012_s17 + $0x980] ss:$16 sps:$4 sm:$0xff]  }
 0xe33   : > { %15146 = vmatpush1.bf16.msra.mxu0 %v19420_v39  ;;  %v19489_v39 = vld [vmem:[%s21012_s17 + $0x988] ss:$16 sps:$4 sm:$0xff]  }
 0xe34   : > { %15490 = vmatpush1.bf16.msra.mxu1 %v19423_v43  ;;  %15147 = vmatprep.subr.bf16.mxu0 %v19428_v1  ;;  %v19494_v43 = vld [vmem:[%s21012_s17 + $0x9a4] ss:$16 sps:$4 sm:$0xff]   ;;  %v19497_v1 = vld [vmem:[%s21012_s17 + $0x9ac] ss:$16 sps:$4 sm:$0xff]  }
 0xe35   : > { %15491 = vmatprep.subr.bf16.mxu1 %v19431_v8  ;;  %v19492_v8 = vld [vmem:[%s21012_s17 + $0x9a0] ss:$16 sps:$4 sm:$0xff]  }
 0xe37   : > { %15148 = vmatpush1.bf16.msra.mxu0 %v19426_v14  ;;  %v19495_v14 = vld [vmem:[%s21012_s17 + $0x9a8] ss:$16 sps:$4 sm:$0xff]  }
 0xe38   : > { %15492 = vmatpush1.bf16.msra.mxu1 %v19429_v27  ;;  %15149 = vmatprep.subr.bf16.mxu0 %v19434_v49  ;;  %v19500_v27 = vld [vmem:[%s21012_s17 + $0x9c4] ss:$16 sps:$4 sm:$0xff]   ;;  %v19503_v49 = vld [vmem:[%s21012_s17 + $0x9cc] ss:$16 sps:$4 sm:$0xff]  }
 0xe39   : > { %15493 = vmatprep.subr.bf16.mxu1 %v19437_v17  ;;  %v19498_v17 = vld [vmem:[%s21012_s17 + $0x9c0] ss:$16 sps:$4 sm:$0xff]  }
 0xe3b   : > { %15150 = vmatpush1.bf16.msra.mxu0 %v19432_v42  ;;  %v19501_v42 = vld [vmem:[%s21012_s17 + $0x9c8] ss:$16 sps:$4 sm:$0xff]  }
 0xe3c   : > { %15494 = vmatpush1.bf16.msra.mxu1 %v19435_v47  ;;  %15151 = vmatprep.subr.bf16.mxu0 %v19440_v44  ;;  %v19506_v47 = vld [vmem:[%s21012_s17 + $0x9e4] ss:$16 sps:$4 sm:$0xff]   ;;  %v19509_v44 = vld [vmem:[%s21012_s17 + $0x9ec] ss:$16 sps:$4 sm:$0xff]  }
 0xe3d   : > { %15495 = vmatprep.subr.bf16.mxu1 %v19443_v53  ;;  %v19504_v53 = vld [vmem:[%s21012_s17 + $0x9e0] ss:$16 sps:$4 sm:$0xff]  }
 0xe3f   : > { %15152 = vmatpush1.bf16.msra.mxu0 %v19438_v38  ;;  %v19507_v38 = vld [vmem:[%s21012_s17 + $0x9e8] ss:$16 sps:$4 sm:$0xff]  }
 0xe40   : > { %15496 = vmatpush1.bf16.msra.mxu1 %v19441_v37  ;;  %15153 = vmatprep.subr.bf16.mxu0 %v19446_v25  ;;  %v19512_v37 = vld [vmem:[%s21012_s17 + $0xa04] ss:$16 sps:$4 sm:$0xff]   ;;  %v19515_v25 = vld [vmem:[%s21012_s17 + $0xa0c] ss:$16 sps:$4 sm:$0xff]  }
 0xe41   : > { %15497 = vmatprep.subr.bf16.mxu1 %v19449_v28  ;;  %v19510_v28 = vld [vmem:[%s21012_s17 + $0xa00] ss:$16 sps:$4 sm:$0xff]  }
 0xe43   : > { %15154 = vmatpush1.bf16.msra.mxu0 %v19444_v35  ;;  %v19513_v35 = vld [vmem:[%s21012_s17 + $0xa08] ss:$16 sps:$4 sm:$0xff]  }
 0xe44   : > { %15498 = vmatpush1.bf16.msra.mxu1 %v19447_v54  ;;  %15155 = vmatprep.subr.bf16.mxu0 %v19452_v63  ;;  %v19518_v54 = vld [vmem:[%s21012_s17 + $0xa24] ss:$16 sps:$4 sm:$0xff]   ;;  %v19521_v63 = vld [vmem:[%s21012_s17 + $0xa2c] ss:$16 sps:$4 sm:$0xff]  }
 0xe45   : > { %15499 = vmatprep.subr.bf16.mxu1 %v19455_v52  ;;  %v19516_v52 = vld [vmem:[%s21012_s17 + $0xa20] ss:$16 sps:$4 sm:$0xff]  }
 0xe47   : > { %15156 = vmatpush1.bf16.msra.mxu0 %v19450_v40  ;;  %v19519_v40 = vld [vmem:[%s21012_s17 + $0xa28] ss:$16 sps:$4 sm:$0xff]  }
 0xe48   : > { %15500 = vmatpush1.bf16.msra.mxu1 %v19453_v30  ;;  %15157 = vmatprep.subr.bf16.mxu0 %v19458_v34  ;;  %v19524_v30 = vld [vmem:[%s21012_s17 + $0xa44] ss:$16 sps:$4 sm:$0xff]   ;;  %v19527_v34 = vld [vmem:[%s21012_s17 + $0xa4c] ss:$16 sps:$4 sm:$0xff]  }
 0xe49   : > { %15501 = vmatprep.subr.bf16.mxu1 %v19461_v9  ;;  %v19525_v9 = vld [vmem:[%s21012_s17 + $0xa48] ss:$16 sps:$4 sm:$0xff]  }
 0xe4b   : > { %15158 = vmatpush1.bf16.msra.mxu0 %v19456_v11  ;;  %v19530_v11 = vld [vmem:[%s21012_s17 + $0xa64] ss:$16 sps:$4 sm:$0xff]  }
 0xe4c   : > { %15502 = vmatpush1.bf16.msra.mxu1 %v19459_v23  ;;  %15159 = vmatprep.subr.bf16.mxu0 %v19464_v7  ;;  %v19533_v23 = vld [vmem:[%s21012_s17 + $0xa6c] ss:$16 sps:$4 sm:$0xff]   ;;  %v19531_v7 = vld [vmem:[%s21012_s17 + $0xa68] ss:$16 sps:$4 sm:$0xff]  }
 0xe4d   : > { %15503 = vmatprep.subr.bf16.mxu1 %v19467_v4  ;;  %v19536_v4 = vld [vmem:[%s21012_s17 + $0xa84] ss:$16 sps:$4 sm:$0xff]  }
 0xe4f   : > { %15160 = vmatpush1.bf16.msra.mxu0 %v19462_v19  ;;  %v19539_v19 = vld [vmem:[%s21012_s17 + $0xa8c] ss:$16 sps:$4 sm:$0xff]  }
 0xe50   : > { %15504 = vmatpush1.bf16.msra.mxu1 %v19465_v61  ;;  %15161 = vmatprep.subr.bf16.mxu0 %v19470_v26  ;;  %v19534_v61 = vld [vmem:[%s21012_s17 + $0xa80] ss:$16 sps:$4 sm:$0xff]   ;;  %v19537_v26 = vld [vmem:[%s21012_s17 + $0xa88] ss:$16 sps:$4 sm:$0xff]  }
 0xe51   : > { %15505 = vmatprep.subr.bf16.mxu1 %v19473_v46  ;;  %v19542_v46 = vld [vmem:[%s21012_s17 + $0xaa4] ss:$16 sps:$4 sm:$0xff]  }
 0xe53   : > { %15162 = vmatpush1.bf16.msra.mxu0 %v19468_v32  ;;  %v19545_v32 = vld [vmem:[%s21012_s17 + $0xaac] ss:$16 sps:$4 sm:$0xff]  }
 0xe54   : > { %15506 = vmatpush1.bf16.msra.mxu1 %v19471_v16  ;;  %15163 = vmatprep.subr.bf16.mxu0 %v19476_v57  ;;  %v19540_v16 = vld [vmem:[%s21012_s17 + $0xaa0] ss:$16 sps:$4 sm:$0xff]   ;;  %v19543_v57 = vld [vmem:[%s21012_s17 + $0xaa8] ss:$16 sps:$4 sm:$0xff]  }
 0xe55   : > { %15507 = vmatprep.subr.bf16.mxu1 %v19479_v51  ;;  %v19548_v51 = vld [vmem:[%s21012_s17 + $0xac4] ss:$16 sps:$4 sm:$0xff]  }
 0xe57   : > { %15164 = vmatpush1.bf16.msra.mxu0 %v19474_v62  ;;  %v19551_v62 = vld [vmem:[%s21012_s17 + $0xacc] ss:$16 sps:$4 sm:$0xff]  }
 0xe58   : > { %15508 = vmatpush1.bf16.msra.mxu1 %v19477_v3  ;;  %15165 = vmatprep.subr.bf16.mxu0 %v19482_v48  ;;  %v19546_v3 = vld [vmem:[%s21012_s17 + $0xac0] ss:$16 sps:$4 sm:$0xff]   ;;  %v19549_v48 = vld [vmem:[%s21012_s17 + $0xac8] ss:$16 sps:$4 sm:$0xff]  }
 0xe59   : > { %15509 = vmatprep.subr.bf16.mxu1 %v19485_v50  ;;  %v19554_v50 = vld [vmem:[%s21012_s17 + $0xae4] ss:$16 sps:$4 sm:$0xff]  }
 0xe5b   : > { %15166 = vmatpush1.bf16.msra.mxu0 %v19480_v18  ;;  %v19557_v18 = vld [vmem:[%s21012_s17 + $0xaec] ss:$16 sps:$4 sm:$0xff]  }
 0xe5c   : > { %15510 = vmatpush1.bf16.msra.mxu1 %v19483_v12  ;;  %15167 = vmatprep.subr.bf16.mxu0 %v19488_v60  ;;  %v19552_v12 = vld [vmem:[%s21012_s17 + $0xae0] ss:$16 sps:$4 sm:$0xff]   ;;  %v19555_v60 = vld [vmem:[%s21012_s17 + $0xae8] ss:$16 sps:$4 sm:$0xff]  }
 0xe5d   : > { %15511 = vmatprep.subr.bf16.mxu1 %v19491_v55  ;;  %v19560_v55 = vld [vmem:[%s21012_s17 + $0xb04] ss:$16 sps:$4 sm:$0xff]  }
 0xe5f   : > { %15168 = vmatpush1.bf16.msra.mxu0 %v19486_v31  ;;  %v19563_v31 = vld [vmem:[%s21012_s17 + $0xb0c] ss:$16 sps:$4 sm:$0xff]  }
 0xe60   : > { %15512 = vmatpush1.bf16.msra.mxu1 %v19489_v39  ;;  %15169 = vmatprep.subr.bf16.mxu0 %v19494_v43  ;;  %v19558_v39 = vld [vmem:[%s21012_s17 + $0xb00] ss:$16 sps:$4 sm:$0xff]   ;;  %v19561_v43 = vld [vmem:[%s21012_s17 + $0xb08] ss:$16 sps:$4 sm:$0xff]  }
 0xe61   : > { %15513 = vmatprep.subr.bf16.mxu1 %v19497_v1  ;;  %v19566_v1 = vld [vmem:[%s21012_s17 + $0xb24] ss:$16 sps:$4 sm:$0xff]  }
 0xe63   : > { %15170 = vmatpush1.bf16.msra.mxu0 %v19492_v8  ;;  %v19569_v8 = vld [vmem:[%s21012_s17 + $0xb2c] ss:$16 sps:$4 sm:$0xff]  }
 0xe64   : > { %15514 = vmatpush1.bf16.msra.mxu1 %v19495_v14  ;;  %15171 = vmatprep.subr.bf16.mxu0 %v19500_v27  ;;  %v19564_v14 = vld [vmem:[%s21012_s17 + $0xb20] ss:$16 sps:$4 sm:$0xff]   ;;  %v19567_v27 = vld [vmem:[%s21012_s17 + $0xb28] ss:$16 sps:$4 sm:$0xff]  }
 0xe65   : > { %15515 = vmatprep.subr.bf16.mxu1 %v19503_v49  ;;  %v19572_v49 = vld [vmem:[%s21012_s17 + $0xb44] ss:$16 sps:$4 sm:$0xff]  }
 0xe67   : > { %15172 = vmatpush1.bf16.msra.mxu0 %v19498_v17  ;;  %v19575_v17 = vld [vmem:[%s21012_s17 + $0xb4c] ss:$16 sps:$4 sm:$0xff]  }
 0xe68   : > { %15516 = vmatpush1.bf16.msra.mxu1 %v19501_v42  ;;  %15173 = vmatprep.subr.bf16.mxu0 %v19506_v47  ;;  %v19570_v42 = vld [vmem:[%s21012_s17 + $0xb40] ss:$16 sps:$4 sm:$0xff]   ;;  %v19573_v47 = vld [vmem:[%s21012_s17 + $0xb48] ss:$16 sps:$4 sm:$0xff]  }
 0xe69   : > { %15517 = vmatprep.subr.bf16.mxu1 %v19509_v44  ;;  %v19578_v44 = vld [vmem:[%s21012_s17 + $0xb64] ss:$16 sps:$4 sm:$0xff]  }
 0xe6b   : > { %15174 = vmatpush1.bf16.msra.mxu0 %v19504_v53  ;;  %v19581_v53 = vld [vmem:[%s21012_s17 + $0xb6c] ss:$16 sps:$4 sm:$0xff]  }
 0xe6c   : > { %15518 = vmatpush1.bf16.msra.mxu1 %v19507_v38  ;;  %15186 = vmatprep.subr.bf16.mxu0 %v19512_v37  ;;  %v19576_v38 = vld [vmem:[%s21012_s17 + $0xb60] ss:$16 sps:$4 sm:$0xff]   ;;  %v19579_v37 = vld [vmem:[%s21012_s17 + $0xb68] ss:$16 sps:$4 sm:$0xff]  }
 0xe6d   : > { %15530 = vmatprep.subr.bf16.mxu1 %v19515_v25  ;;  %v19584_v25 = vld [vmem:[%s21012_s17 + $0xb84] ss:$16 sps:$4 sm:$0xff]  }
 0xe6e   : > { %15176 = vmatmul.mubr.bf16.vlgmr.msra.gmra.mrb[64].mxu0 %v23192_v24 }
 0xe6f   : > { %15520 = vmatmul.mubr.bf16.vlgmr.msra.gmra.mrb[64].mxu1 %v23192_v24  ;;  %15187 = vmatpush1.bf16.msra.mxu0 %v19510_v28  ;;  %v19522_v24 = vld [vmem:[%s21012_s17 + $0xa40] ss:$16 sps:$4 sm:$0xff]   ;;  %v19587_v28 = vld [vmem:[%s21012_s17 + $0xb8c] ss:$16 sps:$4 sm:$0xff]  }
 0xe70   : > { %15218 = vmatprep.mubr.bf16.mxu0 %v23202_v59  ;;  %15531 = vmatpush1.bf16.msra.mxu1 %v19513_v35  ;;  %v19582_v35 = vld [vmem:[%s21012_s17 + $0xb80] ss:$16 sps:$4 sm:$0xff]  }
 0xe71   : > { %15562 = vmatprep.mubr.bf16.mxu1 %v23202_v59  ;;  %15188 = vmatprep.subr.bf16.mxu0 %v19518_v54  ;;  %v19528_v59 = vld [vmem:[%s21012_s17 + $0xa60] ss:$16 sps:$4 sm:$0xff]   ;;  %v19585_v54 = vld [vmem:[%s21012_s17 + $0xb88] ss:$16 sps:$4 sm:$0xff]  }
 0xe72   : > { %15532 = vmatprep.subr.bf16.mxu1 %v19521_v63  ;;  %v19590_v63 = vld [vmem:[%s21012_s17 + $0xba4] ss:$16 sps:$4 sm:$0xff]  }
 0xe73   : > { %15189 = vmatpush1.bf16.msra.mxu0 %v19516_v52  ;;  %v19593_v52 = vld [vmem:[%s21012_s17 + $0xbac] ss:$16 sps:$4 sm:$0xff]  }
 0xe74   : > { %15533 = vmatpush1.bf16.msra.mxu1 %v19519_v40  ;;  %15190 = vmatprep.subr.bf16.mxu0 %v19524_v30  ;;  %v19588_v40 = vld [vmem:[%s21012_s17 + $0xba0] ss:$16 sps:$4 sm:$0xff]   ;;  %v19591_v30 = vld [vmem:[%s21012_s17 + $0xba8] ss:$16 sps:$4 sm:$0xff]  }
 0xe75   : > { %15534 = vmatprep.subr.bf16.mxu1 %v19527_v34  ;;  %v19596_v34 = vld [vmem:[%s21012_s17 + $0xbc4] ss:$16 sps:$4 sm:$0xff]  }
 0xe77   : > { %15191 = vmatpush1.bf16.msra.mxu0 %v19522_v24  ;;  %v19599_v24 = vld [vmem:[%s21012_s17 + $0xbcc] ss:$16 sps:$4 sm:$0xff]  }
 0xe78   : > { %15535 = vmatpush1.bf16.msra.mxu1 %v19525_v9  ;;  %15192 = vmatprep.subr.bf16.mxu0 %v19530_v11  ;;  %v19594_v9 = vld [vmem:[%s21012_s17 + $0xbc0] ss:$16 sps:$4 sm:$0xff]   ;;  %v19597_v11 = vld [vmem:[%s21012_s17 + $0xbc8] ss:$16 sps:$4 sm:$0xff]  }
 0xe79   : > { %15536 = vmatprep.subr.bf16.mxu1 %v19533_v23  ;;  %v19602_v23 = vld [vmem:[%s21012_s17 + $0xbe4] ss:$16 sps:$4 sm:$0xff]  }
 0xe7b   : > { %15193 = vmatpush1.bf16.msra.mxu0 %v19528_v59  ;;  %v19605_v59 = vld [vmem:[%s21012_s17 + $0xbec] ss:$16 sps:$4 sm:$0xff]  }
 0xe7c   : > { %15537 = vmatpush1.bf16.msra.mxu1 %v19531_v7  ;;  %15194 = vmatprep.subr.bf16.mxu0 %v19536_v4  ;;  %v19600_v7 = vld [vmem:[%s21012_s17 + $0xbe0] ss:$16 sps:$4 sm:$0xff]   ;;  %v19603_v4 = vld [vmem:[%s21012_s17 + $0xbe8] ss:$16 sps:$4 sm:$0xff]  }
 0xe7d   : > { %15538 = vmatprep.subr.bf16.mxu1 %v19539_v19  ;;  %v19608_v19 = vld [vmem:[%s21012_s17 + $0xc04] ss:$16 sps:$4 sm:$0xff]  }
 0xe7f   : > { %15195 = vmatpush1.bf16.msra.mxu0 %v19534_v61  ;;  %v19611_v61 = vld [vmem:[%s21012_s17 + $0xc0c] ss:$16 sps:$4 sm:$0xff]  }
 0xe80   : > { %15539 = vmatpush1.bf16.msra.mxu1 %v19537_v26  ;;  %15196 = vmatprep.subr.bf16.mxu0 %v19542_v46  ;;  %v19606_v26 = vld [vmem:[%s21012_s17 + $0xc00] ss:$16 sps:$4 sm:$0xff]   ;;  %v19609_v46 = vld [vmem:[%s21012_s17 + $0xc08] ss:$16 sps:$4 sm:$0xff]  }
 0xe81   : > { %15540 = vmatprep.subr.bf16.mxu1 %v19545_v32  ;;  %v19614_v32 = vld [vmem:[%s21012_s17 + $0xc24] ss:$16 sps:$4 sm:$0xff]  }
 0xe83   : > { %15197 = vmatpush1.bf16.msra.mxu0 %v19540_v16  ;;  %v19617_v16 = vld [vmem:[%s21012_s17 + $0xc2c] ss:$16 sps:$4 sm:$0xff]  }
 0xe84   : > { %15541 = vmatpush1.bf16.msra.mxu1 %v19543_v57  ;;  %15198 = vmatprep.subr.bf16.mxu0 %v19548_v51  ;;  %v19612_v57 = vld [vmem:[%s21012_s17 + $0xc20] ss:$16 sps:$4 sm:$0xff]   ;;  %v19615_v51 = vld [vmem:[%s21012_s17 + $0xc28] ss:$16 sps:$4 sm:$0xff]  }
 0xe85   : > { %15542 = vmatprep.subr.bf16.mxu1 %v19551_v62  ;;  %v19620_v62 = vld [vmem:[%s21012_s17 + $0xc44] ss:$16 sps:$4 sm:$0xff]  }
 0xe87   : > { %15199 = vmatpush1.bf16.msra.mxu0 %v19546_v3  ;;  %v19623_v3 = vld [vmem:[%s21012_s17 + $0xc4c] ss:$16 sps:$4 sm:$0xff]  }
 0xe88   : > { %15543 = vmatpush1.bf16.msra.mxu1 %v19549_v48  ;;  %15200 = vmatprep.subr.bf16.mxu0 %v19554_v50  ;;  %v19621_v48 = vld [vmem:[%s21012_s17 + $0xc48] ss:$16 sps:$4 sm:$0xff]   ;;  %v19626_v50 = vld [vmem:[%s21012_s17 + $0xc64] ss:$16 sps:$4 sm:$0xff]  }
 0xe89   : > { %15544 = vmatprep.subr.bf16.mxu1 %v19557_v18  ;;  %v19629_v18 = vld [vmem:[%s21012_s17 + $0xc6c] ss:$16 sps:$4 sm:$0xff]  }
 0xe8b   : > { %15201 = vmatpush1.bf16.msra.mxu0 %v19552_v12  ;;  %v19627_v12 = vld [vmem:[%s21012_s17 + $0xc68] ss:$16 sps:$4 sm:$0xff]  }
 0xe8c   : > { %15545 = vmatpush1.bf16.msra.mxu1 %v19555_v60  ;;  %15202 = vmatprep.subr.bf16.mxu0 %v19560_v55  ;;  %v19632_v60 = vld [vmem:[%s21012_s17 + $0xc84] ss:$16 sps:$4 sm:$0xff]   ;;  %v19635_v55 = vld [vmem:[%s21012_s17 + $0xc8c] ss:$16 sps:$4 sm:$0xff]  }
 0xe8d   : > { %15546 = vmatprep.subr.bf16.mxu1 %v19563_v31  ;;  %v19630_v31 = vld [vmem:[%s21012_s17 + $0xc80] ss:$16 sps:$4 sm:$0xff]  }
 0xe8f   : > { %15203 = vmatpush1.bf16.msra.mxu0 %v19558_v39  ;;  %v19633_v39 = vld [vmem:[%s21012_s17 + $0xc88] ss:$16 sps:$4 sm:$0xff]  }
 0xe90   : > { %15547 = vmatpush1.bf16.msra.mxu1 %v19561_v43  ;;  %15204 = vmatprep.subr.bf16.mxu0 %v19566_v1  ;;  %v19638_v43 = vld [vmem:[%s21012_s17 + $0xca4] ss:$16 sps:$4 sm:$0xff]   ;;  %v19641_v1 = vld [vmem:[%s21012_s17 + $0xcac] ss:$16 sps:$4 sm:$0xff]  }
 0xe91   : > { %15548 = vmatprep.subr.bf16.mxu1 %v19569_v8  ;;  %v19636_v8 = vld [vmem:[%s21012_s17 + $0xca0] ss:$16 sps:$4 sm:$0xff]  }
 0xe93   : > { %15205 = vmatpush1.bf16.msra.mxu0 %v19564_v14  ;;  %v19639_v14 = vld [vmem:[%s21012_s17 + $0xca8] ss:$16 sps:$4 sm:$0xff]  }
 0xe94   : > { %15549 = vmatpush1.bf16.msra.mxu1 %v19567_v27  ;;  %15206 = vmatprep.subr.bf16.mxu0 %v19572_v49  ;;  %v19644_v27 = vld [vmem:[%s21012_s17 + $0xcc4] ss:$16 sps:$4 sm:$0xff]   ;;  %v19647_v49 = vld [vmem:[%s21012_s17 + $0xccc] ss:$16 sps:$4 sm:$0xff]  }
 0xe95   : > { %15550 = vmatprep.subr.bf16.mxu1 %v19575_v17  ;;  %v19642_v17 = vld [vmem:[%s21012_s17 + $0xcc0] ss:$16 sps:$4 sm:$0xff]  }
 0xe97   : > { %15207 = vmatpush1.bf16.msra.mxu0 %v19570_v42  ;;  %v19645_v42 = vld [vmem:[%s21012_s17 + $0xcc8] ss:$16 sps:$4 sm:$0xff]  }
 0xe98   : > { %15551 = vmatpush1.bf16.msra.mxu1 %v19573_v47  ;;  %15208 = vmatprep.subr.bf16.mxu0 %v19578_v44  ;;  %v19650_v47 = vld [vmem:[%s21012_s17 + $0xce4] ss:$16 sps:$4 sm:$0xff]   ;;  %v19653_v44 = vld [vmem:[%s21012_s17 + $0xcec] ss:$16 sps:$4 sm:$0xff]  }
 0xe99   : > { %15552 = vmatprep.subr.bf16.mxu1 %v19581_v53  ;;  %v19648_v53 = vld [vmem:[%s21012_s17 + $0xce0] ss:$16 sps:$4 sm:$0xff]  }
 0xe9b   : > { %15209 = vmatpush1.bf16.msra.mxu0 %v19576_v38  ;;  %v19651_v38 = vld [vmem:[%s21012_s17 + $0xce8] ss:$16 sps:$4 sm:$0xff]  }
 0xe9c   : > { %15553 = vmatpush1.bf16.msra.mxu1 %v19579_v37  ;;  %15210 = vmatprep.subr.bf16.mxu0 %v19584_v25  ;;  %v19656_v37 = vld [vmem:[%s21012_s17 + $0xd04] ss:$16 sps:$4 sm:$0xff]   ;;  %v19659_v25 = vld [vmem:[%s21012_s17 + $0xd0c] ss:$16 sps:$4 sm:$0xff]  }
 0xe9d   : > { %15554 = vmatprep.subr.bf16.mxu1 %v19587_v28  ;;  %v19654_v28 = vld [vmem:[%s21012_s17 + $0xd00] ss:$16 sps:$4 sm:$0xff]  }
 0xe9f   : > { %15211 = vmatpush1.bf16.msra.mxu0 %v19582_v35  ;;  %v19657_v35 = vld [vmem:[%s21012_s17 + $0xd08] ss:$16 sps:$4 sm:$0xff]  }
 0xea0   : > { %15555 = vmatpush1.bf16.msra.mxu1 %v19585_v54  ;;  %15212 = vmatprep.subr.bf16.mxu0 %v19590_v63  ;;  %v19662_v54 = vld [vmem:[%s21012_s17 + $0xd24] ss:$16 sps:$4 sm:$0xff]   ;;  %v19665_v63 = vld [vmem:[%s21012_s17 + $0xd2c] ss:$16 sps:$4 sm:$0xff]  }
 0xea1   : > { %15556 = vmatprep.subr.bf16.mxu1 %v19593_v52  ;;  %v19660_v52 = vld [vmem:[%s21012_s17 + $0xd20] ss:$16 sps:$4 sm:$0xff]  }
 0xea3   : > { %15213 = vmatpush1.bf16.msra.mxu0 %v19588_v40  ;;  %v19663_v40 = vld [vmem:[%s21012_s17 + $0xd28] ss:$16 sps:$4 sm:$0xff]  }
 0xea4   : > { %15557 = vmatpush1.bf16.msra.mxu1 %v19591_v30  ;;  %15214 = vmatprep.subr.bf16.mxu0 %v19596_v34  ;;  %v19668_v30 = vld [vmem:[%s21012_s17 + $0xd44] ss:$16 sps:$4 sm:$0xff]   ;;  %v19671_v34 = vld [vmem:[%s21012_s17 + $0xd4c] ss:$16 sps:$4 sm:$0xff]  }
 0xea5   : > { %15558 = vmatprep.subr.bf16.mxu1 %v19599_v24  ;;  %v19666_v24 = vld [vmem:[%s21012_s17 + $0xd40] ss:$16 sps:$4 sm:$0xff]  }
 0xea7   : > { %15215 = vmatpush1.bf16.msra.mxu0 %v19594_v9  ;;  %v19669_v9 = vld [vmem:[%s21012_s17 + $0xd48] ss:$16 sps:$4 sm:$0xff]  }
 0xea8   : > { %15559 = vmatpush1.bf16.msra.mxu1 %v19597_v11  ;;  %15216 = vmatprep.subr.bf16.mxu0 %v19602_v23  ;;  %v19674_v11 = vld [vmem:[%s21012_s17 + $0xd64] ss:$16 sps:$4 sm:$0xff]   ;;  %v19677_v23 = vld [vmem:[%s21012_s17 + $0xd6c] ss:$16 sps:$4 sm:$0xff]  }
 0xea9   : > { %15560 = vmatprep.subr.bf16.mxu1 %v19605_v59  ;;  %v19672_v59 = vld [vmem:[%s21012_s17 + $0xd60] ss:$16 sps:$4 sm:$0xff]  }
 0xeab   : > { %15217 = vmatpush1.bf16.msra.mxu0 %v19600_v7  ;;  %v19675_v7 = vld [vmem:[%s21012_s17 + $0xd68] ss:$16 sps:$4 sm:$0xff]  }
 0xeac   : > { %15561 = vmatpush1.bf16.msra.mxu1 %v19603_v4  ;;  %15229 = vmatprep.subr.bf16.mxu0 %v19608_v19  ;;  %v19680_v4 = vld [vmem:[%s21012_s17 + $0xd84] ss:$16 sps:$4 sm:$0xff]   ;;  %v19683_v19 = vld [vmem:[%s21012_s17 + $0xd8c] ss:$16 sps:$4 sm:$0xff]  }
 0xead   : > { %15573 = vmatprep.subr.bf16.mxu1 %v19611_v61  ;;  %v19678_v61 = vld [vmem:[%s21012_s17 + $0xd80] ss:$16 sps:$4 sm:$0xff]  }
 0xeae   : > { %15219 = vmatmul.mubr.bf16.vlgmr.msra.gmra.mrb[64].mxu0 %v23195_v5 }
 0xeaf   : > { %15563 = vmatmul.mubr.bf16.vlgmr.msra.gmra.mrb[64].mxu1 %v23195_v5  ;;  %15230 = vmatpush1.bf16.msra.mxu0 %v19606_v26  ;;  %v19618_v5 = vld [vmem:[%s21012_s17 + $0xc40] ss:$16 sps:$4 sm:$0xff]   ;;  %v19681_v26 = vld [vmem:[%s21012_s17 + $0xd88] ss:$16 sps:$4 sm:$0xff]  }
 0xeb0   : > { %15261 = vmatprep.mubr.bf16.mxu0 %v23378_v41  ;;  %15574 = vmatpush1.bf16.msra.mxu1 %v19609_v46  ;;  %v19686_v46 = vld [vmem:[%s21012_s17 + $0xda4] ss:$16 sps:$4 sm:$0xff]  }
 0xeb1   : > { %15605 = vmatprep.mubr.bf16.mxu1 %v23378_v41  ;;  %15231 = vmatprep.subr.bf16.mxu0 %v19614_v32  ;;  %v19624_v41 = vld [vmem:[%s21012_s17 + $0xc60] ss:$16 sps:$4 sm:$0xff]   ;;  %v19689_v32 = vld [vmem:[%s21012_s17 + $0xdac] ss:$16 sps:$4 sm:$0xff]  }
 0xeb2   : > { %15575 = vmatprep.subr.bf16.mxu1 %v19617_v16  ;;  %v19684_v16 = vld [vmem:[%s21012_s17 + $0xda0] ss:$16 sps:$4 sm:$0xff]  }
 0xeb3   : > { %15232 = vmatpush1.bf16.msra.mxu0 %v19612_v57  ;;  %v19687_v57 = vld [vmem:[%s21012_s17 + $0xda8] ss:$16 sps:$4 sm:$0xff]  }
 0xeb4   : > { %15576 = vmatpush1.bf16.msra.mxu1 %v19615_v51  ;;  %15233 = vmatprep.subr.bf16.mxu0 %v19620_v62  ;;  %v19692_v51 = vld [vmem:[%s21012_s17 + $0xdc4] ss:$16 sps:$4 sm:$0xff]   ;;  %v19695_v62 = vld [vmem:[%s21012_s17 + $0xdcc] ss:$16 sps:$4 sm:$0xff]  }
 0xeb5   : > { %15577 = vmatprep.subr.bf16.mxu1 %v19623_v3  ;;  %v19690_v3 = vld [vmem:[%s21012_s17 + $0xdc0] ss:$16 sps:$4 sm:$0xff]  }
 0xeb7   : > { %15234 = vmatpush1.bf16.msra.mxu0 %v19618_v5  ;;  %v19693_v5 = vld [vmem:[%s21012_s17 + $0xdc8] ss:$16 sps:$4 sm:$0xff]  }
 0xeb8   : > { %15578 = vmatpush1.bf16.msra.mxu1 %v19621_v48  ;;  %15235 = vmatprep.subr.bf16.mxu0 %v19626_v50  ;;  %v19698_v48 = vld [vmem:[%s21012_s17 + $0xde4] ss:$16 sps:$4 sm:$0xff]   ;;  %v19701_v50 = vld [vmem:[%s21012_s17 + $0xdec] ss:$16 sps:$4 sm:$0xff]  }
 0xeb9   : > { %15579 = vmatprep.subr.bf16.mxu1 %v19629_v18  ;;  %v19696_v18 = vld [vmem:[%s21012_s17 + $0xde0] ss:$16 sps:$4 sm:$0xff]  }
 0xebb   : > { %15236 = vmatpush1.bf16.msra.mxu0 %v19624_v41  ;;  %v19699_v41 = vld [vmem:[%s21012_s17 + $0xde8] ss:$16 sps:$4 sm:$0xff]  }
 0xebc   : > { %15580 = vmatpush1.bf16.msra.mxu1 %v19627_v12  ;;  %15237 = vmatprep.subr.bf16.mxu0 %v19632_v60  ;;  %v19704_v12 = vld [vmem:[%s21012_s17 + $0xe04] ss:$16 sps:$4 sm:$0xff]   ;;  %v19707_v60 = vld [vmem:[%s21012_s17 + $0xe0c] ss:$16 sps:$4 sm:$0xff]  }
 0xebd   : > { %15581 = vmatprep.subr.bf16.mxu1 %v19635_v55  ;;  %v19702_v55 = vld [vmem:[%s21012_s17 + $0xe00] ss:$16 sps:$4 sm:$0xff]  }
 0xebf   : > { %15238 = vmatpush1.bf16.msra.mxu0 %v19630_v31  ;;  %v19705_v31 = vld [vmem:[%s21012_s17 + $0xe08] ss:$16 sps:$4 sm:$0xff]  }
 0xec0   : > { %15582 = vmatpush1.bf16.msra.mxu1 %v19633_v39  ;;  %15239 = vmatprep.subr.bf16.mxu0 %v19638_v43  ;;  %v19710_v39 = vld [vmem:[%s21012_s17 + $0xe24] ss:$16 sps:$4 sm:$0xff]   ;;  %v19713_v43 = vld [vmem:[%s21012_s17 + $0xe2c] ss:$16 sps:$4 sm:$0xff]  }
 0xec1   : > { %15583 = vmatprep.subr.bf16.mxu1 %v19641_v1  ;;  %v19708_v1 = vld [vmem:[%s21012_s17 + $0xe20] ss:$16 sps:$4 sm:$0xff]  }
 0xec3   : > { %15240 = vmatpush1.bf16.msra.mxu0 %v19636_v8  ;;  %v19711_v8 = vld [vmem:[%s21012_s17 + $0xe28] ss:$16 sps:$4 sm:$0xff]  }
 0xec4   : > { %15584 = vmatpush1.bf16.msra.mxu1 %v19639_v14  ;;  %15241 = vmatprep.subr.bf16.mxu0 %v19644_v27  ;;  %v19716_v14 = vld [vmem:[%s21012_s17 + $0xe44] ss:$16 sps:$4 sm:$0xff]   ;;  %v19719_v27 = vld [vmem:[%s21012_s17 + $0xe4c] ss:$16 sps:$4 sm:$0xff]  }
 0xec5   : > { %15585 = vmatprep.subr.bf16.mxu1 %v19647_v49  ;;  %v19717_v49 = vld [vmem:[%s21012_s17 + $0xe48] ss:$16 sps:$4 sm:$0xff]  }
 0xec7   : > { %15242 = vmatpush1.bf16.msra.mxu0 %v19642_v17  ;;  %v19722_v17 = vld [vmem:[%s21012_s17 + $0xe64] ss:$16 sps:$4 sm:$0xff]  }
 0xec8   : > { %15586 = vmatpush1.bf16.msra.mxu1 %v19645_v42  ;;  %15243 = vmatprep.subr.bf16.mxu0 %v19650_v47  ;;  %v19725_v42 = vld [vmem:[%s21012_s17 + $0xe6c] ss:$16 sps:$4 sm:$0xff]   ;;  %v19723_v47 = vld [vmem:[%s21012_s17 + $0xe68] ss:$16 sps:$4 sm:$0xff]  }
 0xec9   : > { %15587 = vmatprep.subr.bf16.mxu1 %v19653_v44  ;;  %v19728_v44 = vld [vmem:[%s21012_s17 + $0xe84] ss:$16 sps:$4 sm:$0xff]  }
 0xecb   : > { %15244 = vmatpush1.bf16.msra.mxu0 %v19648_v53  ;;  %v19731_v53 = vld [vmem:[%s21012_s17 + $0xe8c] ss:$16 sps:$4 sm:$0xff]  }
 0xecc   : > { %15588 = vmatpush1.bf16.msra.mxu1 %v19651_v38  ;;  %15245 = vmatprep.subr.bf16.mxu0 %v19656_v37  ;;  %v19726_v38 = vld [vmem:[%s21012_s17 + $0xe80] ss:$16 sps:$4 sm:$0xff]   ;;  %v19729_v37 = vld [vmem:[%s21012_s17 + $0xe88] ss:$16 sps:$4 sm:$0xff]  }
 0xecd   : > { %15589 = vmatprep.subr.bf16.mxu1 %v19659_v25  ;;  %v19734_v25 = vld [vmem:[%s21012_s17 + $0xea4] ss:$16 sps:$4 sm:$0xff]  }
 0xecf   : > { %15246 = vmatpush1.bf16.msra.mxu0 %v19654_v28  ;;  %v19737_v28 = vld [vmem:[%s21012_s17 + $0xeac] ss:$16 sps:$4 sm:$0xff]  }
 0xed0   : > { %15590 = vmatpush1.bf16.msra.mxu1 %v19657_v35  ;;  %15247 = vmatprep.subr.bf16.mxu0 %v19662_v54  ;;  %v19732_v35 = vld [vmem:[%s21012_s17 + $0xea0] ss:$16 sps:$4 sm:$0xff]   ;;  %v19735_v54 = vld [vmem:[%s21012_s17 + $0xea8] ss:$16 sps:$4 sm:$0xff]  }
 0xed1   : > { %15591 = vmatprep.subr.bf16.mxu1 %v19665_v63  ;;  %v19740_v63 = vld [vmem:[%s21012_s17 + $0xec4] ss:$16 sps:$4 sm:$0xff]  }
 0xed3   : > { %15248 = vmatpush1.bf16.msra.mxu0 %v19660_v52  ;;  %v19743_v52 = vld [vmem:[%s21012_s17 + $0xecc] ss:$16 sps:$4 sm:$0xff]  }
 0xed4   : > { %15592 = vmatpush1.bf16.msra.mxu1 %v19663_v40  ;;  %15249 = vmatprep.subr.bf16.mxu0 %v19668_v30  ;;  %v19738_v40 = vld [vmem:[%s21012_s17 + $0xec0] ss:$16 sps:$4 sm:$0xff]   ;;  %v19741_v30 = vld [vmem:[%s21012_s17 + $0xec8] ss:$16 sps:$4 sm:$0xff]  }
 0xed5   : > { %15593 = vmatprep.subr.bf16.mxu1 %v19671_v34  ;;  %v19746_v34 = vld [vmem:[%s21012_s17 + $0xee4] ss:$16 sps:$4 sm:$0xff]  }
 0xed7   : > { %15250 = vmatpush1.bf16.msra.mxu0 %v19666_v24  ;;  %v19749_v24 = vld [vmem:[%s21012_s17 + $0xeec] ss:$16 sps:$4 sm:$0xff]  }
 0xed8   : > { %15594 = vmatpush1.bf16.msra.mxu1 %v19669_v9  ;;  %15251 = vmatprep.subr.bf16.mxu0 %v19674_v11  ;;  %v19744_v9 = vld [vmem:[%s21012_s17 + $0xee0] ss:$16 sps:$4 sm:$0xff]   ;;  %v19747_v11 = vld [vmem:[%s21012_s17 + $0xee8] ss:$16 sps:$4 sm:$0xff]  }
 0xed9   : > { %15595 = vmatprep.subr.bf16.mxu1 %v19677_v23  ;;  %v19752_v23 = vld [vmem:[%s21012_s17 + $0xf04] ss:$16 sps:$4 sm:$0xff]  }
 0xedb   : > { %15252 = vmatpush1.bf16.msra.mxu0 %v19672_v59  ;;  %v19755_v59 = vld [vmem:[%s21012_s17 + $0xf0c] ss:$16 sps:$4 sm:$0xff]  }
 0xedc   : > { %15596 = vmatpush1.bf16.msra.mxu1 %v19675_v7  ;;  %15253 = vmatprep.subr.bf16.mxu0 %v19680_v4  ;;  %v19750_v7 = vld [vmem:[%s21012_s17 + $0xf00] ss:$16 sps:$4 sm:$0xff]   ;;  %v19753_v4 = vld [vmem:[%s21012_s17 + $0xf08] ss:$16 sps:$4 sm:$0xff]  }
 0xedd   : > { %15597 = vmatprep.subr.bf16.mxu1 %v19683_v19  ;;  %v19758_v19 = vld [vmem:[%s21012_s17 + $0xf24] ss:$16 sps:$4 sm:$0xff]  }
 0xedf   : > { %15254 = vmatpush1.bf16.msra.mxu0 %v19678_v61  ;;  %v19761_v61 = vld [vmem:[%s21012_s17 + $0xf2c] ss:$16 sps:$4 sm:$0xff]  }
 0xee0   : > { %15598 = vmatpush1.bf16.msra.mxu1 %v19681_v26  ;;  %15255 = vmatprep.subr.bf16.mxu0 %v19686_v46  ;;  %v19756_v26 = vld [vmem:[%s21012_s17 + $0xf20] ss:$16 sps:$4 sm:$0xff]   ;;  %v19759_v46 = vld [vmem:[%s21012_s17 + $0xf28] ss:$16 sps:$4 sm:$0xff]  }
 0xee1   : > { %15599 = vmatprep.subr.bf16.mxu1 %v19689_v32  ;;  %v19764_v32 = vld [vmem:[%s21012_s17 + $0xf44] ss:$16 sps:$4 sm:$0xff]  }
 0xee3   : > { %15256 = vmatpush1.bf16.msra.mxu0 %v19684_v16  ;;  %v19767_v16 = vld [vmem:[%s21012_s17 + $0xf4c] ss:$16 sps:$4 sm:$0xff]  }
 0xee4   : > { %15600 = vmatpush1.bf16.msra.mxu1 %v19687_v57  ;;  %15257 = vmatprep.subr.bf16.mxu0 %v19692_v51  ;;  %v19762_v57 = vld [vmem:[%s21012_s17 + $0xf40] ss:$16 sps:$4 sm:$0xff]   ;;  %v19765_v51 = vld [vmem:[%s21012_s17 + $0xf48] ss:$16 sps:$4 sm:$0xff]  }
 0xee5   : > { %15601 = vmatprep.subr.bf16.mxu1 %v19695_v62  ;;  %v19770_v62 = vld [vmem:[%s21012_s17 + $0xf64] ss:$16 sps:$4 sm:$0xff]  }
 0xee7   : > { %15258 = vmatpush1.bf16.msra.mxu0 %v19690_v3  ;;  %v19773_v3 = vld [vmem:[%s21012_s17 + $0xf6c] ss:$16 sps:$4 sm:$0xff]  }
 0xee8   : > { %15602 = vmatpush1.bf16.msra.mxu1 %v19693_v5  ;;  %15259 = vmatprep.subr.bf16.mxu0 %v19698_v48  ;;  %v19768_v5 = vld [vmem:[%s21012_s17 + $0xf60] ss:$16 sps:$4 sm:$0xff]   ;;  %v19771_v48 = vld [vmem:[%s21012_s17 + $0xf68] ss:$16 sps:$4 sm:$0xff]  }
 0xee9   : > { %15603 = vmatprep.subr.bf16.mxu1 %v19701_v50  ;;  %v19776_v50 = vld [vmem:[%s21012_s17 + $0xf84] ss:$16 sps:$4 sm:$0xff]  }
 0xeeb   : > { %15260 = vmatpush1.bf16.msra.mxu0 %v19696_v18  ;;  %v19779_v18 = vld [vmem:[%s21012_s17 + $0xf8c] ss:$16 sps:$4 sm:$0xff]  }
 0xeec   : > { %15604 = vmatpush1.bf16.msra.mxu1 %v19699_v41  ;;  %15272 = vmatprep.subr.bf16.mxu0 %v19704_v12  ;;  %v19774_v41 = vld [vmem:[%s21012_s17 + $0xf80] ss:$16 sps:$4 sm:$0xff]   ;;  %v19777_v12 = vld [vmem:[%s21012_s17 + $0xf88] ss:$16 sps:$4 sm:$0xff]  }
 0xeed   : > { %15616 = vmatprep.subr.bf16.mxu1 %v19707_v60  ;;  %v19782_v60 = vld [vmem:[%s21012_s17 + $0xfa4] ss:$16 sps:$4 sm:$0xff]  }
 0xeee   : > { %15262 = vmatmul.mubr.bf16.vlgmr.msra.gmra.mrb[64].mxu0 %v23372_v20 }
 0xeef   : > { %15606 = vmatmul.mubr.bf16.vlgmr.msra.gmra.mrb[64].mxu1 %v23372_v20  ;;  %15273 = vmatpush1.bf16.msra.mxu0 %v19702_v55  ;;  %v19714_v20 = vld [vmem:[%s21012_s17 + $0xe40] ss:$16 sps:$4 sm:$0xff]   ;;  %v19785_v55 = vld [vmem:[%s21012_s17 + $0xfac] ss:$16 sps:$4 sm:$0xff]  }
 0xef0   : > { %15304 = vmatprep.mubr.bf16.mxu0 %v23382_v33  ;;  %15617 = vmatpush1.bf16.msra.mxu1 %v19705_v31  ;;  %v19780_v31 = vld [vmem:[%s21012_s17 + $0xfa0] ss:$16 sps:$4 sm:$0xff]  }
 0xef1   : > { %15648 = vmatprep.mubr.bf16.mxu1 %v23382_v33  ;;  %15274 = vmatprep.subr.bf16.mxu0 %v19710_v39  ;;  %v19720_v33 = vld [vmem:[%s21012_s17 + $0xe60] ss:$16 sps:$4 sm:$0xff]   ;;  %v19783_v39 = vld [vmem:[%s21012_s17 + $0xfa8] ss:$16 sps:$4 sm:$0xff]  }
 0xef2   : > { %15618 = vmatprep.subr.bf16.mxu1 %v19713_v43  ;;  %v19788_v43 = vld [vmem:[%s21012_s17 + $0xfc4] ss:$16 sps:$4 sm:$0xff]  }
 0xef3   : > { %15275 = vmatpush1.bf16.msra.mxu0 %v19708_v1  ;;  %v19791_v1 = vld [vmem:[%s21012_s17 + $0xfcc] ss:$16 sps:$4 sm:$0xff]  }
 0xef4   : > { %15619 = vmatpush1.bf16.msra.mxu1 %v19711_v8  ;;  %15276 = vmatprep.subr.bf16.mxu0 %v19716_v14  ;;  %v19786_v8 = vld [vmem:[%s21012_s17 + $0xfc0] ss:$16 sps:$4 sm:$0xff]   ;;  %v19789_v14 = vld [vmem:[%s21012_s17 + $0xfc8] ss:$16 sps:$4 sm:$0xff]  }
 0xef5   : > { %15620 = vmatprep.subr.bf16.mxu1 %v19719_v27  ;;  %v19794_v27 = vld [vmem:[%s21012_s17 + $0xfe4] ss:$16 sps:$4 sm:$0xff]  }
 0xef7   : > { %15277 = vmatpush1.bf16.msra.mxu0 %v19714_v20  ;;  %v19797_v20 = vld [vmem:[%s21012_s17 + $0xfec] ss:$16 sps:$4 sm:$0xff]  }
 0xef8   : > { %15621 = vmatpush1.bf16.msra.mxu1 %v19717_v49  ;;  %15278 = vmatprep.subr.bf16.mxu0 %v19722_v17  ;;  %v19792_v49 = vld [vmem:[%s21012_s17 + $0xfe0] ss:$16 sps:$4 sm:$0xff]   ;;  %v19795_v17 = vld [vmem:[%s21012_s17 + $0xfe8] ss:$16 sps:$4 sm:$0xff]  }
 0xef9   : > { %15622 = vmatprep.subr.bf16.mxu1 %v19725_v42  ;;  %v12389_v42 = vld [vmem:[%s824_s28] sm:$0xf] }
 0xefb   : > { %15279 = vmatpush1.bf16.msra.mxu0 %v19720_v33  ;;  %v12394_v33 = vrot.slane %v12389_v42, %v21514_v56 }
 0xefc   : > { %15623 = vmatpush1.bf16.msra.mxu1 %v19723_v47  ;;  %15280 = vmatprep.subr.bf16.mxu0 %v19728_v44  ;;  %v12402_v47 = vrot.slane %v12389_v42, %v21530_v6  ;;  %v12398_v44 = vrot.slane %v12389_v42, %v21519_v10 }
 0xefd   : > { %15624 = vmatprep.subr.bf16.mxu1 %v19731_v53 }
 0xeff   : > { %15281 = vmatpush1.bf16.msra.mxu0 %v19726_v38  ;;  %v12406_v38 = vrot.slane %v12389_v42, %v21553_v21 }
 0xf00   : > { %15625 = vmatpush1.bf16.msra.mxu1 %v19729_v37  ;;  %15282 = vmatprep.subr.bf16.mxu0 %v19734_v25 }
 0xf01   : > { %15626 = vmatprep.subr.bf16.mxu1 %v19737_v28 }
 0xf03   : > { %15283 = vmatpush1.bf16.msra.mxu0 %v19732_v35 }
 0xf04   : > { %15627 = vmatpush1.bf16.msra.mxu1 %v19735_v54  ;;  %15284 = vmatprep.subr.bf16.mxu0 %v19740_v63 }
 0xf05   : > { %15628 = vmatprep.subr.bf16.mxu1 %v19743_v52 }
 0xf07   : > { %15285 = vmatpush1.bf16.msra.mxu0 %v19738_v40 }
 0xf08   : > { %15629 = vmatpush1.bf16.msra.mxu1 %v19741_v30  ;;  %15286 = vmatprep.subr.bf16.mxu0 %v19746_v34 }
 0xf09   : > { %15630 = vmatprep.subr.bf16.mxu1 %v19749_v24 }
 0xf0b   : > { %15287 = vmatpush1.bf16.msra.mxu0 %v19744_v9 }
 0xf0c   : > { %15631 = vmatpush1.bf16.msra.mxu1 %v19747_v11  ;;  %15288 = vmatprep.subr.bf16.mxu0 %v19752_v23 }
 0xf0d   : > { %15632 = vmatprep.subr.bf16.mxu1 %v19755_v59 }
 0xf0f   : > { %15289 = vmatpush1.bf16.msra.mxu0 %v19750_v7 }
 0xf10   : > { %15633 = vmatpush1.bf16.msra.mxu1 %v19753_v4  ;;  %15290 = vmatprep.subr.bf16.mxu0 %v19758_v19 }
 0xf11   : > { %15634 = vmatprep.subr.bf16.mxu1 %v19761_v61 }
 0xf13   : > { %15291 = vmatpush1.bf16.msra.mxu0 %v19756_v26 }
 0xf14   : > { %15635 = vmatpush1.bf16.msra.mxu1 %v19759_v46  ;;  %15292 = vmatprep.subr.bf16.mxu0 %v19764_v32 }
 0xf15   : > { %15636 = vmatprep.subr.bf16.mxu1 %v19767_v16 }
 0xf17   : > { %15293 = vmatpush1.bf16.msra.mxu0 %v19762_v57 }
 0xf18   : > { %15637 = vmatpush1.bf16.msra.mxu1 %v19765_v51  ;;  %15294 = vmatprep.subr.bf16.mxu0 %v19770_v62 }
 0xf19   : > { %15638 = vmatprep.subr.bf16.mxu1 %v19773_v3 }
 0xf1b   : > { %15295 = vmatpush1.bf16.msra.mxu0 %v19768_v5 }
 0xf1c   : > { %15639 = vmatpush1.bf16.msra.mxu1 %v19771_v48  ;;  %15296 = vmatprep.subr.bf16.mxu0 %v19776_v50 }
 0xf1d   : > { %15640 = vmatprep.subr.bf16.mxu1 %v19779_v18 }
 0xf1f   : > { %15297 = vmatpush1.bf16.msra.mxu0 %v19774_v41 }
 0xf20   : > { %15641 = vmatpush1.bf16.msra.mxu1 %v19777_v12  ;;  %15298 = vmatprep.subr.bf16.mxu0 %v19782_v60 }
 0xf21   : > { %15642 = vmatprep.subr.bf16.mxu1 %v19785_v55 }
 0xf23   : > { %15299 = vmatpush1.bf16.msra.mxu0 %v19780_v31 }
 0xf24   : > { %15643 = vmatpush1.bf16.msra.mxu1 %v19783_v39  ;;  %15300 = vmatprep.subr.bf16.mxu0 %v19788_v43 }
 0xf25   : > { %15644 = vmatprep.subr.bf16.mxu1 %v19791_v1 }
 0xf27   : > { %15301 = vmatpush1.bf16.msra.mxu0 %v19786_v8 }
 0xf28   : > { %15645 = vmatpush1.bf16.msra.mxu1 %v19789_v14  ;;  %15302 = vmatprep.subr.bf16.mxu0 %v19794_v27 }
 0xf29   : > { %15646 = vmatprep.subr.bf16.mxu1 %v19797_v20 }
 0xf2b   : > { %15303 = vmatpush1.bf16.msra.mxu0 %v19792_v49 }
 0xf2c   : > { %15647 = vmatpush1.bf16.msra.mxu1 %v19795_v17 }
 0xf2e   : > { %15305 = vmatmul.mubr.bf16.vlgmr.msra.gmra.mrb[64].mxu0 %v23375_v29 }
 0xf2f   : > { %15649 = vmatmul.mubr.bf16.vlgmr.msra.gmra.mrb[64].mxu1 %v23375_v29 }
0x1001   : > { %v15306_v53 = vpop.f32.mrb[64].mxu0 }
0x1002   : > { %v18000_v37 = vadd.f32 %v15306_v53, %v12394_v33  ;;  %v15650_v25 = vpop.f32.mrb[64].mxu1  ;;  %v15308_v28 = vpop.f32.mrb[65].mxu0 }
0x1003   : > { %v18004_v35 = vadd.f32 %v15650_v25, %v12402_v47  ;;  %v18001_v54 = vadd.f32 %v15308_v28, %v12398_v44  ;;  %v15652_v63 = vpop.f32.mrb[65].mxu1  ;;  %v15310_v52 = vpop.f32.mrb[66].mxu0  ;;  %v15667_v25 = vld [vmem:[%s23840_s20] sm:$0xf]  ;;  %v15668_v28 = vld [vmem:[%s23841_s22] sm:$0xf] }
0x1004   : > { %v15659_v29 = vadd.f32 %v18000_v37, %v22379_v0  ;;  %v18002_v40 = vadd.f32 %v15310_v52, %v12394_v33  ;;  %v15654_v30 = vpop.f32.mrb[66].mxu1  ;;  %v15312_v34 = vpop.f32.mrb[67].mxu0  ;;  %v18005_v9 = vadd.f32 %v15652_v63, %v12406_v38  ;;  %v15733_v63 = vrot.slane %v15667_v25, %v21530_v6 }
0x1005   : > { %v15660_v24 = vadd.f32 %v18001_v54, %v22375_v45  ;;  %v18006_v11 = vadd.f32 %v15654_v30, %v12402_v47  ;;  %v18003_v23 = vadd.f32 %v15312_v34, %v12398_v44  ;;  %v15656_v59 = vpop.f32.mrb[67].mxu1  ;;  %v15661_v4 = vadd.f32 %v18004_v35, %v22372_v2 }
0x1006   : > { %v15663_v7 = vadd.f32 %v18002_v40, %v22381_v22  ;;  %v18007_v26 = vadd.f32 %v15656_v59, %v12406_v38  ;;  %v15662_v46 = vadd.f32 %v18005_v9, %v22399_v13  ;;  %v15725_v35 = vrot.slane %v15667_v25, %v21514_v56 }
0x1007   : > { %v15669_v19 = vadd.f32 %v15660_v24, %v15659_v29  ;;  %v15664_v61 = vadd.f32 %v18003_v23, %v22377_v58  ;;  %v15665_v0 = vadd.f32 %v18006_v11, %v22389_v15  ;;  %v15729_v54 = vrot.slane %v15667_v25, %v21519_v10 }
0x1008   : > { %v15666_v45 = vadd.f32 %v18007_v26, %v22384_v36  ;;  %v15737_v52 = vrot.slane %v15667_v25, %v21553_v21  ;;  %v15754_v40 = vrot.slane %v15668_v28, %v21514_v56  ;;  %v15758_v30 = vrot.slane %v15668_v28, %v21519_v10 }
0x1009   : > { %v15674_v32 = vadd.f32 %v15664_v61, %v15663_v7  ;;  %v15670_v16 = vadd.f32 %v15669_v19, %v15661_v4  ;;  %v15762_v34 = vrot.slane %v15668_v28, %v21530_v6 }
0x100b   : > { %v15671_v57 = vadd.f32 %v15670_v16, %v15662_v46  ;;  %v15675_v51 = vadd.f32 %v15674_v32, %v15665_v0 }
0x100d   : > { %15672 = vadd.xlane.f32.xlu1 %v15671_v57  ;;  %v15676_v62 = vadd.f32 %v15675_v51, %v15666_v45 }
0x100f   : > { %15677 = vadd.xlane.f32.xlu0 %v15676_v62 }
0x109a   : > { %v15673_v22 = vpop.xlane.xlu1 %15672 }
0x109b   : > { %v15679_v3 = vmul.f32 0.001953125, %v15673_v22 }
0x109c   : > { %v15678_v2 = vpop.xlane.xlu0 %15677 }
0x109d   : > { %v15681_v5 = vsub.f32 %v15659_v29, %v15679_v3  ;;  %v15682_v48 = vsub.f32 %v15660_v24, %v15679_v3  ;;  %v15680_v58 = vmul.f32 0.001953125, %v15678_v2  ;;  %v15683_v50 = vsub.f32 %v15661_v4, %v15679_v3 }
0x109e   : > { %v15684_v18 = vsub.f32 %v15662_v46, %v15679_v3  ;;  %v15766_v24 = vrot.slane %v15668_v28, %v21553_v21 }
0x109f   : > { %v15685_v13 = vsub.f32 %v15663_v7, %v15680_v58  ;;  %v15686_v41 = vsub.f32 %v15664_v61, %v15680_v58  ;;  %v15689_v15 = vmul.f32 %v15681_v5, %v15681_v5  ;;  %v15690_v12 = vmul.f32 %v15682_v48, %v15682_v48 }
0x10a0   : > { %v15691_v60 = vmul.f32 %v15683_v50, %v15683_v50  ;;  %v15687_v55 = vsub.f32 %v15665_v0, %v15680_v58  ;;  %v15688_v31 = vsub.f32 %v15666_v45, %v15680_v58  ;;  %v15692_v1 = vmul.f32 %v15684_v18, %v15684_v18 }
0x10a1   : > { %v15697_v36 = vadd.f32 %v15690_v12, %v15689_v15  ;;  %v15693_v39 = vmul.f32 %v15685_v13, %v15685_v13  ;;  %v15694_v43 = vmul.f32 %v15686_v41, %v15686_v41 }
0x10a2   : > { %v15695_v14 = vmul.f32 %v15687_v55, %v15687_v55  ;;  %v15696_v49 = vmul.f32 %v15688_v31, %v15688_v31 }
0x10a3   : > { %v15698_v8 = vadd.f32 %v15697_v36, %v15691_v60  ;;  %v15702_v27 = vadd.f32 %v15694_v43, %v15693_v39 }
0x10a5   : > { %v15699_v20 = vadd.f32 %v15698_v8, %v15692_v1  ;;  %v15703_v17 = vadd.f32 %v15702_v27, %v15695_v14 }
0x10a7   : > { %15700 = vadd.xlane.f32.xlu1 %v15699_v20  ;;  %v15704_v42 = vadd.f32 %v15703_v17, %v15696_v49 }
0x10a9   : > { %15705 = vadd.xlane.f32.xlu0 %v15704_v42 }
0x1134   : > { %v15701_v33 = vpop.xlane.xlu1 %15700 }
0x1135   : > { %v15707_v47 = vmul.f32 0.001953125, %v15701_v33 }
0x1136   : > { %v15706_v44 = vpop.xlane.xlu0 %15705 }
0x1137   : > { %v15709_v53 = vadd.f32 1e-12, %v15707_v47  ;;  %v15708_v38 = vmul.f32 0.001953125, %v15706_v44 }
0x1139   : > { %19930 = vrsqrt.f32 %v15709_v53  ;;  %v15710_v37 = vadd.f32 1e-12, %v15708_v38 }
0x113b   : > { %19932 = vrsqrt.f32 %v15710_v37 }
0x1143   : > { %v19931_v29 = vpop.eup %19930 }
0x1144   : > { %v15713_v9 = vmul.f32 %v19931_v29, %v15681_v5  ;;  %v15714_v11 = vmul.f32 %v19931_v29, %v15682_v48  ;;  %v15715_v23 = vmul.f32 %v19931_v29, %v15683_v50  ;;  %v15716_v59 = vmul.f32 %v19931_v29, %v15684_v18 }
0x1145   : > { %v19933_v7 = vpop.eup %19932 }
0x1146   : > { %v15742_v4 = vmul.f32 %v15725_v35, %v15713_v9  ;;  %v15743_v19 = vmul.f32 %v15729_v54, %v15714_v11  ;;  %v15744_v61 = vmul.f32 %v15733_v63, %v15715_v23  ;;  %v15745_v26 = vmul.f32 %v15737_v52, %v15716_v59 }
0x1147   : > { %v15717_v46 = vmul.f32 %v19933_v7, %v15685_v13  ;;  %v15718_v0 = vmul.f32 %v19933_v7, %v15686_v41  ;;  %v15719_v32 = vmul.f32 %v19933_v7, %v15687_v55  ;;  %v15720_v16 = vmul.f32 %v19933_v7, %v15688_v31 }
0x1148   : > { %v15771_v56 = vadd.f32 %v15754_v40, %v15742_v4  ;;  %v15772_v45 = vadd.f32 %v15758_v30, %v15743_v19  ;;  %v15773_v10 = vadd.f32 %v15762_v34, %v15744_v61  ;;  %v15774_v57 = vadd.f32 %v15766_v24, %v15745_v26 }
0x1149   : > { %v15746_v6 = vmul.f32 %v15725_v35, %v15717_v46  ;;  %v15747_v51 = vmul.f32 %v15729_v54, %v15718_v0  ;;  %v15748_v21 = vmul.f32 %v15733_v63, %v15719_v32  ;;  %v15749_v62 = vmul.f32 %v15737_v52, %v15720_v16 }
0x114a   : > { %15779 = vst [vmem:[%s23836_s0] sm:$0xff] %v15771_v56  ;;  %15780 = vst [vmem:[%s23836_s0 + $0x8] sm:$0xff] %v15772_v45 }
0x114b   : > { %15781 = vst [vmem:[%s23836_s0 + $0x10] sm:$0xff] %v15773_v10  ;;  %15782 = vst [vmem:[%s23836_s0 + $0x18] sm:$0xff] %v15774_v57  ;;  %v15775_v22 = vadd.f32 %v15754_v40, %v15746_v6  ;;  %v15776_v3 = vadd.f32 %v15758_v30, %v15747_v51  ;;  %v15777_v2 = vadd.f32 %v15762_v34, %v15748_v21 }
0x114c   : > { %v15778_v5 = vadd.f32 %v15766_v24, %v15749_v62 }
0x114d   : > { %15783 = vst [vmem:[%s23836_s0 + $0x20] sm:$0xff] %v15775_v22  ;;  %15784 = vst [vmem:[%s23836_s0 + $0x28] sm:$0xff] %v15776_v3 }
0x114e   : > { %15785 = vst [vmem:[%s23836_s0 + $0x30] sm:$0xff] %v15777_v2  ;;  %15786 = vst [vmem:[%s23836_s0 + $0x38] sm:$0xff] %v15778_v5 }
0x114f PF: > { %s23842_s24 = sld [smem:[#allocation26_spill]]  ;;  %s23843_s21 = sld [smem:[#allocation23_spill]] }
0x1150   : > { %s23844_s22 = sld [smem:[#allocation24_spill]]  ;;  %s23845_s23 = sld [smem:[#allocation27_spill]] }
0x1155   : > { %p25_p1 = scmp.ge.s32.totalorder %s23842_s24, 6  }
0x1157   :  { %27 = sbr.rel (!%p25_p1) target bundleno = 13 (0xd), region = 252 }
0x115e   :  { %15798 = vsyncpa [#allocation5], 1 }
0x115f   :  { %15800 = vsyncpa [#allocation5 + $0x1], 1 }
0x1160   :  { %15801 = vsyncpa [#allocation7], 1 }

</bundles_post_ra>
